<compile_context>
chip_gen: v7x
topology: tpu7x:2x2x1
jax: 0.10.0
libtpu: 0.0.40
codegen_flags: <defaults>
</compile_context>

<pallas_src>
import functools

import jax
import jax.numpy as jnp
from jax.experimental import pallas as pl
from jax.experimental.pallas import tpu as pltpu


# ----------------------------------------------------------------------------
# Pallas kernel: fused (TILE_M, K) @ (K, TILE_N) + bias (+ LeakyReLU / Tanh)
# bf16 operands, f32 MXU accumulation, f32 epilogue.
# ----------------------------------------------------------------------------
def _matmul_bias_act_kernel(x_ref, w_ref, b_ref, o_ref, *, activation):
    acc = jnp.dot(x_ref[...], w_ref[...], preferred_element_type=jnp.float32)
    acc = acc + b_ref[...]                      # bias (1, TILE_N) broadcasts over rows
    if activation == "leaky_relu":
        acc = jnp.where(acc > 0, acc, 0.2 * acc)
    elif activation == "tanh":
        acc = jnp.tanh(acc)
    o_ref[...] = acc.astype(o_ref.dtype)


def fused_matmul_bias_act(x, w, b, *, activation=None, out_dtype=jnp.float32,
                          tile_m=512, tile_n=512):
    """x:(M,K) @ w:(K,N) + b:(N,) -> (M,N), tiled over M and N (K kept whole)."""
    M, K = x.shape
    K2, N = w.shape
    assert K == K2 and b.shape == (N,), (x.shape, w.shape, b.shape)

    x = x.astype(jnp.bfloat16)
    w = w.astype(jnp.bfloat16)
    b = b.reshape(1, N).astype(jnp.float32)

    # Align the contraction dim to bf16 sublane packing.
    if K % 16:
        pad_k = 16 - K % 16
        x = jnp.pad(x, ((0, 0), (0, pad_k)))
        w = jnp.pad(w, ((0, pad_k), (0, 0)))
        K += pad_k

    # Pick tiles; pad M / N so every grid block is full (no partial tiles).
    tm = M if M <= tile_m else tile_m           # tile_m: multiple of 8
    tn = N if N <= tile_n else tile_n           # tile_n: multiple of 128
    Mp = pl.cdiv(M, tm) * tm
    Np = pl.cdiv(N, tn) * tn
    if Mp != M:
        x = jnp.pad(x, ((0, Mp - M), (0, 0)))
    if Np != N:
        w = jnp.pad(w, ((0, 0), (0, Np - N)))
        b = jnp.pad(b, ((0, 0), (0, Np - N)))

    kernel = functools.partial(_matmul_bias_act_kernel, activation=activation)
    out = pl.pallas_call(
        kernel,
        out_shape=jax.ShapeDtypeStruct((Mp, Np), out_dtype),
        grid=(Mp // tm, Np // tn),
        in_specs=[
            pl.BlockSpec((tm, K), lambda i, j: (i, 0)),
            pl.BlockSpec((K, tn), lambda i, j: (0, j)),   # invariant over M tiles
            pl.BlockSpec((1, tn), lambda i, j: (0, j)),   # bias not re-DMA'd per M tile
        ],
        out_specs=pl.BlockSpec((tm, tn), lambda i, j: (i, j)),
        compiler_params=pltpu.CompilerParams(
            dimension_semantics=("parallel", "parallel")),
    )(x, w, b)
    if Mp != M or Np != N:
        out = out[:M, :N]
    return out


# ----------------------------------------------------------------------------
# Glue: ConvTranspose2d(k=3, s=2, p=1, output_padding=1) as a stride-1 conv on
# the zero-dilated, padded input (NHWC throughout).
# ----------------------------------------------------------------------------
def _dilate_pad_nhwc(x, *, stride=2, padding=1, kernel=3, output_padding=1):
    B, H, W, C = x.shape
    Hd, Wd = (H - 1) * stride + 1, (W - 1) * stride + 1
    xd = jnp.zeros((B, Hd, Wd, C), x.dtype).at[:, ::stride, ::stride, :].set(x)
    lo = kernel - 1 - padding
    hi = kernel - 1 - padding + output_padding
    return jnp.pad(xd, ((0, 0), (lo, hi), (lo, hi), (0, 0)))


def _im2col_s1_nhwc(x, k=3):
    # TODO(synk): the 3x3 patch gather is XLA glue; fusing it into the Pallas
    # kernel (manual DMA over shifted windows) would remove the 9x-inflated
    # patches round-trip through HBM.
    B, H, W, C = x.shape
    Ho, Wo = H - k + 1, W - k + 1
    cols = [x[:, kh:kh + Ho, kw:kw + Wo, :] for kh in range(k) for kw in range(k)]
    patches = jnp.concatenate(cols, axis=-1)          # K order = (kh, kw, Cin)
    return patches.reshape(B * Ho * Wo, k * k * C), Ho, Wo


def conv_transpose2d_nhwc(x, w_t, b, *, activation, out_dtype, n_pad_to=None):
    """x:(B,H,W,Cin) NHWC; w_t: PyTorch ConvTranspose2d weight (Cin,Cout,3,3)."""
    B = x.shape[0]
    Cin, Cout, k, _ = w_t.shape
    patches, Ho, Wo = _im2col_s1_nhwc(_dilate_pad_nhwc(x), k=k)
    # Equivalent direct-conv weight: flip spatially, swap channel roles, then
    # flatten rows in the (kh, kw, Cin) order used by the im2col K axis.
    wm = jnp.transpose(w_t[:, :, ::-1, ::-1], (2, 3, 0, 1)).reshape(k * k * Cin, Cout)
    bm = b
    if n_pad_to is not None and Cout < n_pad_to:      # lane-dense output stores
        wm = jnp.pad(wm, ((0, 0), (0, n_pad_to - Cout)))
        bm = jnp.pad(bm, ((0, n_pad_to - Cout),))
    out = fused_matmul_bias_act(patches, wm, bm, activation=activation,
                                out_dtype=out_dtype, tile_m=512, tile_n=512)
    return out.reshape(B, Ho, Wo, -1)


def linear_leaky(zc, w, b):
    """PyTorch nn.Linear (weight (Dout, Din)) + LeakyReLU(0.2)."""
    return fused_matmul_bias_act(zc, w.T, b, activation="leaky_relu",
                                 out_dtype=jnp.bfloat16, tile_m=512, tile_n=1792)


# ----------------------------------------------------------------------------
# Generator forward pass (matches the PyTorch nn.Module).
# ----------------------------------------------------------------------------
def generator_forward(params, z, c):
    B = z.shape[0]
    img_channels = params["b3"].shape[0]
    zc = jnp.concatenate([z, c], axis=1)

    # initial: Linear(latent+classes -> 7*7*256) + LeakyReLU(0.2)
    h = linear_leaky(zc, params["w1"], params["b1"])                    # (B, 12544)

    # Unflatten(1, (256, 7, 7)); convert to NHWC once and stay NHWC.
    h = h.reshape(B, 256, 7, 7).transpose(0, 2, 3, 1)                   # (B, 7, 7, 256)

    # ConvTranspose2d(256 -> 128, 3, 2, 1, 1) + LeakyReLU(0.2)
    h = conv_transpose2d_nhwc(h, params["w2"], params["b2"],
                              activation="leaky_relu",
                              out_dtype=jnp.bfloat16)                   # (B, 14, 14, 128)

    # ConvTranspose2d(128 -> img_channels, 3, 2, 1, 1) + Tanh
    # (Cout padded to 128 lanes inside the matmul; real channels sliced out.)
    h = conv_transpose2d_nhwc(h, params["w3"], params["b3"],
                              activation="tanh", out_dtype=jnp.float32,
                              n_pad_to=128)                             # (B, 28, 28, 128)
    h = h[..., :img_channels]                                           # (B, 28, 28, C)
    return jnp.transpose(h, (0, 3, 1, 2))                               # NCHW output


# ----------------------------------------------------------------------------
# Pure-JAX f32 reference (for in-script validation only).
# ----------------------------------------------------------------------------
def generator_reference(params, z, c):
    x = jnp.concatenate([z, c], axis=1)
    h = jnp.dot(x, params["w1"].T, precision="highest") + params["b1"]
    h = jnp.where(h > 0, h, 0.2 * h)
    h = h.reshape(-1, 256, 7, 7)

    def convt(x_nchw, w_t, b):
        w_dir = jnp.transpose(w_t[:, :, ::-1, ::-1], (1, 0, 2, 3))       # (Cout,Cin,kh,kw)
        y = jax.lax.conv_general_dilated(
            x_nchw, w_dir, window_strides=(1, 1),
            padding=[(1, 2), (1, 2)], lhs_dilation=(2, 2),
            dimension_numbers=("NCHW", "OIHW", "NCHW"), precision="highest")
        return y + b.reshape(1, -1, 1, 1)

    h = convt(h, params["w2"], params["b2"])
    h = jnp.where(h > 0, h, 0.2 * h)
    h = convt(h, params["w3"], params["b3"])
    return jnp.tanh(h)


# ----------------------------------------------------------------------------
# Deterministic parameter init (PyTorch-default-style uniform).
# ----------------------------------------------------------------------------
def init_params(key, img_channels, latent_dim, num_classes):
    din = latent_dim + num_classes
    ks = jax.random.split(key, 6)

    def uniform(k, shape, fan_in):
        bound = 1.0 / jnp.sqrt(float(fan_in))
        return jax.random.uniform(k, shape, jnp.float32, -bound, bound)

    return {
        # nn.Linear(latent+classes, 7*7*256): weight (out, in), bias (out,)
        "w1": uniform(ks[0], (7 * 7 * 256, din), din),
        "b1": uniform(ks[1], (7 * 7 * 256,), din),
        # nn.ConvTranspose2d(256, 128, 3, 2, 1, 1): weight (Cin, Cout, 3, 3)
        "w2": uniform(ks[2], (256, 128, 3, 3), 256 * 9),
        "b2": uniform(ks[3], (128,), 256 * 9),
        # nn.ConvTranspose2d(128, img_channels, 3, 2, 1, 1)
        "w3": uniform(ks[4], (128, img_channels, 3, 3), 128 * 9),
        "b3": uniform(ks[5], (img_channels,), 128 * 9),
    }


if __name__ == "__main__":
    B = 2
    img_channels = 1
    latent_dim = 32
    num_classes = 10   # spatial path 7x7 -> 14x14 -> 28x28 is fixed by the module

    key = jax.random.PRNGKey(0)
    k_p, k_z, k_c = jax.random.split(key, 3)

    params = init_params(k_p, img_channels, latent_dim, num_classes)
    z = jax.random.normal(k_z, (B, latent_dim), jnp.float32)
    labels = jax.random.randint(k_c, (B,), 0, num_classes)
    c = jax.nn.one_hot(labels, num_classes, dtype=jnp.float32)

    fwd = jax.jit(generator_forward)
    out = jax.block_until_ready(fwd(params, z, c))
    assert out.shape == (B, img_channels, 28, 28), out.shape
    assert bool(jnp.all(jnp.isfinite(out)))

    ref = jax.block_until_ready(jax.jit(generator_reference)(params, z, c))
    assert bool(jnp.allclose(out, ref, atol=5e-2)), float(jnp.max(jnp.abs(out - ref)))

    print("KERNEL_OK")
</pallas_src>

<mosaic_0001>
module attributes {stable_mosaic.version = 11 : i64} {
  func.func @_matmul_bias_act_kernel(%arg0: i32, %arg1: i32, %arg2: memref<2x48xbf16, #tpu.memory_space<vmem>>, %arg3: memref<48x1792xbf16, #tpu.memory_space<vmem>>, %arg4: memref<1x1792xf32, #tpu.memory_space<vmem>>, %arg5: memref<2x1792xbf16, #tpu.memory_space<vmem>>) attributes {dimension_semantics = [#tpu.dimension_semantics<parallel>, #tpu.dimension_semantics<parallel>], iteration_bounds = array<i64: 1, 7>, scalar_prefetch = 0 : i64, scratch_operands = 0 : i64, tpu.core_type = #tpu.core_type<tc>, window_params = [{transform_indices = @transform_0, window_bounds = array<i64: 2, 48>}, {transform_indices = @transform_1, window_bounds = array<i64: 48, 1792>}, {transform_indices = @transform_2, window_bounds = array<i64: 1, 1792>}, {transform_indices = @transform_3, window_bounds = array<i64: 2, 1792>}]} {
    %c0 = arith.constant 0 : index
    %c0_0 = arith.constant 0 : index
    %0 = vector.load %arg2[%c0, %c0_0] : memref<2x48xbf16, #tpu.memory_space<vmem>>, vector<2x48xbf16>
    %c0_1 = arith.constant 0 : index
    %c0_2 = arith.constant 0 : index
    %1 = vector.load %arg3[%c0_1, %c0_2] : memref<48x1792xbf16, #tpu.memory_space<vmem>>, vector<48x1792xbf16>
    %cst = arith.constant dense<0.000000e+00> : vector<2x1792xf32>
    %2 = tpu.matmul %0, %1, %cst {dimension_numbers = #tpu.dot_dimension_numbers<[1], [0], [0], [1], [0, 0, 1, 1], [], []>} : vector<2x48xbf16>, vector<48x1792xbf16>, vector<2x1792xf32> -> vector<2x1792xf32>
    %c0_3 = arith.constant 0 : index
    %c0_4 = arith.constant 0 : index
    %3 = vector.load %arg4[%c0_3, %c0_4] : memref<1x1792xf32, #tpu.memory_space<vmem>>, vector<1x1792xf32>
    %4 = vector.broadcast %3 : vector<1x1792xf32> to vector<2x1792xf32>
    %5 = arith.addf %2, %4 : vector<2x1792xf32>
    %cst_5 = arith.constant 0.000000e+00 : f32
    %6 = vector.broadcast %cst_5 : f32 to vector<2x1792xf32>
    %7 = arith.cmpf ogt, %5, %6 : vector<2x1792xf32>
    %cst_6 = arith.constant 2.000000e-01 : f32
    %8 = vector.broadcast %cst_6 : f32 to vector<2x1792xf32>
    %9 = arith.mulf %8, %5 : vector<2x1792xf32>
    %10 = arith.select %7, %5, %9 : vector<2x1792xi1>, vector<2x1792xf32>
    %11 = arith.truncf %10 : vector<2x1792xf32> to vector<2x1792xbf16>
    %c0_7 = arith.constant 0 : index
    %c0_8 = arith.constant 0 : index
    %12 = vector.load %arg5[%c0_7, %c0_8] : memref<2x1792xbf16, #tpu.memory_space<vmem>>, vector<2x1792xbf16>
    tpu.vector_store %arg5[%c0_7, %c0_8], %11 {strides = array<i32>} : memref<2x1792xbf16, #tpu.memory_space<vmem>>, vector<2x1792xbf16>,
    return
  }
  func.func @transform_0(%arg0: i32, %arg1: i32) -> (i32, i32) {
    %c0_i32 = arith.constant 0 : i32
    %c0_i32_0 = arith.constant 0 : i32
    return %arg0, %c0_i32 : i32, i32
  }
  func.func @transform_1(%arg0: i32, %arg1: i32) -> (i32, i32) {
    %c0_i32 = arith.constant 0 : i32
    %c0_i32_0 = arith.constant 0 : i32
    return %c0_i32, %arg1 : i32, i32
  }
  func.func @transform_2(%arg0: i32, %arg1: i32) -> (i32, i32) {
    %c0_i32 = arith.constant 0 : i32
    %c0_i32_0 = arith.constant 0 : i32
    return %c0_i32, %arg1 : i32, i32
  }
  func.func @transform_3(%arg0: i32, %arg1: i32) -> (i32, i32) {
    %c0_i32 = arith.constant 0 : i32
    return %arg0, %arg1 : i32, i32
  }
}

module attributes {stable_mosaic.version = 11 : i64} {
  func.func @_matmul_bias_act_kernel(%arg0: i32, %arg1: i32, %arg2: memref<392x2304xbf16, #tpu.memory_space<vmem>>, %arg3: memref<2304x128xbf16, #tpu.memory_space<vmem>>, %arg4: memref<1x128xf32, #tpu.memory_space<vmem>>, %arg5: memref<392x128xbf16, #tpu.memory_space<vmem>>) attributes {dimension_semantics = [#tpu.dimension_semantics<parallel>, #tpu.dimension_semantics<parallel>], iteration_bounds = array<i64: 1, 1>, scalar_prefetch = 0 : i64, scratch_operands = 0 : i64, tpu.core_type = #tpu.core_type<tc>, window_params = [{transform_indices = @transform_0, window_bounds = array<i64: 392, 2304>}, {transform_indices = @transform_1, window_bounds = array<i64: 2304, 128>}, {transform_indices = @transform_2, window_bounds = array<i64: 1, 128>}, {transform_indices = @transform_3, window_bounds = array<i64: 392, 128>}]} {
    %c0 = arith.constant 0 : index
    %c0_0 = arith.constant 0 : index
    %0 = vector.load %arg2[%c0, %c0_0] : memref<392x2304xbf16, #tpu.memory_space<vmem>>, vector<392x2304xbf16>
    %c0_1 = arith.constant 0 : index
    %c0_2 = arith.constant 0 : index
    %1 = vector.load %arg3[%c0_1, %c0_2] : memref<2304x128xbf16, #tpu.memory_space<vmem>>, vector<2304x128xbf16>
    %cst = arith.constant dense<0.000000e+00> : vector<392x128xf32>
    %2 = tpu.matmul %0, %1, %cst {dimension_numbers = #tpu.dot_dimension_numbers<[1], [0], [0], [1], [0, 0, 1, 1], [], []>} : vector<392x2304xbf16>, vector<2304x128xbf16>, vector<392x128xf32> -> vector<392x128xf32>
    %c0_3 = arith.constant 0 : index
    %c0_4 = arith.constant 0 : index
    %3 = vector.load %arg4[%c0_3, %c0_4] : memref<1x128xf32, #tpu.memory_space<vmem>>, vector<1x128xf32>
    %4 = vector.broadcast %3 : vector<1x128xf32> to vector<392x128xf32>
    %5 = arith.addf %2, %4 : vector<392x128xf32>
    %cst_5 = arith.constant 0.000000e+00 : f32
    %6 = vector.broadcast %cst_5 : f32 to vector<392x128xf32>
    %7 = arith.cmpf ogt, %5, %6 : vector<392x128xf32>
    %cst_6 = arith.constant 2.000000e-01 : f32
    %8 = vector.broadcast %cst_6 : f32 to vector<392x128xf32>
    %9 = arith.mulf %8, %5 : vector<392x128xf32>
    %10 = arith.select %7, %5, %9 : vector<392x128xi1>, vector<392x128xf32>
    %11 = arith.truncf %10 : vector<392x128xf32> to vector<392x128xbf16>
    %c0_7 = arith.constant 0 : index
    %c0_8 = arith.constant 0 : index
    %12 = vector.load %arg5[%c0_7, %c0_8] : memref<392x128xbf16, #tpu.memory_space<vmem>>, vector<392x128xbf16>
    tpu.vector_store %arg5[%c0_7, %c0_8], %11 {strides = array<i32>} : memref<392x128xbf16, #tpu.memory_space<vmem>>, vector<392x128xbf16>,
    return
  }
  func.func @transform_0(%arg0: i32, %arg1: i32) -> (i32, i32) {
    %c0_i32 = arith.constant 0 : i32
    %c0_i32_0 = arith.constant 0 : i32
    return %arg0, %c0_i32 : i32, i32
  }
  func.func @transform_1(%arg0: i32, %arg1: i32) -> (i32, i32) {
    %c0_i32 = arith.constant 0 : i32
    %c0_i32_0 = arith.constant 0 : i32
    return %c0_i32, %arg1 : i32, i32
  }
  func.func @transform_2(%arg0: i32, %arg1: i32) -> (i32, i32) {
    %c0_i32 = arith.constant 0 : i32
    %c0_i32_0 = arith.constant 0 : i32
    return %c0_i32, %arg1 : i32, i32
  }
  func.func @transform_3(%arg0: i32, %arg1: i32) -> (i32, i32) {
    %c0_i32 = arith.constant 0 : i32
    return %arg0, %arg1 : i32, i32
  }
}

module attributes {stable_mosaic.version = 11 : i64} {
  func.func @_matmul_bias_act_kernel(%arg0: i32, %arg1: i32, %arg2: memref<512x1152xbf16, #tpu.memory_space<vmem>>, %arg3: memref<1152x128xbf16, #tpu.memory_space<vmem>>, %arg4: memref<1x128xf32, #tpu.memory_space<vmem>>, %arg5: memref<512x128xf32, #tpu.memory_space<vmem>>) attributes {dimension_semantics = [#tpu.dimension_semantics<parallel>, #tpu.dimension_semantics<parallel>], iteration_bounds = array<i64: 4, 1>, scalar_prefetch = 0 : i64, scratch_operands = 0 : i64, tpu.core_type = #tpu.core_type<tc>, window_params = [{transform_indices = @transform_0, window_bounds = array<i64: 512, 1152>}, {transform_indices = @transform_1, window_bounds = array<i64: 1152, 128>}, {transform_indices = @transform_2, window_bounds = array<i64: 1, 128>}, {transform_indices = @transform_3, window_bounds = array<i64: 512, 128>}]} {
    %c0 = arith.constant 0 : index
    %c0_0 = arith.constant 0 : index
    %0 = vector.load %arg2[%c0, %c0_0] : memref<512x1152xbf16, #tpu.memory_space<vmem>>, vector<512x1152xbf16>
    %c0_1 = arith.constant 0 : index
    %c0_2 = arith.constant 0 : index
    %1 = vector.load %arg3[%c0_1, %c0_2] : memref<1152x128xbf16, #tpu.memory_space<vmem>>, vector<1152x128xbf16>
    %cst = arith.constant dense<0.000000e+00> : vector<512x128xf32>
    %2 = tpu.matmul %0, %1, %cst {dimension_numbers = #tpu.dot_dimension_numbers<[1], [0], [0], [1], [0, 0, 1, 1], [], []>} : vector<512x1152xbf16>, vector<1152x128xbf16>, vector<512x128xf32> -> vector<512x128xf32>
    %c0_3 = arith.constant 0 : index
    %c0_4 = arith.constant 0 : index
    %3 = vector.load %arg4[%c0_3, %c0_4] : memref<1x128xf32, #tpu.memory_space<vmem>>, vector<1x128xf32>
    %4 = vector.broadcast %3 : vector<1x128xf32> to vector<512x128xf32>
    %5 = arith.addf %2, %4 : vector<512x128xf32>
    %6 = math.tanh %5 : vector<512x128xf32>
    %c0_5 = arith.constant 0 : index
    %c0_6 = arith.constant 0 : index
    %7 = vector.load %arg5[%c0_5, %c0_6] : memref<512x128xf32, #tpu.memory_space<vmem>>, vector<512x128xf32>
    tpu.vector_store %arg5[%c0_5, %c0_6], %6 {strides = array<i32>} : memref<512x128xf32, #tpu.memory_space<vmem>>, vector<512x128xf32>,
    return
  }
  func.func @transform_0(%arg0: i32, %arg1: i32) -> (i32, i32) {
    %c0_i32 = arith.constant 0 : i32
    %c0_i32_0 = arith.constant 0 : i32
    return %arg0, %c0_i32 : i32, i32
  }
  func.func @transform_1(%arg0: i32, %arg1: i32) -> (i32, i32) {
    %c0_i32 = arith.constant 0 : i32
    %c0_i32_0 = arith.constant 0 : i32
    return %c0_i32, %arg1 : i32, i32
  }
  func.func @transform_2(%arg0: i32, %arg1: i32) -> (i32, i32) {
    %c0_i32 = arith.constant 0 : i32
    %c0_i32_0 = arith.constant 0 : i32
    return %c0_i32, %arg1 : i32, i32
  }
  func.func @transform_3(%arg0: i32, %arg1: i32) -> (i32, i32) {
    %c0_i32 = arith.constant 0 : i32
    return %arg0, %arg1 : i32, i32
  }
}

</mosaic_0001>

<bundles_post_ra>
// kernel: generator_forward.3
= control target key start
LH: loop header
LB: loop body
LE: loop exit
PB: predicated region body
PF: predicated region fallthrough
CT: control target
= control target key end

     0   :  { %s1447_s12 = smov 0   ;;  %s1449_s13 = smov 0   ;;  %s1733_s0 = inlined_call_operand.vmem [shape: bf16[2,48], index: 0, kind: input, shape index: {}]   ;;  %s1734_s1 = inlined_call_operand.vmem [shape: bf16[48,12544], index: 1, kind: input, shape index: {}]   ;;  %s1735_s2 = inlined_call_operand.vmem [shape: f32[1,12544], index: 2, kind: input, shape index: {}]   ;;  %s1736_s3 = inlined_call_operand.vmem [shape: bf16[2,12544], index: 3, kind: output, shape index: {}]  }
   0x1   :  { %s1451_s14 = smov 0   ;;  %s1453_s15 = smov 0  }
   0x2   :  { %s1455_s16 = smov 0  }
   0x3 LB: > { %s22_s17 = sadd.s32 1, %s1419_s15  ;;  %p65_p1 = scmp.ne.s32.totalorder %s1411_s13, %s1407_s12  ;;  %s1423_s16 = sphi %s1455_s16, %s13_s16   ;;  %s1419_s15 = sphi %s1453_s15, %s1740_s15   ;;  %s1415_s14 = sphi %s1451_s14, %s1739_s14   ;;  %s1411_s13 = sphi %s1449_s13, %s1738_s13   ;;  %s1407_s12 = sphi %s1447_s12, %s1737_s12  }
   0x4   : > { %p23_p0 = scmp.ge.s32.totalorder %s22_s17, 7  ;;  %p66_p2 = scmp.eq.s32.totalorder %s1423_s16, 0 }
   0x5   : > { %s58_s19 = sadd.s32 1, %s1411_s13  ;;  %p1216_p5 = scmp.ge.s32.totalorder %s1423_s16, 7 }
   0x6   : > { %s1742_s17 = smov (%p23_p0, %s22_s17), 0  ;;  %p67_p3 = por %p66_p2, %p65_p1 }
   0x7   : > { %s55_s18 = ssub.s32 %s1419_s15, %s1742_s17  ;;  %151 = sbr.rel (%p1216_p5) target bundleno = 40 (0x28), region = 20 }
   0x8   : > { %p56_p4 = scmp.eq.s32.totalorder %s55_s18, 0 }
   0xa   : > { %s1482_s20 = scalar_select %p56_p4, %s1411_s13, %s58_s19  }
   0xe   : > { %154 = sbr.rel (!%p67_p3) target bundleno = 40 (0x28), region = 24  ;;  %s156_s21 = sand.u32 (%p67_p3), 1, %s1411_s13  }
   0xf   : > { %s1277_s22 = smul.u32 (%p67_p3), 56, %s1419_s15 }
  0x10   : > { %s1278_s23 = smul.u32 (%p67_p3), 336, %s156_s21 }
  0x11   : > { %s1490_s26 = scalar_lea.vmem (%p67_p3), %s1734_s1, %s1277_s22 }
  0x12   : > { %v174_v0 = vld [vmem:[%s1490_s26] sm:$0xff] (%p67_p3)  ;;  %v176_v1 = vld [vmem:[%s1490_s26 + $0x8] sm:$0xff] (%p67_p3)  ;;  %v178_v2 = vld [vmem:[%s1490_s26 + $0x10] sm:$0xff] (%p67_p3)  ;;  %s1495_s27 = scalar_lea.vmem (%p67_p3), [#allocation2], %s1278_s23 }
  0x13   : > { %175 = vst [vmem:[%s1495_s27] sm:$0xff] (%p67_p3), %v174_v0  ;;  %177 = vst [vmem:[%s1495_s27 + $0x8] sm:$0xff] (%p67_p3), %v176_v1  ;;  %v180_v3 = vld [vmem:[%s1490_s26 + $0x18] sm:$0xff] (%p67_p3)  ;;  %v182_v4 = vld [vmem:[%s1490_s26 + $0x20] sm:$0xff] (%p67_p3) }
  0x14   : > { %179 = vst [vmem:[%s1495_s27 + $0x10] sm:$0xff] (%p67_p3), %v178_v2  ;;  %v184_v5 = vld [vmem:[%s1490_s26 + $0x28] sm:$0xff] (%p67_p3)  ;;  %181 = vst [vmem:[%s1495_s27 + $0x18] sm:$0xff] (%p67_p3), %v180_v3  ;;  %v186_v6 = vld [vmem:[%s1490_s26 + $0x30] sm:$0xff] (%p67_p3) }
  0x15   : > { %183 = vst [vmem:[%s1495_s27 + $0x20] sm:$0xff] %v182_v4  ;;  %185 = vst [vmem:[%s1495_s27 + $0x28] sm:$0xff] %v184_v5  ;;  %v188_v7 = vld [vmem:[%s1490_s26 + $0x188] sm:$0xff]  ;;  %v190_v8 = vld [vmem:[%s1490_s26 + $0x190] sm:$0xff] }
  0x16   : > { %187 = vst [vmem:[%s1495_s27 + $0x30] sm:$0xff] %v186_v6  ;;  %189 = vst [vmem:[%s1495_s27 + $0x38] sm:$0xff] %v188_v7  ;;  %v192_v9 = vld [vmem:[%s1490_s26 + $0x198] sm:$0xff]  ;;  %v194_v10 = vld [vmem:[%s1490_s26 + $0x1a0] sm:$0xff] }
  0x17   : > { %191 = vst [vmem:[%s1495_s27 + $0x40] sm:$0xff] %v190_v8  ;;  %v196_v11 = vld [vmem:[%s1490_s26 + $0x1a8] sm:$0xff]  ;;  %193 = vst [vmem:[%s1495_s27 + $0x48] sm:$0xff] %v192_v9  ;;  %v198_v12 = vld [vmem:[%s1490_s26 + $0x1b0] sm:$0xff] }
  0x18   : > { %195 = vst [vmem:[%s1495_s27 + $0x50] sm:$0xff] %v194_v10  ;;  %197 = vst [vmem:[%s1495_s27 + $0x58] sm:$0xff] %v196_v11  ;;  %v200_v13 = vld [vmem:[%s1490_s26 + $0x1b8] sm:$0xff]  ;;  %v202_v14 = vld [vmem:[%s1490_s26 + $0x310] sm:$0xff] }
  0x19   : > { %199 = vst [vmem:[%s1495_s27 + $0x60] sm:$0xff] %v198_v12  ;;  %201 = vst [vmem:[%s1495_s27 + $0x68] sm:$0xff] %v200_v13  ;;  %v204_v15 = vld [vmem:[%s1490_s26 + $0x318] sm:$0xff]  ;;  %v206_v16 = vld [vmem:[%s1490_s26 + $0x320] sm:$0xff] }
  0x1a   : > { %203 = vst [vmem:[%s1495_s27 + $0x70] sm:$0xff] %v202_v14  ;;  %v208_v17 = vld [vmem:[%s1490_s26 + $0x328] sm:$0xff]  ;;  %205 = vst [vmem:[%s1495_s27 + $0x78] sm:$0xff] %v204_v15  ;;  %v210_v18 = vld [vmem:[%s1490_s26 + $0x330] sm:$0xff] }
  0x1b   : > { %207 = vst [vmem:[%s1495_s27 + $0x80] sm:$0xff] %v206_v16  ;;  %209 = vst [vmem:[%s1495_s27 + $0x88] sm:$0xff] %v208_v17  ;;  %v212_v19 = vld [vmem:[%s1490_s26 + $0x338] sm:$0xff]  ;;  %v214_v20 = vld [vmem:[%s1490_s26 + $0x340] sm:$0xff] }
  0x1c   : > { %211 = vst [vmem:[%s1495_s27 + $0x90] sm:$0xff] %v210_v18  ;;  %213 = vst [vmem:[%s1495_s27 + $0x98] sm:$0xff] %v212_v19  ;;  %v216_v21 = vld [vmem:[%s1490_s26 + $0x498] sm:$0xff]  ;;  %v218_v22 = vld [vmem:[%s1490_s26 + $0x4a0] sm:$0xff] }
  0x1d   : > { %215 = vst [vmem:[%s1495_s27 + $0xa0] sm:$0xff] %v214_v20  ;;  %v220_v23 = vld [vmem:[%s1490_s26 + $0x4a8] sm:$0xff]  ;;  %217 = vst [vmem:[%s1495_s27 + $0xa8] sm:$0xff] %v216_v21  ;;  %v222_v24 = vld [vmem:[%s1490_s26 + $0x4b0] sm:$0xff] }
  0x1e   : > { %219 = vst [vmem:[%s1495_s27 + $0xb0] sm:$0xff] %v218_v22  ;;  %221 = vst [vmem:[%s1495_s27 + $0xb8] sm:$0xff] %v220_v23  ;;  %v224_v25 = vld [vmem:[%s1490_s26 + $0x4b8] sm:$0xff]  ;;  %v226_v26 = vld [vmem:[%s1490_s26 + $0x4c0] sm:$0xff] }
  0x1f   : > { %223 = vst [vmem:[%s1495_s27 + $0xc0] sm:$0xff] %v222_v24  ;;  %225 = vst [vmem:[%s1495_s27 + $0xc8] sm:$0xff] %v224_v25  ;;  %v228_v27 = vld [vmem:[%s1490_s26 + $0x4c8] sm:$0xff]  ;;  %v230_v28 = vld [vmem:[%s1490_s26 + $0x620] sm:$0xff] }
  0x20   : > { %227 = vst [vmem:[%s1495_s27 + $0xd0] sm:$0xff] %v226_v26  ;;  %v232_v29 = vld [vmem:[%s1490_s26 + $0x628] sm:$0xff]  ;;  %229 = vst [vmem:[%s1495_s27 + $0xd8] sm:$0xff] %v228_v27  ;;  %v234_v30 = vld [vmem:[%s1490_s26 + $0x630] sm:$0xff] }
  0x21   : > { %231 = vst [vmem:[%s1495_s27 + $0xe0] sm:$0xff] %v230_v28  ;;  %233 = vst [vmem:[%s1495_s27 + $0xe8] sm:$0xff] %v232_v29  ;;  %v236_v31 = vld [vmem:[%s1490_s26 + $0x638] sm:$0xff]  ;;  %v238_v32 = vld [vmem:[%s1490_s26 + $0x640] sm:$0xff] }
  0x22   : > { %235 = vst [vmem:[%s1495_s27 + $0xf0] sm:$0xff] %v234_v30  ;;  %237 = vst [vmem:[%s1495_s27 + $0xf8] sm:$0xff] %v236_v31  ;;  %v240_v33 = vld [vmem:[%s1490_s26 + $0x648] sm:$0xff]  ;;  %v242_v34 = vld [vmem:[%s1490_s26 + $0x650] sm:$0xff] }
  0x23   : > { %239 = vst [vmem:[%s1495_s27 + $0x100] sm:$0xff] %v238_v32  ;;  %v244_v35 = vld [vmem:[%s1490_s26 + $0x7a8] sm:$0xff]  ;;  %241 = vst [vmem:[%s1495_s27 + $0x108] sm:$0xff] %v240_v33  ;;  %v246_v36 = vld [vmem:[%s1490_s26 + $0x7b0] sm:$0xff] }
  0x24   : > { %243 = vst [vmem:[%s1495_s27 + $0x110] sm:$0xff] %v242_v34  ;;  %245 = vst [vmem:[%s1495_s27 + $0x118] sm:$0xff] %v244_v35  ;;  %v248_v37 = vld [vmem:[%s1490_s26 + $0x7b8] sm:$0xff]  ;;  %v250_v38 = vld [vmem:[%s1490_s26 + $0x7c0] sm:$0xff] }
  0x25   : > { %247 = vst [vmem:[%s1495_s27 + $0x120] sm:$0xff] %v246_v36  ;;  %249 = vst [vmem:[%s1495_s27 + $0x128] sm:$0xff] %v248_v37  ;;  %v252_v39 = vld [vmem:[%s1490_s26 + $0x7c8] sm:$0xff]  ;;  %v254_v40 = vld [vmem:[%s1490_s26 + $0x7d0] sm:$0xff] }
  0x26   : > { %251 = vst [vmem:[%s1495_s27 + $0x130] sm:$0xff] %v250_v38  ;;  %v256_v41 = vld [vmem:[%s1490_s26 + $0x7d8] sm:$0xff]  ;;  %253 = vst [vmem:[%s1495_s27 + $0x138] sm:$0xff] %v252_v39 }
  0x27   : > { %255 = vst [vmem:[%s1495_s27 + $0x140] sm:$0xff] %v254_v40  ;;  %257 = vst [vmem:[%s1495_s27 + $0x148] sm:$0xff] %v256_v41 }
  0x28 PF: > { %p1218_p6 = scmp.ge.s32.totalorder %s1423_s16, 1  ;;  %p270_p7 = scmp.lt.s32.totalorder %s1423_s16, 8 }
  0x2a   : > { %p271_p8 = pnand %p1218_p6, %p270_p7 }
  0x2b   : > { %s277_s28 = sand.u32 (!%p271_p8), 1, %s1407_s12   ;;  %v1425_v42 = vmov (!%p271_p8), 0   ;;  %v1601_v56 = vld [vmem:[%s1733_s0] sm:$0x1] (!%p271_p8)  ;;  %vm656_vm0 = vcmask (!%p271_p8), 392192   ;;  %s314_s6 = smul.u32 (!%p271_p8), 14, %s1415_s14  ;;  %v376_v22 = vlaneseq (!%p271_p8) }
  0x2c   : > { %274 = sbr.rel (%p271_p8) target bundleno = 324 (0x144), region = 51  ;;  %692 = vmatprep.mubr.bf16.mxu0 (!%p271_p8), %v1425_v42  ;;  %733 = vmatprep.mubr.bf16.mxu1 (!%p271_p8), %v1425_v42  ;;  %v1426_v28 = vmov (!%p271_p8), 1966171168  }
  0x2d   : > { %s1279_s29 = smul.u32 (!%p271_p8), 336, %s277_s28  ;;  %p315_p9 = scmp.lt.s32.totalorder (!%p271_p8), %s314_s6, 97  ;;  %v1654_v23 = vshrl.u32 (!%p271_p8), %v376_v22, 7  ;;  %v1022_v29 = vunpack.c.l.s4 (!%p271_p8), %v1426_v28 }
  0x2f   : > { %s1583_s30 = scalar_lea.vmem (!%p271_p8), [#allocation2], %s1279_s29  ;;  %v378_v24 = vsub.s32 (!%p271_p8), 0, %v1654_v23  ;;  %v386_v25 = vsub.s32 (!%p271_p8), 2, %v1654_v23  ;;  %v382_v27 = vsub.s32 (!%p271_p8), 1, %v1654_v23  ;;  %v390_v30 = vsub.s32 (!%p271_p8), 3, %v1654_v23 }
  0x30   : > { %v1322_v43 = vld [vmem:[%s1583_s30 + $0x4] ss:$56 sps:$4 sm:$0xff] (!%p271_p8)   ;;  %v1326_v45 = vld [vmem:[%s1583_s30] ss:$56 sps:$4 sm:$0xff] (!%p271_p8)   ;;  %v1328_v47 = vld [vmem:[%s1583_s30 + $0x74] ss:$56 sps:$4 sm:$0xff] (!%p271_p8)   ;;  %v1023_v34 = vunpack.c.0.s8 (!%p271_p8), %v1022_v29 }
  0x31   : > { %v1324_v44 = vld [vmem:[%s1583_s30 + $0xc] ss:$56 sps:$4 sm:$0xff] (!%p271_p8)   ;;  %660 = vmatprep.subr.bf16.mxu0 (!%p271_p8), %v1322_v43  ;;  %v1327_v46 = vld [vmem:[%s1583_s30 + $0x8] ss:$56 sps:$4 sm:$0xff] (!%p271_p8)   ;;  %v1330_v48 = vld [vmem:[%s1583_s30 + $0x7c] ss:$56 sps:$4 sm:$0xff] (!%p271_p8)  }
  0x32   : > { %701 = vmatprep.subr.bf16.mxu1 (!%p271_p8), %v1324_v44  ;;  %661 = vmatpush1.bf16.msra.mxu0 (!%p271_p8), %v1326_v45  ;;  %v1332_v49 = vld [vmem:[%s1583_s30 + $0x70] ss:$56 sps:$4 sm:$0xff] (!%p271_p8)   ;;  %v1334_v51 = vld [vmem:[%s1583_s30 + $0xe4] ss:$56 sps:$4 sm:$0xff] (!%p271_p8)   ;;  %v1338_v53 = vld [vmem:[%s1583_s30 + $0xe0] ss:$56 sps:$4 sm:$0xff] (!%p271_p8)   ;;  %v1676_v43 = vsub.s32 (!%p271_p8), %v1023_v34, %v1654_v23 }
  0x33   : > { %702 = vmatpush1.bf16.msra.mxu1 %v1327_v46  ;;  %662 = vmatprep.subr.bf16.mxu0 %v1328_v47  ;;  %v1333_v50 = vld [vmem:[%s1583_s30 + $0x78] ss:$56 sps:$4 sm:$0xff]   ;;  %v1336_v52 = vld [vmem:[%s1583_s30 + $0xec] ss:$56 sps:$4 sm:$0xff]   ;;  %v1339_v54 = vld [vmem:[%s1583_s30 + $0xe8] ss:$56 sps:$4 sm:$0xff]  }
  0x34   : > { %703 = vmatprep.subr.bf16.mxu1 %v1330_v48  ;;  %v1342_v55 = vld [vmem:[%s1583_s30 + $0x14] ss:$56 sps:$4 sm:$0xff]   ;;  %v1340_v58 = vld [vmem:[%s1583_s30 + $0x10] ss:$56 sps:$4 sm:$0xff]   ;;  %v1348_v60 = vld [vmem:[%s1583_s30 + $0x84] ss:$56 sps:$4 sm:$0xff]  }
  0x35   : > { %v1345_v57 = vld [vmem:[%s1583_s30 + $0x1c] ss:$56 sps:$4 sm:$0xff]   ;;  %v1343_v59 = vld [vmem:[%s1583_s30 + $0x18] ss:$56 sps:$4 sm:$0xff]   ;;  %v1351_v61 = vld [vmem:[%s1583_s30 + $0x8c] ss:$56 sps:$4 sm:$0xff]  }
  0x36   : > { %663 = vmatpush1.bf16.msra.mxu0 %v1332_v49  ;;  %v1346_v62 = vld [vmem:[%s1583_s30 + $0x80] ss:$56 sps:$4 sm:$0xff]   ;;  %v1354_v0 = vld [vmem:[%s1583_s30 + $0xf4] ss:$56 sps:$4 sm:$0xff]   ;;  %v1352_v2 = vld [vmem:[%s1583_s30 + $0xf0] ss:$56 sps:$4 sm:$0xff]  }
  0x37   : > { %704 = vmatpush1.bf16.msra.mxu1 %v1333_v50  ;;  %664 = vmatprep.subr.bf16.mxu0 %v1334_v51  ;;  %v1349_v63 = vld [vmem:[%s1583_s30 + $0x88] ss:$56 sps:$4 sm:$0xff]   ;;  %v1357_v1 = vld [vmem:[%s1583_s30 + $0xfc] ss:$56 sps:$4 sm:$0xff]   ;;  %v1355_v3 = vld [vmem:[%s1583_s30 + $0xf8] ss:$56 sps:$4 sm:$0xff]  }
  0x38   : > { %705 = vmatprep.subr.bf16.mxu1 %v1336_v52  ;;  %v1360_v4 = vld [vmem:[%s1583_s30 + $0x24] ss:$56 sps:$4 sm:$0xff]   ;;  %v1358_v6 = vld [vmem:[%s1583_s30 + $0x20] ss:$56 sps:$4 sm:$0xff]   ;;  %v1366_v8 = vld [vmem:[%s1583_s30 + $0x94] ss:$56 sps:$4 sm:$0xff]  }
  0x39   : > { %v1363_v5 = vld [vmem:[%s1583_s30 + $0x2c] ss:$56 sps:$4 sm:$0xff]   ;;  %v1361_v7 = vld [vmem:[%s1583_s30 + $0x28] ss:$56 sps:$4 sm:$0xff]   ;;  %v1369_v9 = vld [vmem:[%s1583_s30 + $0x9c] ss:$56 sps:$4 sm:$0xff]  }
  0x3a   : > { %665 = vmatpush1.bf16.msra.mxu0 %v1338_v53  ;;  %v1364_v10 = vld [vmem:[%s1583_s30 + $0x90] ss:$56 sps:$4 sm:$0xff]   ;;  %v1372_v12 = vld [vmem:[%s1583_s30 + $0x104] ss:$56 sps:$4 sm:$0xff]   ;;  %v1370_v14 = vld [vmem:[%s1583_s30 + $0x100] ss:$56 sps:$4 sm:$0xff]  }
  0x3b   : > { %706 = vmatpush1.bf16.msra.mxu1 %v1339_v54  ;;  %742 = vmatprep.subr.bf16.mxu0 %v1342_v55  ;;  %v1367_v11 = vld [vmem:[%s1583_s30 + $0x98] ss:$56 sps:$4 sm:$0xff]   ;;  %v1375_v13 = vld [vmem:[%s1583_s30 + $0x10c] ss:$56 sps:$4 sm:$0xff]   ;;  %v1373_v15 = vld [vmem:[%s1583_s30 + $0x108] ss:$56 sps:$4 sm:$0xff]  }
  0x3c   : > { %783 = vmatprep.subr.bf16.mxu1 %v1345_v57  ;;  %v1378_v16 = vld [vmem:[%s1583_s30 + $0x34] ss:$56 sps:$4 sm:$0xff]   ;;  %v1376_v17 = vld [vmem:[%s1583_s30 + $0x30] ss:$56 sps:$4 sm:$0xff]   ;;  %v1381_v18 = vld [vmem:[%s1583_s30 + $0xa4] ss:$56 sps:$4 sm:$0xff]  }
  0x3d   : > { %1261 = vmatmul.mubr.msk.bf16.vlgmr.msra.gmra.mrb[0].mxu0 %vm656_vm0, %v1601_v56  ;;  %v1379_v19 = vld [vmem:[%s1583_s30 + $0xa0] ss:$56 sps:$4 sm:$0xff]   ;;  %v1384_v20 = vld [vmem:[%s1583_s30 + $0x114] ss:$56 sps:$4 sm:$0xff]   ;;  %v1382_v21 = vld [vmem:[%s1583_s30 + $0x110] ss:$56 sps:$4 sm:$0xff]  }
  0x3e   : > { %1262 = vmatmul.mubr.msk.bf16.vlgmr.msra.gmra.mrb[0].mxu1 %vm656_vm0, %v1601_v56  ;;  %743 = vmatpush1.bf16.msra.mxu0 %v1340_v58  ;;  %s1744_s6 = smov (!%p315_p9, %s314_s6), 97  ;;  %v394_v55 = vsub.s32 4, %v1654_v23 }
  0x3f   : > { %784 = vmatpush1.bf16.msra.mxu1 %v1343_v59  ;;  %744 = vmatprep.subr.bf16.mxu0 %v1348_v60  ;;  %s1660_s9 = scalar_lea.vmem %s1735_s2, %s1744_s6  ;;  %v398_v59 = vsub.s32 5, %v1654_v23  ;;  %v406_v60 = vsub.s32 7, %v1654_v23  ;;  %s1705_s12 = scalar_lea.vmem %s1736_s3, %s1744_s6 }
  0x40   : > { %785 = vmatprep.subr.bf16.mxu1 %v1351_v61  ;;  %774 = vmatprep.mubr.bf16.mxu0 %v1425_v42  ;;  %v372_v26 = vld [vmem:[%s1660_s9] sm:$0xff] }
  0x41   : > { %815 = vmatprep.mubr.bf16.mxu1 %v1425_v42  ;;  %v379_v31 = vrot.slane %v372_v26, %v378_v24  ;;  %v387_v32 = vrot.slane %v372_v26, %v386_v25  ;;  %v383_v33 = vrot.slane %v372_v26, %v382_v27  ;;  %v391_v35 = vrot.slane %v372_v26, %v390_v30 }
  0x42   : > { %745 = vmatpush1.bf16.msra.mxu0 %v1346_v62 }
  0x43   : > { %786 = vmatpush1.bf16.msra.mxu1 %v1349_v63  ;;  %746 = vmatprep.subr.bf16.mxu0 %v1354_v0 }
  0x44   : > { %787 = vmatprep.subr.bf16.mxu1 %v1357_v1  ;;  %v395_v1 = vrot.slane %v372_v26, %v394_v55 }
  0x46   : > { %747 = vmatpush1.bf16.msra.mxu0 %v1352_v2 }
  0x47   : > { %788 = vmatpush1.bf16.msra.mxu1 %v1355_v3  ;;  %824 = vmatprep.subr.bf16.mxu0 %v1360_v4  ;;  %v399_v3 = vrot.slane %v372_v26, %v398_v59  ;;  %v407_v4 = vrot.slane %v372_v26, %v406_v60 }
  0x48   : > { %865 = vmatprep.subr.bf16.mxu1 %v1363_v5 }
  0x49   : > { %1263 = vmatmul.mubr.msk.bf16.vlgmr.msra.gmra.mrb[4].mxu0 %vm656_vm0, %v1601_v56 }
  0x4a   : > { %1264 = vmatmul.mubr.msk.bf16.vlgmr.msra.gmra.mrb[4].mxu1 %vm656_vm0, %v1601_v56  ;;  %825 = vmatpush1.bf16.msra.mxu0 %v1358_v6 }
  0x4b   : > { %866 = vmatpush1.bf16.msra.mxu1 %v1361_v7  ;;  %826 = vmatprep.subr.bf16.mxu0 %v1366_v8 }
  0x4c   : > { %867 = vmatprep.subr.bf16.mxu1 %v1369_v9  ;;  %856 = vmatprep.mubr.bf16.mxu0 %v1425_v42 }
  0x4d   : > { %897 = vmatprep.mubr.bf16.mxu1 %v1425_v42 }
  0x4e   : > { %827 = vmatpush1.bf16.msra.mxu0 %v1364_v10 }
  0x4f   : > { %868 = vmatpush1.bf16.msra.mxu1 %v1367_v11  ;;  %828 = vmatprep.subr.bf16.mxu0 %v1372_v12 }
  0x50   : > { %869 = vmatprep.subr.bf16.mxu1 %v1375_v13 }
  0x52   : > { %829 = vmatpush1.bf16.msra.mxu0 %v1370_v14 }
  0x53   : > { %870 = vmatpush1.bf16.msra.mxu1 %v1373_v15  ;;  %906 = vmatprep.subr.bf16.mxu0 %v1378_v16 }
  0x55   : > { %1265 = vmatmul.mubr.msk.bf16.vlgmr.msra.gmra.mrb[8].mxu0 %vm656_vm0, %v1601_v56 }
  0x56   : > { %1266 = vmatmul.mubr.msk.bf16.vlgmr.msra.gmra.mrb[8].mxu1 %vm656_vm0, %v1601_v56  ;;  %907 = vmatpush1.bf16.msra.mxu0 %v1376_v17 }
  0x57   : > { %938 = vmatprep.mubr.bf16.mxu0 %v1425_v42  ;;  %908 = vmatprep.subr.bf16.mxu0 %v1381_v18 }
  0x5a   : > { %909 = vmatpush1.bf16.msra.mxu0 %v1379_v19 }
  0x5b   : > { %910 = vmatprep.subr.bf16.mxu0 %v1384_v20 }
  0x5e   : > { %911 = vmatpush1.bf16.msra.mxu0 %v1382_v21 }
  0x61   : > { %1267 = vmatmul.mubr.msk.bf16.vlgmr.msra.gmra.mrb[12].mxu0 %vm656_vm0, %v1601_v56  ;;  %v402_v56 = vsub.s32 6, %v1654_v23 }
  0x63   : > { %v403_v2 = vrot.slane %v372_v26, %v402_v56 }
 0x110   : > { %v694_v36 = vpop.f32.mrb[0].mxu0 }
 0x111   : > { %v735_v37 = vpop.f32.mrb[0].mxu1  ;;  %v695_v38 = vadd.f32 %v694_v36, %v379_v31  ;;  %v696_v40 = vpop.f32.mrb[1].mxu0  ;;  %v373_v31 = vld [vmem:[%s1660_s9 + $0x8] sm:$0x3f] }
 0x112   : > { %v736_v39 = vadd.f32 %v735_v37, %v387_v32  ;;  %v737_v41 = vpop.f32.mrb[1].mxu1  ;;  %v697_v42 = vadd.f32 %v696_v40, %v383_v33  ;;  %v698_v45 = vpop.f32.mrb[2].mxu0  ;;  %v411_v36 = vrot.slane %v373_v31, %v378_v24  ;;  %v419_v37 = vrot.slane %v373_v31, %v386_v25 }
 0x113   : > { %v738_v44 = vadd.f32 %v737_v41, %v391_v35  ;;  %v739_v46 = vpop.f32.mrb[2].mxu1  ;;  %vm947_vm1 = vcmp.gt.f32.partialorder %v695_v38, 0.0  ;;  %v961_v47 = vmul.f32 0.2, %v695_v38  ;;  %v699_v53 = vpop.f32.mrb[3].mxu0 }
 0x114   : > { %vm949_vm2 = vcmp.gt.f32.partialorder %v736_v39, 0.0  ;;  %v963_v48 = vmul.f32 0.2, %v736_v39  ;;  %vm948_vm3 = vcmp.gt.f32.partialorder %v697_v42, 0.0  ;;  %v962_v49 = vmul.f32 0.2, %v697_v42 }
 0x115   : > { %vm950_vm4 = vcmp.gt.f32.partialorder %v738_v44, 0.0  ;;  %v964_v50 = vmul.f32 0.2, %v738_v44  ;;  %v975_v51 = vsel %vm947_vm1, %v695_v38, %v961_v47  ;;  %v740_v54 = vpop.f32.mrb[3].mxu1  ;;  %v415_v38 = vrot.slane %v373_v31, %v382_v27 }
 0x116   : > { %v977_v52 = vsel %vm949_vm2, %v736_v39, %v963_v48  ;;  %v976_v57 = vsel %vm948_vm3, %v697_v42, %v962_v49  ;;  %v423_v39 = vrot.slane %v373_v31, %v390_v30 }
 0x117   : > { %v978_v58 = vsel %vm950_vm4, %v738_v44, %v964_v50  ;;  %v1268_v61 = vpack.c.bf16 %v976_v57, %v975_v51 }
 0x118   : > { %v1269_v62 = vpack.c.bf16 %v978_v58, %v977_v52 }
 0x119   : > { %v1027_v63 = vrot.slane %v1268_v61, %v1676_v43 }
 0x11a   : > { %v1034_v0 = vrot.slane %v1269_v62, %v1676_v43 }
 0x11c   : > { %v1049_v5 = vcombine.low %v1027_v63, %v1034_v0  ;;  %v776_v6 = vpop.f32.mrb[4].mxu0 }
 0x11d   : > { %v817_v7 = vpop.f32.mrb[4].mxu1  ;;  %v777_v8 = vadd.f32 %v776_v6, %v395_v1  ;;  %v778_v10 = vpop.f32.mrb[5].mxu0 }
 0x11e   : > { %v818_v9 = vadd.f32 %v817_v7, %v403_v2  ;;  %v819_v11 = vpop.f32.mrb[5].mxu1  ;;  %v779_v12 = vadd.f32 %v778_v10, %v399_v3  ;;  %v780_v14 = vpop.f32.mrb[6].mxu0  ;;  %v1057_v44 = vrot.slane %v1049_v5, %v1676_v43  ;;  %v427_v2 = vrot.slane %v373_v31, %v394_v55 }
 0x11f   : > { %v820_v13 = vadd.f32 %v819_v11, %v407_v4  ;;  %v821_v15 = vpop.f32.mrb[6].mxu1  ;;  %vm951_vm5 = vcmp.gt.f32.partialorder %v777_v8, 0.0  ;;  %v965_v16 = vmul.f32 0.2, %v777_v8  ;;  %v781_v22 = vpop.f32.mrb[7].mxu0  ;;  %v431_v4 = vrot.slane %v373_v31, %v398_v59 }
 0x120   : > { %vm953_vm6 = vcmp.gt.f32.partialorder %v818_v9, 0.0  ;;  %v967_v17 = vmul.f32 0.2, %v818_v9  ;;  %vm952_vm7 = vcmp.gt.f32.partialorder %v779_v12, 0.0  ;;  %v966_v18 = vmul.f32 0.2, %v779_v12 }
 0x121   : > { %vm954_vm8 = vcmp.gt.f32.partialorder %v820_v13, 0.0  ;;  %v968_v19 = vmul.f32 0.2, %v820_v13  ;;  %v979_v20 = vsel %vm951_vm5, %v777_v8, %v965_v16  ;;  %v822_v26 = vpop.f32.mrb[7].mxu1 }
 0x122   : > { %v981_v21 = vsel %vm953_vm6, %v818_v9, %v967_v17  ;;  %v980_v28 = vsel %vm952_vm7, %v779_v12, %v966_v18 }
 0x123   : > { %v982_v29 = vsel %vm954_vm8, %v820_v13, %v968_v19  ;;  %v1270_v32 = vpack.c.bf16 %v980_v28, %v979_v20 }
 0x124   : > { %v1271_v33 = vpack.c.bf16 %v982_v29, %v981_v21 }
 0x125   : > { %v1041_v34 = vrot.slane %v1270_v32, %v1676_v43 }
 0x126   : > { %v1048_v35 = vrot.slane %v1271_v33, %v1676_v43 }
 0x128   : > { %v1050_v40 = vcombine.low %v1041_v34, %v1048_v35  ;;  %v858_v41 = vpop.f32.mrb[8].mxu0 }
 0x129   : > { %v899_v42 = vpop.f32.mrb[8].mxu1  ;;  %v859_v46 = vadd.f32 %v858_v41, %v411_v36  ;;  %v860_v24 = vpop.f32.mrb[9].mxu0 }
 0x12a   : > { %v1064_v45 = vrot.slane %v1050_v40, %v1676_v43  ;;  %v900_v47 = vadd.f32 %v899_v42, %v419_v37  ;;  %v901_v48 = vpop.f32.mrb[9].mxu1  ;;  %v861_v49 = vadd.f32 %v860_v24, %v415_v38  ;;  %v862_v50 = vpop.f32.mrb[10].mxu0 }
 0x12b   : > { %v902_v25 = vadd.f32 %v901_v48, %v423_v39  ;;  %v903_v51 = vpop.f32.mrb[10].mxu1  ;;  %vm955_vm9 = vcmp.gt.f32.partialorder %v859_v46, 0.0  ;;  %v969_v30 = vmul.f32 0.2, %v859_v46  ;;  %v863_v52 = vpop.f32.mrb[11].mxu0 }
 0x12c   : > { %v1065_v27 = vcombine.low %v1057_v44, %v1064_v45  ;;  %vm957_vm10 = vcmp.gt.f32.partialorder %v900_v47, 0.0  ;;  %v904_v53 = vpop.f32.mrb[11].mxu1  ;;  %v971_v54 = vmul.f32 0.2, %v900_v47  ;;  %vm956_vm11 = vcmp.gt.f32.partialorder %v861_v49, 0.0 }
 0x12d   : > { %v970_v56 = vmul.f32 0.2, %v861_v49  ;;  %vm958_vm12 = vcmp.gt.f32.partialorder %v902_v25, 0.0  ;;  %v983_v57 = vsel %vm955_vm9, %v859_v46, %v969_v30  ;;  %v972_v58 = vmul.f32 0.2, %v902_v25 }
 0x12e   : > { %1108 = vst [vmem:[%s1705_s12] sm:$0xff] %v1065_v27  ;;  %v985_v60 = vsel %vm957_vm10, %v900_v47, %v971_v54 }
 0x12f   : > { %v984_v61 = vsel %vm956_vm11, %v861_v49, %v970_v56  ;;  %v986_v63 = vsel %vm958_vm12, %v902_v25, %v972_v58 }
 0x130   : > { %v1272_v62 = vpack.c.bf16 %v984_v61, %v983_v57  ;;  %v1273_v0 = vpack.c.bf16 %v986_v63, %v985_v60 }
 0x132   : > { %v1075_v1 = vrot.slane %v1272_v62, %v1676_v43  ;;  %v1082_v3 = vrot.slane %v1273_v0, %v1676_v43 }
 0x134   : > { %v1090_v5 = vcombine.low %v1075_v1, %v1082_v3  ;;  %v940_v6 = vpop.f32.mrb[12].mxu0 }
 0x135   : > { %v941_v7 = vadd.f32 %v940_v6, %v427_v2  ;;  %v942_v8 = vpop.f32.mrb[13].mxu0 }
 0x136   : > { %v943_v9 = vadd.f32 %v942_v8, %v431_v4  ;;  %v944_v10 = vpop.f32.mrb[14].mxu0  ;;  %v1097_v23 = vrot.slane %v1090_v5, %v1676_v43 }
 0x137   : > { %vm959_vm13 = vcmp.gt.f32.partialorder %v941_v7, 0.0  ;;  %v973_v11 = vmul.f32 0.2, %v941_v7  ;;  %v945_v12 = vpop.f32.mrb[15].mxu0 }
 0x138   : > { %vm960_vm14 = vcmp.gt.f32.partialorder %v943_v9, 0.0  ;;  %v974_v13 = vmul.f32 0.2, %v943_v9 }
 0x139   : > { %v987_v14 = vsel %vm959_vm13, %v941_v7, %v973_v11 }
 0x13a   : > { %v988_v15 = vsel %vm960_vm14, %v943_v9, %v974_v13 }
 0x13b   : > { %v1274_v55 = vpack.c.bf16 %v988_v15, %v987_v14 }
 0x13d   : > { %v1089_v16 = vrot.slane %v1274_v55, %v1676_v43 }
 0x13f   : > { %v1104_v59 = vrot.slane %v1089_v16, %v1676_v43 }
 0x141   : > { %v1105_v17 = vcombine.low %v1097_v23, %v1104_v59 }
 0x143   : > { %1109 = vst [vmem:[%s1705_s12 + $0x8] sm:$0x3f] %v1105_v17 }
 0x144 PF: > { %s13_s16 = sadd.s32 1, %s1423_s16   ;;  %s1737_s12 = smov %s1411_s13 }
 0x145   : > { %p10_p10 = scmp.ge.s32.totalorder %s13_s16, 9   ;;  %s1738_s13 = smov %s1482_s20 }
 0x146   : > { %s1739_s14 = smov %s1419_s15  ;;  %s1740_s15 = smov %s1742_s17 }
 0x147   :  { %12 = sbr.rel (!%p10_p10) target bundleno = 3 (0x3), region = 96 }

// kernel: generator_forward.4
= control target key start
LH: loop header
LB: loop body
LE: loop exit
PB: predicated region body
PF: predicated region fallthrough
CT: control target
= control target key end

     0   :  { %v8816_v0 = vmov 0   ;;  %s11007_s1 = inlined_call_operand.vmem [shape: bf16[2304,128], index: 1, kind: input, shape index: {}]   ;;  %s11008_s0 = inlined_call_operand.vmem [shape: bf16[392,2304], index: 0, kind: input, shape index: {}]   ;;  %s11009_s2 = inlined_call_operand.vmem [shape: f32[1,128], index: 2, kind: input, shape index: {}]   ;;  %s11010_s3 = inlined_call_operand.vmem [shape: bf16[392,128], index: 3, kind: output, shape index: {}]  }
   0x1   :  { %3838 = vmatprep.subr.bf16.mxu1 %v8816_v0  ;;  %4766 = vmatprep.subr.bf16.mxu0 %v8816_v0  ;;  %v7990_v1 = vld [vmem:[%s11007_s1] sm:$0xff]   ;;  %v7992_v3 = vld [vmem:[%s11007_s1 + $0x8] sm:$0xff]   ;;  %v7994_v5 = vld [vmem:[%s11007_s1 + $0x10] sm:$0xff]  }
   0x2   :  { %v7991_v2 = vld [vmem:[%s11007_s1 + $0x200] sm:$0xff]   ;;  %3839 = vmatpush1.bf16.msra.mxu1 %v7990_v1  ;;  %v7993_v4 = vld [vmem:[%s11007_s1 + $0x208] sm:$0xff]   ;;  %v7995_v6 = vld [vmem:[%s11007_s1 + $0x210] sm:$0xff]  }
   0x3   :  { %4767 = vmatpush1.bf16.msra.mxu0 %v7991_v2  ;;  %3840 = vmatprep.subr.bf16.mxu1 %v8816_v0  ;;  %v7996_v7 = vld [vmem:[%s11007_s1 + $0x18] sm:$0xff]   ;;  %v7998_v9 = vld [vmem:[%s11007_s1 + $0x20] sm:$0xff]   ;;  %v8000_v11 = vld [vmem:[%s11007_s1 + $0x28] sm:$0xff]  }
   0x4   :  { %4768 = vmatprep.subr.bf16.mxu0 %v8816_v0  ;;  %v7997_v8 = vld [vmem:[%s11007_s1 + $0x218] sm:$0xff]   ;;  %v7999_v10 = vld [vmem:[%s11007_s1 + $0x220] sm:$0xff]   ;;  %v8001_v12 = vld [vmem:[%s11007_s1 + $0x228] sm:$0xff]  }
   0x5   :  { %v8002_v13 = vld [vmem:[%s11007_s1 + $0x30] sm:$0xff]   ;;  %v8004_v15 = vld [vmem:[%s11007_s1 + $0x38] sm:$0xff]   ;;  %v8006_v17 = vld [vmem:[%s11007_s1 + $0x40] sm:$0xff]  }
   0x6   :  { %3841 = vmatpush1.bf16.msra.mxu1 %v7992_v3  ;;  %v8003_v14 = vld [vmem:[%s11007_s1 + $0x230] sm:$0xff]   ;;  %v8005_v16 = vld [vmem:[%s11007_s1 + $0x238] sm:$0xff]   ;;  %v8007_v18 = vld [vmem:[%s11007_s1 + $0x240] sm:$0xff]  }
   0x7   :  { %4769 = vmatpush1.bf16.msra.mxu0 %v7993_v4  ;;  %3842 = vmatprep.subr.bf16.mxu1 %v8816_v0  ;;  %v8024_v19 = vld [vmem:[%s11008_s0 + $0x4] ss:$72 sps:$4 sm:$0xff]   ;;  %v8010_v23 = vld [vmem:[%s11007_s1 + $0x50] sm:$0xff]   ;;  %v8012_v25 = vld [vmem:[%s11007_s1 + $0x58] sm:$0xff]  }
   0x8   :  { %4770 = vmatprep.subr.bf16.mxu0 %v8816_v0  ;;  %v8008_v20 = vld [vmem:[%s11007_s1 + $0x48] sm:$0xff]   ;;  %3870 = vmatprep.mubr.bf16.mxu1 %v8024_v19  ;;  %v8011_v24 = vld [vmem:[%s11007_s1 + $0x250] sm:$0xff]   ;;  %v8013_v26 = vld [vmem:[%s11007_s1 + $0x258] sm:$0xff]  }
   0x9   :  { %v8027_v21 = vld [vmem:[%s11008_s0 + $0x24] ss:$72 sps:$4 sm:$0xff]   ;;  %v8018_v31 = vld [vmem:[%s11007_s1 + $0x70] sm:$0xff]   ;;  %v8020_v33 = vld [vmem:[%s11007_s1 + $0x78] sm:$0xff]  }
   0xa   :  { %3843 = vmatpush1.bf16.msra.mxu1 %v7994_v5  ;;  %v8009_v22 = vld [vmem:[%s11007_s1 + $0x248] sm:$0xff]   ;;  %4798 = vmatprep.mubr.bf16.mxu0 %v8027_v21  ;;  %v8014_v27 = vld [vmem:[%s11007_s1 + $0x60] sm:$0xff]   ;;  %v8019_v32 = vld [vmem:[%s11007_s1 + $0x270] sm:$0xff]  }
   0xb   :  { %4771 = vmatpush1.bf16.msra.mxu0 %v7995_v6  ;;  %3844 = vmatprep.subr.bf16.mxu1 %v8816_v0  ;;  %v8015_v28 = vld [vmem:[%s11007_s1 + $0x260] sm:$0xff]   ;;  %v8016_v29 = vld [vmem:[%s11007_s1 + $0x68] sm:$0xff]   ;;  %v8021_v34 = vld [vmem:[%s11007_s1 + $0x278] sm:$0xff]  }
   0xc   :  { %4772 = vmatprep.subr.bf16.mxu0 %v8816_v0  ;;  %v8017_v30 = vld [vmem:[%s11007_s1 + $0x268] sm:$0xff]   ;;  %v8028_v37 = vld [vmem:[%s11007_s1 + $0x280] sm:$0xff]   ;;  %v8029_v38 = vld [vmem:[%s11008_s0 + $0x94] ss:$72 sps:$4 sm:$0xff]  }
   0xd   :  { %v8022_v35 = vld [vmem:[%s11008_s0] ss:$72 sps:$4 sm:$0xff]   ;;  %v8032_v40 = vld [vmem:[%s11008_s0 + $0xb4] ss:$72 sps:$4 sm:$0xff]   ;;  %v8034_v43 = vld [vmem:[%s11008_s0 + $0x90] ss:$72 sps:$4 sm:$0xff]  }
   0xe   :  { %3845 = vmatpush1.bf16.msra.mxu1 %v7996_v7  ;;  %v8025_v36 = vld [vmem:[%s11008_s0 + $0x20] ss:$72 sps:$4 sm:$0xff]   ;;  %v8035_v44 = vld [vmem:[%s11008_s0 + $0xb0] ss:$72 sps:$4 sm:$0xff]   ;;  %v8038_v46 = vld [vmem:[%s11008_s0 + $0x124] ss:$72 sps:$4 sm:$0xff]  }
   0xf   :  { %4773 = vmatpush1.bf16.msra.mxu0 %v7997_v8  ;;  %3846 = vmatprep.subr.bf16.mxu1 %v8816_v0  ;;  %v8031_v39 = vld [vmem:[%s11007_s1 + $0x80] sm:$0xff]   ;;  %v8036_v41 = vld [vmem:[%s11007_s1 + $0x288] sm:$0xff]   ;;  %v8037_v45 = vld [vmem:[%s11007_s1 + $0x290] sm:$0xff]  }
  0x10   :  { %4774 = vmatprep.subr.bf16.mxu0 %v8816_v0  ;;  %v8044_v42 = vld [vmem:[%s11007_s1 + $0x88] sm:$0xff]   ;;  %v8058_v48 = vld [vmem:[%s11007_s1 + $0x90] sm:$0xff]   ;;  %v8045_v50 = vld [vmem:[%s11007_s1 + $0x298] sm:$0xff]  }
  0x11   :  { %v8040_v47 = vld [vmem:[%s11008_s0 + $0x144] ss:$72 sps:$4 sm:$0xff]   ;;  %v8042_v49 = vld [vmem:[%s11008_s0 + $0x120] ss:$72 sps:$4 sm:$0xff]   ;;  %v8068_v51 = vld [vmem:[%s11007_s1 + $0x98] sm:$0xff]  }
  0x12   :  { %3847 = vmatpush1.bf16.msra.mxu1 %v7998_v9  ;;  %v8043_v52 = vld [vmem:[%s11008_s0 + $0x140] ss:$72 sps:$4 sm:$0xff]   ;;  %v8046_v53 = vld [vmem:[%s11008_s0 + $0x1b4] ss:$72 sps:$4 sm:$0xff]   ;;  %v8050_v58 = vld [vmem:[%s11008_s0 + $0x1b0] ss:$72 sps:$4 sm:$0xff]  }
  0x13   :  { %4775 = vmatpush1.bf16.msra.mxu0 %v7999_v10  ;;  %3848 = vmatprep.subr.bf16.mxu1 %v8816_v0  ;;  %v8048_v54 = vld [vmem:[%s11008_s0 + $0x1d4] ss:$72 sps:$4 sm:$0xff]   ;;  %v8052_v55 = vld [vmem:[%s11007_s1 + $0x2a0] sm:$0xff]   ;;  %v8060_v57 = vld [vmem:[%s11007_s1 + $0x2a8] sm:$0xff]  }
  0x14   :  { %4776 = vmatprep.subr.bf16.mxu0 %v8816_v0  ;;  %v8083_v56 = vld [vmem:[%s11007_s1 + $0xa0] sm:$0xff]   ;;  %v8051_v59 = vld [vmem:[%s11008_s0 + $0x1d0] ss:$72 sps:$4 sm:$0xff]   ;;  %v8092_v60 = vld [vmem:[%s11007_s1 + $0xa8] sm:$0xff]  }
  0x15   :  { %v8053_v61 = vld [vmem:[%s11008_s0 + $0x244] ss:$72 sps:$4 sm:$0xff]   ;;  %v8067_v63 = vld [vmem:[%s11007_s1 + $0x2b0] sm:$0xff]   ;;  %v8057_v2 = vld [vmem:[%s11008_s0 + $0x240] ss:$72 sps:$4 sm:$0xff]  }
  0x16   :  { %3849 = vmatpush1.bf16.msra.mxu1 %v8000_v11  ;;  %v8055_v62 = vld [vmem:[%s11008_s0 + $0x264] ss:$72 sps:$4 sm:$0xff]   ;;  %v8107_v1 = vld [vmem:[%s11007_s1 + $0xb0] sm:$0xff]   ;;  %v8073_v3 = vld [vmem:[%s11007_s1 + $0x2b8] sm:$0xff]  }
  0x17   :  { %4777 = vmatpush1.bf16.msra.mxu0 %v8001_v12  ;;  %3850 = vmatprep.subr.bf16.mxu1 %v8816_v0  ;;  %v8059_v4 = vld [vmem:[%s11008_s0 + $0x260] ss:$72 sps:$4 sm:$0xff]   ;;  %v8118_v5 = vld [vmem:[%s11007_s1 + $0xb8] sm:$0xff]  }
  0x18   :  { %4778 = vmatprep.subr.bf16.mxu0 %v8816_v0  ;;  %v8061_v6 = vld [vmem:[%s11008_s0 + $0x2d4] ss:$72 sps:$4 sm:$0xff]   ;;  %v8076_v8 = vld [vmem:[%s11007_s1 + $0x2c0] sm:$0xff]   ;;  %v8065_v10 = vld [vmem:[%s11008_s0 + $0x2d0] ss:$72 sps:$4 sm:$0xff]  }
  0x19   :  { %v8063_v7 = vld [vmem:[%s11008_s0 + $0x2f4] ss:$72 sps:$4 sm:$0xff]   ;;  %v8131_v9 = vld [vmem:[%s11007_s1 + $0xc0] sm:$0xff]   ;;  %v8084_v11 = vld [vmem:[%s11007_s1 + $0x2c8] sm:$0xff]  }
  0x1a   :  { %3851 = vmatpush1.bf16.msra.mxu1 %v8002_v13  ;;  %v8066_v12 = vld [vmem:[%s11008_s0 + $0x2f0] ss:$72 sps:$4 sm:$0xff]   ;;  %v8069_v13 = vld [vmem:[%s11008_s0 + $0x364] ss:$72 sps:$4 sm:$0xff]   ;;  %v8074_v19 = vld [vmem:[%s11008_s0 + $0x360] ss:$72 sps:$4 sm:$0xff]  }
  0x1b   :  { %4779 = vmatpush1.bf16.msra.mxu0 %v8003_v14  ;;  %3852 = vmatprep.subr.bf16.mxu1 %v8816_v0  ;;  %v8071_v14 = vld [vmem:[%s11008_s0 + $0x384] ss:$72 sps:$4 sm:$0xff]   ;;  %v8077_v21 = vld [vmem:[%s11008_s0 + $0x3f4] ss:$72 sps:$4 sm:$0xff]  }
  0x1c   :  { %4780 = vmatprep.subr.bf16.mxu0 %v8816_v0 }
  0x1e   :  { %3853 = vmatpush1.bf16.msra.mxu1 %v8004_v15  ;;  %v8144_v15 = vld [vmem:[%s11007_s1 + $0xc8] sm:$0xff]  }
  0x1f   :  { %4781 = vmatpush1.bf16.msra.mxu0 %v8005_v16  ;;  %3854 = vmatprep.subr.bf16.mxu1 %v8816_v0  ;;  %v8091_v16 = vld [vmem:[%s11007_s1 + $0x2d0] sm:$0xff]  }
  0x20   :  { %4782 = vmatprep.subr.bf16.mxu0 %v8816_v0 }
  0x22   :  { %3855 = vmatpush1.bf16.msra.mxu1 %v8006_v17  ;;  %v8099_v17 = vld [vmem:[%s11007_s1 + $0x2d8] sm:$0xff]  }
  0x23   :  { %4783 = vmatpush1.bf16.msra.mxu0 %v8007_v18  ;;  %3856 = vmatprep.subr.bf16.mxu1 %v8816_v0  ;;  %v8153_v18 = vld [vmem:[%s11007_s1 + $0xd0] sm:$0xff]  }
  0x24   :  { %4784 = vmatprep.subr.bf16.mxu0 %v8816_v0 }
  0x26   :  { %3857 = vmatpush1.bf16.msra.mxu1 %v8008_v20  ;;  %v8075_v20 = vld [vmem:[%s11008_s0 + $0x380] ss:$72 sps:$4 sm:$0xff]  }
  0x27   :  { %4785 = vmatpush1.bf16.msra.mxu0 %v8009_v22  ;;  %3858 = vmatprep.subr.bf16.mxu1 %v8816_v0  ;;  %v8079_v22 = vld [vmem:[%s11008_s0 + $0x414] ss:$72 sps:$4 sm:$0xff]  }
  0x28   :  { %4786 = vmatprep.subr.bf16.mxu0 %v8816_v0 }
  0x2a   :  { %3859 = vmatpush1.bf16.msra.mxu1 %v8010_v23  ;;  %v8104_v23 = vld [vmem:[%s11007_s1 + $0x2e0] sm:$0xff]  }
  0x2b   :  { %4787 = vmatpush1.bf16.msra.mxu0 %v8011_v24  ;;  %3860 = vmatprep.subr.bf16.mxu1 %v8816_v0  ;;  %v8167_v24 = vld [vmem:[%s11007_s1 + $0xd8] sm:$0xff]  }
  0x2c   :  { %4788 = vmatprep.subr.bf16.mxu0 %v8816_v0 }
  0x2e   :  { %3861 = vmatpush1.bf16.msra.mxu1 %v8012_v25  ;;  %v8108_v25 = vld [vmem:[%s11007_s1 + $0x2e8] sm:$0xff]  }
  0x2f   :  { %4789 = vmatpush1.bf16.msra.mxu0 %v8013_v26  ;;  %3862 = vmatprep.subr.bf16.mxu1 %v8816_v0  ;;  %v8081_v26 = vld [vmem:[%s11008_s0 + $0x3f0] ss:$72 sps:$4 sm:$0xff]  }
  0x30   :  { %4790 = vmatprep.subr.bf16.mxu0 %v8816_v0 }
  0x32   :  { %3863 = vmatpush1.bf16.msra.mxu1 %v8014_v27  ;;  %v8082_v27 = vld [vmem:[%s11008_s0 + $0x410] ss:$72 sps:$4 sm:$0xff]  }
  0x33   :  { %4791 = vmatpush1.bf16.msra.mxu0 %v8015_v28  ;;  %3864 = vmatprep.subr.bf16.mxu1 %v8816_v0  ;;  %v8085_v28 = vld [vmem:[%s11008_s0 + $0x484] ss:$72 sps:$4 sm:$0xff]  }
  0x34   :  { %4792 = vmatprep.subr.bf16.mxu0 %v8816_v0 }
  0x36   :  { %3865 = vmatpush1.bf16.msra.mxu1 %v8016_v29  ;;  %v8087_v29 = vld [vmem:[%s11008_s0 + $0x4a4] ss:$72 sps:$4 sm:$0xff]  }
  0x37   :  { %4793 = vmatpush1.bf16.msra.mxu0 %v8017_v30  ;;  %3866 = vmatprep.subr.bf16.mxu1 %v8816_v0  ;;  %v8115_v30 = vld [vmem:[%s11007_s1 + $0x2f0] sm:$0xff]  }
  0x38   :  { %4794 = vmatprep.subr.bf16.mxu0 %v8816_v0 }
  0x3a   :  { %3867 = vmatpush1.bf16.msra.mxu1 %v8018_v31  ;;  %v8175_v31 = vld [vmem:[%s11007_s1 + $0xe0] sm:$0xff]  }
  0x3b   :  { %4795 = vmatpush1.bf16.msra.mxu0 %v8019_v32  ;;  %3868 = vmatprep.subr.bf16.mxu1 %v8816_v0  ;;  %v8123_v32 = vld [vmem:[%s11007_s1 + $0x2f8] sm:$0xff]  }
  0x3c   :  { %4796 = vmatprep.subr.bf16.mxu0 %v8816_v0 }
  0x3e   :  { %3869 = vmatpush1.bf16.msra.mxu1 %v8020_v33  ;;  %v8089_v33 = vld [vmem:[%s11008_s0 + $0x480] ss:$72 sps:$4 sm:$0xff]  }
  0x3f   :  { %4797 = vmatpush1.bf16.msra.mxu0 %v8021_v34  ;;  %4070 = vmatprep.subr.bf16.mxu1 %v8816_v0  ;;  %v8090_v34 = vld [vmem:[%s11008_s0 + $0x4a0] ss:$72 sps:$4 sm:$0xff]  }
  0x40   :  { %4998 = vmatprep.subr.bf16.mxu0 %v8816_v0 }
  0x41   :  { %3871 = vmatmul.mubr.bf16.vlgmr.msra.gmra.mrb[0].mxu1 %v8022_v35  ;;  %v8093_v35 = vld [vmem:[%s11008_s0 + $0x514] ss:$72 sps:$4 sm:$0xff]  }
  0x42   :  { %4799 = vmatmul.mubr.bf16.vlgmr.msra.gmra.mrb[0].mxu0 %v8025_v36  ;;  %3878 = vmatprep.mubr.bf16.mxu1 %v8029_v38  ;;  %v8189_v36 = vld [vmem:[%s11007_s1 + $0xe8] sm:$0xff]   ;;  %v8197_v38 = vld [vmem:[%s11007_s1 + $0xf0] sm:$0xff]  }
  0x43   :  { %4999 = vmatpush1.bf16.msra.mxu0 %v8028_v37  ;;  %4071 = vmatpush1.bf16.msra.mxu1 %v8031_v39  ;;  %v8095_v37 = vld [vmem:[%s11008_s0 + $0x534] ss:$72 sps:$4 sm:$0xff]   ;;  %v8097_v39 = vld [vmem:[%s11008_s0 + $0x510] ss:$72 sps:$4 sm:$0xff]  }
  0x44   :  { %4806 = vmatprep.mubr.bf16.mxu0 %v8032_v40  ;;  %5000 = vmatprep.subr.bf16.mxu0 %v8816_v0  ;;  %v8098_v40 = vld [vmem:[%s11008_s0 + $0x530] ss:$72 sps:$4 sm:$0xff]  }
  0x45   :  { %4072 = vmatprep.subr.bf16.mxu1 %v8816_v0 }
  0x47   :  { %5001 = vmatpush1.bf16.msra.mxu0 %v8036_v41  ;;  %4073 = vmatpush1.bf16.msra.mxu1 %v8044_v42  ;;  %v8100_v41 = vld [vmem:[%s11008_s0 + $0x5a4] ss:$72 sps:$4 sm:$0xff]  }
  0x48   :  { %5002 = vmatprep.subr.bf16.mxu0 %v8816_v0  ;;  %4074 = vmatprep.subr.bf16.mxu1 %v8816_v0  ;;  %v8102_v42 = vld [vmem:[%s11008_s0 + $0x5c4] ss:$72 sps:$4 sm:$0xff]  }
  0x49   :  { %3879 = vmatmul.mubr.bf16.gmra.mrb[4].mxu1 %v8034_v43  ;;  %v8210_v43 = vld [vmem:[%s11007_s1 + $0xf8] sm:$0xff]  }
  0x4a   :  { %4807 = vmatmul.mubr.bf16.gmra.mrb[4].mxu0 %v8035_v44  ;;  %3886 = vmatprep.mubr.bf16.mxu1 %v8038_v46  ;;  %v8105_v44 = vld [vmem:[%s11008_s0 + $0x5a0] ss:$72 sps:$4 sm:$0xff]   ;;  %v8109_v46 = vld [vmem:[%s11008_s0 + $0x634] ss:$72 sps:$4 sm:$0xff]  }
  0x4b   :  { %5003 = vmatpush1.bf16.msra.mxu0 %v8037_v45  ;;  %4814 = vmatprep.mubr.bf16.mxu0 %v8040_v47  ;;  %v8106_v45 = vld [vmem:[%s11008_s0 + $0x5c0] ss:$72 sps:$4 sm:$0xff]   ;;  %v8111_v47 = vld [vmem:[%s11008_s0 + $0x654] ss:$72 sps:$4 sm:$0xff]  }
  0x4c   :  { %5004 = vmatprep.subr.bf16.mxu0 %v8816_v0  ;;  %4075 = vmatpush1.bf16.msra.mxu1 %v8058_v48  ;;  %v8113_v48 = vld [vmem:[%s11008_s0 + $0x630] ss:$72 sps:$4 sm:$0xff]  }
  0x4d   :  { %4076 = vmatprep.subr.bf16.mxu1 %v8816_v0 }
  0x4f   :  { %5005 = vmatpush1.bf16.msra.mxu0 %v8045_v50  ;;  %v8116_v50 = vld [vmem:[%s11008_s0 + $0x6c4] ss:$72 sps:$4 sm:$0xff]  }
  0x50   :  { %5006 = vmatprep.subr.bf16.mxu0 %v8816_v0  ;;  %4077 = vmatpush1.bf16.msra.mxu1 %v8068_v51  ;;  %v8119_v51 = vld [vmem:[%s11008_s0 + $0x6e4] ss:$72 sps:$4 sm:$0xff]  }
  0x51   :  { %3887 = vmatmul.mubr.bf16.gmra.mrb[8].mxu1 %v8042_v49  ;;  %4078 = vmatprep.subr.bf16.mxu1 %v8816_v0  ;;  %v8114_v49 = vld [vmem:[%s11008_s0 + $0x650] ss:$72 sps:$4 sm:$0xff]  }
  0x52   :  { %4815 = vmatmul.mubr.bf16.gmra.mrb[8].mxu0 %v8043_v52  ;;  %3894 = vmatprep.mubr.bf16.mxu1 %v8046_v53  ;;  %v8121_v52 = vld [vmem:[%s11008_s0 + $0x6c0] ss:$72 sps:$4 sm:$0xff]  }
  0x53   :  { %4822 = vmatprep.mubr.bf16.mxu0 %v8048_v54  ;;  %5007 = vmatpush1.bf16.msra.mxu0 %v8052_v55  ;;  %v8122_v53 = vld [vmem:[%s11008_s0 + $0x6e0] ss:$72 sps:$4 sm:$0xff]   ;;  %v8124_v54 = vld [vmem:[%s11008_s0 + $0x754] ss:$72 sps:$4 sm:$0xff]  }
  0x54   :  { %5008 = vmatprep.subr.bf16.mxu0 %v8816_v0  ;;  %4079 = vmatpush1.bf16.msra.mxu1 %v8083_v56  ;;  %v8128_v55 = vld [vmem:[%s11008_s0 + $0x2c] ss:$72 sps:$4 sm:$0xff]   ;;  %v8129_v56 = vld [vmem:[%s11008_s0 + $0x750] ss:$72 sps:$4 sm:$0xff]  }
  0x55   :  { %4080 = vmatprep.subr.bf16.mxu1 %v8816_v0 }
  0x57   :  { %5009 = vmatpush1.bf16.msra.mxu0 %v8060_v57  ;;  %v8126_v57 = vld [vmem:[%s11008_s0 + $0x28] ss:$72 sps:$4 sm:$0xff]  }
  0x58   :  { %5010 = vmatprep.subr.bf16.mxu0 %v8816_v0  ;;  %4081 = vmatpush1.bf16.msra.mxu1 %v8092_v60  ;;  %v8134_v60 = vld [vmem:[%s11008_s0 + $0xbc] ss:$72 sps:$4 sm:$0xff]  }
  0x59   :  { %3895 = vmatmul.mubr.bf16.gmra.mrb[12].mxu1 %v8050_v58  ;;  %4082 = vmatprep.subr.bf16.mxu1 %v8816_v0  ;;  %v8132_v58 = vld [vmem:[%s11008_s0 + $0x7e4] ss:$72 sps:$4 sm:$0xff]  }
  0x5a   :  { %4823 = vmatmul.mubr.bf16.gmra.mrb[12].mxu0 %v8051_v59  ;;  %3902 = vmatprep.mubr.bf16.mxu1 %v8053_v61  ;;  %v8130_v59 = vld [vmem:[%s11007_s1 + $0x300] sm:$0xff]  }
  0x5b   :  { %4830 = vmatprep.mubr.bf16.mxu0 %v8055_v62  ;;  %5011 = vmatpush1.bf16.msra.mxu0 %v8067_v63  ;;  %v8136_v61 = vld [vmem:[%s11008_s0 + $0x7e0] ss:$72 sps:$4 sm:$0xff]  }
  0x5c   :  { %5012 = vmatprep.subr.bf16.mxu0 %v8816_v0  ;;  %4083 = vmatpush1.bf16.msra.mxu1 %v8107_v1  ;;  %v8138_v62 = vld [vmem:[%s11007_s1 + $0x308] sm:$0xff]   ;;  %v8137_v63 = vld [vmem:[%s11008_s0 + $0xb8] ss:$72 sps:$4 sm:$0xff]   ;;  %v8139_v1 = vld [vmem:[%s11008_s0 + $0x874] ss:$72 sps:$4 sm:$0xff]  }
  0x5d   :  { %4084 = vmatprep.subr.bf16.mxu1 %v8816_v0 }
  0x5f   :  { %5013 = vmatpush1.bf16.msra.mxu0 %v8073_v3  ;;  %v8152_v3 = vld [vmem:[%s11007_s1 + $0x310] sm:$0xff]  }
  0x60   :  { %5014 = vmatprep.subr.bf16.mxu0 %v8816_v0  ;;  %4085 = vmatpush1.bf16.msra.mxu1 %v8118_v5  ;;  %v8164_v5 = vld [vmem:[%s11007_s1 + $0x318] sm:$0xff]  }
  0x61   :  { %3903 = vmatmul.mubr.bf16.gmra.mrb[16].mxu1 %v8057_v2  ;;  %4086 = vmatprep.subr.bf16.mxu1 %v8816_v0  ;;  %v8141_v2 = vld [vmem:[%s11008_s0 + $0x14c] ss:$72 sps:$4 sm:$0xff]  }
  0x62   :  { %4831 = vmatmul.mubr.bf16.gmra.mrb[16].mxu0 %v8059_v4  ;;  %3910 = vmatprep.mubr.bf16.mxu1 %v8061_v6  ;;  %v8143_v4 = vld [vmem:[%s11008_s0 + $0x870] ss:$72 sps:$4 sm:$0xff]  }
  0x63   :  { %4838 = vmatprep.mubr.bf16.mxu0 %v8063_v7  ;;  %5015 = vmatpush1.bf16.msra.mxu0 %v8076_v8  ;;  %v8145_v6 = vld [vmem:[%s11008_s0 + $0x148] ss:$72 sps:$4 sm:$0xff]   ;;  %v8146_v7 = vld [vmem:[%s11008_s0 + $0x904] ss:$72 sps:$4 sm:$0xff]  }
  0x64   :  { %5016 = vmatprep.subr.bf16.mxu0 %v8816_v0  ;;  %4087 = vmatpush1.bf16.msra.mxu1 %v8131_v9  ;;  %v8148_v8 = vld [vmem:[%s11008_s0 + $0x1dc] ss:$72 sps:$4 sm:$0xff]  }
  0x65   :  { %4088 = vmatprep.subr.bf16.mxu1 %v8816_v0  ;;  %v8174_v9 = vld [vmem:[%s11007_s1 + $0x320] sm:$0xff]  }
  0x67   :  { %5017 = vmatpush1.bf16.msra.mxu0 %v8084_v11  ;;  %v8188_v11 = vld [vmem:[%s11007_s1 + $0x328] sm:$0xff]  }
  0x68   :  { %5018 = vmatprep.subr.bf16.mxu0 %v8816_v0  ;;  %4089 = vmatpush1.bf16.msra.mxu1 %v8144_v15  ;;  %v8196_v15 = vld [vmem:[%s11007_s1 + $0x330] sm:$0xff]  }
  0x69   :  { %3911 = vmatmul.mubr.bf16.gmra.mrb[20].mxu1 %v8065_v10  ;;  %4090 = vmatprep.subr.bf16.mxu1 %v8816_v0  ;;  %v8150_v10 = vld [vmem:[%s11008_s0 + $0x900] ss:$72 sps:$4 sm:$0xff]  }
  0x6a   :  { %4839 = vmatmul.mubr.bf16.gmra.mrb[20].mxu0 %v8066_v12  ;;  %3918 = vmatprep.mubr.bf16.mxu1 %v8069_v13  ;;  %v8151_v12 = vld [vmem:[%s11008_s0 + $0x1d8] ss:$72 sps:$4 sm:$0xff]   ;;  %v8154_v13 = vld [vmem:[%s11008_s0 + $0x994] ss:$72 sps:$4 sm:$0xff]  }
  0x6b   :  { %4846 = vmatprep.mubr.bf16.mxu0 %v8071_v14  ;;  %5019 = vmatpush1.bf16.msra.mxu0 %v8091_v16  ;;  %v8156_v14 = vld [vmem:[%s11008_s0 + $0x26c] ss:$72 sps:$4 sm:$0xff]   ;;  %v8158_v16 = vld [vmem:[%s11008_s0 + $0x990] ss:$72 sps:$4 sm:$0xff]  }
  0x6c   :  { %5020 = vmatprep.subr.bf16.mxu0 %v8816_v0  ;;  %4091 = vmatpush1.bf16.msra.mxu1 %v8153_v18  ;;  %v8159_v18 = vld [vmem:[%s11008_s0 + $0x268] ss:$72 sps:$4 sm:$0xff]  }
  0x6d   :  { %4092 = vmatprep.subr.bf16.mxu1 %v8816_v0 }
  0x6f   :  { %5021 = vmatpush1.bf16.msra.mxu0 %v8099_v17  ;;  %v8209_v17 = vld [vmem:[%s11007_s1 + $0x338] sm:$0xff]  }
  0x70   :  { %5022 = vmatprep.subr.bf16.mxu0 %v8816_v0  ;;  %4093 = vmatpush1.bf16.msra.mxu1 %v8167_v24  ;;  %v8166_v24 = vld [vmem:[%s11008_s0 + $0x2f8] ss:$72 sps:$4 sm:$0xff]  }
  0x71   :  { %3919 = vmatmul.mubr.bf16.gmra.mrb[24].mxu1 %v8074_v19  ;;  %4094 = vmatprep.subr.bf16.mxu1 %v8816_v0  ;;  %v8160_v19 = vld [vmem:[%s11008_s0 + $0xa24] ss:$72 sps:$4 sm:$0xff]  }
  0x72   :  { %4847 = vmatmul.mubr.bf16.gmra.mrb[24].mxu0 %v8075_v20  ;;  %3926 = vmatprep.mubr.bf16.mxu1 %v8077_v21  ;;  %v8162_v20 = vld [vmem:[%s11008_s0 + $0x2fc] ss:$72 sps:$4 sm:$0xff]  }
  0x73   :  { %4854 = vmatprep.mubr.bf16.mxu0 %v8079_v22  ;;  %5023 = vmatpush1.bf16.msra.mxu0 %v8104_v23  ;;  %v8217_v21 = vld [vmem:[%s11007_s1 + $0x340] sm:$0xff]   ;;  %v8231_v23 = vld [vmem:[%s11007_s1 + $0x348] sm:$0xff]  }
  0x74   :  { %5024 = vmatprep.subr.bf16.mxu0 %v8816_v0  ;;  %4095 = vmatpush1.bf16.msra.mxu1 %v8175_v31  ;;  %v8165_v22 = vld [vmem:[%s11008_s0 + $0xa20] ss:$72 sps:$4 sm:$0xff]   ;;  %v8176_v31 = vld [vmem:[%s11008_s0 + $0xb44] ss:$72 sps:$4 sm:$0xff]  }
  0x75   :  { %4096 = vmatprep.subr.bf16.mxu1 %v8816_v0 }
  0x77   :  { %5025 = vmatpush1.bf16.msra.mxu0 %v8108_v25  ;;  %v8168_v25 = vld [vmem:[%s11008_s0 + $0xab4] ss:$72 sps:$4 sm:$0xff]  }
  0x78   :  { %5026 = vmatprep.subr.bf16.mxu0 %v8816_v0  ;;  %4097 = vmatpush1.bf16.msra.mxu1 %v8189_v36  ;;  %v8181_v36 = vld [vmem:[%s11008_s0 + $0x418] ss:$72 sps:$4 sm:$0xff]  }
  0x79   :  { %3927 = vmatmul.mubr.bf16.gmra.mrb[28].mxu1 %v8081_v26  ;;  %4098 = vmatprep.subr.bf16.mxu1 %v8816_v0  ;;  %v8170_v26 = vld [vmem:[%s11008_s0 + $0x38c] ss:$72 sps:$4 sm:$0xff]  }
  0x7a   :  { %4855 = vmatmul.mubr.bf16.gmra.mrb[28].mxu0 %v8082_v27  ;;  %3934 = vmatprep.mubr.bf16.mxu1 %v8085_v28  ;;  %v8239_v27 = vld [vmem:[%s11007_s1 + $0x350] sm:$0xff]  }
  0x7b   :  { %4862 = vmatprep.mubr.bf16.mxu0 %v8087_v29  ;;  %5027 = vmatpush1.bf16.msra.mxu0 %v8115_v30  ;;  %v8172_v28 = vld [vmem:[%s11008_s0 + $0xab0] ss:$72 sps:$4 sm:$0xff]  }
  0x7c   :  { %5028 = vmatprep.subr.bf16.mxu0 %v8816_v0  ;;  %4099 = vmatpush1.bf16.msra.mxu1 %v8197_v38  ;;  %v8253_v29 = vld [vmem:[%s11007_s1 + $0x358] sm:$0xff]   ;;  %v8173_v30 = vld [vmem:[%s11008_s0 + $0x388] ss:$72 sps:$4 sm:$0xff]   ;;  %v8184_v38 = vld [vmem:[%s11008_s0 + $0x4ac] ss:$72 sps:$4 sm:$0xff]  }
  0x7d   :  { %4100 = vmatprep.subr.bf16.mxu1 %v8816_v0 }
  0x7f   :  { %5029 = vmatpush1.bf16.msra.mxu0 %v8123_v32  ;;  %v8178_v32 = vld [vmem:[%s11008_s0 + $0x41c] ss:$72 sps:$4 sm:$0xff]  }
  0x80   :  { %5230 = vmatprep.subr.bf16.mxu0 %v8816_v0  ;;  %4101 = vmatpush1.bf16.msra.mxu1 %v8210_v43  ;;  %v8190_v43 = vld [vmem:[%s11008_s0 + $0xc64] ss:$72 sps:$4 sm:$0xff]  }
  0x81   :  { %3935 = vmatmul.mubr.bf16.gmra.mrb[32].mxu1 %v8089_v33  ;;  %4302 = vmatprep.subr.bf16.mxu1 %v8816_v0  ;;  %v8265_v33 = vld [vmem:[%s11007_s1 + $0x360] sm:$0xff]  }
  0x82   :  { %4863 = vmatmul.mubr.bf16.gmra.mrb[32].mxu0 %v8090_v34  ;;  %3942 = vmatprep.mubr.bf16.mxu1 %v8093_v35  ;;  %v8180_v34 = vld [vmem:[%s11008_s0 + $0xb40] ss:$72 sps:$4 sm:$0xff]  }
  0x83   :  { %4870 = vmatprep.mubr.bf16.mxu0 %v8095_v37  ;;  %v8275_v35 = vld [vmem:[%s11007_s1 + $0x368] sm:$0xff]   ;;  %v8182_v37 = vld [vmem:[%s11008_s0 + $0xbd4] ss:$72 sps:$4 sm:$0xff]  }
  0x89   :  { %3943 = vmatmul.mubr.bf16.gmra.mrb[36].mxu1 %v8097_v39  ;;  %v8289_v39 = vld [vmem:[%s11007_s1 + $0x370] sm:$0xff]  }
  0x8a   :  { %4871 = vmatmul.mubr.bf16.gmra.mrb[36].mxu0 %v8098_v40  ;;  %3950 = vmatprep.mubr.bf16.mxu1 %v8100_v41  ;;  %v8186_v40 = vld [vmem:[%s11008_s0 + $0xbd0] ss:$72 sps:$4 sm:$0xff]  }
  0x8b   :  { %4878 = vmatprep.mubr.bf16.mxu0 %v8102_v42  ;;  %v8297_v41 = vld [vmem:[%s11007_s1 + $0x378] sm:$0xff]   ;;  %v8187_v42 = vld [vmem:[%s11008_s0 + $0x4a8] ss:$72 sps:$4 sm:$0xff]  }
  0x91   :  { %3951 = vmatmul.mubr.bf16.gmra.mrb[40].mxu1 %v8105_v44  ;;  %v8192_v44 = vld [vmem:[%s11008_s0 + $0x53c] ss:$72 sps:$4 sm:$0xff]  }
  0x92   :  { %4879 = vmatmul.mubr.bf16.gmra.mrb[40].mxu0 %v8106_v45  ;;  %3958 = vmatprep.mubr.bf16.mxu1 %v8109_v46  ;;  %v8194_v45 = vld [vmem:[%s11008_s0 + $0xc60] ss:$72 sps:$4 sm:$0xff]  }
  0x93   :  { %4886 = vmatprep.mubr.bf16.mxu0 %v8111_v47  ;;  %v8195_v46 = vld [vmem:[%s11008_s0 + $0x538] ss:$72 sps:$4 sm:$0xff]   ;;  %v8198_v47 = vld [vmem:[%s11008_s0 + $0xcf4] ss:$72 sps:$4 sm:$0xff]  }
  0x99   :  { %3959 = vmatmul.mubr.bf16.gmra.mrb[44].mxu1 %v8113_v48  ;;  %v8200_v48 = vld [vmem:[%s11008_s0 + $0x5cc] ss:$72 sps:$4 sm:$0xff]  }
  0x9a   :  { %4887 = vmatmul.mubr.bf16.gmra.mrb[44].mxu0 %v8114_v49  ;;  %3966 = vmatprep.mubr.bf16.mxu1 %v8116_v50  ;;  %v8202_v49 = vld [vmem:[%s11008_s0 + $0xcf0] ss:$72 sps:$4 sm:$0xff]   ;;  %v447_v50 = vld [vmem:[%s11008_s0 + $0xd80] sm:$0xff] }
  0x9b   :  { %4894 = vmatprep.mubr.bf16.mxu0 %v8119_v51  ;;  %v8203_v51 = vld [vmem:[%s11008_s0 + $0x5c8] ss:$72 sps:$4 sm:$0xff]  }
  0xa1   :  { %3967 = vmatmul.mubr.bf16.gmra.mrb[48].mxu1 %v8121_v52  ;;  %v8205_v52 = vld [vmem:[%s11008_s0 + $0x65c] ss:$72 sps:$4 sm:$0xff]  }
  0xa2   :  { %4895 = vmatmul.mubr.bf16.gmra.mrb[48].mxu0 %v8122_v53  ;;  %3974 = vmatprep.mubr.bf16.mxu1 %v8124_v54  ;;  %v6757_v53 = vcombine.high %v447_v50, %v447_v50  ;;  %v8208_v54 = vld [vmem:[%s11008_s0 + $0x658] ss:$72 sps:$4 sm:$0xff]  }
  0xa3   :  { %5030 = vmatprep.mubr.bf16.mxu0 %v8128_v55  ;;  %v8213_v55 = vld [vmem:[%s11008_s0 + $0xc] ss:$72 sps:$4 sm:$0xff]  }
  0xa9   :  { %3975 = vmatmul.mubr.bf16.gmra.mrb[52].mxu1 %v8129_v56  ;;  %v6756_v56 = vcombine.low %v447_v50, %v447_v50  ;;  %v8285_v50 = vld [vmem:[%s11008_s0 + $0xc8c] ss:$72 sps:$4 sm:$0xff]  }
  0xaa   :  { %5031 = vmatmul.mubr.bf16.vlgmr.msra.gmra.mrb[0].mxu0 %v8126_v57  ;;  %3982 = vmatprep.mubr.bf16.mxu1 %v8132_v58  ;;  %v8214_v57 = vld [vmem:[%s11008_s0 + $0x6ec] ss:$72 sps:$4 sm:$0xff]   ;;  %v8211_v58 = vld [vmem:[%s11008_s0 + $0x8] ss:$72 sps:$4 sm:$0xff]  }
  0xab   :  { %5231 = vmatpush1.bf16.msra.mxu0 %v8130_v59  ;;  %5038 = vmatprep.mubr.bf16.mxu0 %v8134_v60  ;;  %v8216_v59 = vld [vmem:[%s11008_s0 + $0x6e8] ss:$72 sps:$4 sm:$0xff]   ;;  %v8218_v60 = vld [vmem:[%s11008_s0 + $0x9c] ss:$72 sps:$4 sm:$0xff]  }
  0xac   :  { %5232 = vmatprep.subr.bf16.mxu0 %v8816_v0 }
  0xaf   :  { %5233 = vmatpush1.bf16.msra.mxu0 %v8138_v62  ;;  %v8221_v62 = vld [vmem:[%s11008_s0 + $0x77c] ss:$72 sps:$4 sm:$0xff]  }
  0xb0   :  { %5234 = vmatprep.subr.bf16.mxu0 %v8816_v0 }
  0xb1   :  { %3983 = vmatmul.mubr.bf16.gmra.mrb[56].mxu1 %v8136_v61  ;;  %v8220_v61 = vld [vmem:[%s11007_s1 + $0x100] sm:$0xff]  }
  0xb2   :  { %5039 = vmatmul.mubr.bf16.gmra.mrb[4].mxu0 %v8137_v63  ;;  %3990 = vmatprep.mubr.bf16.mxu1 %v8139_v1  ;;  %v8223_v63 = vld [vmem:[%s11008_s0 + $0x98] ss:$72 sps:$4 sm:$0xff]   ;;  %v8232_v1 = vld [vmem:[%s11007_s1 + $0x108] sm:$0xff]  }
  0xb3   :  { %5046 = vmatprep.mubr.bf16.mxu0 %v8141_v2  ;;  %5235 = vmatpush1.bf16.msra.mxu0 %v8152_v3  ;;  %v8224_v2 = vld [vmem:[%s11008_s0 + $0x778] ss:$72 sps:$4 sm:$0xff]   ;;  %v8225_v3 = vld [vmem:[%s11008_s0 + $0x12c] ss:$72 sps:$4 sm:$0xff]  }
  0xb4   :  { %5236 = vmatprep.subr.bf16.mxu0 %v8816_v0 }
  0xb7   :  { %5237 = vmatpush1.bf16.msra.mxu0 %v8164_v5  ;;  %v8245_v5 = vld [vmem:[%s11007_s1 + $0x110] sm:$0xff]  }
  0xb8   :  { %5238 = vmatprep.subr.bf16.mxu0 %v8816_v0 }
  0xb9   :  { %3991 = vmatmul.mubr.bf16.gmra.mrb[60].mxu1 %v8143_v4  ;;  %v8227_v4 = vld [vmem:[%s11008_s0 + $0x80c] ss:$72 sps:$4 sm:$0xff]  }
  0xba   :  { %5047 = vmatmul.mubr.bf16.gmra.mrb[8].mxu0 %v8145_v6  ;;  %3998 = vmatprep.mubr.bf16.mxu1 %v8146_v7  ;;  %v8229_v6 = vld [vmem:[%s11008_s0 + $0x128] ss:$72 sps:$4 sm:$0xff]   ;;  %v8254_v7 = vld [vmem:[%s11007_s1 + $0x118] sm:$0xff]  }
  0xbb   :  { %5054 = vmatprep.mubr.bf16.mxu0 %v8148_v8  ;;  %5239 = vmatpush1.bf16.msra.mxu0 %v8174_v9  ;;  %v8230_v8 = vld [vmem:[%s11008_s0 + $0x808] ss:$72 sps:$4 sm:$0xff]   ;;  %v8233_v9 = vld [vmem:[%s11008_s0 + $0x1bc] ss:$72 sps:$4 sm:$0xff]  }
  0xbc   :  { %5240 = vmatprep.subr.bf16.mxu0 %v8816_v0 }
  0xbf   :  { %5241 = vmatpush1.bf16.msra.mxu0 %v8188_v11  ;;  %v8268_v11 = vld [vmem:[%s11007_s1 + $0x120] sm:$0xff]  }
  0xc0   :  { %5242 = vmatprep.subr.bf16.mxu0 %v8816_v0 }
  0xc1   :  { %3999 = vmatmul.mubr.bf16.gmra.mrb[64].mxu1 %v8150_v10  ;;  %v8235_v10 = vld [vmem:[%s11008_s0 + $0x89c] ss:$72 sps:$4 sm:$0xff]  }
  0xc2   :  { %5055 = vmatmul.mubr.bf16.gmra.mrb[12].mxu0 %v8151_v12  ;;  %4006 = vmatprep.mubr.bf16.mxu1 %v8154_v13  ;;  %v8237_v12 = vld [vmem:[%s11008_s0 + $0x1b8] ss:$72 sps:$4 sm:$0xff]   ;;  %v8276_v13 = vld [vmem:[%s11007_s1 + $0x128] sm:$0xff]  }
  0xc3   :  { %5062 = vmatprep.mubr.bf16.mxu0 %v8156_v14  ;;  %5243 = vmatpush1.bf16.msra.mxu0 %v8196_v15  ;;  %v8238_v14 = vld [vmem:[%s11008_s0 + $0x898] ss:$72 sps:$4 sm:$0xff]   ;;  %v8240_v15 = vld [vmem:[%s11008_s0 + $0x24c] ss:$72 sps:$4 sm:$0xff]  }
  0xc4   :  { %5244 = vmatprep.subr.bf16.mxu0 %v8816_v0 }
  0xc7   :  { %5245 = vmatpush1.bf16.msra.mxu0 %v8209_v17  ;;  %v8290_v17 = vld [vmem:[%s11007_s1 + $0x130] sm:$0xff]  }
  0xc8   :  { %5246 = vmatprep.subr.bf16.mxu0 %v8816_v0 }
  0xc9   :  { %4007 = vmatmul.mubr.bf16.gmra.mrb[68].mxu1 %v8158_v16  ;;  %v8242_v16 = vld [vmem:[%s11008_s0 + $0x92c] ss:$72 sps:$4 sm:$0xff]  }
  0xca   :  { %5063 = vmatmul.mubr.bf16.gmra.mrb[16].mxu0 %v8159_v18  ;;  %4014 = vmatprep.mubr.bf16.mxu1 %v8160_v19  ;;  %v8244_v18 = vld [vmem:[%s11008_s0 + $0x248] ss:$72 sps:$4 sm:$0xff]   ;;  %v8300_v19 = vld [vmem:[%s11007_s1 + $0x138] sm:$0xff]  }
  0xcb   :  { %5070 = vmatprep.mubr.bf16.mxu0 %v8162_v20  ;;  %5247 = vmatpush1.bf16.msra.mxu0 %v8217_v21  ;;  %v8246_v20 = vld [vmem:[%s11008_s0 + $0x928] ss:$72 sps:$4 sm:$0xff]   ;;  %v8247_v21 = vld [vmem:[%s11008_s0 + $0x2dc] ss:$72 sps:$4 sm:$0xff]  }
  0xcc   :  { %5248 = vmatprep.subr.bf16.mxu0 %v8816_v0 }
  0xcf   :  { %5249 = vmatpush1.bf16.msra.mxu0 %v8231_v23  ;;  %v8311_v23 = vld [vmem:[%s11007_s1 + $0x140] sm:$0xff]  }
  0xd0   :  { %5250 = vmatprep.subr.bf16.mxu0 %v8816_v0 }
  0xd1   :  { %4015 = vmatmul.mubr.bf16.gmra.mrb[72].mxu1 %v8165_v22  ;;  %v8249_v22 = vld [vmem:[%s11008_s0 + $0x9bc] ss:$72 sps:$4 sm:$0xff]  }
  0xd2   :  { %5071 = vmatmul.mubr.bf16.gmra.mrb[20].mxu0 %v8166_v24  ;;  %4022 = vmatprep.mubr.bf16.mxu1 %v8168_v25  ;;  %v8251_v24 = vld [vmem:[%s11008_s0 + $0x2d8] ss:$72 sps:$4 sm:$0xff]   ;;  %v8324_v25 = vld [vmem:[%s11007_s1 + $0x148] sm:$0xff]  }
  0xd3   :  { %5078 = vmatprep.mubr.bf16.mxu0 %v8170_v26  ;;  %5251 = vmatpush1.bf16.msra.mxu0 %v8239_v27  ;;  %v8252_v26 = vld [vmem:[%s11008_s0 + $0x9b8] ss:$72 sps:$4 sm:$0xff]   ;;  %v8255_v27 = vld [vmem:[%s11008_s0 + $0x36c] ss:$72 sps:$4 sm:$0xff]  }
  0xd4   :  { %5252 = vmatprep.subr.bf16.mxu0 %v8816_v0 }
  0xd7   :  { %5253 = vmatpush1.bf16.msra.mxu0 %v8253_v29  ;;  %v8333_v29 = vld [vmem:[%s11007_s1 + $0x150] sm:$0xff]  }
  0xd8   :  { %5254 = vmatprep.subr.bf16.mxu0 %v8816_v0 }
  0xd9   :  { %4023 = vmatmul.mubr.bf16.gmra.mrb[76].mxu1 %v8172_v28  ;;  %v8257_v28 = vld [vmem:[%s11008_s0 + $0xa4c] ss:$72 sps:$4 sm:$0xff]  }
  0xda   :  { %5079 = vmatmul.mubr.bf16.gmra.mrb[24].mxu0 %v8173_v30  ;;  %4030 = vmatprep.mubr.bf16.mxu1 %v8176_v31  ;;  %v8259_v30 = vld [vmem:[%s11008_s0 + $0x368] ss:$72 sps:$4 sm:$0xff]   ;;  %v8347_v31 = vld [vmem:[%s11007_s1 + $0x158] sm:$0xff]  }
  0xdb   :  { %5086 = vmatprep.mubr.bf16.mxu0 %v8178_v32  ;;  %5255 = vmatpush1.bf16.msra.mxu0 %v8265_v33  ;;  %v8260_v32 = vld [vmem:[%s11008_s0 + $0xa48] ss:$72 sps:$4 sm:$0xff]   ;;  %v8261_v33 = vld [vmem:[%s11008_s0 + $0x3fc] ss:$72 sps:$4 sm:$0xff]  }
  0xdc   :  { %5256 = vmatprep.subr.bf16.mxu0 %v8816_v0 }
  0xdf   :  { %5257 = vmatpush1.bf16.msra.mxu0 %v8275_v35  ;;  %v8355_v35 = vld [vmem:[%s11007_s1 + $0x160] sm:$0xff]  }
  0xe0   :  { %5258 = vmatprep.subr.bf16.mxu0 %v8816_v0 }
  0xe1   :  { %4031 = vmatmul.mubr.bf16.gmra.mrb[80].mxu1 %v8180_v34  ;;  %v8263_v34 = vld [vmem:[%s11008_s0 + $0xadc] ss:$72 sps:$4 sm:$0xff]  }
  0xe2   :  { %5087 = vmatmul.mubr.bf16.gmra.mrb[28].mxu0 %v8181_v36  ;;  %4038 = vmatprep.mubr.bf16.mxu1 %v8182_v37  ;;  %v8266_v36 = vld [vmem:[%s11008_s0 + $0x3f8] ss:$72 sps:$4 sm:$0xff]   ;;  %v8369_v37 = vld [vmem:[%s11007_s1 + $0x168] sm:$0xff]  }
  0xe3   :  { %5094 = vmatprep.mubr.bf16.mxu0 %v8184_v38  ;;  %5259 = vmatpush1.bf16.msra.mxu0 %v8289_v39  ;;  %v8267_v38 = vld [vmem:[%s11008_s0 + $0xad8] ss:$72 sps:$4 sm:$0xff]   ;;  %v8269_v39 = vld [vmem:[%s11008_s0 + $0x48c] ss:$72 sps:$4 sm:$0xff]  }
  0xe4   :  { %5260 = vmatprep.subr.bf16.mxu0 %v8816_v0 }
  0xe7   :  { %5261 = vmatpush1.bf16.msra.mxu0 %v8297_v41  ;;  %v8377_v41 = vld [vmem:[%s11007_s1 + $0x170] sm:$0xff]  }
  0xe8   :  { %5462 = vmatprep.subr.bf16.mxu0 %v8816_v0 }
  0xe9   :  { %4039 = vmatmul.mubr.bf16.gmra.mrb[84].mxu1 %v8186_v40  ;;  %v8271_v40 = vld [vmem:[%s11008_s0 + $0xb6c] ss:$72 sps:$4 sm:$0xff]  }
  0xea   :  { %5095 = vmatmul.mubr.bf16.gmra.mrb[32].mxu0 %v8187_v42  ;;  %4046 = vmatprep.mubr.bf16.mxu1 %v8190_v43  ;;  %v8273_v42 = vld [vmem:[%s11008_s0 + $0x488] ss:$72 sps:$4 sm:$0xff]  }
  0xeb   :  { %5102 = vmatprep.mubr.bf16.mxu0 %v8192_v44  ;;  %v8274_v43 = vld [vmem:[%s11008_s0 + $0xb68] ss:$72 sps:$4 sm:$0xff]   ;;  %v8277_v44 = vld [vmem:[%s11008_s0 + $0x51c] ss:$72 sps:$4 sm:$0xff]  }
  0xf1   :  { %4047 = vmatmul.mubr.bf16.gmra.mrb[88].mxu1 %v8194_v45  ;;  %v8279_v45 = vld [vmem:[%s11008_s0 + $0xbfc] ss:$72 sps:$4 sm:$0xff]  }
  0xf2   :  { %5103 = vmatmul.mubr.bf16.gmra.mrb[36].mxu0 %v8195_v46  ;;  %4054 = vmatprep.mubr.bf16.mxu1 %v8198_v47  ;;  %v8390_v46 = vld [vmem:[%s11007_s1 + $0x178] sm:$0xff]  }
  0xf3   :  { %5110 = vmatprep.mubr.bf16.mxu0 %v8200_v48  ;;  %v8281_v47 = vld [vmem:[%s11008_s0 + $0x518] ss:$72 sps:$4 sm:$0xff]  }
  0xf4   :  { %v8282_v48 = vld [vmem:[%s11008_s0 + $0xbf8] ss:$72 sps:$4 sm:$0xff]  }
  0xf9   :  { %4055 = vmatmul.mubr.bf16.gmra.mrb[92].mxu1 %v8202_v49  ;;  %v8283_v49 = vld [vmem:[%s11008_s0 + $0x5ac] ss:$72 sps:$4 sm:$0xff]  }
  0xfa   :  { %5111 = vmatmul.mubr.bf16.gmra.mrb[40].mxu0 %v8203_v51  ;;  %4062 = vmatprep.mubr.bf16.mxu1 %v6757_v53  ;;  %v8287_v51 = vld [vmem:[%s11008_s0 + $0x5a8] ss:$72 sps:$4 sm:$0xff]   ;;  %v8291_v53 = vld [vmem:[%s11008_s0 + $0x63c] ss:$72 sps:$4 sm:$0xff]  }
  0xfb   :  { %5118 = vmatprep.mubr.bf16.mxu0 %v8205_v52  ;;  %v8288_v52 = vld [vmem:[%s11008_s0 + $0xc88] ss:$72 sps:$4 sm:$0xff]  }
 0x101   :  { %4063 = vmatmul.mubr.bf16.gmra.mrb[96].mxu1 %v6756_v56  ;;  %v8295_v56 = vld [vmem:[%s11008_s0 + $0x638] ss:$72 sps:$4 sm:$0xff]  }
 0x102   :  { %5119 = vmatmul.mubr.bf16.gmra.mrb[44].mxu0 %v8208_v54  ;;  %4102 = vmatprep.mubr.bf16.mxu1 %v8213_v55  ;;  %v8293_v54 = vld [vmem:[%s11008_s0 + $0xd1c] ss:$72 sps:$4 sm:$0xff]   ;;  %v452_v55 = vld [vmem:[%s11008_s0 + $0xda8] sm:$0xff] }
 0x103   :  { %5126 = vmatprep.mubr.bf16.mxu0 %v8214_v57  ;;  %v8296_v57 = vld [vmem:[%s11008_s0 + $0xd18] ss:$72 sps:$4 sm:$0xff]  }
 0x109   :  { %4103 = vmatmul.mubr.bf16.vlgmr.msra.gmra.mrb[0].mxu1 %v8211_v58  ;;  %v8298_v58 = vld [vmem:[%s11008_s0 + $0x6cc] ss:$72 sps:$4 sm:$0xff]  }
 0x10a   :  { %5127 = vmatmul.mubr.bf16.gmra.mrb[48].mxu0 %v8216_v59  ;;  %4110 = vmatprep.mubr.bf16.mxu1 %v8218_v60  ;;  %v6767_v59 = vcombine.high %v452_v55, %v452_v55  ;;  %v8302_v60 = vld [vmem:[%s11008_s0 + $0x6c8] ss:$72 sps:$4 sm:$0xff]  }
 0x10b   :  { %4303 = vmatpush1.bf16.msra.mxu1 %v8220_v61  ;;  %5134 = vmatprep.mubr.bf16.mxu0 %v8221_v62  ;;  %v6766_v61 = vcombine.low %v452_v55, %v452_v55  ;;  %v8304_v62 = vld [vmem:[%s11008_s0 + $0x75c] ss:$72 sps:$4 sm:$0xff]  }
 0x10c   :  { %4304 = vmatprep.subr.bf16.mxu1 %v8816_v0  ;;  %v8378_v55 = vld [vmem:[%s11008_s0 + $0xcfc] ss:$72 sps:$4 sm:$0xff]  }
 0x10f   :  { %4305 = vmatpush1.bf16.msra.mxu1 %v8232_v1  ;;  %v8309_v1 = vld [vmem:[%s11008_s0 + $0x758] ss:$72 sps:$4 sm:$0xff]  }
 0x110   :  { %4306 = vmatprep.subr.bf16.mxu1 %v8816_v0 }
 0x111   :  { %4111 = vmatmul.mubr.bf16.gmra.mrb[4].mxu1 %v8223_v63  ;;  %v8308_v63 = vld [vmem:[%s11008_s0 + $0x34] ss:$72 sps:$4 sm:$0xff]  }
 0x112   :  { %5135 = vmatmul.mubr.bf16.gmra.mrb[52].mxu0 %v8224_v2  ;;  %4118 = vmatprep.mubr.bf16.mxu1 %v8225_v3  ;;  %v8306_v2 = vld [vmem:[%s11008_s0 + $0x30] ss:$72 sps:$4 sm:$0xff]   ;;  %v8312_v3 = vld [vmem:[%s11008_s0 + $0x7ec] ss:$72 sps:$4 sm:$0xff]  }
 0x113   :  { %5142 = vmatprep.mubr.bf16.mxu0 %v8227_v4  ;;  %4307 = vmatpush1.bf16.msra.mxu1 %v8245_v5  ;;  %v8310_v4 = vld [vmem:[%s11007_s1 + $0x380] sm:$0xff]  }
 0x114   :  { %4308 = vmatprep.subr.bf16.mxu1 %v8816_v0  ;;  %v8314_v5 = vld [vmem:[%s11008_s0 + $0xc4] ss:$72 sps:$4 sm:$0xff]  }
 0x117   :  { %4309 = vmatpush1.bf16.msra.mxu1 %v8254_v7  ;;  %v8316_v7 = vld [vmem:[%s11008_s0 + $0x7e8] ss:$72 sps:$4 sm:$0xff]  }
 0x118   :  { %4310 = vmatprep.subr.bf16.mxu1 %v8816_v0 }
 0x119   :  { %4119 = vmatmul.mubr.bf16.gmra.mrb[8].mxu1 %v8229_v6  ;;  %v8318_v6 = vld [vmem:[%s11007_s1 + $0x388] sm:$0xff]  }
 0x11a   :  { %5143 = vmatmul.mubr.bf16.gmra.mrb[56].mxu0 %v8230_v8  ;;  %4126 = vmatprep.mubr.bf16.mxu1 %v8233_v9  ;;  %v8317_v8 = vld [vmem:[%s11008_s0 + $0xc0] ss:$72 sps:$4 sm:$0xff]   ;;  %v8319_v9 = vld [vmem:[%s11008_s0 + $0x87c] ss:$72 sps:$4 sm:$0xff]  }
 0x11b   :  { %5150 = vmatprep.mubr.bf16.mxu0 %v8235_v10  ;;  %4311 = vmatpush1.bf16.msra.mxu1 %v8268_v11  ;;  %v8321_v10 = vld [vmem:[%s11008_s0 + $0x154] ss:$72 sps:$4 sm:$0xff]  }
 0x11c   :  { %4312 = vmatprep.subr.bf16.mxu1 %v8816_v0  ;;  %v8332_v11 = vld [vmem:[%s11007_s1 + $0x390] sm:$0xff]  }
 0x11f   :  { %4313 = vmatpush1.bf16.msra.mxu1 %v8276_v13  ;;  %v8323_v13 = vld [vmem:[%s11008_s0 + $0x878] ss:$72 sps:$4 sm:$0xff]  }
 0x120   :  { %4314 = vmatprep.subr.bf16.mxu1 %v8816_v0 }
 0x121   :  { %4127 = vmatmul.mubr.bf16.gmra.mrb[12].mxu1 %v8237_v12  ;;  %v8344_v12 = vld [vmem:[%s11007_s1 + $0x398] sm:$0xff]  }
 0x122   :  { %5151 = vmatmul.mubr.bf16.gmra.mrb[60].mxu0 %v8238_v14  ;;  %4134 = vmatprep.mubr.bf16.mxu1 %v8240_v15  ;;  %v8325_v14 = vld [vmem:[%s11008_s0 + $0x150] ss:$72 sps:$4 sm:$0xff]   ;;  %v8326_v15 = vld [vmem:[%s11008_s0 + $0x90c] ss:$72 sps:$4 sm:$0xff]  }
 0x123   :  { %5158 = vmatprep.mubr.bf16.mxu0 %v8242_v16  ;;  %4315 = vmatpush1.bf16.msra.mxu1 %v8290_v17  ;;  %v8328_v16 = vld [vmem:[%s11008_s0 + $0x1e4] ss:$72 sps:$4 sm:$0xff]  }
 0x124   :  { %4316 = vmatprep.subr.bf16.mxu1 %v8816_v0  ;;  %v8354_v17 = vld [vmem:[%s11007_s1 + $0x3a0] sm:$0xff]  }
 0x127   :  { %4317 = vmatpush1.bf16.msra.mxu1 %v8300_v19  ;;  %v8330_v19 = vld [vmem:[%s11008_s0 + $0x908] ss:$72 sps:$4 sm:$0xff]  }
 0x128   :  { %4318 = vmatprep.subr.bf16.mxu1 %v8816_v0 }
 0x129   :  { %4135 = vmatmul.mubr.bf16.gmra.mrb[16].mxu1 %v8244_v18  ;;  %v8368_v18 = vld [vmem:[%s11007_s1 + $0x3a8] sm:$0xff]  }
 0x12a   :  { %5159 = vmatmul.mubr.bf16.gmra.mrb[64].mxu0 %v8246_v20  ;;  %4142 = vmatprep.mubr.bf16.mxu1 %v8247_v21  ;;  %v8331_v20 = vld [vmem:[%s11008_s0 + $0x1e0] ss:$72 sps:$4 sm:$0xff]   ;;  %v8334_v21 = vld [vmem:[%s11008_s0 + $0x99c] ss:$72 sps:$4 sm:$0xff]  }
 0x12b   :  { %5166 = vmatprep.mubr.bf16.mxu0 %v8249_v22  ;;  %4319 = vmatpush1.bf16.msra.mxu1 %v8311_v23  ;;  %v8336_v22 = vld [vmem:[%s11008_s0 + $0x274] ss:$72 sps:$4 sm:$0xff]  }
 0x12c   :  { %4320 = vmatprep.subr.bf16.mxu1 %v8816_v0  ;;  %v8376_v23 = vld [vmem:[%s11007_s1 + $0x3b0] sm:$0xff]  }
 0x12f   :  { %4321 = vmatpush1.bf16.msra.mxu1 %v8324_v25  ;;  %v8338_v25 = vld [vmem:[%s11008_s0 + $0x998] ss:$72 sps:$4 sm:$0xff]  }
 0x130   :  { %4322 = vmatprep.subr.bf16.mxu1 %v8816_v0 }
 0x131   :  { %4143 = vmatmul.mubr.bf16.gmra.mrb[20].mxu1 %v8251_v24  ;;  %v8389_v24 = vld [vmem:[%s11007_s1 + $0x3b8] sm:$0xff]  }
 0x132   :  { %5167 = vmatmul.mubr.bf16.gmra.mrb[68].mxu0 %v8252_v26  ;;  %4150 = vmatprep.mubr.bf16.mxu1 %v8255_v27  ;;  %v8339_v26 = vld [vmem:[%s11008_s0 + $0x270] ss:$72 sps:$4 sm:$0xff]   ;;  %v8340_v27 = vld [vmem:[%s11008_s0 + $0xa2c] ss:$72 sps:$4 sm:$0xff]  }
 0x133   :  { %5174 = vmatprep.mubr.bf16.mxu0 %v8257_v28  ;;  %4323 = vmatpush1.bf16.msra.mxu1 %v8333_v29  ;;  %v8342_v28 = vld [vmem:[%s11008_s0 + $0x304] ss:$72 sps:$4 sm:$0xff]  }
 0x134   :  { %4324 = vmatprep.subr.bf16.mxu1 %v8816_v0  ;;  %v8397_v29 = vld [vmem:[%s11007_s1 + $0x3c0] sm:$0xff]  }
 0x137   :  { %4325 = vmatpush1.bf16.msra.mxu1 %v8347_v31  ;;  %v8345_v31 = vld [vmem:[%s11008_s0 + $0xa28] ss:$72 sps:$4 sm:$0xff]  }
 0x138   :  { %4326 = vmatprep.subr.bf16.mxu1 %v8816_v0 }
 0x139   :  { %4151 = vmatmul.mubr.bf16.gmra.mrb[24].mxu1 %v8259_v30  ;;  %v8411_v30 = vld [vmem:[%s11007_s1 + $0x3c8] sm:$0xff]  }
 0x13a   :  { %5175 = vmatmul.mubr.bf16.gmra.mrb[72].mxu0 %v8260_v32  ;;  %4158 = vmatprep.mubr.bf16.mxu1 %v8261_v33  ;;  %v8346_v32 = vld [vmem:[%s11008_s0 + $0x300] ss:$72 sps:$4 sm:$0xff]   ;;  %v8348_v33 = vld [vmem:[%s11008_s0 + $0xabc] ss:$72 sps:$4 sm:$0xff]  }
 0x13b   :  { %5182 = vmatprep.mubr.bf16.mxu0 %v8263_v34  ;;  %4327 = vmatpush1.bf16.msra.mxu1 %v8355_v35  ;;  %v8350_v34 = vld [vmem:[%s11008_s0 + $0x394] ss:$72 sps:$4 sm:$0xff]  }
 0x13c   :  { %4328 = vmatprep.subr.bf16.mxu1 %v8816_v0  ;;  %v8419_v35 = vld [vmem:[%s11007_s1 + $0x3d0] sm:$0xff]  }
 0x13f   :  { %4329 = vmatpush1.bf16.msra.mxu1 %v8369_v37  ;;  %v8352_v37 = vld [vmem:[%s11008_s0 + $0xab8] ss:$72 sps:$4 sm:$0xff]  }
 0x140   :  { %4330 = vmatprep.subr.bf16.mxu1 %v8816_v0 }
 0x141   :  { %4159 = vmatmul.mubr.bf16.gmra.mrb[28].mxu1 %v8266_v36  ;;  %v8433_v36 = vld [vmem:[%s11007_s1 + $0x3d8] sm:$0xff]  }
 0x142   :  { %5183 = vmatmul.mubr.bf16.gmra.mrb[76].mxu0 %v8267_v38  ;;  %4166 = vmatprep.mubr.bf16.mxu1 %v8269_v39  ;;  %v8353_v38 = vld [vmem:[%s11008_s0 + $0x390] ss:$72 sps:$4 sm:$0xff]   ;;  %v8356_v39 = vld [vmem:[%s11008_s0 + $0xb4c] ss:$72 sps:$4 sm:$0xff]  }
 0x143   :  { %5190 = vmatprep.mubr.bf16.mxu0 %v8271_v40  ;;  %4331 = vmatpush1.bf16.msra.mxu1 %v8377_v41  ;;  %v8358_v40 = vld [vmem:[%s11008_s0 + $0x424] ss:$72 sps:$4 sm:$0xff]  }
 0x144   :  { %4332 = vmatprep.subr.bf16.mxu1 %v8816_v0  ;;  %v8445_v41 = vld [vmem:[%s11007_s1 + $0x3e0] sm:$0xff]  }
 0x147   :  { %4333 = vmatpush1.bf16.msra.mxu1 %v8390_v46  ;;  %v8364_v46 = vld [vmem:[%s11008_s0 + $0x4b4] ss:$72 sps:$4 sm:$0xff]  }
 0x148   :  { %4534 = vmatprep.subr.bf16.mxu1 %v8816_v0 }
 0x149   :  { %4167 = vmatmul.mubr.bf16.gmra.mrb[32].mxu1 %v8273_v42  ;;  %v8455_v42 = vld [vmem:[%s11007_s1 + $0x3e8] sm:$0xff]  }
 0x14a   :  { %5191 = vmatmul.mubr.bf16.gmra.mrb[80].mxu0 %v8274_v43  ;;  %4174 = vmatprep.mubr.bf16.mxu1 %v8277_v44  ;;  %v8360_v43 = vld [vmem:[%s11008_s0 + $0xb48] ss:$72 sps:$4 sm:$0xff]  }
 0x14b   :  { %5198 = vmatprep.mubr.bf16.mxu0 %v8279_v45  ;;  %v8361_v44 = vld [vmem:[%s11008_s0 + $0x420] ss:$72 sps:$4 sm:$0xff]   ;;  %v8362_v45 = vld [vmem:[%s11008_s0 + $0xbdc] ss:$72 sps:$4 sm:$0xff]  }
 0x151   :  { %4175 = vmatmul.mubr.bf16.gmra.mrb[36].mxu1 %v8281_v47  ;;  %v8469_v47 = vld [vmem:[%s11007_s1 + $0x3f0] sm:$0xff]  }
 0x152   :  { %5199 = vmatmul.mubr.bf16.gmra.mrb[84].mxu0 %v8282_v48  ;;  %4182 = vmatprep.mubr.bf16.mxu1 %v8283_v49  ;;  %v8477_v48 = vld [vmem:[%s11007_s1 + $0x3f8] sm:$0xff]  }
 0x153   :  { %5206 = vmatprep.mubr.bf16.mxu0 %v8285_v50  ;;  %v8366_v49 = vld [vmem:[%s11008_s0 + $0xbd8] ss:$72 sps:$4 sm:$0xff]  }
 0x154   :  { %v8367_v50 = vld [vmem:[%s11008_s0 + $0x4b0] ss:$72 sps:$4 sm:$0xff]  }
 0x159   :  { %4183 = vmatmul.mubr.bf16.gmra.mrb[40].mxu1 %v8287_v51  ;;  %v8370_v51 = vld [vmem:[%s11008_s0 + $0xc6c] ss:$72 sps:$4 sm:$0xff]  }
 0x15a   :  { %5207 = vmatmul.mubr.bf16.gmra.mrb[88].mxu0 %v8288_v52  ;;  %4190 = vmatprep.mubr.bf16.mxu1 %v8291_v53  ;;  %v8372_v52 = vld [vmem:[%s11008_s0 + $0x544] ss:$72 sps:$4 sm:$0xff]   ;;  %v8374_v53 = vld [vmem:[%s11008_s0 + $0xc68] ss:$72 sps:$4 sm:$0xff]  }
 0x15b   :  { %5214 = vmatprep.mubr.bf16.mxu0 %v8293_v54  ;;  %v8375_v54 = vld [vmem:[%s11008_s0 + $0x540] ss:$72 sps:$4 sm:$0xff]  }
 0x161   :  { %4191 = vmatmul.mubr.bf16.gmra.mrb[44].mxu1 %v8295_v56  ;;  %v8380_v56 = vld [vmem:[%s11008_s0 + $0x5d4] ss:$72 sps:$4 sm:$0xff]  }
 0x162   :  { %5215 = vmatmul.mubr.bf16.gmra.mrb[92].mxu0 %v8296_v57  ;;  %4198 = vmatprep.mubr.bf16.mxu1 %v8298_v58  ;;  %v448_v57 = vld [vmem:[%s11008_s0 + $0xd88] sm:$0xff]  ;;  %v8382_v58 = vld [vmem:[%s11008_s0 + $0xcf8] ss:$72 sps:$4 sm:$0xff]  }
 0x163   :  { %5222 = vmatprep.mubr.bf16.mxu0 %v6767_v59  ;;  %v8383_v59 = vld [vmem:[%s11008_s0 + $0x5d0] ss:$72 sps:$4 sm:$0xff]  }
 0x169   :  { %4199 = vmatmul.mubr.bf16.gmra.mrb[48].mxu1 %v8302_v60  ;;  %v6759_v60 = vcombine.high %v448_v57, %v448_v57 }
 0x16a   :  { %5223 = vmatmul.mubr.bf16.gmra.mrb[96].mxu0 %v6766_v61  ;;  %4206 = vmatprep.mubr.bf16.mxu1 %v8304_v62  ;;  %v8385_v61 = vld [vmem:[%s11008_s0 + $0x664] ss:$72 sps:$4 sm:$0xff]   ;;  %v6758_v62 = vcombine.low %v448_v57, %v448_v57  ;;  %v8463_v57 = vld [vmem:[%s11008_s0 + $0x5b4] ss:$72 sps:$4 sm:$0xff]  }
 0x16b   :  { %5262 = vmatprep.mubr.bf16.mxu0 %v8308_v63  ;;  %v8388_v63 = vld [vmem:[%s11008_s0 + $0x660] ss:$72 sps:$4 sm:$0xff]  }
 0x171   :  { %4207 = vmatmul.mubr.bf16.gmra.mrb[52].mxu1 %v8309_v1  ;;  %v8393_v1 = vld [vmem:[%s11008_s0 + $0x14] ss:$72 sps:$4 sm:$0xff]  }
 0x172   :  { %5263 = vmatmul.mubr.bf16.vlgmr.msra.gmra.mrb[0].mxu0 %v8306_v2  ;;  %4214 = vmatprep.mubr.bf16.mxu1 %v8312_v3  ;;  %v8394_v2 = vld [vmem:[%s11008_s0 + $0x6f4] ss:$72 sps:$4 sm:$0xff]   ;;  %v8391_v3 = vld [vmem:[%s11008_s0 + $0x10] ss:$72 sps:$4 sm:$0xff]  }
 0x173   :  { %5463 = vmatpush1.bf16.msra.mxu0 %v8310_v4  ;;  %5270 = vmatprep.mubr.bf16.mxu0 %v8314_v5  ;;  %v8396_v4 = vld [vmem:[%s11008_s0 + $0x6f0] ss:$72 sps:$4 sm:$0xff]   ;;  %v8398_v5 = vld [vmem:[%s11008_s0 + $0xa4] ss:$72 sps:$4 sm:$0xff]  }
 0x174   :  { %5464 = vmatprep.subr.bf16.mxu0 %v8816_v0 }
 0x177   :  { %5465 = vmatpush1.bf16.msra.mxu0 %v8318_v6  ;;  %v8400_v6 = vld [vmem:[%s11007_s1 + $0x180] sm:$0xff]  }
 0x178   :  { %5466 = vmatprep.subr.bf16.mxu0 %v8816_v0 }
 0x179   :  { %4215 = vmatmul.mubr.bf16.gmra.mrb[56].mxu1 %v8316_v7  ;;  %v8401_v7 = vld [vmem:[%s11008_s0 + $0x784] ss:$72 sps:$4 sm:$0xff]  }
 0x17a   :  { %5271 = vmatmul.mubr.bf16.gmra.mrb[4].mxu0 %v8317_v8  ;;  %4222 = vmatprep.mubr.bf16.mxu1 %v8319_v9  ;;  %v8412_v8 = vld [vmem:[%s11007_s1 + $0x188] sm:$0xff]  }
 0x17b   :  { %5278 = vmatprep.mubr.bf16.mxu0 %v8321_v10  ;;  %5467 = vmatpush1.bf16.msra.mxu0 %v8332_v11  ;;  %v8403_v9 = vld [vmem:[%s11008_s0 + $0xa0] ss:$72 sps:$4 sm:$0xff]   ;;  %v8405_v11 = vld [vmem:[%s11008_s0 + $0x134] ss:$72 sps:$4 sm:$0xff]  }
 0x17c   :  { %5468 = vmatprep.subr.bf16.mxu0 %v8816_v0  ;;  %v8404_v10 = vld [vmem:[%s11008_s0 + $0x780] ss:$72 sps:$4 sm:$0xff]  }
 0x17f   :  { %5469 = vmatpush1.bf16.msra.mxu0 %v8344_v12  ;;  %v8407_v12 = vld [vmem:[%s11008_s0 + $0x814] ss:$72 sps:$4 sm:$0xff]  }
 0x180   :  { %5470 = vmatprep.subr.bf16.mxu0 %v8816_v0 }
 0x181   :  { %4223 = vmatmul.mubr.bf16.gmra.mrb[60].mxu1 %v8323_v13  ;;  %v8425_v13 = vld [vmem:[%s11007_s1 + $0x190] sm:$0xff]  }
 0x182   :  { %5279 = vmatmul.mubr.bf16.gmra.mrb[8].mxu0 %v8325_v14  ;;  %4230 = vmatprep.mubr.bf16.mxu1 %v8326_v15  ;;  %v8434_v14 = vld [vmem:[%s11007_s1 + $0x198] sm:$0xff]  }
 0x183   :  { %5286 = vmatprep.mubr.bf16.mxu0 %v8328_v16  ;;  %5471 = vmatpush1.bf16.msra.mxu0 %v8354_v17  ;;  %v8409_v15 = vld [vmem:[%s11008_s0 + $0x130] ss:$72 sps:$4 sm:$0xff]   ;;  %v8413_v17 = vld [vmem:[%s11008_s0 + $0x1c4] ss:$72 sps:$4 sm:$0xff]  }
 0x184   :  { %5472 = vmatprep.subr.bf16.mxu0 %v8816_v0  ;;  %v8410_v16 = vld [vmem:[%s11008_s0 + $0x810] ss:$72 sps:$4 sm:$0xff]  }
 0x187   :  { %5473 = vmatpush1.bf16.msra.mxu0 %v8368_v18  ;;  %v8415_v18 = vld [vmem:[%s11008_s0 + $0x8a4] ss:$72 sps:$4 sm:$0xff]  }
 0x188   :  { %5474 = vmatprep.subr.bf16.mxu0 %v8816_v0 }
 0x189   :  { %4231 = vmatmul.mubr.bf16.gmra.mrb[64].mxu1 %v8330_v19  ;;  %v8448_v19 = vld [vmem:[%s11007_s1 + $0x1a0] sm:$0xff]  }
 0x18a   :  { %5287 = vmatmul.mubr.bf16.gmra.mrb[12].mxu0 %v8331_v20  ;;  %4238 = vmatprep.mubr.bf16.mxu1 %v8334_v21  ;;  %v8456_v20 = vld [vmem:[%s11007_s1 + $0x1a8] sm:$0xff]  }
 0x18b   :  { %5294 = vmatprep.mubr.bf16.mxu0 %v8336_v22  ;;  %5475 = vmatpush1.bf16.msra.mxu0 %v8376_v23  ;;  %v8417_v21 = vld [vmem:[%s11008_s0 + $0x1c0] ss:$72 sps:$4 sm:$0xff]   ;;  %v8420_v23 = vld [vmem:[%s11008_s0 + $0x254] ss:$72 sps:$4 sm:$0xff]  }
 0x18c   :  { %5476 = vmatprep.subr.bf16.mxu0 %v8816_v0  ;;  %v8418_v22 = vld [vmem:[%s11008_s0 + $0x8a0] ss:$72 sps:$4 sm:$0xff]  }
 0x18f   :  { %5477 = vmatpush1.bf16.msra.mxu0 %v8389_v24  ;;  %v8422_v24 = vld [vmem:[%s11008_s0 + $0x934] ss:$72 sps:$4 sm:$0xff]  }
 0x190   :  { %5478 = vmatprep.subr.bf16.mxu0 %v8816_v0 }
 0x191   :  { %4239 = vmatmul.mubr.bf16.gmra.mrb[68].mxu1 %v8338_v25  ;;  %v8470_v25 = vld [vmem:[%s11007_s1 + $0x1b0] sm:$0xff]  }
 0x192   :  { %5295 = vmatmul.mubr.bf16.gmra.mrb[16].mxu0 %v8339_v26  ;;  %4246 = vmatprep.mubr.bf16.mxu1 %v8340_v27  ;;  %v8480_v26 = vld [vmem:[%s11007_s1 + $0x1b8] sm:$0xff]  }
 0x193   :  { %5302 = vmatprep.mubr.bf16.mxu0 %v8342_v28  ;;  %5479 = vmatpush1.bf16.msra.mxu0 %v8397_v29  ;;  %v8424_v27 = vld [vmem:[%s11008_s0 + $0x250] ss:$72 sps:$4 sm:$0xff]   ;;  %v8427_v29 = vld [vmem:[%s11008_s0 + $0x2e4] ss:$72 sps:$4 sm:$0xff]  }
 0x194   :  { %5480 = vmatprep.subr.bf16.mxu0 %v8816_v0  ;;  %v8426_v28 = vld [vmem:[%s11008_s0 + $0x930] ss:$72 sps:$4 sm:$0xff]  }
 0x197   :  { %5481 = vmatpush1.bf16.msra.mxu0 %v8411_v30  ;;  %v8429_v30 = vld [vmem:[%s11008_s0 + $0x9c4] ss:$72 sps:$4 sm:$0xff]  }
 0x198   :  { %5482 = vmatprep.subr.bf16.mxu0 %v8816_v0 }
 0x199   :  { %4247 = vmatmul.mubr.bf16.gmra.mrb[72].mxu1 %v8345_v31  ;;  %v8491_v31 = vld [vmem:[%s11007_s1 + $0x1c0] sm:$0xff]  }
 0x19a   :  { %5303 = vmatmul.mubr.bf16.gmra.mrb[20].mxu0 %v8346_v32  ;;  %4254 = vmatprep.mubr.bf16.mxu1 %v8348_v33  ;;  %v8504_v32 = vld [vmem:[%s11007_s1 + $0x1c8] sm:$0xff]  }
 0x19b   :  { %5310 = vmatprep.mubr.bf16.mxu0 %v8350_v34  ;;  %5483 = vmatpush1.bf16.msra.mxu0 %v8419_v35  ;;  %v8431_v33 = vld [vmem:[%s11008_s0 + $0x2e0] ss:$72 sps:$4 sm:$0xff]   ;;  %v8435_v35 = vld [vmem:[%s11008_s0 + $0x374] ss:$72 sps:$4 sm:$0xff]  }
 0x19c   :  { %5484 = vmatprep.subr.bf16.mxu0 %v8816_v0  ;;  %v8432_v34 = vld [vmem:[%s11008_s0 + $0x9c0] ss:$72 sps:$4 sm:$0xff]  }
 0x19f   :  { %5485 = vmatpush1.bf16.msra.mxu0 %v8433_v36  ;;  %v8437_v36 = vld [vmem:[%s11008_s0 + $0xa54] ss:$72 sps:$4 sm:$0xff]  }
 0x1a0   :  { %5486 = vmatprep.subr.bf16.mxu0 %v8816_v0 }
 0x1a1   :  { %4255 = vmatmul.mubr.bf16.gmra.mrb[76].mxu1 %v8352_v37  ;;  %v8513_v37 = vld [vmem:[%s11007_s1 + $0x1d0] sm:$0xff]  }
 0x1a2   :  { %5311 = vmatmul.mubr.bf16.gmra.mrb[24].mxu0 %v8353_v38  ;;  %4262 = vmatprep.mubr.bf16.mxu1 %v8356_v39  ;;  %v8527_v38 = vld [vmem:[%s11007_s1 + $0x1d8] sm:$0xff]  }
 0x1a3   :  { %5318 = vmatprep.mubr.bf16.mxu0 %v8358_v40  ;;  %5487 = vmatpush1.bf16.msra.mxu0 %v8445_v41  ;;  %v8439_v39 = vld [vmem:[%s11008_s0 + $0x370] ss:$72 sps:$4 sm:$0xff]   ;;  %v8441_v41 = vld [vmem:[%s11008_s0 + $0x404] ss:$72 sps:$4 sm:$0xff]  }
 0x1a4   :  { %5488 = vmatprep.subr.bf16.mxu0 %v8816_v0  ;;  %v8440_v40 = vld [vmem:[%s11008_s0 + $0xa50] ss:$72 sps:$4 sm:$0xff]  }
 0x1a7   :  { %5489 = vmatpush1.bf16.msra.mxu0 %v8455_v42  ;;  %v8443_v42 = vld [vmem:[%s11008_s0 + $0xae4] ss:$72 sps:$4 sm:$0xff]  }
 0x1a8   :  { %5490 = vmatprep.subr.bf16.mxu0 %v8816_v0 }
 0x1a9   :  { %4263 = vmatmul.mubr.bf16.gmra.mrb[80].mxu1 %v8360_v43  ;;  %v8535_v43 = vld [vmem:[%s11007_s1 + $0x1e0] sm:$0xff]  }
 0x1aa   :  { %5319 = vmatmul.mubr.bf16.gmra.mrb[28].mxu0 %v8361_v44  ;;  %4270 = vmatprep.mubr.bf16.mxu1 %v8362_v45  ;;  %v8549_v44 = vld [vmem:[%s11007_s1 + $0x1e8] sm:$0xff]  }
 0x1ab   :  { %5326 = vmatprep.mubr.bf16.mxu0 %v8364_v46  ;;  %5491 = vmatpush1.bf16.msra.mxu0 %v8469_v47  ;;  %v8446_v45 = vld [vmem:[%s11008_s0 + $0x400] ss:$72 sps:$4 sm:$0xff]   ;;  %v8449_v47 = vld [vmem:[%s11008_s0 + $0x494] ss:$72 sps:$4 sm:$0xff]  }
 0x1ac   :  { %5492 = vmatprep.subr.bf16.mxu0 %v8816_v0  ;;  %v8447_v46 = vld [vmem:[%s11008_s0 + $0xae0] ss:$72 sps:$4 sm:$0xff]  }
 0x1af   :  { %5493 = vmatpush1.bf16.msra.mxu0 %v8477_v48  ;;  %v8451_v48 = vld [vmem:[%s11008_s0 + $0xb74] ss:$72 sps:$4 sm:$0xff]  }
 0x1b0   :  { %5694 = vmatprep.subr.bf16.mxu0 %v8816_v0 }
 0x1b1   :  { %4271 = vmatmul.mubr.bf16.gmra.mrb[84].mxu1 %v8366_v49  ;;  %v8557_v49 = vld [vmem:[%s11007_s1 + $0x1f0] sm:$0xff]  }
 0x1b2   :  { %5327 = vmatmul.mubr.bf16.gmra.mrb[32].mxu0 %v8367_v50  ;;  %4278 = vmatprep.mubr.bf16.mxu1 %v8370_v51  ;;  %v8453_v50 = vld [vmem:[%s11008_s0 + $0x490] ss:$72 sps:$4 sm:$0xff]  }
 0x1b3   :  { %5334 = vmatprep.mubr.bf16.mxu0 %v8372_v52  ;;  %v8454_v51 = vld [vmem:[%s11008_s0 + $0xb70] ss:$72 sps:$4 sm:$0xff]   ;;  %v8457_v52 = vld [vmem:[%s11008_s0 + $0x524] ss:$72 sps:$4 sm:$0xff]  }
 0x1b9   :  { %4279 = vmatmul.mubr.bf16.gmra.mrb[88].mxu1 %v8374_v53  ;;  %v8459_v53 = vld [vmem:[%s11008_s0 + $0xc04] ss:$72 sps:$4 sm:$0xff]  }
 0x1ba   :  { %5335 = vmatmul.mubr.bf16.gmra.mrb[36].mxu0 %v8375_v54  ;;  %4286 = vmatprep.mubr.bf16.mxu1 %v8378_v55  ;;  %v8570_v54 = vld [vmem:[%s11007_s1 + $0x1f8] sm:$0xff]   ;;  %v8461_v55 = vld [vmem:[%s11008_s0 + $0x520] ss:$72 sps:$4 sm:$0xff]  }
 0x1bb   :  { %5342 = vmatprep.mubr.bf16.mxu0 %v8380_v56  ;;  %v8462_v56 = vld [vmem:[%s11008_s0 + $0xc00] ss:$72 sps:$4 sm:$0xff]  }
 0x1c1   :  { %4287 = vmatmul.mubr.bf16.gmra.mrb[92].mxu1 %v8382_v58  ;;  %v8465_v58 = vld [vmem:[%s11008_s0 + $0xc94] ss:$72 sps:$4 sm:$0xff]  }
 0x1c2   :  { %5343 = vmatmul.mubr.bf16.gmra.mrb[40].mxu0 %v8383_v59  ;;  %4294 = vmatprep.mubr.bf16.mxu1 %v6759_v60  ;;  %v8467_v59 = vld [vmem:[%s11008_s0 + $0x5b0] ss:$72 sps:$4 sm:$0xff]  }
 0x1c3   :  { %5350 = vmatprep.mubr.bf16.mxu0 %v8385_v61  ;;  %v8468_v60 = vld [vmem:[%s11008_s0 + $0xc90] ss:$72 sps:$4 sm:$0xff]   ;;  %v8471_v61 = vld [vmem:[%s11008_s0 + $0x644] ss:$72 sps:$4 sm:$0xff]  }
 0x1c9   :  { %4295 = vmatmul.mubr.bf16.gmra.mrb[96].mxu1 %v6758_v62  ;;  %v8473_v62 = vld [vmem:[%s11008_s0 + $0xd24] ss:$72 sps:$4 sm:$0xff]  }
 0x1ca   :  { %5351 = vmatmul.mubr.bf16.gmra.mrb[44].mxu0 %v8388_v63  ;;  %4334 = vmatprep.mubr.bf16.mxu1 %v8393_v1  ;;  %v453_v63 = vld [vmem:[%s11008_s0 + $0xdb0] sm:$0xff]  ;;  %v8475_v1 = vld [vmem:[%s11008_s0 + $0x640] ss:$72 sps:$4 sm:$0xff]  }
 0x1cb   :  { %5358 = vmatprep.mubr.bf16.mxu0 %v8394_v2  ;;  %v8476_v2 = vld [vmem:[%s11008_s0 + $0xd20] ss:$72 sps:$4 sm:$0xff]  }
 0x1d1   :  { %4335 = vmatmul.mubr.bf16.vlgmr.msra.gmra.mrb[0].mxu1 %v8391_v3  ;;  %v8478_v3 = vld [vmem:[%s11008_s0 + $0x6d4] ss:$72 sps:$4 sm:$0xff]  }
 0x1d2   :  { %5359 = vmatmul.mubr.bf16.gmra.mrb[48].mxu0 %v8396_v4  ;;  %4342 = vmatprep.mubr.bf16.mxu1 %v8398_v5  ;;  %v6769_v4 = vcombine.high %v453_v63, %v453_v63  ;;  %v8482_v5 = vld [vmem:[%s11008_s0 + $0x6d0] ss:$72 sps:$4 sm:$0xff]  }
 0x1d3   :  { %4535 = vmatpush1.bf16.msra.mxu1 %v8400_v6  ;;  %5366 = vmatprep.mubr.bf16.mxu0 %v8401_v7  ;;  %v6768_v6 = vcombine.low %v453_v63, %v453_v63  ;;  %v8484_v7 = vld [vmem:[%s11008_s0 + $0x764] ss:$72 sps:$4 sm:$0xff]  }
 0x1d4   :  { %4536 = vmatprep.subr.bf16.mxu1 %v8816_v0  ;;  %v8558_v63 = vld [vmem:[%s11008_s0 + $0xd04] ss:$72 sps:$4 sm:$0xff]  }
 0x1d7   :  { %4537 = vmatpush1.bf16.msra.mxu1 %v8412_v8  ;;  %v8488_v8 = vld [vmem:[%s11008_s0 + $0x3c] ss:$72 sps:$4 sm:$0xff]  }
 0x1d8   :  { %4538 = vmatprep.subr.bf16.mxu1 %v8816_v0 }
 0x1d9   :  { %4343 = vmatmul.mubr.bf16.gmra.mrb[4].mxu1 %v8403_v9  ;;  %v8489_v9 = vld [vmem:[%s11008_s0 + $0x760] ss:$72 sps:$4 sm:$0xff]  }
 0x1da   :  { %5367 = vmatmul.mubr.bf16.gmra.mrb[52].mxu0 %v8404_v10  ;;  %4350 = vmatprep.mubr.bf16.mxu1 %v8405_v11  ;;  %v8486_v10 = vld [vmem:[%s11008_s0 + $0x38] ss:$72 sps:$4 sm:$0xff]   ;;  %v8492_v11 = vld [vmem:[%s11008_s0 + $0x7f4] ss:$72 sps:$4 sm:$0xff]  }
 0x1db   :  { %5374 = vmatprep.mubr.bf16.mxu0 %v8407_v12  ;;  %4539 = vmatpush1.bf16.msra.mxu1 %v8425_v13  ;;  %v8490_v12 = vld [vmem:[%s11007_s1 + $0x400] sm:$0xff]   ;;  %v8494_v13 = vld [vmem:[%s11008_s0 + $0xcc] ss:$72 sps:$4 sm:$0xff]  }
 0x1dc   :  { %4540 = vmatprep.subr.bf16.mxu1 %v8816_v0 }
 0x1df   :  { %4541 = vmatpush1.bf16.msra.mxu1 %v8434_v14  ;;  %v8498_v14 = vld [vmem:[%s11007_s1 + $0x408] sm:$0xff]  }
 0x1e0   :  { %4542 = vmatprep.subr.bf16.mxu1 %v8816_v0 }
 0x1e1   :  { %4351 = vmatmul.mubr.bf16.gmra.mrb[8].mxu1 %v8409_v15  ;;  %v8496_v15 = vld [vmem:[%s11008_s0 + $0x7f0] ss:$72 sps:$4 sm:$0xff]  }
 0x1e2   :  { %5375 = vmatmul.mubr.bf16.gmra.mrb[56].mxu0 %v8410_v16  ;;  %4358 = vmatprep.mubr.bf16.mxu1 %v8413_v17  ;;  %v8497_v16 = vld [vmem:[%s11008_s0 + $0xc8] ss:$72 sps:$4 sm:$0xff]   ;;  %v8499_v17 = vld [vmem:[%s11008_s0 + $0x884] ss:$72 sps:$4 sm:$0xff]  }
 0x1e3   :  { %5382 = vmatprep.mubr.bf16.mxu0 %v8415_v18  ;;  %4543 = vmatpush1.bf16.msra.mxu1 %v8448_v19  ;;  %v8501_v18 = vld [vmem:[%s11008_s0 + $0x15c] ss:$72 sps:$4 sm:$0xff]   ;;  %v8512_v19 = vld [vmem:[%s11007_s1 + $0x410] sm:$0xff]  }
 0x1e4   :  { %4544 = vmatprep.subr.bf16.mxu1 %v8816_v0 }
 0x1e7   :  { %4545 = vmatpush1.bf16.msra.mxu1 %v8456_v20  ;;  %v8524_v20 = vld [vmem:[%s11007_s1 + $0x418] sm:$0xff]  }
 0x1e8   :  { %4546 = vmatprep.subr.bf16.mxu1 %v8816_v0 }
 0x1e9   :  { %4359 = vmatmul.mubr.bf16.gmra.mrb[12].mxu1 %v8417_v21  ;;  %v8503_v21 = vld [vmem:[%s11008_s0 + $0x880] ss:$72 sps:$4 sm:$0xff]  }
 0x1ea   :  { %5383 = vmatmul.mubr.bf16.gmra.mrb[60].mxu0 %v8418_v22  ;;  %4366 = vmatprep.mubr.bf16.mxu1 %v8420_v23  ;;  %v8505_v22 = vld [vmem:[%s11008_s0 + $0x158] ss:$72 sps:$4 sm:$0xff]   ;;  %v8506_v23 = vld [vmem:[%s11008_s0 + $0x914] ss:$72 sps:$4 sm:$0xff]  }
 0x1eb   :  { %5390 = vmatprep.mubr.bf16.mxu0 %v8422_v24  ;;  %4547 = vmatpush1.bf16.msra.mxu1 %v8470_v25  ;;  %v8508_v24 = vld [vmem:[%s11008_s0 + $0x1ec] ss:$72 sps:$4 sm:$0xff]   ;;  %v8534_v25 = vld [vmem:[%s11007_s1 + $0x420] sm:$0xff]  }
 0x1ec   :  { %4548 = vmatprep.subr.bf16.mxu1 %v8816_v0 }
 0x1ef   :  { %4549 = vmatpush1.bf16.msra.mxu1 %v8480_v26  ;;  %v8548_v26 = vld [vmem:[%s11007_s1 + $0x428] sm:$0xff]  }
 0x1f0   :  { %4550 = vmatprep.subr.bf16.mxu1 %v8816_v0 }
 0x1f1   :  { %4367 = vmatmul.mubr.bf16.gmra.mrb[16].mxu1 %v8424_v27  ;;  %v8510_v27 = vld [vmem:[%s11008_s0 + $0x910] ss:$72 sps:$4 sm:$0xff]  }
 0x1f2   :  { %5391 = vmatmul.mubr.bf16.gmra.mrb[64].mxu0 %v8426_v28  ;;  %4374 = vmatprep.mubr.bf16.mxu1 %v8427_v29  ;;  %v8511_v28 = vld [vmem:[%s11008_s0 + $0x1e8] ss:$72 sps:$4 sm:$0xff]   ;;  %v8514_v29 = vld [vmem:[%s11008_s0 + $0x9a4] ss:$72 sps:$4 sm:$0xff]  }
 0x1f3   :  { %5398 = vmatprep.mubr.bf16.mxu0 %v8429_v30  ;;  %4551 = vmatpush1.bf16.msra.mxu1 %v8491_v31  ;;  %v8516_v30 = vld [vmem:[%s11008_s0 + $0x27c] ss:$72 sps:$4 sm:$0xff]   ;;  %v8556_v31 = vld [vmem:[%s11007_s1 + $0x430] sm:$0xff]  }
 0x1f4   :  { %4552 = vmatprep.subr.bf16.mxu1 %v8816_v0 }
 0x1f7   :  { %4553 = vmatpush1.bf16.msra.mxu1 %v8504_v32  ;;  %v8569_v32 = vld [vmem:[%s11007_s1 + $0x438] sm:$0xff]  }
 0x1f8   :  { %4554 = vmatprep.subr.bf16.mxu1 %v8816_v0 }
 0x1f9   :  { %4375 = vmatmul.mubr.bf16.gmra.mrb[20].mxu1 %v8431_v33  ;;  %v8518_v33 = vld [vmem:[%s11008_s0 + $0x9a0] ss:$72 sps:$4 sm:$0xff]  }
 0x1fa   :  { %5399 = vmatmul.mubr.bf16.gmra.mrb[68].mxu0 %v8432_v34  ;;  %4382 = vmatprep.mubr.bf16.mxu1 %v8435_v35  ;;  %v8519_v34 = vld [vmem:[%s11008_s0 + $0x278] ss:$72 sps:$4 sm:$0xff]   ;;  %v8520_v35 = vld [vmem:[%s11008_s0 + $0xa34] ss:$72 sps:$4 sm:$0xff]  }
 0x1fb   :  { %5406 = vmatprep.mubr.bf16.mxu0 %v8437_v36  ;;  %4555 = vmatpush1.bf16.msra.mxu1 %v8513_v37  ;;  %v8522_v36 = vld [vmem:[%s11008_s0 + $0x30c] ss:$72 sps:$4 sm:$0xff]   ;;  %v8577_v37 = vld [vmem:[%s11007_s1 + $0x440] sm:$0xff]  }
 0x1fc   :  { %4556 = vmatprep.subr.bf16.mxu1 %v8816_v0 }
 0x1ff   :  { %4557 = vmatpush1.bf16.msra.mxu1 %v8527_v38  ;;  %v8590_v38 = vld [vmem:[%s11007_s1 + $0x448] sm:$0xff]  }
 0x200   :  { %4558 = vmatprep.subr.bf16.mxu1 %v8816_v0 }
 0x201   :  { %4383 = vmatmul.mubr.bf16.gmra.mrb[24].mxu1 %v8439_v39  ;;  %v8525_v39 = vld [vmem:[%s11008_s0 + $0xa30] ss:$72 sps:$4 sm:$0xff]  }
 0x202   :  { %5407 = vmatmul.mubr.bf16.gmra.mrb[72].mxu0 %v8440_v40  ;;  %4390 = vmatprep.mubr.bf16.mxu1 %v8441_v41  ;;  %v8526_v40 = vld [vmem:[%s11008_s0 + $0x308] ss:$72 sps:$4 sm:$0xff]   ;;  %v8528_v41 = vld [vmem:[%s11008_s0 + $0xac4] ss:$72 sps:$4 sm:$0xff]  }
 0x203   :  { %5414 = vmatprep.mubr.bf16.mxu0 %v8443_v42  ;;  %4559 = vmatpush1.bf16.msra.mxu1 %v8535_v43  ;;  %v8530_v42 = vld [vmem:[%s11008_s0 + $0x39c] ss:$72 sps:$4 sm:$0xff]   ;;  %v8597_v43 = vld [vmem:[%s11007_s1 + $0x450] sm:$0xff]  }
 0x204   :  { %4560 = vmatprep.subr.bf16.mxu1 %v8816_v0 }
 0x207   :  { %4561 = vmatpush1.bf16.msra.mxu1 %v8549_v44  ;;  %v8610_v44 = vld [vmem:[%s11007_s1 + $0x458] sm:$0xff]  }
 0x208   :  { %4562 = vmatprep.subr.bf16.mxu1 %v8816_v0 }
 0x209   :  { %4391 = vmatmul.mubr.bf16.gmra.mrb[28].mxu1 %v8446_v45  ;;  %v8532_v45 = vld [vmem:[%s11008_s0 + $0xac0] ss:$72 sps:$4 sm:$0xff]  }
 0x20a   :  { %5415 = vmatmul.mubr.bf16.gmra.mrb[76].mxu0 %v8447_v46  ;;  %4398 = vmatprep.mubr.bf16.mxu1 %v8449_v47  ;;  %v8533_v46 = vld [vmem:[%s11008_s0 + $0x398] ss:$72 sps:$4 sm:$0xff]   ;;  %v8536_v47 = vld [vmem:[%s11008_s0 + $0xb54] ss:$72 sps:$4 sm:$0xff]  }
 0x20b   :  { %5422 = vmatprep.mubr.bf16.mxu0 %v8451_v48  ;;  %4563 = vmatpush1.bf16.msra.mxu1 %v8557_v49  ;;  %v8538_v48 = vld [vmem:[%s11008_s0 + $0x42c] ss:$72 sps:$4 sm:$0xff]   ;;  %v8621_v49 = vld [vmem:[%s11007_s1 + $0x460] sm:$0xff]  }
 0x20c   :  { %4564 = vmatprep.subr.bf16.mxu1 %v8816_v0 }
 0x20f   :  { %4565 = vmatpush1.bf16.msra.mxu1 %v8570_v54  ;;  %v8544_v54 = vld [vmem:[%s11008_s0 + $0x4bc] ss:$72 sps:$4 sm:$0xff]  }
 0x210   :  { %7159 = vmatprep.subr.bf16.mxu1 %v8816_v0 }
 0x211   :  { %4399 = vmatmul.mubr.bf16.gmra.mrb[32].mxu1 %v8453_v50  ;;  %v8630_v50 = vld [vmem:[%s11007_s1 + $0x468] sm:$0xff]  }
 0x212   :  { %5423 = vmatmul.mubr.bf16.gmra.mrb[80].mxu0 %v8454_v51  ;;  %4406 = vmatprep.mubr.bf16.mxu1 %v8457_v52  ;;  %v8540_v51 = vld [vmem:[%s11008_s0 + $0xb50] ss:$72 sps:$4 sm:$0xff]  }
 0x213   :  { %5430 = vmatprep.mubr.bf16.mxu0 %v8459_v53  ;;  %v8541_v52 = vld [vmem:[%s11008_s0 + $0x428] ss:$72 sps:$4 sm:$0xff]   ;;  %v8542_v53 = vld [vmem:[%s11008_s0 + $0xbe4] ss:$72 sps:$4 sm:$0xff]  }
 0x219   :  { %4407 = vmatmul.mubr.bf16.gmra.mrb[36].mxu1 %v8461_v55  ;;  %v8643_v55 = vld [vmem:[%s11007_s1 + $0x470] sm:$0xff]  }
 0x21a   :  { %5431 = vmatmul.mubr.bf16.gmra.mrb[84].mxu0 %v8462_v56  ;;  %4414 = vmatprep.mubr.bf16.mxu1 %v8463_v57  ;;  %v8650_v56 = vld [vmem:[%s11007_s1 + $0x478] sm:$0xff]   ;;  %v8546_v57 = vld [vmem:[%s11008_s0 + $0xbe0] ss:$72 sps:$4 sm:$0xff]  }
 0x21b   :  { %5438 = vmatprep.mubr.bf16.mxu0 %v8465_v58  ;;  %v8547_v58 = vld [vmem:[%s11008_s0 + $0x4b8] ss:$72 sps:$4 sm:$0xff]  }
 0x221   :  { %4415 = vmatmul.mubr.bf16.gmra.mrb[40].mxu1 %v8467_v59  ;;  %v8550_v59 = vld [vmem:[%s11008_s0 + $0xc74] ss:$72 sps:$4 sm:$0xff]  }
 0x222   :  { %5439 = vmatmul.mubr.bf16.gmra.mrb[88].mxu0 %v8468_v60  ;;  %4422 = vmatprep.mubr.bf16.mxu1 %v8471_v61  ;;  %v8552_v60 = vld [vmem:[%s11008_s0 + $0x54c] ss:$72 sps:$4 sm:$0xff]   ;;  %v8554_v61 = vld [vmem:[%s11008_s0 + $0xc70] ss:$72 sps:$4 sm:$0xff]  }
 0x223   :  { %5446 = vmatprep.mubr.bf16.mxu0 %v8473_v62  ;;  %v8555_v62 = vld [vmem:[%s11008_s0 + $0x548] ss:$72 sps:$4 sm:$0xff]  }
 0x229   :  { %4423 = vmatmul.mubr.bf16.gmra.mrb[44].mxu1 %v8475_v1  ;;  %v8560_v1 = vld [vmem:[%s11008_s0 + $0x5dc] ss:$72 sps:$4 sm:$0xff]  }
 0x22a   :  { %5447 = vmatmul.mubr.bf16.gmra.mrb[92].mxu0 %v8476_v2  ;;  %4430 = vmatprep.mubr.bf16.mxu1 %v8478_v3  ;;  %v449_v2 = vld [vmem:[%s11008_s0 + $0xd90] sm:$0xff]  ;;  %v8562_v3 = vld [vmem:[%s11008_s0 + $0xd00] ss:$72 sps:$4 sm:$0xff]  }
 0x22b   :  { %5454 = vmatprep.mubr.bf16.mxu0 %v6769_v4  ;;  %v8563_v4 = vld [vmem:[%s11008_s0 + $0x5d8] ss:$72 sps:$4 sm:$0xff]  }
 0x231   :  { %4431 = vmatmul.mubr.bf16.gmra.mrb[48].mxu1 %v8482_v5  ;;  %v6761_v5 = vcombine.high %v449_v2, %v449_v2 }
 0x232   :  { %5455 = vmatmul.mubr.bf16.gmra.mrb[96].mxu0 %v6768_v6  ;;  %4438 = vmatprep.mubr.bf16.mxu1 %v8484_v7  ;;  %v8565_v6 = vld [vmem:[%s11008_s0 + $0x66c] ss:$72 sps:$4 sm:$0xff]   ;;  %v6760_v7 = vcombine.low %v449_v2, %v449_v2  ;;  %v8639_v2 = vld [vmem:[%s11008_s0 + $0xc9c] ss:$72 sps:$4 sm:$0xff]  }
 0x233   :  { %5494 = vmatprep.mubr.bf16.mxu0 %v8488_v8  ;;  %v8568_v8 = vld [vmem:[%s11008_s0 + $0x668] ss:$72 sps:$4 sm:$0xff]  }
 0x239   :  { %4439 = vmatmul.mubr.bf16.gmra.mrb[52].mxu1 %v8489_v9  ;;  %v8573_v9 = vld [vmem:[%s11008_s0 + $0x1c] ss:$72 sps:$4 sm:$0xff]  }
 0x23a   :  { %5495 = vmatmul.mubr.bf16.vlgmr.msra.gmra.mrb[0].mxu0 %v8486_v10  ;;  %4446 = vmatprep.mubr.bf16.mxu1 %v8492_v11  ;;  %v8574_v10 = vld [vmem:[%s11008_s0 + $0x6fc] ss:$72 sps:$4 sm:$0xff]   ;;  %v8571_v11 = vld [vmem:[%s11008_s0 + $0x18] ss:$72 sps:$4 sm:$0xff]  }
 0x23b   :  { %5695 = vmatpush1.bf16.msra.mxu0 %v8490_v12  ;;  %5502 = vmatprep.mubr.bf16.mxu0 %v8494_v13  ;;  %v8576_v12 = vld [vmem:[%s11008_s0 + $0x6f8] ss:$72 sps:$4 sm:$0xff]   ;;  %v8578_v13 = vld [vmem:[%s11008_s0 + $0xac] ss:$72 sps:$4 sm:$0xff]  }
 0x23c   :  { %5696 = vmatprep.subr.bf16.mxu0 %v8816_v0 }
 0x23f   :  { %5697 = vmatpush1.bf16.msra.mxu0 %v8498_v14  ;;  %v8580_v14 = vld [vmem:[%s11008_s0 + $0x78c] ss:$72 sps:$4 sm:$0xff]  }
 0x240   :  { %5698 = vmatprep.subr.bf16.mxu0 %v8816_v0 }
 0x241   :  { %4447 = vmatmul.mubr.bf16.gmra.mrb[56].mxu1 %v8496_v15  ;;  %v8800_v15 = vld [vmem:[%s11007_s1 + $0x200] sm:$0xff]  }
 0x242   :  { %5503 = vmatmul.mubr.bf16.gmra.mrb[4].mxu0 %v8497_v16  ;;  %4454 = vmatprep.mubr.bf16.mxu1 %v8499_v17  ;;  %v8582_v16 = vld [vmem:[%s11008_s0 + $0xa8] ss:$72 sps:$4 sm:$0xff]  }
 0x243   :  { %5510 = vmatprep.mubr.bf16.mxu0 %v8501_v18  ;;  %5699 = vmatpush1.bf16.msra.mxu0 %v8512_v19  ;;  %v8583_v17 = vld [vmem:[%s11008_s0 + $0x788] ss:$72 sps:$4 sm:$0xff]   ;;  %v8584_v18 = vld [vmem:[%s11008_s0 + $0x13c] ss:$72 sps:$4 sm:$0xff]  }
 0x244   :  { %5700 = vmatprep.subr.bf16.mxu0 %v8816_v0  ;;  %v8586_v19 = vld [vmem:[%s11008_s0 + $0x81c] ss:$72 sps:$4 sm:$0xff]  }
 0x247   :  { %5701 = vmatpush1.bf16.msra.mxu0 %v8524_v20  ;;  %v8801_v20 = vld [vmem:[%s11007_s1 + $0x208] sm:$0xff]  }
 0x248   :  { %5702 = vmatprep.subr.bf16.mxu0 %v8816_v0 }
 0x249   :  { %4455 = vmatmul.mubr.bf16.gmra.mrb[60].mxu1 %v8503_v21  ;;  %v8802_v21 = vld [vmem:[%s11007_s1 + $0x210] sm:$0xff]  }
 0x24a   :  { %5511 = vmatmul.mubr.bf16.gmra.mrb[8].mxu0 %v8505_v22  ;;  %4462 = vmatprep.mubr.bf16.mxu1 %v8506_v23  ;;  %v8588_v22 = vld [vmem:[%s11008_s0 + $0x138] ss:$72 sps:$4 sm:$0xff]  }
 0x24b   :  { %5518 = vmatprep.mubr.bf16.mxu0 %v8508_v24  ;;  %5703 = vmatpush1.bf16.msra.mxu0 %v8534_v25  ;;  %v8589_v23 = vld [vmem:[%s11008_s0 + $0x818] ss:$72 sps:$4 sm:$0xff]   ;;  %v8591_v24 = vld [vmem:[%s11008_s0 + $0x1cc] ss:$72 sps:$4 sm:$0xff]  }
 0x24c   :  { %5704 = vmatprep.subr.bf16.mxu0 %v8816_v0  ;;  %v8593_v25 = vld [vmem:[%s11008_s0 + $0x8ac] ss:$72 sps:$4 sm:$0xff]  }
 0x24f   :  { %5705 = vmatpush1.bf16.msra.mxu0 %v8548_v26  ;;  %v8803_v26 = vld [vmem:[%s11007_s1 + $0x218] sm:$0xff]  }
 0x250   :  { %5706 = vmatprep.subr.bf16.mxu0 %v8816_v0 }
 0x251   :  { %4463 = vmatmul.mubr.bf16.gmra.mrb[64].mxu1 %v8510_v27  ;;  %v8804_v27 = vld [vmem:[%s11007_s1 + $0x220] sm:$0xff]  }
 0x252   :  { %5519 = vmatmul.mubr.bf16.gmra.mrb[12].mxu0 %v8511_v28  ;;  %4470 = vmatprep.mubr.bf16.mxu1 %v8514_v29  ;;  %v8595_v28 = vld [vmem:[%s11008_s0 + $0x1c8] ss:$72 sps:$4 sm:$0xff]  }
 0x253   :  { %5526 = vmatprep.mubr.bf16.mxu0 %v8516_v30  ;;  %5707 = vmatpush1.bf16.msra.mxu0 %v8556_v31  ;;  %v8596_v29 = vld [vmem:[%s11008_s0 + $0x8a8] ss:$72 sps:$4 sm:$0xff]   ;;  %v8598_v30 = vld [vmem:[%s11008_s0 + $0x25c] ss:$72 sps:$4 sm:$0xff]  }
 0x254   :  { %5708 = vmatprep.subr.bf16.mxu0 %v8816_v0  ;;  %v8600_v31 = vld [vmem:[%s11008_s0 + $0x93c] ss:$72 sps:$4 sm:$0xff]  }
 0x257   :  { %5709 = vmatpush1.bf16.msra.mxu0 %v8569_v32  ;;  %v8805_v32 = vld [vmem:[%s11007_s1 + $0x228] sm:$0xff]  }
 0x258   :  { %5710 = vmatprep.subr.bf16.mxu0 %v8816_v0 }
 0x259   :  { %4471 = vmatmul.mubr.bf16.gmra.mrb[68].mxu1 %v8518_v33  ;;  %v8806_v33 = vld [vmem:[%s11007_s1 + $0x230] sm:$0xff]  }
 0x25a   :  { %5527 = vmatmul.mubr.bf16.gmra.mrb[16].mxu0 %v8519_v34  ;;  %4478 = vmatprep.mubr.bf16.mxu1 %v8520_v35  ;;  %v8602_v34 = vld [vmem:[%s11008_s0 + $0x258] ss:$72 sps:$4 sm:$0xff]  }
 0x25b   :  { %5534 = vmatprep.mubr.bf16.mxu0 %v8522_v36  ;;  %5711 = vmatpush1.bf16.msra.mxu0 %v8577_v37  ;;  %v8603_v35 = vld [vmem:[%s11008_s0 + $0x938] ss:$72 sps:$4 sm:$0xff]   ;;  %v8604_v36 = vld [vmem:[%s11008_s0 + $0x2ec] ss:$72 sps:$4 sm:$0xff]  }
 0x25c   :  { %5712 = vmatprep.subr.bf16.mxu0 %v8816_v0  ;;  %v8606_v37 = vld [vmem:[%s11008_s0 + $0x9cc] ss:$72 sps:$4 sm:$0xff]  }
 0x25f   :  { %5713 = vmatpush1.bf16.msra.mxu0 %v8590_v38  ;;  %v8807_v38 = vld [vmem:[%s11007_s1 + $0x238] sm:$0xff]  }
 0x260   :  { %5714 = vmatprep.subr.bf16.mxu0 %v8816_v0 }
 0x261   :  { %4479 = vmatmul.mubr.bf16.gmra.mrb[72].mxu1 %v8525_v39  ;;  %v8808_v39 = vld [vmem:[%s11007_s1 + $0x240] sm:$0xff]  }
 0x262   :  { %5535 = vmatmul.mubr.bf16.gmra.mrb[20].mxu0 %v8526_v40  ;;  %4486 = vmatprep.mubr.bf16.mxu1 %v8528_v41  ;;  %v8608_v40 = vld [vmem:[%s11008_s0 + $0x2e8] ss:$72 sps:$4 sm:$0xff]  }
 0x263   :  { %5542 = vmatprep.mubr.bf16.mxu0 %v8530_v42  ;;  %5715 = vmatpush1.bf16.msra.mxu0 %v8597_v43  ;;  %v8609_v41 = vld [vmem:[%s11008_s0 + $0x9c8] ss:$72 sps:$4 sm:$0xff]   ;;  %v8611_v42 = vld [vmem:[%s11008_s0 + $0x37c] ss:$72 sps:$4 sm:$0xff]  }
 0x264   :  { %5716 = vmatprep.subr.bf16.mxu0 %v8816_v0  ;;  %v8613_v43 = vld [vmem:[%s11008_s0 + $0xa5c] ss:$72 sps:$4 sm:$0xff]  }
 0x267   :  { %5717 = vmatpush1.bf16.msra.mxu0 %v8610_v44  ;;  %v8809_v44 = vld [vmem:[%s11007_s1 + $0x248] sm:$0xff]  }
 0x268   :  { %5718 = vmatprep.subr.bf16.mxu0 %v8816_v0 }
 0x269   :  { %4487 = vmatmul.mubr.bf16.gmra.mrb[76].mxu1 %v8532_v45  ;;  %v8810_v45 = vld [vmem:[%s11007_s1 + $0x250] sm:$0xff]  }
 0x26a   :  { %5543 = vmatmul.mubr.bf16.gmra.mrb[24].mxu0 %v8533_v46  ;;  %4494 = vmatprep.mubr.bf16.mxu1 %v8536_v47  ;;  %v8615_v46 = vld [vmem:[%s11008_s0 + $0x378] ss:$72 sps:$4 sm:$0xff]  }
 0x26b   :  { %5550 = vmatprep.mubr.bf16.mxu0 %v8538_v48  ;;  %5719 = vmatpush1.bf16.msra.mxu0 %v8621_v49  ;;  %v8616_v47 = vld [vmem:[%s11008_s0 + $0xa58] ss:$72 sps:$4 sm:$0xff]   ;;  %v8617_v48 = vld [vmem:[%s11008_s0 + $0x40c] ss:$72 sps:$4 sm:$0xff]  }
 0x26c   :  { %5720 = vmatprep.subr.bf16.mxu0 %v8816_v0  ;;  %v8619_v49 = vld [vmem:[%s11008_s0 + $0xaec] ss:$72 sps:$4 sm:$0xff]  }
 0x26f   :  { %5721 = vmatpush1.bf16.msra.mxu0 %v8630_v50  ;;  %v8811_v50 = vld [vmem:[%s11007_s1 + $0x258] sm:$0xff]  }
 0x270   :  { %5722 = vmatprep.subr.bf16.mxu0 %v8816_v0 }
 0x271   :  { %4495 = vmatmul.mubr.bf16.gmra.mrb[80].mxu1 %v8540_v51  ;;  %v8812_v51 = vld [vmem:[%s11007_s1 + $0x260] sm:$0xff]  }
 0x272   :  { %5551 = vmatmul.mubr.bf16.gmra.mrb[28].mxu0 %v8541_v52  ;;  %4502 = vmatprep.mubr.bf16.mxu1 %v8542_v53  ;;  %v8622_v52 = vld [vmem:[%s11008_s0 + $0x408] ss:$72 sps:$4 sm:$0xff]  }
 0x273   :  { %5558 = vmatprep.mubr.bf16.mxu0 %v8544_v54  ;;  %5723 = vmatpush1.bf16.msra.mxu0 %v8643_v55  ;;  %v8623_v53 = vld [vmem:[%s11008_s0 + $0xae8] ss:$72 sps:$4 sm:$0xff]   ;;  %v8624_v54 = vld [vmem:[%s11008_s0 + $0x49c] ss:$72 sps:$4 sm:$0xff]  }
 0x274   :  { %5724 = vmatprep.subr.bf16.mxu0 %v8816_v0  ;;  %v8626_v55 = vld [vmem:[%s11008_s0 + $0xb7c] ss:$72 sps:$4 sm:$0xff]  }
 0x277   :  { %5725 = vmatpush1.bf16.msra.mxu0 %v8650_v56  ;;  %v8813_v56 = vld [vmem:[%s11007_s1 + $0x268] sm:$0xff]  }
 0x279   :  { %4503 = vmatmul.mubr.bf16.gmra.mrb[84].mxu1 %v8546_v57  ;;  %v8814_v57 = vld [vmem:[%s11007_s1 + $0x270] sm:$0xff]  }
 0x27a   :  { %5559 = vmatmul.mubr.bf16.gmra.mrb[32].mxu0 %v8547_v58  ;;  %4510 = vmatprep.mubr.bf16.mxu1 %v8550_v59  ;;  %v8628_v58 = vld [vmem:[%s11008_s0 + $0x498] ss:$72 sps:$4 sm:$0xff]  }
 0x27b   :  { %5566 = vmatprep.mubr.bf16.mxu0 %v8552_v60  ;;  %v8629_v59 = vld [vmem:[%s11008_s0 + $0xb78] ss:$72 sps:$4 sm:$0xff]   ;;  %v8631_v60 = vld [vmem:[%s11008_s0 + $0x52c] ss:$72 sps:$4 sm:$0xff]  }
 0x281   :  { %4511 = vmatmul.mubr.bf16.gmra.mrb[88].mxu1 %v8554_v61  ;;  %v8633_v61 = vld [vmem:[%s11008_s0 + $0xc0c] ss:$72 sps:$4 sm:$0xff]  }
 0x282   :  { %5567 = vmatmul.mubr.bf16.gmra.mrb[36].mxu0 %v8555_v62  ;;  %4518 = vmatprep.mubr.bf16.mxu1 %v8558_v63  ;;  %v8635_v62 = vld [vmem:[%s11008_s0 + $0x528] ss:$72 sps:$4 sm:$0xff]  }
 0x283   :  { %5574 = vmatprep.mubr.bf16.mxu0 %v8560_v1  ;;  %v8636_v63 = vld [vmem:[%s11008_s0 + $0xc08] ss:$72 sps:$4 sm:$0xff]   ;;  %v8637_v1 = vld [vmem:[%s11008_s0 + $0x5bc] ss:$72 sps:$4 sm:$0xff]  }
 0x289   :  { %4519 = vmatmul.mubr.bf16.gmra.mrb[92].mxu1 %v8562_v3  ;;  %v8641_v3 = vld [vmem:[%s11008_s0 + $0x5b8] ss:$72 sps:$4 sm:$0xff]  }
 0x28a   :  { %5575 = vmatmul.mubr.bf16.gmra.mrb[40].mxu0 %v8563_v4  ;;  %4526 = vmatprep.mubr.bf16.mxu1 %v6761_v5  ;;  %v8642_v4 = vld [vmem:[%s11008_s0 + $0xc98] ss:$72 sps:$4 sm:$0xff]   ;;  %v8644_v5 = vld [vmem:[%s11008_s0 + $0x64c] ss:$72 sps:$4 sm:$0xff]  }
 0x28b   :  { %5582 = vmatprep.mubr.bf16.mxu0 %v8565_v6  ;;  %v8646_v6 = vld [vmem:[%s11008_s0 + $0xd2c] ss:$72 sps:$4 sm:$0xff]  }
 0x291   :  { %4527 = vmatmul.mubr.bf16.gmra.mrb[96].mxu1 %v6760_v7  ;;  %v454_v7 = vld [vmem:[%s11008_s0 + $0xdb8] sm:$0xff] }
 0x292   :  { %5583 = vmatmul.mubr.bf16.gmra.mrb[44].mxu0 %v8568_v8  ;;  %4566 = vmatprep.mubr.bf16.mxu1 %v8573_v9  ;;  %v8648_v8 = vld [vmem:[%s11008_s0 + $0x648] ss:$72 sps:$4 sm:$0xff]  }
 0x293   :  { %5590 = vmatprep.mubr.bf16.mxu0 %v8574_v10  ;;  %v8649_v9 = vld [vmem:[%s11008_s0 + $0xd28] ss:$72 sps:$4 sm:$0xff]   ;;  %v8651_v10 = vld [vmem:[%s11008_s0 + $0x6dc] ss:$72 sps:$4 sm:$0xff]  }
 0x299   :  { %4567 = vmatmul.mubr.bf16.vlgmr.msra.gmra.mrb[0].mxu1 %v8571_v11  ;;  %v6771_v11 = vcombine.high %v454_v7, %v454_v7 }
 0x29a   :  { %5591 = vmatmul.mubr.bf16.gmra.mrb[48].mxu0 %v8576_v12  ;;  %4574 = vmatprep.mubr.bf16.mxu1 %v8578_v13  ;;  %v8654_v12 = vld [vmem:[%s11008_s0 + $0x6d8] ss:$72 sps:$4 sm:$0xff]   ;;  %v6770_v13 = vcombine.low %v454_v7, %v454_v7  ;;  %v8739_v7 = vld [vmem:[%s11008_s0 + $0x894] ss:$72 sps:$4 sm:$0xff]  }
 0x29b   :  { %7175 = vmatpush1.bf16.msra.mxu1 %v8800_v15  ;;  %5598 = vmatprep.mubr.bf16.mxu0 %v8580_v14  ;;  %v8656_v14 = vld [vmem:[%s11008_s0 + $0x76c] ss:$72 sps:$4 sm:$0xff]  }
 0x29c   :  { %7160 = vmatprep.subr.bf16.mxu1 %v8816_v0  ;;  %v8660_v15 = vld [vmem:[%s11008_s0 + $0x44] ss:$72 sps:$4 sm:$0xff]  }
 0x29f   :  { %7176 = vmatpush1.bf16.msra.mxu1 %v8801_v20  ;;  %v8666_v20 = vld [vmem:[%s11008_s0 + $0x7f8] ss:$72 sps:$4 sm:$0xff]  }
 0x2a0   :  { %7161 = vmatprep.subr.bf16.mxu1 %v8816_v0 }
 0x2a1   :  { %4575 = vmatmul.mubr.bf16.gmra.mrb[4].mxu1 %v8582_v16  ;;  %v8661_v16 = vld [vmem:[%s11008_s0 + $0x768] ss:$72 sps:$4 sm:$0xff]  }
 0x2a2   :  { %5599 = vmatmul.mubr.bf16.gmra.mrb[52].mxu0 %v8583_v17  ;;  %4582 = vmatprep.mubr.bf16.mxu1 %v8584_v18  ;;  %v8658_v17 = vld [vmem:[%s11008_s0 + $0x40] ss:$72 sps:$4 sm:$0xff]   ;;  %v8662_v18 = vld [vmem:[%s11008_s0 + $0x7fc] ss:$72 sps:$4 sm:$0xff]  }
 0x2a3   :  { %5606 = vmatprep.mubr.bf16.mxu0 %v8586_v19  ;;  %7177 = vmatpush1.bf16.msra.mxu1 %v8802_v21  ;;  %v8664_v19 = vld [vmem:[%s11008_s0 + $0xd4] ss:$72 sps:$4 sm:$0xff]   ;;  %v8667_v21 = vld [vmem:[%s11008_s0 + $0xd0] ss:$72 sps:$4 sm:$0xff]  }
 0x2a4   :  { %7162 = vmatprep.subr.bf16.mxu1 %v8816_v0 }
 0x2a7   :  { %7178 = vmatpush1.bf16.msra.mxu1 %v8803_v26  ;;  %v8674_v26 = vld [vmem:[%s11008_s0 + $0x91c] ss:$72 sps:$4 sm:$0xff]  }
 0x2a8   :  { %7163 = vmatprep.subr.bf16.mxu1 %v8816_v0 }
 0x2a9   :  { %4583 = vmatmul.mubr.bf16.gmra.mrb[8].mxu1 %v8588_v22  ;;  %v8668_v22 = vld [vmem:[%s11008_s0 + $0x88c] ss:$72 sps:$4 sm:$0xff]  }
 0x2aa   :  { %5607 = vmatmul.mubr.bf16.gmra.mrb[56].mxu0 %v8589_v23  ;;  %4590 = vmatprep.mubr.bf16.mxu1 %v8591_v24  ;;  %v8670_v23 = vld [vmem:[%s11008_s0 + $0x164] ss:$72 sps:$4 sm:$0xff]   ;;  %v8672_v24 = vld [vmem:[%s11008_s0 + $0x888] ss:$72 sps:$4 sm:$0xff]  }
 0x2ab   :  { %5614 = vmatprep.mubr.bf16.mxu0 %v8593_v25  ;;  %7179 = vmatpush1.bf16.msra.mxu1 %v8804_v27  ;;  %v8673_v25 = vld [vmem:[%s11008_s0 + $0x160] ss:$72 sps:$4 sm:$0xff]   ;;  %v8676_v27 = vld [vmem:[%s11008_s0 + $0x1f4] ss:$72 sps:$4 sm:$0xff]  }
 0x2ac   :  { %7164 = vmatprep.subr.bf16.mxu1 %v8816_v0 }
 0x2af   :  { %7180 = vmatpush1.bf16.msra.mxu1 %v8805_v32  ;;  %v8684_v32 = vld [vmem:[%s11008_s0 + $0x9a8] ss:$72 sps:$4 sm:$0xff]  }
 0x2b0   :  { %7165 = vmatprep.subr.bf16.mxu1 %v8816_v0 }
 0x2b1   :  { %4591 = vmatmul.mubr.bf16.gmra.mrb[12].mxu1 %v8595_v28  ;;  %v8678_v28 = vld [vmem:[%s11008_s0 + $0x918] ss:$72 sps:$4 sm:$0xff]  }
 0x2b2   :  { %5615 = vmatmul.mubr.bf16.gmra.mrb[60].mxu0 %v8596_v29  ;;  %4598 = vmatprep.mubr.bf16.mxu1 %v8598_v30  ;;  %v8679_v29 = vld [vmem:[%s11008_s0 + $0x1f0] ss:$72 sps:$4 sm:$0xff]   ;;  %v8680_v30 = vld [vmem:[%s11008_s0 + $0x9ac] ss:$72 sps:$4 sm:$0xff]  }
 0x2b3   :  { %5622 = vmatprep.mubr.bf16.mxu0 %v8600_v31  ;;  %7181 = vmatpush1.bf16.msra.mxu1 %v8806_v33  ;;  %v8682_v31 = vld [vmem:[%s11008_s0 + $0x284] ss:$72 sps:$4 sm:$0xff]   ;;  %v8685_v33 = vld [vmem:[%s11008_s0 + $0x280] ss:$72 sps:$4 sm:$0xff]  }
 0x2b4   :  { %7166 = vmatprep.subr.bf16.mxu1 %v8816_v0 }
 0x2b7   :  { %7182 = vmatpush1.bf16.msra.mxu1 %v8807_v38  ;;  %v8692_v38 = vld [vmem:[%s11008_s0 + $0xacc] ss:$72 sps:$4 sm:$0xff]  }
 0x2b8   :  { %7167 = vmatprep.subr.bf16.mxu1 %v8816_v0 }
 0x2b9   :  { %4599 = vmatmul.mubr.bf16.gmra.mrb[16].mxu1 %v8602_v34  ;;  %v8686_v34 = vld [vmem:[%s11008_s0 + $0xa3c] ss:$72 sps:$4 sm:$0xff]  }
 0x2ba   :  { %5623 = vmatmul.mubr.bf16.gmra.mrb[64].mxu0 %v8603_v35  ;;  %4606 = vmatprep.mubr.bf16.mxu1 %v8604_v36  ;;  %v8688_v35 = vld [vmem:[%s11008_s0 + $0x314] ss:$72 sps:$4 sm:$0xff]   ;;  %v8690_v36 = vld [vmem:[%s11008_s0 + $0xa38] ss:$72 sps:$4 sm:$0xff]  }
 0x2bb   :  { %5630 = vmatprep.mubr.bf16.mxu0 %v8606_v37  ;;  %7183 = vmatpush1.bf16.msra.mxu1 %v8808_v39  ;;  %v8691_v37 = vld [vmem:[%s11008_s0 + $0x310] ss:$72 sps:$4 sm:$0xff]   ;;  %v8694_v39 = vld [vmem:[%s11008_s0 + $0x3a4] ss:$72 sps:$4 sm:$0xff]  }
 0x2bc   :  { %7168 = vmatprep.subr.bf16.mxu1 %v8816_v0 }
 0x2bf   :  { %7184 = vmatpush1.bf16.msra.mxu1 %v8809_v44  ;;  %v8702_v44 = vld [vmem:[%s11008_s0 + $0xb58] ss:$72 sps:$4 sm:$0xff]  }
 0x2c0   :  { %7169 = vmatprep.subr.bf16.mxu1 %v8816_v0 }
 0x2c1   :  { %4607 = vmatmul.mubr.bf16.gmra.mrb[20].mxu1 %v8608_v40  ;;  %v8696_v40 = vld [vmem:[%s11008_s0 + $0xac8] ss:$72 sps:$4 sm:$0xff]  }
 0x2c2   :  { %5631 = vmatmul.mubr.bf16.gmra.mrb[68].mxu0 %v8609_v41  ;;  %4614 = vmatprep.mubr.bf16.mxu1 %v8611_v42  ;;  %v8697_v41 = vld [vmem:[%s11008_s0 + $0x3a0] ss:$72 sps:$4 sm:$0xff]   ;;  %v8698_v42 = vld [vmem:[%s11008_s0 + $0xb5c] ss:$72 sps:$4 sm:$0xff]  }
 0x2c3   :  { %5638 = vmatprep.mubr.bf16.mxu0 %v8613_v43  ;;  %7185 = vmatpush1.bf16.msra.mxu1 %v8810_v45  ;;  %v8700_v43 = vld [vmem:[%s11008_s0 + $0x434] ss:$72 sps:$4 sm:$0xff]   ;;  %v8703_v45 = vld [vmem:[%s11008_s0 + $0x430] ss:$72 sps:$4 sm:$0xff]  }
 0x2c4   :  { %7170 = vmatprep.subr.bf16.mxu1 %v8816_v0 }
 0x2c7   :  { %7186 = vmatpush1.bf16.msra.mxu1 %v8811_v50  ;;  %v8710_v50 = vld [vmem:[%s11008_s0 + $0xc7c] ss:$72 sps:$4 sm:$0xff]  }
 0x2c8   :  { %7171 = vmatprep.subr.bf16.mxu1 %v8816_v0 }
 0x2c9   :  { %4615 = vmatmul.mubr.bf16.gmra.mrb[24].mxu1 %v8615_v46  ;;  %v8704_v46 = vld [vmem:[%s11008_s0 + $0xbec] ss:$72 sps:$4 sm:$0xff]  }
 0x2ca   :  { %5639 = vmatmul.mubr.bf16.gmra.mrb[72].mxu0 %v8616_v47  ;;  %4622 = vmatprep.mubr.bf16.mxu1 %v8617_v48  ;;  %v8706_v47 = vld [vmem:[%s11008_s0 + $0x4c4] ss:$72 sps:$4 sm:$0xff]   ;;  %v8708_v48 = vld [vmem:[%s11008_s0 + $0xbe8] ss:$72 sps:$4 sm:$0xff]  }
 0x2cb   :  { %5646 = vmatprep.mubr.bf16.mxu0 %v8619_v49  ;;  %7187 = vmatpush1.bf16.msra.mxu1 %v8812_v51  ;;  %v8709_v49 = vld [vmem:[%s11008_s0 + $0x4c0] ss:$72 sps:$4 sm:$0xff]   ;;  %v8712_v51 = vld [vmem:[%s11008_s0 + $0x554] ss:$72 sps:$4 sm:$0xff]  }
 0x2cc   :  { %7172 = vmatprep.subr.bf16.mxu1 %v8816_v0 }
 0x2cf   :  { %7188 = vmatpush1.bf16.msra.mxu1 %v8813_v56  ;;  %v450_v56 = vld [vmem:[%s11008_s0 + $0xd98] sm:$0xff] }
 0x2d0   :  { %7173 = vmatprep.subr.bf16.mxu1 %v8816_v0 }
 0x2d1   :  { %4623 = vmatmul.mubr.bf16.gmra.mrb[28].mxu1 %v8622_v52  ;;  %v8714_v52 = vld [vmem:[%s11008_s0 + $0xc78] ss:$72 sps:$4 sm:$0xff]  }
 0x2d2   :  { %5647 = vmatmul.mubr.bf16.gmra.mrb[76].mxu0 %v8623_v53  ;;  %4630 = vmatprep.mubr.bf16.mxu1 %v8624_v54  ;;  %v8715_v53 = vld [vmem:[%s11008_s0 + $0x550] ss:$72 sps:$4 sm:$0xff]   ;;  %v8716_v54 = vld [vmem:[%s11008_s0 + $0xd0c] ss:$72 sps:$4 sm:$0xff]  }
 0x2d3   :  { %5654 = vmatprep.mubr.bf16.mxu0 %v8626_v55  ;;  %7189 = vmatpush1.bf16.msra.mxu1 %v8814_v57  ;;  %v8718_v55 = vld [vmem:[%s11008_s0 + $0x5e4] ss:$72 sps:$4 sm:$0xff]   ;;  %v8720_v57 = vld [vmem:[%s11008_s0 + $0xd08] ss:$72 sps:$4 sm:$0xff]  }
 0x2d4   :  { %7174 = vmatprep.subr.bf16.mxu1 %v8816_v0  ;;  %v8815_v0 = vld [vmem:[%s11007_s1 + $0x278] sm:$0xff]  }
 0x2d7   :  { %7190 = vmatpush1.bf16.msra.mxu1 %v8815_v0  ;;  %v8726_v0 = vld [vmem:[%s11008_s0 + $0x670] ss:$72 sps:$4 sm:$0xff]  }
 0x2d9   :  { %4631 = vmatmul.mubr.bf16.gmra.mrb[32].mxu1 %v8628_v58  ;;  %v8721_v58 = vld [vmem:[%s11008_s0 + $0x5e0] ss:$72 sps:$4 sm:$0xff]  }
 0x2da   :  { %5655 = vmatmul.mubr.bf16.gmra.mrb[80].mxu0 %v8629_v59  ;;  %4638 = vmatprep.mubr.bf16.mxu1 %v8631_v60  ;;  %v6763_v59 = vcombine.high %v450_v56, %v450_v56  ;;  %v8723_v60 = vld [vmem:[%s11008_s0 + $0x674] ss:$72 sps:$4 sm:$0xff]  }
 0x2db   :  { %5662 = vmatprep.mubr.bf16.mxu0 %v8633_v61  ;;  %v6762_v61 = vcombine.low %v450_v56, %v450_v56  ;;  %v8777_v56 = vld [vmem:[%s11008_s0 + $0xb84] ss:$72 sps:$4 sm:$0xff]  }
 0x2e1   :  { %4639 = vmatmul.mubr.bf16.gmra.mrb[36].mxu1 %v8635_v62  ;;  %v8729_v62 = vld [vmem:[%s11008_s0 + $0x774] ss:$72 sps:$4 sm:$0xff]  }
 0x2e2   :  { %5663 = vmatmul.mubr.bf16.gmra.mrb[84].mxu0 %v8636_v63  ;;  %4646 = vmatprep.mubr.bf16.mxu1 %v8637_v1  ;;  %v8730_v63 = vld [vmem:[%s11008_s0 + $0x704] ss:$72 sps:$4 sm:$0xff]   ;;  %v8727_v1 = vld [vmem:[%s11008_s0 + $0x770] ss:$72 sps:$4 sm:$0xff]  }
 0x2e3   :  { %5670 = vmatprep.mubr.bf16.mxu0 %v8639_v2  ;;  %v8732_v2 = vld [vmem:[%s11008_s0 + $0x700] ss:$72 sps:$4 sm:$0xff]  }
 0x2e9   :  { %4647 = vmatmul.mubr.bf16.gmra.mrb[40].mxu1 %v8641_v3  ;;  %v8733_v3 = vld [vmem:[%s11008_s0 + $0x804] ss:$72 sps:$4 sm:$0xff]  }
 0x2ea   :  { %5671 = vmatmul.mubr.bf16.gmra.mrb[88].mxu0 %v8642_v4  ;;  %4654 = vmatprep.mubr.bf16.mxu1 %v8644_v5  ;;  %v8735_v4 = vld [vmem:[%s11008_s0 + $0x794] ss:$72 sps:$4 sm:$0xff]   ;;  %v8737_v5 = vld [vmem:[%s11008_s0 + $0x800] ss:$72 sps:$4 sm:$0xff]  }
 0x2eb   :  { %5678 = vmatprep.mubr.bf16.mxu0 %v8646_v6  ;;  %v8738_v6 = vld [vmem:[%s11008_s0 + $0x790] ss:$72 sps:$4 sm:$0xff]  }
 0x2f1   :  { %4655 = vmatmul.mubr.bf16.gmra.mrb[44].mxu1 %v8648_v8  ;;  %v8741_v8 = vld [vmem:[%s11008_s0 + $0x824] ss:$72 sps:$4 sm:$0xff]  }
 0x2f2   :  { %5679 = vmatmul.mubr.bf16.gmra.mrb[92].mxu0 %v8649_v9  ;;  %4662 = vmatprep.mubr.bf16.mxu1 %v8651_v10 }
 0x2f3   :  { %5686 = vmatprep.mubr.bf16.mxu0 %v6771_v11  ;;  %v8743_v11 = vld [vmem:[%s11008_s0 + $0x890] ss:$72 sps:$4 sm:$0xff]  }
 0x2f9   :  { %4663 = vmatmul.mubr.bf16.gmra.mrb[48].mxu1 %v8654_v12 }
 0x2fa   :  { %5687 = vmatmul.mubr.bf16.gmra.mrb[96].mxu0 %v6770_v13  ;;  %4670 = vmatprep.mubr.bf16.mxu1 %v8656_v14  ;;  %v8744_v13 = vld [vmem:[%s11008_s0 + $0x820] ss:$72 sps:$4 sm:$0xff]   ;;  %v8745_v14 = vld [vmem:[%s11008_s0 + $0x924] ss:$72 sps:$4 sm:$0xff]  }
 0x2fb   :  { %5726 = vmatprep.mubr.bf16.mxu0 %v8660_v15 }
 0x301   :  { %4671 = vmatmul.mubr.bf16.gmra.mrb[52].mxu1 %v8661_v16  ;;  %v8747_v16 = vld [vmem:[%s11008_s0 + $0x8b4] ss:$72 sps:$4 sm:$0xff]  }
 0x302   :  { %5727 = vmatmul.mubr.bf16.vlgmr.msra.gmra.mrb[0].mxu0 %v8658_v17  ;;  %4678 = vmatprep.mubr.bf16.mxu1 %v8662_v18 }
 0x303   :  { %5734 = vmatprep.mubr.bf16.mxu0 %v8664_v19  ;;  %v8749_v19 = vld [vmem:[%s11008_s0 + $0x920] ss:$72 sps:$4 sm:$0xff]  }
 0x309   :  { %4679 = vmatmul.mubr.bf16.gmra.mrb[56].mxu1 %v8666_v20 }
 0x30a   :  { %5735 = vmatmul.mubr.bf16.gmra.mrb[4].mxu0 %v8667_v21  ;;  %4686 = vmatprep.mubr.bf16.mxu1 %v8668_v22  ;;  %v8750_v21 = vld [vmem:[%s11008_s0 + $0x8b0] ss:$72 sps:$4 sm:$0xff]   ;;  %v8751_v22 = vld [vmem:[%s11008_s0 + $0x9b4] ss:$72 sps:$4 sm:$0xff]  }
 0x30b   :  { %5742 = vmatprep.mubr.bf16.mxu0 %v8670_v23 }
 0x311   :  { %4687 = vmatmul.mubr.bf16.gmra.mrb[60].mxu1 %v8672_v24  ;;  %v8753_v24 = vld [vmem:[%s11008_s0 + $0x944] ss:$72 sps:$4 sm:$0xff]  }
 0x312   :  { %5743 = vmatmul.mubr.bf16.gmra.mrb[8].mxu0 %v8673_v25  ;;  %4694 = vmatprep.mubr.bf16.mxu1 %v8674_v26 }
 0x313   :  { %5750 = vmatprep.mubr.bf16.mxu0 %v8676_v27  ;;  %v8755_v27 = vld [vmem:[%s11008_s0 + $0x9b0] ss:$72 sps:$4 sm:$0xff]  }
 0x319   :  { %4695 = vmatmul.mubr.bf16.gmra.mrb[64].mxu1 %v8678_v28 }
 0x31a   :  { %5751 = vmatmul.mubr.bf16.gmra.mrb[12].mxu0 %v8679_v29  ;;  %4702 = vmatprep.mubr.bf16.mxu1 %v8680_v30  ;;  %v8756_v29 = vld [vmem:[%s11008_s0 + $0x940] ss:$72 sps:$4 sm:$0xff]   ;;  %v8757_v30 = vld [vmem:[%s11008_s0 + $0xa44] ss:$72 sps:$4 sm:$0xff]  }
 0x31b   :  { %5758 = vmatprep.mubr.bf16.mxu0 %v8682_v31 }
 0x321   :  { %4703 = vmatmul.mubr.bf16.gmra.mrb[68].mxu1 %v8684_v32  ;;  %v8759_v32 = vld [vmem:[%s11008_s0 + $0x9d4] ss:$72 sps:$4 sm:$0xff]  }
 0x322   :  { %5759 = vmatmul.mubr.bf16.gmra.mrb[16].mxu0 %v8685_v33  ;;  %4710 = vmatprep.mubr.bf16.mxu1 %v8686_v34 }
 0x323   :  { %5766 = vmatprep.mubr.bf16.mxu0 %v8688_v35  ;;  %v8761_v35 = vld [vmem:[%s11008_s0 + $0xa40] ss:$72 sps:$4 sm:$0xff]  }
 0x329   :  { %4711 = vmatmul.mubr.bf16.gmra.mrb[72].mxu1 %v8690_v36 }
 0x32a   :  { %5767 = vmatmul.mubr.bf16.gmra.mrb[20].mxu0 %v8691_v37  ;;  %4718 = vmatprep.mubr.bf16.mxu1 %v8692_v38  ;;  %v8762_v37 = vld [vmem:[%s11008_s0 + $0x9d0] ss:$72 sps:$4 sm:$0xff]   ;;  %v8763_v38 = vld [vmem:[%s11008_s0 + $0xad4] ss:$72 sps:$4 sm:$0xff]  }
 0x32b   :  { %5774 = vmatprep.mubr.bf16.mxu0 %v8694_v39 }
 0x331   :  { %4719 = vmatmul.mubr.bf16.gmra.mrb[76].mxu1 %v8696_v40  ;;  %v8765_v40 = vld [vmem:[%s11008_s0 + $0xa64] ss:$72 sps:$4 sm:$0xff]  }
 0x332   :  { %5775 = vmatmul.mubr.bf16.gmra.mrb[24].mxu0 %v8697_v41  ;;  %4726 = vmatprep.mubr.bf16.mxu1 %v8698_v42 }
 0x333   :  { %5782 = vmatprep.mubr.bf16.mxu0 %v8700_v43  ;;  %v8767_v43 = vld [vmem:[%s11008_s0 + $0xad0] ss:$72 sps:$4 sm:$0xff]  }
 0x339   :  { %4727 = vmatmul.mubr.bf16.gmra.mrb[80].mxu1 %v8702_v44 }
 0x33a   :  { %5783 = vmatmul.mubr.bf16.gmra.mrb[28].mxu0 %v8703_v45  ;;  %4734 = vmatprep.mubr.bf16.mxu1 %v8704_v46  ;;  %v8768_v45 = vld [vmem:[%s11008_s0 + $0xa60] ss:$72 sps:$4 sm:$0xff]   ;;  %v8769_v46 = vld [vmem:[%s11008_s0 + $0xb64] ss:$72 sps:$4 sm:$0xff]  }
 0x33b   :  { %5790 = vmatprep.mubr.bf16.mxu0 %v8706_v47 }
 0x341   :  { %4735 = vmatmul.mubr.bf16.gmra.mrb[84].mxu1 %v8708_v48  ;;  %v8771_v48 = vld [vmem:[%s11008_s0 + $0xaf4] ss:$72 sps:$4 sm:$0xff]  }
 0x342   :  { %5791 = vmatmul.mubr.bf16.gmra.mrb[32].mxu0 %v8709_v49  ;;  %4742 = vmatprep.mubr.bf16.mxu1 %v8710_v50 }
 0x343   :  { %5798 = vmatprep.mubr.bf16.mxu0 %v8712_v51  ;;  %v8773_v51 = vld [vmem:[%s11008_s0 + $0xb60] ss:$72 sps:$4 sm:$0xff]  }
 0x349   :  { %4743 = vmatmul.mubr.bf16.gmra.mrb[88].mxu1 %v8714_v52 }
 0x34a   :  { %5799 = vmatmul.mubr.bf16.gmra.mrb[36].mxu0 %v8715_v53  ;;  %4750 = vmatprep.mubr.bf16.mxu1 %v8716_v54  ;;  %v8774_v53 = vld [vmem:[%s11008_s0 + $0xaf0] ss:$72 sps:$4 sm:$0xff]   ;;  %v8775_v54 = vld [vmem:[%s11008_s0 + $0xbf4] ss:$72 sps:$4 sm:$0xff]  }
 0x34b   :  { %5806 = vmatprep.mubr.bf16.mxu0 %v8718_v55 }
 0x351   :  { %4751 = vmatmul.mubr.bf16.gmra.mrb[92].mxu1 %v8720_v57 }
 0x352   :  { %5807 = vmatmul.mubr.bf16.gmra.mrb[40].mxu0 %v8721_v58  ;;  %4758 = vmatprep.mubr.bf16.mxu1 %v6763_v59  ;;  %v8779_v59 = vld [vmem:[%s11008_s0 + $0xbf0] ss:$72 sps:$4 sm:$0xff]  }
 0x353   :  { %5814 = vmatprep.mubr.bf16.mxu0 %v8723_v60 }
 0x359   :  { %4759 = vmatmul.mubr.bf16.gmra.mrb[96].mxu1 %v6762_v61  ;;  %v8780_v61 = vld [vmem:[%s11008_s0 + $0xb80] ss:$72 sps:$4 sm:$0xff]  }
 0x35a   :  { %5815 = vmatmul.mubr.bf16.gmra.mrb[44].mxu0 %v8726_v0  ;;  %4902 = vmatprep.mubr.bf16.mxu1 %v8729_v62  ;;  %v8781_v0 = vld [vmem:[%s11008_s0 + $0xc84] ss:$72 sps:$4 sm:$0xff]  }
 0x35b   :  { %5822 = vmatprep.mubr.bf16.mxu0 %v8730_v63  ;;  %v8783_v63 = vld [vmem:[%s11008_s0 + $0xc14] ss:$72 sps:$4 sm:$0xff]  }
 0x361   :  { %4903 = vmatmul.mubr.bf16.vlgmr.msra.gmra.mrb[52].mxu1 %v8727_v1 }
 0x362   :  { %5823 = vmatmul.mubr.bf16.gmra.mrb[48].mxu0 %v8732_v2  ;;  %4910 = vmatprep.mubr.bf16.mxu1 %v8733_v3  ;;  %v8785_v3 = vld [vmem:[%s11008_s0 + $0xc80] ss:$72 sps:$4 sm:$0xff]  }
 0x363   :  { %5830 = vmatprep.mubr.bf16.mxu0 %v8735_v4 }
 0x369   :  { %4911 = vmatmul.mubr.bf16.gmra.mrb[56].mxu1 %v8737_v5  ;;  %v8786_v5 = vld [vmem:[%s11008_s0 + $0xc10] ss:$72 sps:$4 sm:$0xff]  }
 0x36a   :  { %5831 = vmatmul.mubr.bf16.gmra.mrb[52].mxu0 %v8738_v6  ;;  %4918 = vmatprep.mubr.bf16.mxu1 %v8739_v7  ;;  %v8787_v6 = vld [vmem:[%s11008_s0 + $0xd14] ss:$72 sps:$4 sm:$0xff]  }
 0x36b   :  { %5838 = vmatprep.mubr.bf16.mxu0 %v8741_v8  ;;  %v8789_v8 = vld [vmem:[%s11008_s0 + $0xca4] ss:$72 sps:$4 sm:$0xff]  }
 0x36c   :  { %v10686_v9 = vpop.f32.mrb[0].mxu1 }
 0x36d   :  { %v4570_v10 = vpop.f32.mrb[1].mxu1 }
 0x36e   :  { %v10691_v12 = vpop.f32.mrb[2].mxu1  ;;  %v451_v10 = vld [vmem:[%s11008_s0 + $0xda0] sm:$0xff] }
 0x36f   :  { %v4573_v15 = vpop.f32.mrb[3].mxu1 }
 0x371   :  { %4919 = vmatmul.mubr.bf16.gmra.mrb[60].mxu1 %v8743_v11 }
 0x372   :  { %5839 = vmatmul.mubr.bf16.gmra.mrb[56].mxu0 %v8744_v13  ;;  %4926 = vmatprep.mubr.bf16.mxu1 %v8745_v14  ;;  %v8791_v14 = vld [vmem:[%s11008_s0 + $0xd10] ss:$72 sps:$4 sm:$0xff]  }
 0x373   :  { %5846 = vmatprep.mubr.bf16.mxu0 %v8747_v16  ;;  %v8792_v16 = vld [vmem:[%s11008_s0 + $0xca0] ss:$72 sps:$4 sm:$0xff]  }
 0x374   :  { %v10702_v17 = vpop.f32.mrb[4].mxu1 }
 0x375   :  { %v4578_v18 = vpop.f32.mrb[5].mxu1 }
 0x376   :  { %v10707_v20 = vpop.f32.mrb[6].mxu1  ;;  %v6765_v18 = vcombine.high %v451_v10, %v451_v10 }
 0x377   :  { %v4581_v23 = vpop.f32.mrb[7].mxu1 }
 0x378   :  { %v455_v23 = vld [vmem:[%s11008_s0 + $0xdc0] sm:$0xff] }
 0x379   :  { %4927 = vmatmul.mubr.bf16.gmra.mrb[64].mxu1 %v8749_v19 }
 0x37a   :  { %5847 = vmatmul.mubr.bf16.gmra.mrb[60].mxu0 %v8750_v21  ;;  %4934 = vmatprep.mubr.bf16.mxu1 %v8751_v22  ;;  %v8794_v21 = vld [vmem:[%s11008_s0 + $0xd34] ss:$72 sps:$4 sm:$0xff]  }
 0x37b   :  { %5854 = vmatprep.mubr.bf16.mxu0 %v8753_v24 }
 0x37c   :  { %v10718_v25 = vpop.f32.mrb[8].mxu1 }
 0x37d   :  { %v4586_v26 = vpop.f32.mrb[9].mxu1 }
 0x37e   :  { %v10723_v28 = vpop.f32.mrb[10].mxu1  ;;  %v6764_v26 = vcombine.low %v451_v10, %v451_v10 }
 0x37f   :  { %v4589_v31 = vpop.f32.mrb[11].mxu1 }
 0x380   :  { %v6773_v31 = vcombine.high %v455_v23, %v455_v23 }
 0x381   :  { %4935 = vmatmul.mubr.bf16.gmra.mrb[68].mxu1 %v8755_v27 }
 0x382   :  { %5855 = vmatmul.mubr.bf16.gmra.mrb[64].mxu0 %v8756_v29  ;;  %4942 = vmatprep.mubr.bf16.mxu1 %v8757_v30  ;;  %v8797_v29 = vld [vmem:[%s11008_s0 + $0xd30] ss:$72 sps:$4 sm:$0xff]  }
 0x383   :  { %5862 = vmatprep.mubr.bf16.mxu0 %v8759_v32 }
 0x384   :  { %v10734_v33 = vpop.f32.mrb[12].mxu1 }
 0x385   :  { %v4594_v34 = vpop.f32.mrb[13].mxu1 }
 0x386   :  { %v10739_v36 = vpop.f32.mrb[14].mxu1 }
 0x387   :  { %v4597_v39 = vpop.f32.mrb[15].mxu1 }
 0x389   :  { %4943 = vmatmul.mubr.bf16.gmra.mrb[72].mxu1 %v8761_v35 }
 0x38a   :  { %5863 = vmatmul.mubr.bf16.gmra.mrb[68].mxu0 %v8762_v37  ;;  %4950 = vmatprep.mubr.bf16.mxu1 %v8763_v38  ;;  %v6772_v37 = vcombine.low %v455_v23, %v455_v23 }
 0x38b   :  { %5870 = vmatprep.mubr.bf16.mxu0 %v8765_v40 }
 0x38c   :  { %v10750_v41 = vpop.f32.mrb[16].mxu1 }
 0x38d   :  { %v4602_v42 = vpop.f32.mrb[17].mxu1 }
 0x38e   :  { %v10755_v44 = vpop.f32.mrb[18].mxu1 }
 0x38f   :  { %v4605_v47 = vpop.f32.mrb[19].mxu1 }
 0x391   :  { %4951 = vmatmul.mubr.bf16.gmra.mrb[76].mxu1 %v8767_v43 }
 0x392   :  { %5871 = vmatmul.mubr.bf16.gmra.mrb[72].mxu0 %v8768_v45  ;;  %4958 = vmatprep.mubr.bf16.mxu1 %v8769_v46 }
 0x393   :  { %5878 = vmatprep.mubr.bf16.mxu0 %v8771_v48 }
 0x394   :  { %v10766_v49 = vpop.f32.mrb[20].mxu1 }
 0x395   :  { %v4610_v50 = vpop.f32.mrb[21].mxu1 }
 0x396   :  { %v10771_v52 = vpop.f32.mrb[22].mxu1  ;;  %v10855_v50 = vld [vmem:[%s11009_s2] ss:$0 sm:$0xff] }
 0x397   :  { %v4613_v55 = vpop.f32.mrb[23].mxu1  ;;  %v7201_v23 = vadd.f32 %v10855_v50, %v10723_v28 }
 0x399   :  { %4959 = vmatmul.mubr.bf16.gmra.mrb[80].mxu1 %v8773_v51  ;;  %v7191_v51 = vadd.f32 %v10855_v50, %v10686_v9 }
 0x39a   :  { %5879 = vmatmul.mubr.bf16.gmra.mrb[76].mxu0 %v8774_v53  ;;  %4966 = vmatprep.mubr.bf16.mxu1 %v8775_v54  ;;  %v7193_v54 = vadd.f32 %v10855_v50, %v10691_v12 }
 0x39b   :  { %5886 = vmatprep.mubr.bf16.mxu0 %v8777_v56 }
 0x39c   :  { %v10782_v57 = vpop.f32.mrb[24].mxu1 }
 0x39d   :  { %v4618_v58 = vpop.f32.mrb[25].mxu1 }
 0x39e   :  { %v10787_v60 = vpop.f32.mrb[26].mxu1 }
 0x39f   :  { %v4621_v62 = vpop.f32.mrb[27].mxu1 }
 0x3a1   :  { %4967 = vmatmul.mubr.bf16.gmra.mrb[84].mxu1 %v8779_v59 }
 0x3a2   :  { %5887 = vmatmul.mubr.bf16.gmra.mrb[80].mxu0 %v8780_v61  ;;  %4974 = vmatprep.mubr.bf16.mxu1 %v8781_v0 }
 0x3a3   :  { %5894 = vmatprep.mubr.bf16.mxu0 %v8783_v63  ;;  %v7195_v63 = vadd.f32 %v10855_v50, %v10702_v17 }
 0x3a4   :  { %v10798_v1 = vpop.f32.mrb[28].mxu1 }
 0x3a5   :  { %v4626_v2 = vpop.f32.mrb[29].mxu1 }
 0x3a6   :  { %v10803_v4 = vpop.f32.mrb[30].mxu1 }
 0x3a7   :  { %v4629_v7 = vpop.f32.mrb[31].mxu1 }
 0x3a9   :  { %4975 = vmatmul.mubr.bf16.gmra.mrb[88].mxu1 %v8785_v3 }
 0x3aa   :  { %5895 = vmatmul.mubr.bf16.gmra.mrb[84].mxu0 %v8786_v5  ;;  %4982 = vmatprep.mubr.bf16.mxu1 %v8787_v6  ;;  %v7197_v6 = vadd.f32 %v10855_v50, %v10707_v20 }
 0x3ab   :  { %5902 = vmatprep.mubr.bf16.mxu0 %v8789_v8 }
 0x3ac   :  { %v10817_v11 = vpop.f32.mrb[32].mxu1 }
 0x3ad   :  { %v4634_v13 = vpop.f32.mrb[33].mxu1 }
 0x3ae   :  { %v10822_v15 = vpop.f32.mrb[34].mxu1 }
 0x3af   :  { %v4637_v19 = vpop.f32.mrb[35].mxu1 }
 0x3b1   :  { %4983 = vmatmul.mubr.bf16.gmra.mrb[92].mxu1 %v8791_v14 }
 0x3b2   :  { %5903 = vmatmul.mubr.bf16.gmra.mrb[88].mxu0 %v8792_v16  ;;  %4990 = vmatprep.mubr.bf16.mxu1 %v6765_v18  ;;  %v7199_v16 = vadd.f32 %v10855_v50, %v10718_v25 }
 0x3b3   :  { %5910 = vmatprep.mubr.bf16.mxu0 %v8794_v21 }
 0x3b4   :  { %v10830_v22 = vpop.f32.mrb[36].mxu1 }
 0x3b5   :  { %v4642_v24 = vpop.f32.mrb[37].mxu1 }
 0x3b6   :  { %v10835_v27 = vpop.f32.mrb[38].mxu1 }
 0x3b7   :  { %v4645_v30 = vpop.f32.mrb[39].mxu1 }
 0x3b9   :  { %4991 = vmatmul.mubr.bf16.gmra.mrb[96].mxu1 %v6764_v26 }
 0x3ba   :  { %5911 = vmatmul.mubr.bf16.gmra.mrb[92].mxu0 %v8797_v29 }
 0x3bb   :  { %5918 = vmatprep.mubr.bf16.mxu0 %v6773_v31 }
 0x3bc   :  { %v10840_v32 = vpop.f32.mrb[40].mxu1 }
 0x3bd   :  { %v4650_v34 = vpop.f32.mrb[41].mxu1 }
 0x3be   :  { %v10842_v35 = vpop.f32.mrb[42].mxu1 }
 0x3bf   :  { %v4653_v38 = vpop.f32.mrb[43].mxu1 }
 0x3c2   :  { %5919 = vmatmul.mubr.bf16.gmra.mrb[96].mxu0 %v6772_v37  ;;  %v7203_v37 = vadd.f32 %v10855_v50, %v10734_v33 }
 0x3c4   :  { %v10844_v39 = vpop.f32.mrb[44].mxu1 }
 0x3c5   :  { %v4658_v40 = vpop.f32.mrb[45].mxu1 }
 0x3c6   :  { %v10846_v42 = vpop.f32.mrb[46].mxu1 }
 0x3c7   :  { %v4661_v43 = vpop.f32.mrb[47].mxu1 }
 0x3cc   :  { %v10848_v45 = vpop.f32.mrb[48].mxu1 }
 0x3cd   :  { %v4666_v46 = vpop.f32.mrb[49].mxu1 }
 0x3ce   :  { %v10850_v47 = vpop.f32.mrb[50].mxu1  ;;  %v7205_v46 = vadd.f32 %v10855_v50, %v10739_v36 }
 0x3cf   :  { %v4669_v48 = vpop.f32.mrb[51].mxu1 }
 0x3d5   :  { %v5728_v53 = vpop.f32.mrb[0].mxu0 }
 0x3d6   :  { %v7192_v55 = vadd.f32 %v7191_v51, %v5728_v53  ;;  %v5730_v56 = vpop.f32.mrb[1].mxu0 }
 0x3d7   :  { %v5731_v58 = vpop.f32.mrb[2].mxu0 }
 0x3d8   :  { %v5975_v59 = vmul.f32 0.2, %v7192_v55  ;;  %v7194_v61 = vadd.f32 %v7193_v54, %v5731_v58  ;;  %v5733_v0 = vpop.f32.mrb[3].mxu0  ;;  %vm5926_vm0 = vcmp.gt.f32.partialorder %v7192_v55, 0.0  ;;  %v7207_v58 = vadd.f32 %v10855_v50, %v10750_v41 }
 0x3da   :  { %vm5927_vm1 = vcmp.gt.f32.partialorder %v7194_v61, 0.0  ;;  %v5976_v62 = vmul.f32 0.2, %v7194_v61  ;;  %v6024_v2 = vsel %vm5926_vm0, %v7192_v55, %v5975_v59 }
 0x3dc   :  { %v6025_v3 = vsel %vm5927_vm1, %v7194_v61, %v5976_v62  ;;  %v7209_v62 = vadd.f32 %v10855_v50, %v10755_v44 }
 0x3dd   :  { %v7019_v5 = vpack.c.bf16 %v6025_v3, %v6024_v2  ;;  %v5736_v9 = vpop.f32.mrb[4].mxu0 }
 0x3de   :  { %v7196_v12 = vadd.f32 %v7195_v63, %v5736_v9  ;;  %v5738_v7 = vpop.f32.mrb[5].mxu0 }
 0x3df   :  { %7020 = vst [vmem:[%s11010_s3] sm:$0xff] %v7019_v5   ;;  %v5739_v8 = vpop.f32.mrb[6].mxu0 }
 0x3e0   :  { %v5977_v10 = vmul.f32 0.2, %v7196_v12  ;;  %v7198_v13 = vadd.f32 %v7197_v6, %v5739_v8  ;;  %v5741_v14 = vpop.f32.mrb[7].mxu0  ;;  %vm5928_vm2 = vcmp.gt.f32.partialorder %v7196_v12, 0.0 }
 0x3e2   :  { %vm5929_vm3 = vcmp.gt.f32.partialorder %v7198_v13, 0.0  ;;  %v5978_v17 = vmul.f32 0.2, %v7198_v13  ;;  %v6026_v18 = vsel %vm5928_vm2, %v7196_v12, %v5977_v10  ;;  %v7211_v12 = vadd.f32 %v10855_v50, %v10766_v49 }
 0x3e4   :  { %v6027_v19 = vsel %vm5929_vm3, %v7198_v13, %v5978_v17  ;;  %v7213_v13 = vadd.f32 %v10855_v50, %v10771_v52 }
 0x3e5   :  { %v7024_v21 = vpack.c.bf16 %v6027_v19, %v6026_v18  ;;  %v5744_v20 = vpop.f32.mrb[8].mxu0 }
 0x3e6   :  { %v7200_v24 = vadd.f32 %v7199_v16, %v5744_v20  ;;  %v5746_v26 = vpop.f32.mrb[9].mxu0  ;;  %v7215_v20 = vadd.f32 %v10855_v50, %v10782_v57 }
 0x3e7   :  { %7136 = vst [vmem:[%s11010_s3 + $0x8] sm:$0xff] %v7024_v21   ;;  %v5747_v29 = vpop.f32.mrb[10].mxu0 }
 0x3e8   :  { %v5979_v30 = vmul.f32 0.2, %v7200_v24  ;;  %v7202_v31 = vadd.f32 %v7201_v23, %v5747_v29  ;;  %v5749_v34 = vpop.f32.mrb[11].mxu0  ;;  %vm5930_vm4 = vcmp.gt.f32.partialorder %v7200_v24, 0.0  ;;  %v7217_v29 = vadd.f32 %v10855_v50, %v10787_v60 }
 0x3ea   :  { %vm5931_vm5 = vcmp.gt.f32.partialorder %v7202_v31, 0.0  ;;  %v5980_v25 = vmul.f32 0.2, %v7202_v31  ;;  %v6028_v38 = vsel %vm5930_vm4, %v7200_v24, %v5979_v30 }
 0x3ec   :  { %v6029_v40 = vsel %vm5931_vm5, %v7202_v31, %v5980_v25 }
 0x3ed   :  { %v7029_v43 = vpack.c.bf16 %v6029_v40, %v6028_v38  ;;  %v5752_v28 = vpop.f32.mrb[12].mxu0  ;;  %v7219_v40 = vadd.f32 %v10855_v50, %v10798_v1 }
 0x3ee   :  { %v7204_v48 = vadd.f32 %v7203_v37, %v5752_v28  ;;  %v5754_v51 = vpop.f32.mrb[13].mxu0 }
 0x3ef   :  { %7137 = vst [vmem:[%s11010_s3 + $0x10] sm:$0xff] %v7029_v43   ;;  %v5755_v53 = vpop.f32.mrb[14].mxu0 }
 0x3f0   :  { %v5981_v54 = vmul.f32 0.2, %v7204_v48  ;;  %v7206_v55 = vadd.f32 %v7205_v46, %v5755_v53  ;;  %v5757_v56 = vpop.f32.mrb[15].mxu0  ;;  %vm5932_vm6 = vcmp.gt.f32.partialorder %v7204_v48, 0.0 }
 0x3f2   :  { %vm5933_vm7 = vcmp.gt.f32.partialorder %v7206_v55, 0.0  ;;  %v5982_v33 = vmul.f32 0.2, %v7206_v55  ;;  %v6030_v59 = vsel %vm5932_vm6, %v7204_v48, %v5981_v54  ;;  %v7221_v48 = vadd.f32 %v10855_v50, %v10803_v4 }
 0x3f4   :  { %v6031_v61 = vsel %vm5933_vm7, %v7206_v55, %v5982_v33 }
 0x3f5   :  { %v7034_v0 = vpack.c.bf16 %v6031_v61, %v6030_v59  ;;  %v5760_v36 = vpop.f32.mrb[16].mxu0 }
 0x3f6   :  { %v7208_v63 = vadd.f32 %v7207_v58, %v5760_v36  ;;  %v5762_v2 = vpop.f32.mrb[17].mxu0  ;;  %v7223_v58 = vadd.f32 %v10855_v50, %v10817_v11  ;;  %v7225_v36 = vadd.f32 %v10855_v50, %v10822_v15 }
 0x3f7   :  { %7138 = vst [vmem:[%s11010_s3 + $0x18] sm:$0xff] %v7034_v0   ;;  %v5763_v3 = vpop.f32.mrb[18].mxu0 }
 0x3f8   :  { %v5983_v5 = vmul.f32 0.2, %v7208_v63  ;;  %v7210_v9 = vadd.f32 %v7209_v62, %v5763_v3  ;;  %v5765_v6 = vpop.f32.mrb[19].mxu0  ;;  %vm5934_vm8 = vcmp.gt.f32.partialorder %v7208_v63, 0.0 }
 0x3f9   :  { %v7227_v6 = vadd.f32 %v10855_v50, %v10830_v22 }
 0x3fa   :  { %vm5935_vm9 = vcmp.gt.f32.partialorder %v7210_v9, 0.0  ;;  %v5984_v41 = vmul.f32 0.2, %v7210_v9  ;;  %v6032_v7 = vsel %vm5934_vm8, %v7208_v63, %v5983_v5 }
 0x3fc   :  { %v6033_v8 = vsel %vm5935_vm9, %v7210_v9, %v5984_v41 }
 0x3fd   :  { %v7039_v10 = vpack.c.bf16 %v6033_v8, %v6032_v7  ;;  %v5768_v44 = vpop.f32.mrb[20].mxu0  ;;  %v7229_v8 = vadd.f32 %v10855_v50, %v10835_v27 }
 0x3fe   :  { %v7212_v14 = vadd.f32 %v7211_v12, %v5768_v44  ;;  %v5770_v17 = vpop.f32.mrb[21].mxu0 }
 0x3ff   :  { %7139 = vst [vmem:[%s11010_s3 + $0x20] sm:$0xff] %v7039_v10   ;;  %v5771_v16 = vpop.f32.mrb[22].mxu0 }
 0x400   :  { %v5985_v18 = vmul.f32 0.2, %v7212_v14  ;;  %v7214_v19 = vadd.f32 %v7213_v13, %v5771_v16  ;;  %v5773_v21 = vpop.f32.mrb[23].mxu0  ;;  %vm5936_vm10 = vcmp.gt.f32.partialorder %v7212_v14, 0.0 }
 0x402   :  { %vm5937_vm11 = vcmp.gt.f32.partialorder %v7214_v19, 0.0  ;;  %v5986_v49 = vmul.f32 0.2, %v7214_v19  ;;  %v6034_v23 = vsel %vm5936_vm10, %v7212_v14, %v5985_v18  ;;  %v7231_v18 = vadd.f32 %v10855_v50, %v10840_v32 }
 0x404   :  { %v6035_v24 = vsel %vm5937_vm11, %v7214_v19, %v5986_v49 }
 0x405   :  { %v7044_v26 = vpack.c.bf16 %v6035_v24, %v6034_v23  ;;  %v5776_v52 = vpop.f32.mrb[24].mxu0 }
 0x406   :  { %v7216_v30 = vadd.f32 %v7215_v20, %v5776_v52  ;;  %v5778_v31 = vpop.f32.mrb[25].mxu0  ;;  %v7233_v20 = vadd.f32 %v10855_v50, %v10842_v35 }
 0x407   :  { %7140 = vst [vmem:[%s11010_s3 + $0x28] sm:$0xff] %v7044_v26   ;;  %v5779_v34 = vpop.f32.mrb[26].mxu0  ;;  %v7235_v31 = vadd.f32 %v10855_v50, %v10844_v39 }
 0x408   :  { %v5987_v25 = vmul.f32 0.2, %v7216_v30  ;;  %v7218_v37 = vadd.f32 %v7217_v29, %v5779_v34  ;;  %v5781_v38 = vpop.f32.mrb[27].mxu0  ;;  %vm5938_vm12 = vcmp.gt.f32.partialorder %v7216_v30, 0.0 }
 0x409   :  { %v7237_v38 = vadd.f32 %v10855_v50, %v10846_v42 }
 0x40a   :  { %vm5939_vm13 = vcmp.gt.f32.partialorder %v7218_v37, 0.0  ;;  %v5988_v57 = vmul.f32 0.2, %v7218_v37  ;;  %v6036_v43 = vsel %vm5938_vm12, %v7216_v30, %v5987_v25 }
 0x40c   :  { %v6037_v28 = vsel %vm5939_vm13, %v7218_v37, %v5988_v57 }
 0x40d   :  { %v7049_v46 = vpack.c.bf16 %v6037_v28, %v6036_v43  ;;  %v5784_v60 = vpop.f32.mrb[28].mxu0 }
 0x40e   :  { %v7220_v51 = vadd.f32 %v7219_v40, %v5784_v60  ;;  %v5786_v53 = vpop.f32.mrb[29].mxu0 }
 0x40f   :  { %7141 = vst [vmem:[%s11010_s3 + $0x30] sm:$0xff] %v7049_v46   ;;  %v5787_v54 = vpop.f32.mrb[30].mxu0 }
 0x410   :  { %v5989_v55 = vmul.f32 0.2, %v7220_v51  ;;  %v7222_v56 = vadd.f32 %v7221_v48, %v5787_v54  ;;  %v5789_v33 = vpop.f32.mrb[31].mxu0  ;;  %vm5940_vm14 = vcmp.gt.f32.partialorder %v7220_v51, 0.0  ;;  %v7239_v48 = vadd.f32 %v10855_v50, %v10848_v45 }
 0x411   :  { %v7241_v33 = vadd.f32 %v10855_v50, %v10850_v47 }
 0x412   :  { %vm5941_vm15 = vcmp.gt.f32.partialorder %v7222_v56, 0.0  ;;  %v5990_v1 = vmul.f32 0.2, %v7222_v56  ;;  %v6038_v59 = vsel %vm5940_vm14, %v7220_v51, %v5989_v55 }
 0x414   :  { %v6039_v61 = vsel %vm5941_vm15, %v7222_v56, %v5990_v1 }
 0x415   :  { %v7054_v0 = vpack.c.bf16 %v6039_v61, %v6038_v59  ;;  %v5792_v4 = vpop.f32.mrb[32].mxu0 }
 0x416   :  { %v7224_v62 = vadd.f32 %v7223_v58, %v5792_v4  ;;  %v5794_v63 = vpop.f32.mrb[33].mxu0 }
 0x417   :  { %7142 = vst [vmem:[%s11010_s3 + $0x38] sm:$0xff] %v7054_v0   ;;  %v5795_v2 = vpop.f32.mrb[34].mxu0 }
 0x418   :  { %v5991_v3 = vmul.f32 0.2, %v7224_v62  ;;  %v7226_v5 = vadd.f32 %v7225_v36, %v5795_v2  ;;  %v5797_v9 = vpop.f32.mrb[35].mxu0  ;;  %vm5942_vm0 = vcmp.gt.f32.partialorder %v7224_v62, 0.0 }
 0x41a   :  { %vm5943_vm1 = vcmp.gt.f32.partialorder %v7226_v5, 0.0  ;;  %v5992_v11 = vmul.f32 0.2, %v7226_v5  ;;  %v6040_v41 = vsel %vm5942_vm0, %v7224_v62, %v5991_v3 }
 0x41c   :  { %v6041_v12 = vsel %vm5943_vm1, %v7226_v5, %v5992_v11 }
 0x41d   :  { %v7059_v7 = vpack.c.bf16 %v6041_v12, %v6040_v41  ;;  %v5800_v15 = vpop.f32.mrb[36].mxu0 }
 0x41e   :  { %v7228_v10 = vadd.f32 %v7227_v6, %v5800_v15  ;;  %v5802_v44 = vpop.f32.mrb[37].mxu0 }
 0x41f   :  { %7143 = vst [vmem:[%s11010_s3 + $0x40] sm:$0xff] %v7059_v7   ;;  %v5803_v13 = vpop.f32.mrb[38].mxu0 }
 0x420   :  { %v5993_v14 = vmul.f32 0.2, %v7228_v10  ;;  %v7230_v17 = vadd.f32 %v7229_v8, %v5803_v13  ;;  %v5805_v16 = vpop.f32.mrb[39].mxu0  ;;  %vm5944_vm2 = vcmp.gt.f32.partialorder %v7228_v10, 0.0 }
 0x422   :  { %vm5945_vm3 = vcmp.gt.f32.partialorder %v7230_v17, 0.0  ;;  %v5994_v22 = vmul.f32 0.2, %v7230_v17  ;;  %v6042_v19 = vsel %vm5944_vm2, %v7228_v10, %v5993_v14 }
 0x424   :  { %v6043_v21 = vsel %vm5945_vm3, %v7230_v17, %v5994_v22 }
 0x425   :  { %v7064_v49 = vpack.c.bf16 %v6043_v21, %v6042_v19  ;;  %v5808_v27 = vpop.f32.mrb[40].mxu0 }
 0x426   :  { %v7232_v23 = vadd.f32 %v7231_v18, %v5808_v27  ;;  %v5810_v24 = vpop.f32.mrb[41].mxu0 }
 0x427   :  { %7144 = vst [vmem:[%s11010_s3 + $0x48] sm:$0xff] %v7064_v49   ;;  %v5811_v26 = vpop.f32.mrb[42].mxu0 }
 0x428   :  { %v5995_v52 = vmul.f32 0.2, %v7232_v23  ;;  %v7234_v29 = vadd.f32 %v7233_v20, %v5811_v26  ;;  %v5813_v30 = vpop.f32.mrb[43].mxu0  ;;  %vm5946_vm4 = vcmp.gt.f32.partialorder %v7232_v23, 0.0 }
 0x42a   :  { %vm5947_vm5 = vcmp.gt.f32.partialorder %v7234_v29, 0.0  ;;  %v5996_v32 = vmul.f32 0.2, %v7234_v29  ;;  %v6044_v34 = vsel %vm5946_vm4, %v7232_v23, %v5995_v52 }
 0x42c   :  { %v6045_v25 = vsel %vm5947_vm5, %v7234_v29, %v5996_v32 }
 0x42d   :  { %v7069_v37 = vpack.c.bf16 %v6045_v25, %v6044_v34  ;;  %v5816_v35 = vpop.f32.mrb[44].mxu0 }
 0x42e   :  { %v7236_v57 = vadd.f32 %v7235_v31, %v5816_v35  ;;  %v5818_v40 = vpop.f32.mrb[45].mxu0 }
 0x42f   :  { %7145 = vst [vmem:[%s11010_s3 + $0x50] sm:$0xff] %v7069_v37   ;;  %v5819_v43 = vpop.f32.mrb[46].mxu0 }
 0x430   :  { %v5997_v28 = vmul.f32 0.2, %v7236_v57  ;;  %v7238_v46 = vadd.f32 %v7237_v38, %v5819_v43  ;;  %v5821_v60 = vpop.f32.mrb[47].mxu0  ;;  %vm5948_vm6 = vcmp.gt.f32.partialorder %v7236_v57, 0.0 }
 0x432   :  { %vm5949_vm7 = vcmp.gt.f32.partialorder %v7238_v46, 0.0  ;;  %v5998_v39 = vmul.f32 0.2, %v7238_v46  ;;  %v6046_v51 = vsel %vm5948_vm6, %v7236_v57, %v5997_v28 }
 0x434   :  { %v6047_v53 = vsel %vm5949_vm7, %v7238_v46, %v5998_v39  ;;  %v4904_v54 = vpop.f32.mrb[52].mxu1 }
 0x435   :  { %v7074_v42 = vpack.c.bf16 %v6047_v53, %v6046_v51  ;;  %v5824_v55 = vpop.f32.mrb[48].mxu0  ;;  %v4906_v56 = vpop.f32.mrb[53].mxu1  ;;  %v7243_v63 = vadd.f32 %v10855_v50, %v4904_v54 }
 0x436   :  { %v7240_v1 = vadd.f32 %v7239_v48, %v5824_v55  ;;  %v5826_v58 = vpop.f32.mrb[49].mxu0  ;;  %v4907_v59 = vpop.f32.mrb[54].mxu1 }
 0x437   :  { %7146 = vst [vmem:[%s11010_s3 + $0x58] sm:$0xff] %v7074_v42   ;;  %v5827_v61 = vpop.f32.mrb[50].mxu0  ;;  %v4909_v0 = vpop.f32.mrb[55].mxu1  ;;  %v7245_v6 = vadd.f32 %v10855_v50, %v4907_v59 }
 0x438   :  { %v5999_v4 = vmul.f32 0.2, %v7240_v1  ;;  %v7242_v45 = vadd.f32 %v7241_v33, %v5827_v61  ;;  %v5829_v36 = vpop.f32.mrb[51].mxu0  ;;  %vm5950_vm8 = vcmp.gt.f32.partialorder %v7240_v1, 0.0 }
 0x43a   :  { %vm5951_vm9 = vcmp.gt.f32.partialorder %v7242_v45, 0.0  ;;  %v6000_v62 = vmul.f32 0.2, %v7242_v45  ;;  %v6048_v2 = vsel %vm5950_vm8, %v7240_v1, %v5999_v4 }
 0x43c   :  { %v6049_v3 = vsel %vm5951_vm9, %v7242_v45, %v6000_v62  ;;  %v4912_v47 = vpop.f32.mrb[56].mxu1 }
 0x43d   :  { %v7079_v5 = vpack.c.bf16 %v6049_v3, %v6048_v2  ;;  %v5832_v9 = vpop.f32.mrb[52].mxu0  ;;  %v4914_v11 = vpop.f32.mrb[57].mxu1  ;;  %v7247_v17 = vadd.f32 %v10855_v50, %v4912_v47 }
 0x43e   :  { %v7244_v41 = vadd.f32 %v7243_v63, %v5832_v9  ;;  %v5834_v12 = vpop.f32.mrb[53].mxu0  ;;  %v4915_v7 = vpop.f32.mrb[58].mxu1 }
 0x43f   :  { %7147 = vst [vmem:[%s11010_s3 + $0x60] sm:$0xff] %v7079_v5   ;;  %v5835_v15 = vpop.f32.mrb[54].mxu0  ;;  %v4917_v8 = vpop.f32.mrb[59].mxu1  ;;  %v7249_v27 = vadd.f32 %v10855_v50, %v4915_v7 }
 0x440   :  { %v6001_v10 = vmul.f32 0.2, %v7244_v41  ;;  %v7246_v44 = vadd.f32 %v7245_v6, %v5835_v15  ;;  %v5837_v13 = vpop.f32.mrb[55].mxu0  ;;  %vm5952_vm10 = vcmp.gt.f32.partialorder %v7244_v41, 0.0 }
 0x442   :  { %vm5953_vm11 = vcmp.gt.f32.partialorder %v7246_v44, 0.0  ;;  %v6002_v14 = vmul.f32 0.2, %v7246_v44  ;;  %v6050_v16 = vsel %vm5952_vm10, %v7244_v41, %v6001_v10 }
 0x444   :  { %v6051_v22 = vsel %vm5953_vm11, %v7246_v44, %v6002_v14  ;;  %v4920_v18 = vpop.f32.mrb[60].mxu1 }
 0x445   :  { %v7084_v19 = vpack.c.bf16 %v6051_v22, %v6050_v16  ;;  %v5840_v21 = vpop.f32.mrb[56].mxu0  ;;  %v4922_v49 = vpop.f32.mrb[61].mxu1  ;;  %v7251_v34 = vadd.f32 %v10855_v50, %v4920_v18 }
 0x446   :  { %v7248_v20 = vadd.f32 %v7247_v17, %v5840_v21  ;;  %v5842_v23 = vpop.f32.mrb[57].mxu0  ;;  %v4923_v24 = vpop.f32.mrb[62].mxu1 }
 0x447   :  { %7148 = vst [vmem:[%s11010_s3 + $0x68] sm:$0xff] %v7084_v19   ;;  %v5843_v26 = vpop.f32.mrb[58].mxu0  ;;  %v4925_v52 = vpop.f32.mrb[63].mxu1  ;;  %v7253_v43 = vadd.f32 %v10855_v50, %v4923_v24 }
 0x448   :  { %v6003_v29 = vmul.f32 0.2, %v7248_v20  ;;  %v7250_v30 = vadd.f32 %v7249_v27, %v5843_v26  ;;  %v5845_v32 = vpop.f32.mrb[59].mxu0  ;;  %vm5954_vm12 = vcmp.gt.f32.partialorder %v7248_v20, 0.0 }
 0x44a   :  { %vm5955_vm13 = vcmp.gt.f32.partialorder %v7250_v30, 0.0  ;;  %v6004_v31 = vmul.f32 0.2, %v7250_v30  ;;  %v6052_v25 = vsel %vm5954_vm12, %v7248_v20, %v6003_v29 }
 0x44c   :  { %v6053_v37 = vsel %vm5955_vm13, %v7250_v30, %v6004_v31  ;;  %v4928_v35 = vpop.f32.mrb[64].mxu1 }
 0x44d   :  { %v7089_v38 = vpack.c.bf16 %v6053_v37, %v6052_v25  ;;  %v5848_v57 = vpop.f32.mrb[60].mxu0  ;;  %v4930_v40 = vpop.f32.mrb[65].mxu1  ;;  %v7255_v55 = vadd.f32 %v10855_v50, %v4928_v35 }
 0x44e   :  { %v7252_v28 = vadd.f32 %v7251_v34, %v5848_v57  ;;  %v5850_v46 = vpop.f32.mrb[61].mxu0  ;;  %v4931_v60 = vpop.f32.mrb[66].mxu1 }
 0x44f   :  { %7149 = vst [vmem:[%s11010_s3 + $0x70] sm:$0xff] %v7089_v38   ;;  %v5851_v39 = vpop.f32.mrb[62].mxu0  ;;  %v4933_v48 = vpop.f32.mrb[67].mxu1  ;;  %v7257_v0 = vadd.f32 %v10855_v50, %v4931_v60 }
 0x450   :  { %v6005_v51 = vmul.f32 0.2, %v7252_v28  ;;  %v7254_v53 = vadd.f32 %v7253_v43, %v5851_v39  ;;  %v5853_v54 = vpop.f32.mrb[63].mxu0  ;;  %vm5956_vm14 = vcmp.gt.f32.partialorder %v7252_v28, 0.0 }
 0x452   :  { %vm5957_vm15 = vcmp.gt.f32.partialorder %v7254_v53, 0.0  ;;  %v6006_v42 = vmul.f32 0.2, %v7254_v53  ;;  %v6054_v56 = vsel %vm5956_vm14, %v7252_v28, %v6005_v51 }
 0x454   :  { %v6055_v33 = vsel %vm5957_vm15, %v7254_v53, %v6006_v42  ;;  %v4936_v1 = vpop.f32.mrb[68].mxu1 }
 0x455   :  { %v7094_v58 = vpack.c.bf16 %v6055_v33, %v6054_v56  ;;  %v5856_v59 = vpop.f32.mrb[64].mxu0  ;;  %v4938_v61 = vpop.f32.mrb[69].mxu1  ;;  %v7259_v9 = vadd.f32 %v10855_v50, %v4936_v1 }
 0x456   :  { %v7256_v4 = vadd.f32 %v7255_v55, %v5856_v59  ;;  %v5858_v45 = vpop.f32.mrb[65].mxu0  ;;  %v4939_v36 = vpop.f32.mrb[70].mxu1 }
 0x457   :  { %7150 = vst [vmem:[%s11010_s3 + $0x78] sm:$0xff] %v7094_v58   ;;  %v5859_v62 = vpop.f32.mrb[66].mxu0  ;;  %v4941_v63 = vpop.f32.mrb[71].mxu1  ;;  %v7261_v8 = vadd.f32 %v10855_v50, %v4939_v36 }
 0x458   :  { %v6007_v2 = vmul.f32 0.2, %v7256_v4  ;;  %v7258_v3 = vadd.f32 %v7257_v0, %v5859_v62  ;;  %v5861_v47 = vpop.f32.mrb[67].mxu0  ;;  %vm5958_vm0 = vcmp.gt.f32.partialorder %v7256_v4, 0.0 }
 0x45a   :  { %vm5959_vm1 = vcmp.gt.f32.partialorder %v7258_v3, 0.0  ;;  %v6008_v5 = vmul.f32 0.2, %v7258_v3  ;;  %v6056_v11 = vsel %vm5958_vm0, %v7256_v4, %v6007_v2 }
 0x45c   :  { %v6057_v6 = vsel %vm5959_vm1, %v7258_v3, %v6008_v5  ;;  %v4944_v41 = vpop.f32.mrb[72].mxu1 }
 0x45d   :  { %v7099_v12 = vpack.c.bf16 %v6057_v6, %v6056_v11  ;;  %v5864_v7 = vpop.f32.mrb[68].mxu0  ;;  %v4946_v15 = vpop.f32.mrb[73].mxu1  ;;  %v7263_v21 = vadd.f32 %v10855_v50, %v4944_v41 }
 0x45e   :  { %v7260_v10 = vadd.f32 %v7259_v9, %v5864_v7  ;;  %v5866_v44 = vpop.f32.mrb[69].mxu0  ;;  %v4947_v13 = vpop.f32.mrb[74].mxu1 }
 0x45f   :  { %7151 = vst [vmem:[%s11010_s3 + $0x80] sm:$0xff] %v7099_v12   ;;  %v5867_v14 = vpop.f32.mrb[70].mxu0  ;;  %v4949_v17 = vpop.f32.mrb[75].mxu1  ;;  %v7265_v52 = vadd.f32 %v10855_v50, %v4947_v13 }
 0x460   :  { %v6009_v16 = vmul.f32 0.2, %v7260_v10  ;;  %v7262_v22 = vadd.f32 %v7261_v8, %v5867_v14  ;;  %v5869_v18 = vpop.f32.mrb[71].mxu0  ;;  %vm5960_vm2 = vcmp.gt.f32.partialorder %v7260_v10, 0.0 }
 0x462   :  { %vm5961_vm3 = vcmp.gt.f32.partialorder %v7262_v22, 0.0  ;;  %v6010_v19 = vmul.f32 0.2, %v7262_v22  ;;  %v6058_v49 = vsel %vm5960_vm2, %v7260_v10, %v6009_v16 }
 0x464   :  { %v6059_v27 = vsel %vm5961_vm3, %v7262_v22, %v6010_v19  ;;  %v4952_v20 = vpop.f32.mrb[76].mxu1 }
 0x465   :  { %v7104_v23 = vpack.c.bf16 %v6059_v27, %v6058_v49  ;;  %v5872_v24 = vpop.f32.mrb[72].mxu0  ;;  %v4954_v26 = vpop.f32.mrb[77].mxu1  ;;  %v7267_v57 = vadd.f32 %v10855_v50, %v4952_v20 }
 0x466   :  { %v7264_v29 = vadd.f32 %v7263_v21, %v5872_v24  ;;  %v5874_v30 = vpop.f32.mrb[73].mxu0  ;;  %v4955_v32 = vpop.f32.mrb[78].mxu1 }
 0x467   :  { %7152 = vst [vmem:[%s11010_s3 + $0x88] sm:$0xff] %v7104_v23   ;;  %v5875_v31 = vpop.f32.mrb[74].mxu0  ;;  %v4957_v34 = vpop.f32.mrb[79].mxu1  ;;  %v7269_v48 = vadd.f32 %v10855_v50, %v4955_v32 }
 0x468   :  { %v6011_v25 = vmul.f32 0.2, %v7264_v29  ;;  %v7266_v37 = vadd.f32 %v7265_v52, %v5875_v31  ;;  %v5877_v35 = vpop.f32.mrb[75].mxu0  ;;  %vm5962_vm4 = vcmp.gt.f32.partialorder %v7264_v29, 0.0 }
 0x46a   :  { %vm5963_vm5 = vcmp.gt.f32.partialorder %v7266_v37, 0.0  ;;  %v6012_v38 = vmul.f32 0.2, %v7266_v37  ;;  %v6060_v40 = vsel %vm5962_vm4, %v7264_v29, %v6011_v25 }
 0x46c   :  { %v6061_v43 = vsel %vm5963_vm5, %v7266_v37, %v6012_v38  ;;  %v4960_v28 = vpop.f32.mrb[80].mxu1 }
 0x46d   :  { %v7109_v46 = vpack.c.bf16 %v6061_v43, %v6060_v40  ;;  %v5880_v60 = vpop.f32.mrb[76].mxu0  ;;  %v4962_v39 = vpop.f32.mrb[81].mxu1  ;;  %v7271_v59 = vadd.f32 %v10855_v50, %v4960_v28 }
 0x46e   :  { %v7268_v51 = vadd.f32 %v7267_v57, %v5880_v60  ;;  %v5882_v53 = vpop.f32.mrb[77].mxu0  ;;  %v4963_v54 = vpop.f32.mrb[82].mxu1 }
 0x46f   :  { %7153 = vst [vmem:[%s11010_s3 + $0x90] sm:$0xff] %v7109_v46   ;;  %v5883_v42 = vpop.f32.mrb[78].mxu0  ;;  %v4965_v55 = vpop.f32.mrb[83].mxu1  ;;  %v7273_v63 = vadd.f32 %v10855_v50, %v4963_v54 }
 0x470   :  { %v6013_v56 = vmul.f32 0.2, %v7268_v51  ;;  %v7270_v33 = vadd.f32 %v7269_v48, %v5883_v42  ;;  %v5885_v1 = vpop.f32.mrb[79].mxu0  ;;  %vm5964_vm6 = vcmp.gt.f32.partialorder %v7268_v51, 0.0 }
 0x472   :  { %vm5965_vm7 = vcmp.gt.f32.partialorder %v7270_v33, 0.0  ;;  %v6014_v58 = vmul.f32 0.2, %v7270_v33  ;;  %v6062_v61 = vsel %vm5964_vm6, %v7268_v51, %v6013_v56 }
 0x474   :  { %v6063_v0 = vsel %vm5965_vm7, %v7270_v33, %v6014_v58  ;;  %v4968_v4 = vpop.f32.mrb[84].mxu1 }
 0x475   :  { %v7114_v45 = vpack.c.bf16 %v6063_v0, %v6062_v61  ;;  %v5888_v36 = vpop.f32.mrb[80].mxu0  ;;  %v4970_v62 = vpop.f32.mrb[85].mxu1  ;;  %v7275_v7 = vadd.f32 %v10855_v50, %v4968_v4 }
 0x476   :  { %v7272_v2 = vadd.f32 %v7271_v59, %v5888_v36  ;;  %v5890_v3 = vpop.f32.mrb[81].mxu0  ;;  %v4971_v47 = vpop.f32.mrb[86].mxu1 }
 0x477   :  { %7154 = vst [vmem:[%s11010_s3 + $0x98] sm:$0xff] %v7114_v45   ;;  %v5891_v5 = vpop.f32.mrb[82].mxu0  ;;  %v4973_v9 = vpop.f32.mrb[87].mxu1  ;;  %v7277_v17 = vadd.f32 %v10855_v50, %v4971_v47 }
 0x478   :  { %v6015_v11 = vmul.f32 0.2, %v7272_v2  ;;  %v7274_v6 = vadd.f32 %v7273_v63, %v5891_v5  ;;  %v5893_v41 = vpop.f32.mrb[83].mxu0  ;;  %vm5966_vm8 = vcmp.gt.f32.partialorder %v7272_v2, 0.0 }
 0x47a   :  { %vm5967_vm9 = vcmp.gt.f32.partialorder %v7274_v6, 0.0  ;;  %v6016_v12 = vmul.f32 0.2, %v7274_v6  ;;  %v6064_v15 = vsel %vm5966_vm8, %v7272_v2, %v6015_v11 }
 0x47c   :  { %v6065_v8 = vsel %vm5967_vm9, %v7274_v6, %v6016_v12  ;;  %v4976_v10 = vpop.f32.mrb[88].mxu1 }
 0x47d   :  { %v7119_v44 = vpack.c.bf16 %v6065_v8, %v6064_v15  ;;  %v5896_v13 = vpop.f32.mrb[84].mxu0  ;;  %v4978_v14 = vpop.f32.mrb[89].mxu1  ;;  %v7279_v24 = vadd.f32 %v10855_v50, %v4976_v10 }
 0x47e   :  { %v7276_v16 = vadd.f32 %v7275_v7, %v5896_v13  ;;  %v5898_v22 = vpop.f32.mrb[85].mxu0  ;;  %v4979_v18 = vpop.f32.mrb[90].mxu1 }
 0x47f   :  { %7155 = vst [vmem:[%s11010_s3 + $0xa0] sm:$0xff] %v7119_v44   ;;  %v5899_v19 = vpop.f32.mrb[86].mxu0  ;;  %v4981_v21 = vpop.f32.mrb[91].mxu1  ;;  %v7281_v34 = vadd.f32 %v10855_v50, %v4979_v18 }
 0x480   :  { %v6017_v49 = vmul.f32 0.2, %v7276_v16  ;;  %v7278_v27 = vadd.f32 %v7277_v17, %v5899_v19  ;;  %v5901_v20 = vpop.f32.mrb[87].mxu0  ;;  %vm5968_vm10 = vcmp.gt.f32.partialorder %v7276_v16, 0.0 }
 0x482   :  { %vm5969_vm11 = vcmp.gt.f32.partialorder %v7278_v27, 0.0  ;;  %v6018_v23 = vmul.f32 0.2, %v7278_v27  ;;  %v6066_v26 = vsel %vm5968_vm10, %v7276_v16, %v6017_v49 }
 0x484   :  { %v6067_v52 = vsel %vm5969_vm11, %v7278_v27, %v6018_v23  ;;  %v4984_v29 = vpop.f32.mrb[92].mxu1 }
 0x485   :  { %v7124_v30 = vpack.c.bf16 %v6067_v52, %v6066_v26  ;;  %v5904_v32 = vpop.f32.mrb[88].mxu0  ;;  %v4986_v31 = vpop.f32.mrb[93].mxu1  ;;  %v7283_v60 = vadd.f32 %v10855_v50, %v4984_v29 }
 0x486   :  { %v7280_v25 = vadd.f32 %v7279_v24, %v5904_v32  ;;  %v5906_v37 = vpop.f32.mrb[89].mxu0  ;;  %v4987_v35 = vpop.f32.mrb[94].mxu1 }
 0x487   :  { %7156 = vst [vmem:[%s11010_s3 + $0xa8] sm:$0xff] %v7124_v30   ;;  %v5907_v38 = vpop.f32.mrb[90].mxu0  ;;  %v4989_v57 = vpop.f32.mrb[95].mxu1  ;;  %v7285_v55 = vadd.f32 %v10855_v50, %v4987_v35 }
 0x488   :  { %v6019_v40 = vmul.f32 0.2, %v7280_v25  ;;  %v7282_v43 = vadd.f32 %v7281_v34, %v5907_v38  ;;  %v5909_v28 = vpop.f32.mrb[91].mxu0  ;;  %vm5970_vm12 = vcmp.gt.f32.partialorder %v7280_v25, 0.0 }
 0x48a   :  { %vm5971_vm13 = vcmp.gt.f32.partialorder %v7282_v43, 0.0  ;;  %v6020_v46 = vmul.f32 0.2, %v7282_v43  ;;  %v6068_v39 = vsel %vm5970_vm12, %v7280_v25, %v6019_v40 }
 0x48c   :  { %v6069_v48 = vsel %vm5971_vm13, %v7282_v43, %v6020_v46  ;;  %v4992_v51 = vpop.f32.mrb[96].mxu1 }
 0x48d   :  { %v7129_v53 = vpack.c.bf16 %v6069_v48, %v6068_v39  ;;  %v5912_v54 = vpop.f32.mrb[92].mxu0  ;;  %v4994_v42 = vpop.f32.mrb[97].mxu1  ;;  %v7287_v36 = vadd.f32 %v10855_v50, %v4992_v51 }
 0x48e   :  { %v7284_v56 = vadd.f32 %v7283_v60, %v5912_v54  ;;  %v5914_v33 = vpop.f32.mrb[93].mxu0  ;;  %v4995_v1 = vpop.f32.mrb[98].mxu1 }
 0x48f   :  { %7157 = vst [vmem:[%s11010_s3 + $0xb0] sm:$0xff] %v7129_v53   ;;  %v5915_v58 = vpop.f32.mrb[94].mxu0  ;;  %v4996_v59 = vpop.f32.mrb[99].mxu1 }
 0x490   :  { %v6021_v61 = vmul.f32 0.2, %v7284_v56  ;;  %v7286_v0 = vadd.f32 %v7285_v55, %v5915_v58  ;;  %v5917_v4 = vpop.f32.mrb[95].mxu0  ;;  %vm5972_vm14 = vcmp.gt.f32.partialorder %v7284_v56, 0.0 }
 0x492   :  { %vm5973_vm15 = vcmp.gt.f32.partialorder %v7286_v0, 0.0  ;;  %v6022_v45 = vmul.f32 0.2, %v7286_v0  ;;  %v6070_v62 = vsel %vm5972_vm14, %v7284_v56, %v6021_v61 }
 0x494   :  { %v6071_v63 = vsel %vm5973_vm15, %v7286_v0, %v6022_v45 }
 0x495   :  { %v7134_v2 = vpack.c.bf16 %v6071_v63, %v6070_v62  ;;  %v5920_v3 = vpop.f32.mrb[96].mxu0 }
 0x496   :  { %v7288_v47 = vadd.f32 %v7287_v36, %v5920_v3  ;;  %v5922_v5 = vpop.f32.mrb[97].mxu0 }
 0x497   :  { %7158 = vst [vmem:[%s11010_s3 + $0xb8] sm:$0xff] %v7134_v2   ;;  %v5923_v9 = vpop.f32.mrb[98].mxu0 }
 0x498   :  { %vm5974_vm0 = vcmp.gt.f32.partialorder %v7288_v47, 0.0  ;;  %v6023_v11 = vmul.f32 0.2, %v7288_v47  ;;  %v5924_v6 = vpop.f32.mrb[99].mxu0 }
 0x49a   :  { %v6072_v41 = vsel %vm5974_vm0, %v7288_v47, %v6023_v11 }
 0x49b   :  { %v7015_v12 = vpack.c.bf16 %v6072_v41, %v6072_v41 }
 0x49d   :  { %6318 = vst [vmem:[%s11010_s3 + $0xc0] sm:$0xf] %v7015_v12 }

// kernel: generator_forward.5
= control target key start
LH: loop header
LB: loop body
LE: loop exit
PB: predicated region body
PF: predicated region fallthrough
CT: control target
= control target key end

     0   :  { %s5877_s12 = smov 0   ;;  %s5879_s13 = smov 0   ;;  %s7065_s0 = inlined_call_operand.vmem [shape: bf16[2048,1152], index: 0, kind: input, shape index: {}]   ;;  %s7066_s1 = inlined_call_operand.vmem [shape: bf16[1152,128], index: 1, kind: input, shape index: {}]   ;;  %s7067_s2 = inlined_call_operand.vmem [shape: f32[1,128], index: 2, kind: input, shape index: {}]   ;;  %s7068_s3 = inlined_call_operand.vmem [shape: f32[2048,128], index: 3, kind: output, shape index: {}]  }
   0x1   :  { %s5881_s14 = smov 0  }
   0x2 LB: > { %s25_s15 = sadd.s32 1, %s5850_s13  ;;  %p4285_p0 = scmp.ge.s32.totalorder %s5854_s14, 1  ;;  %s5854_s14 = sphi %s5881_s14, %s13_s14   ;;  %s5850_s13 = sphi %s5879_s13, %s7098_s13   ;;  %s5846_s12 = sphi %s5877_s12, %s7097_s12  }
   0x3   : > { %p27_p1 = scmp.ge.s32.totalorder %s25_s15, 4  ;;  %p170_p2 = scmp.lt.s32.totalorder %s5854_s14, 5 }
   0x5   : > { %s7100_s15 = smov (%p27_p1, %s25_s15), 0  ;;  %p171_p3 = pnand %p4285_p0, %p170_p2 }
   0x7   : > { %174 = sbr.rel (%p171_p3) target bundleno = 878 (0x36e), region = 32 }
   0xe   : > { %v5215_v0 = vld [vmem:[%s7066_s1] sm:$0xff]   ;;  %v5856_v1 = vmov 0   ;;  %v5217_v3 = vld [vmem:[%s7066_s1 + $0x8] sm:$0xff]   ;;  %v5219_v5 = vld [vmem:[%s7066_s1 + $0x10] sm:$0xff]   ;;  %s4286_s9 = sshll.u32 %s5846_s12, 6 }
   0xf   : > { %2604 = vmatprep.subr.bf16.mxu1 %v5856_v1  ;;  %2893 = vmatprep.subr.bf16.mxu0 %v5856_v1  ;;  %v5905_v2 = vld [vmem:[%s7066_s1 + $0x80] sm:$0xff]   ;;  %v5915_v4 = vld [vmem:[%s7066_s1 + $0x88] sm:$0xff]   ;;  %v5926_v6 = vld [vmem:[%s7066_s1 + $0x90] sm:$0xff]   ;;  %p206_p4 = scmp.lt.s32.totalorder %s4286_s9, 255 }
  0x10   : > { %2605 = vmatpush1.bf16.msra.mxu1 %v5215_v0  ;;  %2894 = vmatpush1.bf16.msra.mxu0 %v5905_v2  ;;  %v5221_v7 = vld [vmem:[%s7066_s1 + $0x18] sm:$0xff]   ;;  %v5223_v9 = vld [vmem:[%s7066_s1 + $0x20] sm:$0xff]   ;;  %v5225_v11 = vld [vmem:[%s7066_s1 + $0x28] sm:$0xff]  }
  0x11   : > { %2606 = vmatprep.subr.bf16.mxu1 %v5856_v1  ;;  %2895 = vmatprep.subr.bf16.mxu0 %v5856_v1  ;;  %v5937_v8 = vld [vmem:[%s7066_s1 + $0x98] sm:$0xff]   ;;  %v5948_v10 = vld [vmem:[%s7066_s1 + $0xa0] sm:$0xff]   ;;  %v5960_v12 = vld [vmem:[%s7066_s1 + $0xa8] sm:$0xff]   ;;  %s7102_s9 = smov (!%p206_p4, %s4286_s9), 255 }
  0x12   : > { %v5227_v13 = vld [vmem:[%s7066_s1 + $0x30] sm:$0xff]   ;;  %v5229_v15 = vld [vmem:[%s7066_s1 + $0x38] sm:$0xff]   ;;  %s5189_s23 = smul.u32 36, %s7102_s9  ;;  %v5231_v17 = vld [vmem:[%s7066_s1 + $0x40] sm:$0xff]  }
  0x13   : > { %v5973_v14 = vld [vmem:[%s7066_s1 + $0xb0] sm:$0xff]   ;;  %v5985_v16 = vld [vmem:[%s7066_s1 + $0xb8] sm:$0xff]   ;;  %v6001_v18 = vld [vmem:[%s7066_s1 + $0xc0] sm:$0xff]  }
  0x14   : > { %2607 = vmatpush1.bf16.msra.mxu1 %v5217_v3  ;;  %2896 = vmatpush1.bf16.msra.mxu0 %v5915_v4  ;;  %s5994_s30 = scalar_lea.vmem %s7065_s0, %s5189_s23  ;;  %v5233_v20 = vld [vmem:[%s7066_s1 + $0x48] sm:$0xff]   ;;  %v5235_v23 = vld [vmem:[%s7066_s1 + $0x50] sm:$0xff]   ;;  %v5237_v25 = vld [vmem:[%s7066_s1 + $0x58] sm:$0xff]  }
  0x15   : > { %2608 = vmatprep.subr.bf16.mxu1 %v5856_v1  ;;  %2897 = vmatprep.subr.bf16.mxu0 %v5856_v1  ;;  %v5249_v19 = vld [vmem:[%s5994_s30 + $0x4] ss:$36 sps:$4 sm:$0xff]   ;;  %v5252_v21 = vld [vmem:[%s5994_s30 + $0xc] ss:$36 sps:$4 sm:$0xff]   ;;  %v6036_v26 = vld [vmem:[%s7066_s1 + $0xd8] sm:$0xff]  }
  0x16   : > { %v6014_v22 = vld [vmem:[%s7066_s1 + $0xc8] sm:$0xff]   ;;  %2636 = vmatprep.mubr.bf16.mxu1 %v5249_v19  ;;  %2925 = vmatprep.mubr.bf16.mxu0 %v5252_v21  ;;  %v6025_v24 = vld [vmem:[%s7066_s1 + $0xd0] sm:$0xff]   ;;  %v5239_v27 = vld [vmem:[%s7066_s1 + $0x60] sm:$0xff]  }
  0x17   : > { %v6047_v28 = vld [vmem:[%s7066_s1 + $0xe0] sm:$0xff]   ;;  %v5241_v29 = vld [vmem:[%s7066_s1 + $0x68] sm:$0xff]   ;;  %v5243_v31 = vld [vmem:[%s7066_s1 + $0x70] sm:$0xff]  }
  0x18   : > { %2609 = vmatpush1.bf16.msra.mxu1 %v5219_v5  ;;  %2898 = vmatpush1.bf16.msra.mxu0 %v5926_v6  ;;  %v6058_v30 = vld [vmem:[%s7066_s1 + $0xe8] sm:$0xff]   ;;  %v6069_v32 = vld [vmem:[%s7066_s1 + $0xf0] sm:$0xff]   ;;  %v5245_v33 = vld [vmem:[%s7066_s1 + $0x78] sm:$0xff]  }
  0x19   : > { %2610 = vmatprep.subr.bf16.mxu1 %v5856_v1  ;;  %2899 = vmatprep.subr.bf16.mxu0 %v5856_v1  ;;  %v6080_v34 = vld [vmem:[%s7066_s1 + $0xf8] sm:$0xff]   ;;  %v5247_v35 = vld [vmem:[%s5994_s30] ss:$36 sps:$4 sm:$0xff]   ;;  %v5250_v36 = vld [vmem:[%s5994_s30 + $0x8] ss:$36 sps:$4 sm:$0xff]  }
  0x1a   : > { %v5253_v37 = vld [vmem:[%s7066_s1 + $0x100] sm:$0xff]   ;;  %v5255_v38 = vld [vmem:[%s5994_s30 + $0x4c] ss:$36 sps:$4 sm:$0xff]   ;;  %v5257_v39 = vld [vmem:[%s5994_s30 + $0x54] ss:$36 sps:$4 sm:$0xff]  }
  0x1b   : > { %v5254_v40 = vld [vmem:[%s7066_s1 + $0x108] sm:$0xff]   ;;  %v5260_v42 = vld [vmem:[%s5994_s30 + $0x50] ss:$36 sps:$4 sm:$0xff]   ;;  %v5265_v45 = vld [vmem:[%s5994_s30 + $0x9c] ss:$36 sps:$4 sm:$0xff]  }
  0x1c   : > { %2611 = vmatpush1.bf16.msra.mxu1 %v5221_v7  ;;  %2900 = vmatpush1.bf16.msra.mxu0 %v5937_v8  ;;  %v5259_v41 = vld [vmem:[%s5994_s30 + $0x48] ss:$36 sps:$4 sm:$0xff]   ;;  %v5263_v43 = vld [vmem:[%s5994_s30 + $0x94] ss:$36 sps:$4 sm:$0xff]   ;;  %v5269_v49 = vld [vmem:[%s7066_s1 + $0x120] sm:$0xff]  }
  0x1d   : > { %2612 = vmatprep.subr.bf16.mxu1 %v5856_v1  ;;  %2901 = vmatprep.subr.bf16.mxu0 %v5856_v1  ;;  %v5261_v44 = vld [vmem:[%s7066_s1 + $0x110] sm:$0xff]   ;;  %v5262_v46 = vld [vmem:[%s7066_s1 + $0x118] sm:$0xff]   ;;  %v5273_v51 = vld [vmem:[%s5994_s30 + $0xe4] ss:$36 sps:$4 sm:$0xff]  }
  0x1e   : > { %v5267_v47 = vld [vmem:[%s5994_s30 + $0x90] ss:$36 sps:$4 sm:$0xff]   ;;  %v5268_v48 = vld [vmem:[%s5994_s30 + $0x98] ss:$36 sps:$4 sm:$0xff]   ;;  %v5270_v52 = vld [vmem:[%s7066_s1 + $0x128] sm:$0xff]  }
  0x1f   : > { %v5271_v50 = vld [vmem:[%s5994_s30 + $0xdc] ss:$36 sps:$4 sm:$0xff]   ;;  %v5279_v55 = vld [vmem:[%s5994_s30 + $0x124] ss:$36 sps:$4 sm:$0xff]   ;;  %v5277_v56 = vld [vmem:[%s7066_s1 + $0x130] sm:$0xff]  }
  0x20   : > { %2613 = vmatpush1.bf16.msra.mxu1 %v5223_v9  ;;  %2902 = vmatpush1.bf16.msra.mxu0 %v5948_v10  ;;  %v5275_v53 = vld [vmem:[%s5994_s30 + $0xd8] ss:$36 sps:$4 sm:$0xff]   ;;  %v5276_v54 = vld [vmem:[%s5994_s30 + $0xe0] ss:$36 sps:$4 sm:$0xff]   ;;  %v5281_v57 = vld [vmem:[%s5994_s30 + $0x12c] ss:$36 sps:$4 sm:$0xff]  }
  0x21   : > { %2614 = vmatprep.subr.bf16.mxu1 %v5856_v1  ;;  %2903 = vmatprep.subr.bf16.mxu0 %v5856_v1  ;;  %v5278_v58 = vld [vmem:[%s7066_s1 + $0x138] sm:$0xff]   ;;  %v5283_v59 = vld [vmem:[%s5994_s30 + $0x120] ss:$36 sps:$4 sm:$0xff]   ;;  %v5284_v60 = vld [vmem:[%s5994_s30 + $0x128] ss:$36 sps:$4 sm:$0xff]  }
  0x22   : > { %v5285_v61 = vld [vmem:[%s7066_s1 + $0x140] sm:$0xff]   ;;  %v5287_v62 = vld [vmem:[%s5994_s30 + $0x16c] ss:$36 sps:$4 sm:$0xff]   ;;  %v5289_v63 = vld [vmem:[%s5994_s30 + $0x174] ss:$36 sps:$4 sm:$0xff]  }
  0x23   : > { %v5286_v0 = vld [vmem:[%s7066_s1 + $0x148] sm:$0xff]   ;;  %v5292_v3 = vld [vmem:[%s5994_s30 + $0x170] ss:$36 sps:$4 sm:$0xff]   ;;  %v5294_v7 = vld [vmem:[%s7066_s1 + $0x158] sm:$0xff]  }
  0x24   : > { %2615 = vmatpush1.bf16.msra.mxu1 %v5225_v11  ;;  %2904 = vmatpush1.bf16.msra.mxu0 %v5960_v12  ;;  %v5293_v5 = vld [vmem:[%s7066_s1 + $0x150] sm:$0xff]   ;;  %v5300_v9 = vld [vmem:[%s5994_s30 + $0x1b8] ss:$36 sps:$4 sm:$0xff]  }
  0x25   : > { %2616 = vmatprep.subr.bf16.mxu1 %v5856_v1  ;;  %2905 = vmatprep.subr.bf16.mxu0 %v5856_v1  ;;  %v5303_v11 = vld [vmem:[%s5994_s30 + $0x1fc] ss:$36 sps:$4 sm:$0xff]   ;;  %v5313_v21 = vld [vmem:[%s5994_s30 + $0x10] ss:$36 sps:$4 sm:$0xff]  }
  0x26   : > { %v5310_v19 = vld [vmem:[%s7066_s1 + $0x178] sm:$0xff]  }
  0x28   : > { %2617 = vmatpush1.bf16.msra.mxu1 %v5227_v13  ;;  %2906 = vmatpush1.bf16.msra.mxu0 %v5973_v14  ;;  %v5302_v13 = vld [vmem:[%s7066_s1 + $0x168] sm:$0xff]  }
  0x29   : > { %2618 = vmatprep.subr.bf16.mxu1 %v5856_v1  ;;  %2907 = vmatprep.subr.bf16.mxu0 %v5856_v1 }
  0x2c   : > { %2619 = vmatpush1.bf16.msra.mxu1 %v5229_v15  ;;  %2908 = vmatpush1.bf16.msra.mxu0 %v5985_v16  ;;  %v5308_v15 = vld [vmem:[%s5994_s30 + $0x200] ss:$36 sps:$4 sm:$0xff]  }
  0x2d   : > { %2620 = vmatprep.subr.bf16.mxu1 %v5856_v1  ;;  %2909 = vmatprep.subr.bf16.mxu0 %v5856_v1 }
  0x30   : > { %2621 = vmatpush1.bf16.msra.mxu1 %v5231_v17  ;;  %2910 = vmatpush1.bf16.msra.mxu0 %v6001_v18  ;;  %v5309_v17 = vld [vmem:[%s7066_s1 + $0x170] sm:$0xff]  }
  0x31   : > { %2622 = vmatprep.subr.bf16.mxu1 %v5856_v1  ;;  %2911 = vmatprep.subr.bf16.mxu0 %v5856_v1 }
  0x34   : > { %2623 = vmatpush1.bf16.msra.mxu1 %v5233_v20  ;;  %2912 = vmatpush1.bf16.msra.mxu0 %v6014_v22  ;;  %v5316_v20 = vld [vmem:[%s5994_s30 + $0x240] ss:$36 sps:$4 sm:$0xff]  }
  0x35   : > { %2624 = vmatprep.subr.bf16.mxu1 %v5856_v1  ;;  %2913 = vmatprep.subr.bf16.mxu0 %v5856_v1 }
  0x38   : > { %2625 = vmatpush1.bf16.msra.mxu1 %v5235_v23  ;;  %2914 = vmatpush1.bf16.msra.mxu0 %v6025_v24  ;;  %v5317_v23 = vld [vmem:[%s7066_s1 + $0x180] sm:$0xff]  }
  0x39   : > { %2626 = vmatprep.subr.bf16.mxu1 %v5856_v1  ;;  %2915 = vmatprep.subr.bf16.mxu0 %v5856_v1 }
  0x3c   : > { %2627 = vmatpush1.bf16.msra.mxu1 %v5237_v25  ;;  %2916 = vmatpush1.bf16.msra.mxu0 %v6036_v26  ;;  %v5322_v25 = vld [vmem:[%s5994_s30 + $0x288] ss:$36 sps:$4 sm:$0xff]  }
  0x3d   : > { %2628 = vmatprep.subr.bf16.mxu1 %v5856_v1  ;;  %2917 = vmatprep.subr.bf16.mxu0 %v5856_v1 }
  0x40   : > { %2629 = vmatpush1.bf16.msra.mxu1 %v5239_v27  ;;  %2918 = vmatpush1.bf16.msra.mxu0 %v6047_v28  ;;  %v5323_v27 = vld [vmem:[%s5994_s30 + $0x58] ss:$36 sps:$4 sm:$0xff]  }
  0x41   : > { %2630 = vmatprep.subr.bf16.mxu1 %v5856_v1  ;;  %2919 = vmatprep.subr.bf16.mxu0 %v5856_v1 }
  0x44   : > { %2631 = vmatpush1.bf16.msra.mxu1 %v5241_v29  ;;  %2920 = vmatpush1.bf16.msra.mxu0 %v6058_v30  ;;  %v5326_v29 = vld [vmem:[%s5994_s30 + $0xa4] ss:$36 sps:$4 sm:$0xff]  }
  0x45   : > { %2632 = vmatprep.subr.bf16.mxu1 %v5856_v1  ;;  %2921 = vmatprep.subr.bf16.mxu0 %v5856_v1 }
  0x48   : > { %2633 = vmatpush1.bf16.msra.mxu1 %v5243_v31  ;;  %2922 = vmatpush1.bf16.msra.mxu0 %v6069_v32  ;;  %v5328_v31 = vld [vmem:[%s5994_s30 + $0x2d0] ss:$36 sps:$4 sm:$0xff]  }
  0x49   : > { %2634 = vmatprep.subr.bf16.mxu1 %v5856_v1  ;;  %2923 = vmatprep.subr.bf16.mxu0 %v5856_v1 }
  0x4c   : > { %2635 = vmatpush1.bf16.msra.mxu1 %v5245_v33  ;;  %2924 = vmatpush1.bf16.msra.mxu0 %v6080_v34  ;;  %v5329_v33 = vld [vmem:[%s5994_s30 + $0xa0] ss:$36 sps:$4 sm:$0xff]  }
  0x4d   : > { %4773 = vmatprep.subr.bf16.mxu1 %v5856_v1  ;;  %3182 = vmatprep.subr.bf16.mxu0 %v5856_v1 }
  0x4f   : > { %2637 = vmatmul.mubr.bf16.vlgmr.msra.gmra.mrb[0].mxu1 %v5247_v35  ;;  %2926 = vmatmul.mubr.bf16.vlgmr.msra.gmra.mrb[0].mxu0 %v5250_v36  ;;  %v5333_v35 = vld [vmem:[%s5994_s30 + $0xec] ss:$36 sps:$4 sm:$0xff]   ;;  %v5369_v36 = vld [vmem:[%s7066_s1 + $0x1a0] sm:$0xff]  }
  0x50   : > { %4789 = vmatpush1.bf16.msra.mxu1 %v5905_v2  ;;  %3183 = vmatpush1.bf16.msra.mxu0 %v5253_v37  ;;  %v5291_v2 = vld [vmem:[%s5994_s30 + $0x168] ss:$36 sps:$4 sm:$0xff]  }
  0x51   : > { %2644 = vmatprep.mubr.bf16.mxu1 %v5255_v38  ;;  %3184 = vmatprep.subr.bf16.mxu0 %v5856_v1  ;;  %v5382_v37 = vld [vmem:[%s7066_s1 + $0x1a8] sm:$0xff]   ;;  %v5335_v38 = vld [vmem:[%s5994_s30 + $0x318] ss:$36 sps:$4 sm:$0xff]  }
  0x52   : > { %2933 = vmatprep.mubr.bf16.mxu0 %v5257_v39  ;;  %4774 = vmatprep.subr.bf16.mxu1 %v5856_v1  ;;  %v5336_v39 = vld [vmem:[%s5994_s30 + $0xe8] ss:$36 sps:$4 sm:$0xff]  }
  0x54   : > { %4790 = vmatpush1.bf16.msra.mxu1 %v5915_v4  ;;  %3185 = vmatpush1.bf16.msra.mxu0 %v5254_v40  ;;  %v5295_v4 = vld [vmem:[%s5994_s30 + $0x1b4] ss:$36 sps:$4 sm:$0xff]   ;;  %v5337_v40 = vld [vmem:[%s5994_s30 + $0x364] ss:$36 sps:$4 sm:$0xff]  }
  0x55   : > { %4775 = vmatprep.subr.bf16.mxu1 %v5856_v1  ;;  %3186 = vmatprep.subr.bf16.mxu0 %v5856_v1 }
  0x57   : > { %2645 = vmatmul.mubr.bf16.gmra.mrb[4].mxu1 %v5259_v41  ;;  %2934 = vmatmul.mubr.bf16.gmra.mrb[4].mxu0 %v5260_v42  ;;  %v5339_v41 = vld [vmem:[%s5994_s30 + $0x134] ss:$36 sps:$4 sm:$0xff]  }
  0x58   : > { %2652 = vmatprep.mubr.bf16.mxu1 %v5263_v43  ;;  %3187 = vmatpush1.bf16.msra.mxu0 %v5261_v44  ;;  %v5395_v42 = vld [vmem:[%s7066_s1 + $0x1b0] sm:$0xff]   ;;  %v5408_v43 = vld [vmem:[%s7066_s1 + $0x1b8] sm:$0xff]   ;;  %v5341_v44 = vld [vmem:[%s5994_s30 + $0x360] ss:$36 sps:$4 sm:$0xff]  }
  0x59   : > { %2941 = vmatprep.mubr.bf16.mxu0 %v5265_v45  ;;  %3188 = vmatprep.subr.bf16.mxu0 %v5856_v1  ;;  %v5342_v45 = vld [vmem:[%s5994_s30 + $0x130] ss:$36 sps:$4 sm:$0xff]  }
  0x5a   : > { %4791 = vmatpush1.bf16.msra.mxu1 %v5926_v6  ;;  %v5297_v6 = vld [vmem:[%s5994_s30 + $0x1bc] ss:$36 sps:$4 sm:$0xff]  }
  0x5b   : > { %4776 = vmatprep.subr.bf16.mxu1 %v5856_v1 }
  0x5c   : > { %3189 = vmatpush1.bf16.msra.mxu0 %v5262_v46  ;;  %v5344_v46 = vld [vmem:[%s5994_s30 + $0x3ac] ss:$36 sps:$4 sm:$0xff]  }
  0x5d   : > { %3190 = vmatprep.subr.bf16.mxu0 %v5856_v1 }
  0x5e   : > { %4792 = vmatpush1.bf16.msra.mxu1 %v5937_v8  ;;  %v5299_v8 = vld [vmem:[%s5994_s30 + $0x1b0] ss:$36 sps:$4 sm:$0xff]  }
  0x5f   : > { %2653 = vmatmul.mubr.bf16.gmra.mrb[8].mxu1 %v5267_v47  ;;  %4777 = vmatprep.subr.bf16.mxu1 %v5856_v1  ;;  %v5346_v47 = vld [vmem:[%s5994_s30 + $0x17c] ss:$36 sps:$4 sm:$0xff]  }
  0x60   : > { %2942 = vmatmul.mubr.bf16.gmra.mrb[8].mxu0 %v5268_v48  ;;  %2660 = vmatprep.mubr.bf16.mxu1 %v5271_v50  ;;  %v5421_v48 = vld [vmem:[%s7066_s1 + $0x1c0] sm:$0xff]   ;;  %v5348_v50 = vld [vmem:[%s5994_s30 + $0x3a8] ss:$36 sps:$4 sm:$0xff]  }
  0x61   : > { %3191 = vmatpush1.bf16.msra.mxu0 %v5269_v49  ;;  %2949 = vmatprep.mubr.bf16.mxu0 %v5273_v51  ;;  %v5434_v49 = vld [vmem:[%s7066_s1 + $0x1c8] sm:$0xff]   ;;  %v5349_v51 = vld [vmem:[%s5994_s30 + $0x178] ss:$36 sps:$4 sm:$0xff]  }
  0x62   : > { %3192 = vmatprep.subr.bf16.mxu0 %v5856_v1  ;;  %4793 = vmatpush1.bf16.msra.mxu1 %v5948_v10  ;;  %v5301_v10 = vld [vmem:[%s7066_s1 + $0x160] sm:$0xff]  }
  0x63   : > { %4778 = vmatprep.subr.bf16.mxu1 %v5856_v1 }
  0x65   : > { %3193 = vmatpush1.bf16.msra.mxu0 %v5270_v52  ;;  %v5350_v52 = vld [vmem:[%s5994_s30 + $0x3f4] ss:$36 sps:$4 sm:$0xff]  }
  0x66   : > { %3194 = vmatprep.subr.bf16.mxu0 %v5856_v1  ;;  %4794 = vmatpush1.bf16.msra.mxu1 %v5960_v12  ;;  %v5305_v12 = vld [vmem:[%s5994_s30 + $0x204] ss:$36 sps:$4 sm:$0xff]  }
  0x67   : > { %2661 = vmatmul.mubr.bf16.gmra.mrb[12].mxu1 %v5275_v53  ;;  %4779 = vmatprep.subr.bf16.mxu1 %v5856_v1  ;;  %v5352_v53 = vld [vmem:[%s5994_s30 + $0x1c4] ss:$36 sps:$4 sm:$0xff]  }
  0x68   : > { %2950 = vmatmul.mubr.bf16.gmra.mrb[12].mxu0 %v5276_v54  ;;  %2668 = vmatprep.mubr.bf16.mxu1 %v5279_v55  ;;  %v5447_v54 = vld [vmem:[%s7066_s1 + $0x1d0] sm:$0xff]  }
  0x69   : > { %3195 = vmatpush1.bf16.msra.mxu0 %v5277_v56  ;;  %2957 = vmatprep.mubr.bf16.mxu0 %v5281_v57  ;;  %v5354_v55 = vld [vmem:[%s5994_s30 + $0x3f0] ss:$36 sps:$4 sm:$0xff]   ;;  %v5355_v56 = vld [vmem:[%s5994_s30 + $0x1c0] ss:$36 sps:$4 sm:$0xff]  }
  0x6a   : > { %3196 = vmatprep.subr.bf16.mxu0 %v5856_v1  ;;  %4795 = vmatpush1.bf16.msra.mxu1 %v5973_v14  ;;  %v5307_v14 = vld [vmem:[%s5994_s30 + $0x1f8] ss:$36 sps:$4 sm:$0xff]  }
  0x6b   : > { %4780 = vmatprep.subr.bf16.mxu1 %v5856_v1  ;;  %v5357_v57 = vld [vmem:[%s5994_s30 + $0x43c] ss:$36 sps:$4 sm:$0xff]  }
  0x6d   : > { %3197 = vmatpush1.bf16.msra.mxu0 %v5278_v58  ;;  %v5359_v58 = vld [vmem:[%s5994_s30 + $0x20c] ss:$36 sps:$4 sm:$0xff]  }
  0x6e   : > { %3198 = vmatprep.subr.bf16.mxu0 %v5856_v1  ;;  %4796 = vmatpush1.bf16.msra.mxu1 %v5985_v16  ;;  %v5311_v16 = vld [vmem:[%s5994_s30 + $0x244] ss:$36 sps:$4 sm:$0xff]  }
  0x6f   : > { %2669 = vmatmul.mubr.bf16.gmra.mrb[16].mxu1 %v5283_v59  ;;  %4781 = vmatprep.subr.bf16.mxu1 %v5856_v1  ;;  %v5460_v59 = vld [vmem:[%s7066_s1 + $0x1d8] sm:$0xff]  }
  0x70   : > { %2958 = vmatmul.mubr.bf16.gmra.mrb[16].mxu0 %v5284_v60  ;;  %2676 = vmatprep.mubr.bf16.mxu1 %v5287_v62  ;;  %v5361_v60 = vld [vmem:[%s5994_s30 + $0x438] ss:$36 sps:$4 sm:$0xff]   ;;  %v5363_v62 = vld [vmem:[%s5994_s30 + $0x484] ss:$36 sps:$4 sm:$0xff]  }
  0x71   : > { %3199 = vmatpush1.bf16.msra.mxu0 %v5285_v61  ;;  %2965 = vmatprep.mubr.bf16.mxu0 %v5289_v63  ;;  %v5362_v61 = vld [vmem:[%s5994_s30 + $0x208] ss:$36 sps:$4 sm:$0xff]   ;;  %v5365_v63 = vld [vmem:[%s5994_s30 + $0x254] ss:$36 sps:$4 sm:$0xff]  }
  0x72   : > { %3200 = vmatprep.subr.bf16.mxu0 %v5856_v1  ;;  %4797 = vmatpush1.bf16.msra.mxu1 %v6001_v18  ;;  %v5315_v18 = vld [vmem:[%s5994_s30 + $0x14] ss:$36 sps:$4 sm:$0xff]  }
  0x73   : > { %4782 = vmatprep.subr.bf16.mxu1 %v5856_v1 }
  0x75   : > { %3201 = vmatpush1.bf16.msra.mxu0 %v5286_v0  ;;  %v5367_v0 = vld [vmem:[%s5994_s30 + $0x480] ss:$36 sps:$4 sm:$0xff]  }
  0x76   : > { %3202 = vmatprep.subr.bf16.mxu0 %v5856_v1  ;;  %4798 = vmatpush1.bf16.msra.mxu1 %v6014_v22  ;;  %v5318_v22 = vld [vmem:[%s5994_s30 + $0x28c] ss:$36 sps:$4 sm:$0xff]  }
  0x77   : > { %2677 = vmatmul.mubr.bf16.gmra.mrb[20].mxu1 %v5291_v2  ;;  %4783 = vmatprep.subr.bf16.mxu1 %v5856_v1  ;;  %v5368_v2 = vld [vmem:[%s5994_s30 + $0x250] ss:$36 sps:$4 sm:$0xff]  }
  0x78   : > { %2966 = vmatmul.mubr.bf16.gmra.mrb[20].mxu0 %v5292_v3  ;;  %2684 = vmatprep.mubr.bf16.mxu1 %v5295_v4  ;;  %v5370_v3 = vld [vmem:[%s5994_s30 + $0x4cc] ss:$36 sps:$4 sm:$0xff]   ;;  %v5372_v4 = vld [vmem:[%s5994_s30 + $0x29c] ss:$36 sps:$4 sm:$0xff]  }
  0x79   : > { %3203 = vmatpush1.bf16.msra.mxu0 %v5293_v5  ;;  %2973 = vmatprep.mubr.bf16.mxu0 %v5297_v6  ;;  %v5473_v5 = vld [vmem:[%s7066_s1 + $0x1e0] sm:$0xff]  }
  0x7a   : > { %3204 = vmatprep.subr.bf16.mxu0 %v5856_v1  ;;  %4799 = vmatpush1.bf16.msra.mxu1 %v6025_v24  ;;  %v5320_v24 = vld [vmem:[%s5994_s30 + $0x5c] ss:$36 sps:$4 sm:$0xff]  }
  0x7b   : > { %4784 = vmatprep.subr.bf16.mxu1 %v5856_v1  ;;  %v6303_v6 = vld [vmem:[%s7066_s1 + $0x200] sm:$0xff]  }
  0x7d   : > { %3205 = vmatpush1.bf16.msra.mxu0 %v5294_v7  ;;  %v5374_v7 = vld [vmem:[%s5994_s30 + $0x4c8] ss:$36 sps:$4 sm:$0xff]  }
  0x7e   : > { %3206 = vmatprep.subr.bf16.mxu0 %v5856_v1  ;;  %4800 = vmatpush1.bf16.msra.mxu1 %v6036_v26  ;;  %v5330_v26 = vld [vmem:[%s7066_s1 + $0x188] sm:$0xff]  }
  0x7f   : > { %2685 = vmatmul.mubr.bf16.gmra.mrb[24].mxu1 %v5299_v8  ;;  %4785 = vmatprep.subr.bf16.mxu1 %v5856_v1  ;;  %v5375_v8 = vld [vmem:[%s5994_s30 + $0x298] ss:$36 sps:$4 sm:$0xff]  }
  0x80   : > { %2974 = vmatmul.mubr.bf16.gmra.mrb[24].mxu0 %v5300_v9  ;;  %2692 = vmatprep.mubr.bf16.mxu1 %v5303_v11  ;;  %v5376_v9 = vld [vmem:[%s5994_s30 + $0x514] ss:$36 sps:$4 sm:$0xff]  }
  0x81   : > { %3207 = vmatpush1.bf16.msra.mxu0 %v5301_v10  ;;  %2981 = vmatprep.mubr.bf16.mxu0 %v5305_v12  ;;  %v5378_v10 = vld [vmem:[%s5994_s30 + $0x2e4] ss:$36 sps:$4 sm:$0xff]   ;;  %v5380_v11 = vld [vmem:[%s5994_s30 + $0x510] ss:$36 sps:$4 sm:$0xff]  }
  0x82   : > { %3208 = vmatprep.subr.bf16.mxu0 %v5856_v1  ;;  %4801 = vmatpush1.bf16.msra.mxu1 %v6047_v28  ;;  %v5324_v28 = vld [vmem:[%s5994_s30 + $0x2d4] ss:$36 sps:$4 sm:$0xff]   ;;  %v5381_v12 = vld [vmem:[%s5994_s30 + $0x2e0] ss:$36 sps:$4 sm:$0xff]  }
  0x83   : > { %4786 = vmatprep.subr.bf16.mxu1 %v5856_v1 }
  0x85   : > { %3209 = vmatpush1.bf16.msra.mxu0 %v5302_v13  ;;  %v5383_v13 = vld [vmem:[%s5994_s30 + $0x55c] ss:$36 sps:$4 sm:$0xff]  }
  0x86   : > { %3210 = vmatprep.subr.bf16.mxu0 %v5856_v1  ;;  %4802 = vmatpush1.bf16.msra.mxu1 %v6058_v30  ;;  %v5343_v30 = vld [vmem:[%s7066_s1 + $0x190] sm:$0xff]  }
  0x87   : > { %2693 = vmatmul.mubr.bf16.gmra.mrb[28].mxu1 %v5307_v14  ;;  %4787 = vmatprep.subr.bf16.mxu1 %v5856_v1  ;;  %v5385_v14 = vld [vmem:[%s5994_s30 + $0x32c] ss:$36 sps:$4 sm:$0xff]  }
  0x88   : > { %2982 = vmatmul.mubr.bf16.gmra.mrb[28].mxu0 %v5308_v15  ;;  %2700 = vmatprep.mubr.bf16.mxu1 %v5311_v16  ;;  %v5487_v15 = vld [vmem:[%s7066_s1 + $0x1e8] sm:$0xff]   ;;  %v5387_v16 = vld [vmem:[%s5994_s30 + $0x558] ss:$36 sps:$4 sm:$0xff]  }
  0x89   : > { %3211 = vmatpush1.bf16.msra.mxu0 %v5309_v17  ;;  %3214 = vmatprep.mubr.bf16.mxu0 %v5315_v18  ;;  %v5388_v17 = vld [vmem:[%s5994_s30 + $0x328] ss:$36 sps:$4 sm:$0xff]  }
  0x8a   : > { %3212 = vmatprep.subr.bf16.mxu0 %v5856_v1  ;;  %4803 = vmatpush1.bf16.msra.mxu1 %v6069_v32  ;;  %v5356_v32 = vld [vmem:[%s7066_s1 + $0x198] sm:$0xff]   ;;  %v5389_v18 = vld [vmem:[%s5994_s30 + $0x5a4] ss:$36 sps:$4 sm:$0xff]  }
  0x8b   : > { %4788 = vmatprep.subr.bf16.mxu1 %v5856_v1 }
  0x8d   : > { %3213 = vmatpush1.bf16.msra.mxu0 %v5310_v19  ;;  %v5391_v19 = vld [vmem:[%s5994_s30 + $0x374] ss:$36 sps:$4 sm:$0xff]  }
  0x8e   : > { %3471 = vmatprep.subr.bf16.mxu0 %v5856_v1  ;;  %4804 = vmatpush1.bf16.msra.mxu1 %v6080_v34  ;;  %v5331_v34 = vld [vmem:[%s5994_s30 + $0x31c] ss:$36 sps:$4 sm:$0xff]  }
  0x8f   : > { %2701 = vmatmul.mubr.bf16.gmra.mrb[32].mxu1 %v5316_v20  ;;  %4693 = vmatprep.subr.bf16.mxu1 %v6303_v6  ;;  %v5393_v20 = vld [vmem:[%s5994_s30 + $0x5a0] ss:$36 sps:$4 sm:$0xff]  }
  0x90   : > { %3215 = vmatmul.mubr.bf16.vlgmr.msra.gmra.mrb[0].mxu0 %v5313_v21  ;;  %2708 = vmatprep.mubr.bf16.mxu1 %v5318_v22  ;;  %v5394_v21 = vld [vmem:[%s5994_s30 + $0x370] ss:$36 sps:$4 sm:$0xff]  }
  0x91   : > { %3472 = vmatpush1.bf16.msra.mxu0 %v5317_v23  ;;  %3222 = vmatprep.mubr.bf16.mxu0 %v5320_v24  ;;  %v5396_v22 = vld [vmem:[%s5994_s30 + $0x5ec] ss:$36 sps:$4 sm:$0xff]   ;;  %v5398_v23 = vld [vmem:[%s5994_s30 + $0x3bc] ss:$36 sps:$4 sm:$0xff]  }
  0x92   : > { %3473 = vmatprep.subr.bf16.mxu0 %v5856_v1  ;;  %v5501_v24 = vld [vmem:[%s7066_s1 + $0x1f0] sm:$0xff]  }
  0x95   : > { %3474 = vmatpush1.bf16.msra.mxu0 %v5330_v26  ;;  %v5401_v26 = vld [vmem:[%s5994_s30 + $0x3b8] ss:$36 sps:$4 sm:$0xff]  }
  0x96   : > { %3475 = vmatprep.subr.bf16.mxu0 %v5856_v1 }
  0x97   : > { %2709 = vmatmul.mubr.bf16.gmra.mrb[36].mxu1 %v5322_v25  ;;  %v5400_v25 = vld [vmem:[%s5994_s30 + $0x5e8] ss:$36 sps:$4 sm:$0xff]  }
  0x98   : > { %3223 = vmatmul.mubr.bf16.gmra.mrb[4].mxu0 %v5323_v27  ;;  %2716 = vmatprep.mubr.bf16.mxu1 %v5324_v28  ;;  %v5402_v27 = vld [vmem:[%s5994_s30 + $0x634] ss:$36 sps:$4 sm:$0xff]   ;;  %v5404_v28 = vld [vmem:[%s5994_s30 + $0x404] ss:$36 sps:$4 sm:$0xff]  }
  0x99   : > { %3230 = vmatprep.mubr.bf16.mxu0 %v5326_v29  ;;  %3476 = vmatpush1.bf16.msra.mxu0 %v5343_v30  ;;  %v5406_v29 = vld [vmem:[%s5994_s30 + $0x630] ss:$36 sps:$4 sm:$0xff]   ;;  %v5407_v30 = vld [vmem:[%s5994_s30 + $0x400] ss:$36 sps:$4 sm:$0xff]  }
  0x9a   : > { %3477 = vmatprep.subr.bf16.mxu0 %v5856_v1 }
  0x9d   : > { %3478 = vmatpush1.bf16.msra.mxu0 %v5356_v32  ;;  %v5411_v32 = vld [vmem:[%s5994_s30 + $0x44c] ss:$36 sps:$4 sm:$0xff]  }
  0x9e   : > { %3479 = vmatprep.subr.bf16.mxu0 %v5856_v1 }
  0x9f   : > { %2717 = vmatmul.mubr.bf16.gmra.mrb[40].mxu1 %v5328_v31  ;;  %v5409_v31 = vld [vmem:[%s5994_s30 + $0x67c] ss:$36 sps:$4 sm:$0xff]  }
  0xa0   : > { %3231 = vmatmul.mubr.bf16.gmra.mrb[8].mxu0 %v5329_v33  ;;  %2724 = vmatprep.mubr.bf16.mxu1 %v5331_v34  ;;  %v5413_v33 = vld [vmem:[%s5994_s30 + $0x678] ss:$36 sps:$4 sm:$0xff]   ;;  %v5414_v34 = vld [vmem:[%s5994_s30 + $0x448] ss:$36 sps:$4 sm:$0xff]  }
  0xa1   : > { %3238 = vmatprep.mubr.bf16.mxu0 %v5333_v35  ;;  %3480 = vmatpush1.bf16.msra.mxu0 %v5369_v36  ;;  %v5415_v35 = vld [vmem:[%s5994_s30 + $0x6c4] ss:$36 sps:$4 sm:$0xff]   ;;  %v5417_v36 = vld [vmem:[%s5994_s30 + $0x494] ss:$36 sps:$4 sm:$0xff]  }
  0xa2   : > { %3481 = vmatprep.subr.bf16.mxu0 %v5856_v1 }
  0xa5   : > { %3482 = vmatpush1.bf16.msra.mxu0 %v5382_v37  ;;  %v5419_v37 = vld [vmem:[%s5994_s30 + $0x6c0] ss:$36 sps:$4 sm:$0xff]  }
  0xa6   : > { %3483 = vmatprep.subr.bf16.mxu0 %v5856_v1 }
  0xa7   : > { %2725 = vmatmul.mubr.bf16.gmra.mrb[44].mxu1 %v5335_v38  ;;  %v5420_v38 = vld [vmem:[%s5994_s30 + $0x490] ss:$36 sps:$4 sm:$0xff]  }
  0xa8   : > { %3239 = vmatmul.mubr.bf16.gmra.mrb[12].mxu0 %v5336_v39  ;;  %2732 = vmatprep.mubr.bf16.mxu1 %v5337_v40  ;;  %v5422_v39 = vld [vmem:[%s5994_s30 + $0x70c] ss:$36 sps:$4 sm:$0xff]   ;;  %v5424_v40 = vld [vmem:[%s5994_s30 + $0x4dc] ss:$36 sps:$4 sm:$0xff]  }
  0xa9   : > { %3246 = vmatprep.mubr.bf16.mxu0 %v5339_v41  ;;  %3484 = vmatpush1.bf16.msra.mxu0 %v5395_v42  ;;  %v5426_v41 = vld [vmem:[%s5994_s30 + $0x708] ss:$36 sps:$4 sm:$0xff]   ;;  %v5427_v42 = vld [vmem:[%s5994_s30 + $0x4d8] ss:$36 sps:$4 sm:$0xff]  }
  0xaa   : > { %3485 = vmatprep.subr.bf16.mxu0 %v5856_v1 }
  0xad   : > { %3486 = vmatpush1.bf16.msra.mxu0 %v5408_v43  ;;  %v5428_v43 = vld [vmem:[%s5994_s30 + $0x754] ss:$36 sps:$4 sm:$0xff]  }
  0xae   : > { %3487 = vmatprep.subr.bf16.mxu0 %v5856_v1 }
  0xaf   : > { %2733 = vmatmul.mubr.bf16.gmra.mrb[48].mxu1 %v5341_v44  ;;  %v5430_v44 = vld [vmem:[%s5994_s30 + $0x524] ss:$36 sps:$4 sm:$0xff]  }
  0xb0   : > { %3247 = vmatmul.mubr.bf16.gmra.mrb[16].mxu0 %v5342_v45  ;;  %2740 = vmatprep.mubr.bf16.mxu1 %v5344_v46  ;;  %v5432_v45 = vld [vmem:[%s5994_s30 + $0x750] ss:$36 sps:$4 sm:$0xff]   ;;  %v5433_v46 = vld [vmem:[%s5994_s30 + $0x520] ss:$36 sps:$4 sm:$0xff]  }
  0xb1   : > { %3254 = vmatprep.mubr.bf16.mxu0 %v5346_v47  ;;  %3488 = vmatpush1.bf16.msra.mxu0 %v5421_v48  ;;  %v5435_v47 = vld [vmem:[%s5994_s30 + $0x79c] ss:$36 sps:$4 sm:$0xff]   ;;  %v5437_v48 = vld [vmem:[%s5994_s30 + $0x56c] ss:$36 sps:$4 sm:$0xff]  }
  0xb2   : > { %3489 = vmatprep.subr.bf16.mxu0 %v5856_v1 }
  0xb5   : > { %3490 = vmatpush1.bf16.msra.mxu0 %v5434_v49 }
  0xb6   : > { %3491 = vmatprep.subr.bf16.mxu0 %v5856_v1 }
  0xb7   : > { %2741 = vmatmul.mubr.bf16.gmra.mrb[52].mxu1 %v5348_v50 }
  0xb8   : > { %3255 = vmatmul.mubr.bf16.gmra.mrb[20].mxu0 %v5349_v51  ;;  %2748 = vmatprep.mubr.bf16.mxu1 %v5350_v52  ;;  %v5439_v51 = vld [vmem:[%s5994_s30 + $0x798] ss:$36 sps:$4 sm:$0xff]  }
  0xb9   : > { %3262 = vmatprep.mubr.bf16.mxu0 %v5352_v53  ;;  %3492 = vmatpush1.bf16.msra.mxu0 %v5447_v54  ;;  %v5440_v53 = vld [vmem:[%s5994_s30 + $0x568] ss:$36 sps:$4 sm:$0xff]  }
  0xba   : > { %3493 = vmatprep.subr.bf16.mxu0 %v5856_v1  ;;  %v5441_v54 = vld [vmem:[%s5994_s30 + $0x7e4] ss:$36 sps:$4 sm:$0xff]  }
  0xbd   : > { %3494 = vmatpush1.bf16.msra.mxu0 %v5460_v59  ;;  %v5445_v59 = vld [vmem:[%s5994_s30 + $0x7e0] ss:$36 sps:$4 sm:$0xff]  }
  0xbe   : > { %3495 = vmatprep.subr.bf16.mxu0 %v5856_v1 }
  0xbf   : > { %2749 = vmatmul.mubr.bf16.gmra.mrb[56].mxu1 %v5354_v55 }
  0xc0   : > { %3263 = vmatmul.mubr.bf16.gmra.mrb[24].mxu0 %v5355_v56  ;;  %2756 = vmatprep.mubr.bf16.mxu1 %v5357_v57  ;;  %v5443_v56 = vld [vmem:[%s5994_s30 + $0x5b4] ss:$36 sps:$4 sm:$0xff]  }
  0xc1   : > { %3270 = vmatprep.mubr.bf16.mxu0 %v5359_v58  ;;  %3496 = vmatpush1.bf16.msra.mxu0 %v5473_v5 }
  0xc2   : > { %3497 = vmatprep.subr.bf16.mxu0 %v5856_v1 }
  0xc5   : > { %3498 = vmatpush1.bf16.msra.mxu0 %v5487_v15  ;;  %v5459_v15 = vld [vmem:[%s5994_s30 + $0x640] ss:$36 sps:$4 sm:$0xff]  }
  0xc6   : > { %3499 = vmatprep.subr.bf16.mxu0 %v5856_v1 }
  0xc7   : > { %2757 = vmatmul.mubr.bf16.gmra.mrb[60].mxu1 %v5361_v60 }
  0xc8   : > { %3271 = vmatmul.mubr.bf16.gmra.mrb[28].mxu0 %v5362_v61  ;;  %2764 = vmatprep.mubr.bf16.mxu1 %v5363_v62  ;;  %v5446_v61 = vld [vmem:[%s5994_s30 + $0x5b0] ss:$36 sps:$4 sm:$0xff]  }
  0xc9   : > { %3278 = vmatprep.mubr.bf16.mxu0 %v5365_v63  ;;  %3500 = vmatpush1.bf16.msra.mxu0 %v5501_v24  ;;  %v5448_v62 = vld [vmem:[%s5994_s30 + $0x82c] ss:$36 sps:$4 sm:$0xff]  }
  0xca   : > { %3501 = vmatprep.subr.bf16.mxu0 %v5856_v1  ;;  %v5514_v1 = vld [vmem:[%s7066_s1 + $0x1f8] sm:$0xff]   ;;  %v5469_v24 = vld [vmem:[%s5994_s30 + $0x24c] ss:$36 sps:$4 sm:$0xff]  }
  0xcd   : > { %3502 = vmatpush1.bf16.msra.mxu0 %v5514_v1  ;;  %v5475_v1 = vld [vmem:[%s5994_s30 + $0x294] ss:$36 sps:$4 sm:$0xff]  }
  0xcf   : > { %2765 = vmatmul.mubr.bf16.gmra.mrb[64].mxu1 %v5367_v0  ;;  %v5450_v0 = vld [vmem:[%s5994_s30 + $0x5fc] ss:$36 sps:$4 sm:$0xff]  }
  0xd0   : > { %3279 = vmatmul.mubr.bf16.gmra.mrb[32].mxu0 %v5368_v2  ;;  %2772 = vmatprep.mubr.bf16.mxu1 %v5370_v3 }
  0xd1   : > { %3286 = vmatprep.mubr.bf16.mxu0 %v5372_v4  ;;  %v5452_v4 = vld [vmem:[%s5994_s30 + $0x828] ss:$36 sps:$4 sm:$0xff]  }
  0xd7   : > { %2773 = vmatmul.mubr.bf16.gmra.mrb[68].mxu1 %v5374_v7  ;;  %v5453_v7 = vld [vmem:[%s5994_s30 + $0x5f8] ss:$36 sps:$4 sm:$0xff]  }
  0xd8   : > { %3287 = vmatmul.mubr.bf16.gmra.mrb[36].mxu0 %v5375_v8  ;;  %2780 = vmatprep.mubr.bf16.mxu1 %v5376_v9  ;;  %v5454_v8 = vld [vmem:[%s5994_s30 + $0x874] ss:$36 sps:$4 sm:$0xff]  }
  0xd9   : > { %3294 = vmatprep.mubr.bf16.mxu0 %v5378_v10  ;;  %v5456_v10 = vld [vmem:[%s5994_s30 + $0x644] ss:$36 sps:$4 sm:$0xff]  }
  0xdf   : > { %2781 = vmatmul.mubr.bf16.gmra.mrb[72].mxu1 %v5380_v11 }
  0xe0   : > { %3295 = vmatmul.mubr.bf16.gmra.mrb[40].mxu0 %v5381_v12  ;;  %2788 = vmatprep.mubr.bf16.mxu1 %v5383_v13  ;;  %v5458_v13 = vld [vmem:[%s5994_s30 + $0x870] ss:$36 sps:$4 sm:$0xff]  }
  0xe1   : > { %3302 = vmatprep.mubr.bf16.mxu0 %v5385_v14 }
  0xe7   : > { %2789 = vmatmul.mubr.bf16.gmra.mrb[76].mxu1 %v5387_v16  ;;  %v5461_v16 = vld [vmem:[%s5994_s30 + $0x8bc] ss:$36 sps:$4 sm:$0xff]  }
  0xe8   : > { %3303 = vmatmul.mubr.bf16.gmra.mrb[44].mxu0 %v5388_v17  ;;  %2796 = vmatprep.mubr.bf16.mxu1 %v5389_v18  ;;  %v5463_v18 = vld [vmem:[%s5994_s30 + $0x68c] ss:$36 sps:$4 sm:$0xff]  }
  0xe9   : > { %3310 = vmatprep.mubr.bf16.mxu0 %v5391_v19 }
  0xef   : > { %2797 = vmatmul.mubr.bf16.gmra.mrb[80].mxu1 %v5393_v20 }
  0xf0   : > { %3311 = vmatmul.mubr.bf16.gmra.mrb[48].mxu0 %v5394_v21  ;;  %2804 = vmatprep.mubr.bf16.mxu1 %v5396_v22  ;;  %v5465_v21 = vld [vmem:[%s5994_s30 + $0x8b8] ss:$36 sps:$4 sm:$0xff]  }
  0xf1   : > { %3318 = vmatprep.mubr.bf16.mxu0 %v5398_v23  ;;  %v5466_v23 = vld [vmem:[%s5994_s30 + $0x688] ss:$36 sps:$4 sm:$0xff]  }
  0xf7   : > { %2805 = vmatmul.mubr.bf16.gmra.mrb[84].mxu1 %v5400_v25 }
  0xf8   : > { %3319 = vmatmul.mubr.bf16.gmra.mrb[52].mxu0 %v5401_v26  ;;  %2812 = vmatprep.mubr.bf16.mxu1 %v5402_v27  ;;  %v5470_v26 = vld [vmem:[%s5994_s30 + $0x6d4] ss:$36 sps:$4 sm:$0xff]  }
  0xf9   : > { %3326 = vmatprep.mubr.bf16.mxu0 %v5404_v28 }
  0xff   : > { %2813 = vmatmul.mubr.bf16.gmra.mrb[88].mxu1 %v5406_v29  ;;  %v5467_v29 = vld [vmem:[%s5994_s30 + $0x248] ss:$36 sps:$4 sm:$0xff]  }
 0x100   : > { %3327 = vmatmul.mubr.bf16.gmra.mrb[56].mxu0 %v5407_v30  ;;  %2820 = vmatprep.mubr.bf16.mxu1 %v5409_v31  ;;  %v5472_v31 = vld [vmem:[%s5994_s30 + $0x6d0] ss:$36 sps:$4 sm:$0xff]  }
 0x101   : > { %3334 = vmatprep.mubr.bf16.mxu0 %v5411_v32 }
 0x107   : > { %2821 = vmatmul.mubr.bf16.gmra.mrb[92].mxu1 %v5413_v33  ;;  %v5477_v33 = vld [vmem:[%s5994_s30 + $0x71c] ss:$36 sps:$4 sm:$0xff]  }
 0x108   : > { %3335 = vmatmul.mubr.bf16.gmra.mrb[60].mxu0 %v5414_v34  ;;  %2828 = vmatprep.mubr.bf16.mxu1 %v5415_v35  ;;  %v5494_v34 = vld [vmem:[%s7066_s1 + $0x208] sm:$0xff]   ;;  %v5515_v35 = vld [vmem:[%s7066_s1 + $0x210] sm:$0xff]  }
 0x109   : > { %3342 = vmatprep.mubr.bf16.mxu0 %v5417_v36 }
 0x10f   : > { %2829 = vmatmul.mubr.bf16.gmra.mrb[96].mxu1 %v5419_v37 }
 0x110   : > { %3343 = vmatmul.mubr.bf16.gmra.mrb[64].mxu0 %v5420_v38  ;;  %2836 = vmatprep.mubr.bf16.mxu1 %v5422_v39  ;;  %v5479_v38 = vld [vmem:[%s5994_s30 + $0x290] ss:$36 sps:$4 sm:$0xff]  }
 0x111   : > { %3350 = vmatprep.mubr.bf16.mxu0 %v5424_v40  ;;  %v5480_v40 = vld [vmem:[%s5994_s30 + $0x718] ss:$36 sps:$4 sm:$0xff]  }
 0x117   : > { %2837 = vmatmul.mubr.bf16.gmra.mrb[100].mxu1 %v5426_v41  ;;  %v5481_v41 = vld [vmem:[%s5994_s30 + $0x2dc] ss:$36 sps:$4 sm:$0xff]  }
 0x118   : > { %3351 = vmatmul.mubr.bf16.gmra.mrb[68].mxu0 %v5427_v42  ;;  %2844 = vmatprep.mubr.bf16.mxu1 %v5428_v43  ;;  %v5534_v43 = vld [vmem:[%s7066_s1 + $0x218] sm:$0xff]  }
 0x119   : > { %3358 = vmatprep.mubr.bf16.mxu0 %v5430_v44 }
 0x11f   : > { %2845 = vmatmul.mubr.bf16.gmra.mrb[104].mxu1 %v5432_v45  ;;  %v5553_v45 = vld [vmem:[%s7066_s1 + $0x220] sm:$0xff]  }
 0x120   : > { %3359 = vmatmul.mubr.bf16.gmra.mrb[72].mxu0 %v5433_v46  ;;  %2852 = vmatprep.mubr.bf16.mxu1 %v5435_v47  ;;  %v5485_v47 = vld [vmem:[%s5994_s30 + $0x2d8] ss:$36 sps:$4 sm:$0xff]  }
 0x121   : > { %3366 = vmatprep.mubr.bf16.mxu0 %v5437_v48 }
 0x122   : > { %v6358_v49 = vpop.f32.mrb[0].mxu1 }
 0x123   : > { %v2640_v50 = vpop.f32.mrb[1].mxu1 }
 0x124   : > { %v6361_v52 = vpop.f32.mrb[2].mxu1  ;;  %v5486_v50 = vld [vmem:[%s5994_s30 + $0x760] ss:$36 sps:$4 sm:$0xff]  }
 0x125   : > { %v2643_v55 = vpop.f32.mrb[3].mxu1 }
 0x126   : > { %v5572_v55 = vld [vmem:[%s7066_s1 + $0x228] sm:$0xff]  }
 0x127   : > { %2853 = vmatmul.mubr.bf16.gmra.mrb[108].mxu1 %v5439_v51  ;;  %v5488_v51 = vld [vmem:[%s5994_s30 + $0x324] ss:$36 sps:$4 sm:$0xff]  }
 0x128   : > { %3367 = vmatmul.mubr.bf16.gmra.mrb[76].mxu0 %v5440_v53  ;;  %2860 = vmatprep.mubr.bf16.mxu1 %v5441_v54  ;;  %v5490_v54 = vld [vmem:[%s5994_s30 + $0x7ac] ss:$36 sps:$4 sm:$0xff]  }
 0x129   : > { %3374 = vmatprep.mubr.bf16.mxu0 %v5443_v56  ;;  %v5591_v56 = vld [vmem:[%s7066_s1 + $0x230] sm:$0xff]  }
 0x12a   : > { %v6366_v57 = vpop.f32.mrb[4].mxu1 }
 0x12b   : > { %v2648_v58 = vpop.f32.mrb[5].mxu1 }
 0x12c   : > { %v6369_v60 = vpop.f32.mrb[6].mxu1  ;;  %v5492_v58 = vld [vmem:[%s5994_s30 + $0x320] ss:$36 sps:$4 sm:$0xff]  }
 0x12d   : > { %v2651_v63 = vpop.f32.mrb[7].mxu1 }
 0x12e   : > { %v5499_v63 = vld [vmem:[%s5994_s30 + $0x368] ss:$36 sps:$4 sm:$0xff]  }
 0x12f   : > { %2861 = vmatmul.mubr.bf16.gmra.mrb[112].mxu1 %v5445_v59  ;;  %v5493_v59 = vld [vmem:[%s5994_s30 + $0x7a8] ss:$36 sps:$4 sm:$0xff]  }
 0x130   : > { %3375 = vmatmul.mubr.bf16.gmra.mrb[80].mxu0 %v5446_v61  ;;  %2868 = vmatprep.mubr.bf16.mxu1 %v5448_v62  ;;  %v5495_v61 = vld [vmem:[%s5994_s30 + $0x36c] ss:$36 sps:$4 sm:$0xff]   ;;  %v5497_v62 = vld [vmem:[%s5994_s30 + $0x7f4] ss:$36 sps:$4 sm:$0xff]  }
 0x131   : > { %3382 = vmatprep.mubr.bf16.mxu0 %v5450_v0  ;;  %v5500_v0 = vld [vmem:[%s5994_s30 + $0x7f0] ss:$36 sps:$4 sm:$0xff]  }
 0x132   : > { %v6374_v2 = vpop.f32.mrb[8].mxu1 }
 0x133   : > { %v2656_v3 = vpop.f32.mrb[9].mxu1 }
 0x134   : > { %v6377_v5 = vpop.f32.mrb[10].mxu1  ;;  %v5502_v3 = vld [vmem:[%s5994_s30 + $0x3b4] ss:$36 sps:$4 sm:$0xff]  }
 0x135   : > { %v2659_v9 = vpop.f32.mrb[11].mxu1 }
 0x136   : > { %v5508_v9 = vld [vmem:[%s5994_s30 + $0x3fc] ss:$36 sps:$4 sm:$0xff]  }
 0x137   : > { %2869 = vmatmul.mubr.bf16.gmra.mrb[116].mxu1 %v5452_v4  ;;  %v5504_v4 = vld [vmem:[%s5994_s30 + $0x83c] ss:$36 sps:$4 sm:$0xff]  }
 0x138   : > { %3383 = vmatmul.mubr.bf16.gmra.mrb[84].mxu0 %v5453_v7  ;;  %2876 = vmatprep.mubr.bf16.mxu1 %v5454_v8  ;;  %v5506_v7 = vld [vmem:[%s5994_s30 + $0x3b0] ss:$36 sps:$4 sm:$0xff]   ;;  %v5507_v8 = vld [vmem:[%s5994_s30 + $0x838] ss:$36 sps:$4 sm:$0xff]  }
 0x139   : > { %3390 = vmatprep.mubr.bf16.mxu0 %v5456_v10  ;;  %v5510_v10 = vld [vmem:[%s5994_s30 + $0x884] ss:$36 sps:$4 sm:$0xff]  }
 0x13a   : > { %v6382_v11 = vpop.f32.mrb[12].mxu1 }
 0x13b   : > { %v2664_v12 = vpop.f32.mrb[13].mxu1 }
 0x13c   : > { %v6385_v14 = vpop.f32.mrb[14].mxu1  ;;  %v5610_v12 = vld [vmem:[%s7066_s1 + $0x238] sm:$0xff]  }
 0x13d   : > { %v2667_v17 = vpop.f32.mrb[15].mxu1 }
 0x13e   : > { %v5518_v17 = vld [vmem:[%s5994_s30 + $0x8cc] ss:$36 sps:$4 sm:$0xff]  }
 0x13f   : > { %2877 = vmatmul.mubr.bf16.gmra.mrb[120].mxu1 %v5458_v13  ;;  %v5512_v13 = vld [vmem:[%s5994_s30 + $0x3f8] ss:$36 sps:$4 sm:$0xff]  }
 0x140   : > { %3391 = vmatmul.mubr.bf16.gmra.mrb[88].mxu0 %v5459_v15  ;;  %2884 = vmatprep.mubr.bf16.mxu1 %v5461_v16  ;;  %v5513_v15 = vld [vmem:[%s5994_s30 + $0x880] ss:$36 sps:$4 sm:$0xff]  }
 0x141   : > { %3398 = vmatprep.mubr.bf16.mxu0 %v5463_v18  ;;  %v5516_v16 = vld [vmem:[%s5994_s30 + $0x444] ss:$36 sps:$4 sm:$0xff]  }
 0x142   : > { %v6390_v19 = vpop.f32.mrb[16].mxu1  ;;  %v5520_v18 = vld [vmem:[%s5994_s30 + $0x440] ss:$36 sps:$4 sm:$0xff]  }
 0x143   : > { %v2672_v20 = vpop.f32.mrb[17].mxu1 }
 0x144   : > { %v6393_v22 = vpop.f32.mrb[18].mxu1  ;;  %v5521_v20 = vld [vmem:[%s5994_s30 + $0x8c8] ss:$36 sps:$4 sm:$0xff]  }
 0x145   : > { %v2675_v25 = vpop.f32.mrb[19].mxu1 }
 0x146   : > { %v5524_v25 = vld [vmem:[%s5994_s30 + $0x18] ss:$36 sps:$4 sm:$0xff]  }
 0x147   : > { %2885 = vmatmul.mubr.bf16.gmra.mrb[124].mxu1 %v5465_v21  ;;  %v5522_v21 = vld [vmem:[%s5994_s30 + $0x48c] ss:$36 sps:$4 sm:$0xff]  }
 0x148   : > { %3399 = vmatmul.mubr.bf16.gmra.mrb[92].mxu0 %v5466_v23  ;;  %2989 = vmatprep.mubr.bf16.mxu1 %v5469_v24  ;;  %v5526_v23 = vld [vmem:[%s5994_s30 + $0x1c] ss:$36 sps:$4 sm:$0xff]   ;;  %v5527_v24 = vld [vmem:[%s5994_s30 + $0x488] ss:$36 sps:$4 sm:$0xff]  }
 0x149   : > { %3406 = vmatprep.mubr.bf16.mxu0 %v5470_v26  ;;  %v5528_v26 = vld [vmem:[%s5994_s30 + $0x4d4] ss:$36 sps:$4 sm:$0xff]  }
 0x14a   : > { %v6398_v27 = vpop.f32.mrb[20].mxu1 }
 0x14b   : > { %v2680_v28 = vpop.f32.mrb[21].mxu1 }
 0x14c   : > { %v6401_v30 = vpop.f32.mrb[22].mxu1  ;;  %v5530_v28 = vld [vmem:[%s5994_s30 + $0x64] ss:$36 sps:$4 sm:$0xff]  }
 0x14d   : > { %v2683_v32 = vpop.f32.mrb[23].mxu1 }
 0x14e   : > { %v5535_v32 = vld [vmem:[%s5994_s30 + $0x51c] ss:$36 sps:$4 sm:$0xff]  }
 0x14f   : > { %2990 = vmatmul.mubr.bf16.vlgmr.msra.gmra.mrb[32].mxu1 %v5467_v29  ;;  %v5532_v29 = vld [vmem:[%s5994_s30 + $0x4d0] ss:$36 sps:$4 sm:$0xff]  }
 0x150   : > { %3407 = vmatmul.mubr.bf16.gmra.mrb[96].mxu0 %v5472_v31  ;;  %4694 = vmatpush3.bf16.msra.mxu1 %v6303_v6  ;;  %v5483_v6 = vld [vmem:[%s5994_s30 + $0x764] ss:$36 sps:$4 sm:$0xff]  }
 0x151   : > { %2997 = vmatprep.mubr.bf16.mxu1 %v5475_v1  ;;  %3414 = vmatprep.mubr.bf16.mxu0 %v5477_v33  ;;  %v5533_v31 = vld [vmem:[%s5994_s30 + $0x60] ss:$36 sps:$4 sm:$0xff]   ;;  %v5537_v1 = vld [vmem:[%s5994_s30 + $0xac] ss:$36 sps:$4 sm:$0xff]   ;;  %v5539_v33 = vld [vmem:[%s5994_s30 + $0x518] ss:$36 sps:$4 sm:$0xff]  }
 0x152   : > { %v6413_v36 = vpop.f32.mrb[24].mxu1  ;;  %4695 = vmatprep.subr.bf16.mxu1 %v5494_v34 }
 0x153   : > { %v2688_v37 = vpop.f32.mrb[25].mxu1 }
 0x154   : > { %v6416_v39 = vpop.f32.mrb[26].mxu1  ;;  %4696 = vmatpush3.bf16.msra.mxu1 %v5494_v34  ;;  %v5540_v34 = vld [vmem:[%s5994_s30 + $0xa8] ss:$36 sps:$4 sm:$0xff]   ;;  %v5543_v37 = vld [vmem:[%s5994_s30 + $0xf4] ss:$36 sps:$4 sm:$0xff]  }
 0x155   : > { %v2691_v42 = vpop.f32.mrb[27].mxu1  ;;  %4697 = vmatprep.subr.bf16.mxu1 %v5515_v35 }
 0x156   : > { %v5549_v42 = vld [vmem:[%s5994_s30 + $0x13c] ss:$36 sps:$4 sm:$0xff]  }
 0x157   : > { %2998 = vmatmul.mubr.bf16.gmra.mrb[36].mxu1 %v5479_v38  ;;  %v5545_v38 = vld [vmem:[%s5994_s30 + $0x560] ss:$36 sps:$4 sm:$0xff]  }
 0x158   : > { %3415 = vmatmul.mubr.bf16.gmra.mrb[100].mxu0 %v5480_v40  ;;  %3005 = vmatprep.mubr.bf16.mxu1 %v5481_v41  ;;  %v5546_v40 = vld [vmem:[%s5994_s30 + $0xf0] ss:$36 sps:$4 sm:$0xff]  }
 0x159   : > { %3422 = vmatprep.mubr.bf16.mxu0 %v5483_v6  ;;  %4698 = vmatpush3.bf16.msra.mxu1 %v5515_v35  ;;  %v5541_v35 = vld [vmem:[%s5994_s30 + $0x564] ss:$36 sps:$4 sm:$0xff]   ;;  %v5547_v41 = vld [vmem:[%s5994_s30 + $0x5ac] ss:$36 sps:$4 sm:$0xff]  }
 0x15a   : > { %v6424_v44 = vpop.f32.mrb[28].mxu1  ;;  %4699 = vmatprep.subr.bf16.mxu1 %v5534_v43  ;;  %v5551_v6 = vld [vmem:[%s5994_s30 + $0x5a8] ss:$36 sps:$4 sm:$0xff]  }
 0x15b   : > { %v2696_v46 = vpop.f32.mrb[29].mxu1 }
 0x15c   : > { %v6430_v48 = vpop.f32.mrb[30].mxu1  ;;  %v5556_v46 = vld [vmem:[%s5994_s30 + $0x184] ss:$36 sps:$4 sm:$0xff]  }
 0x15d   : > { %v2699_v53 = vpop.f32.mrb[31].mxu1  ;;  %4700 = vmatpush3.bf16.msra.mxu1 %v5534_v43  ;;  %v5552_v43 = vld [vmem:[%s5994_s30 + $0x138] ss:$36 sps:$4 sm:$0xff]  }
 0x15e   : > { %4701 = vmatprep.subr.bf16.mxu1 %v5553_v45  ;;  %v5562_v53 = vld [vmem:[%s5994_s30 + $0x1cc] ss:$36 sps:$4 sm:$0xff]  }
 0x15f   : > { %3006 = vmatmul.mubr.bf16.gmra.mrb[40].mxu1 %v5485_v47  ;;  %v5558_v47 = vld [vmem:[%s5994_s30 + $0x5f0] ss:$36 sps:$4 sm:$0xff]  }
 0x160   : > { %3423 = vmatmul.mubr.bf16.gmra.mrb[104].mxu0 %v5486_v50  ;;  %3013 = vmatprep.mubr.bf16.mxu1 %v5488_v51  ;;  %v5559_v50 = vld [vmem:[%s5994_s30 + $0x180] ss:$36 sps:$4 sm:$0xff]  }
 0x161   : > { %3430 = vmatprep.mubr.bf16.mxu0 %v5490_v54  ;;  %4702 = vmatpush3.bf16.msra.mxu1 %v5553_v45  ;;  %v5554_v45 = vld [vmem:[%s5994_s30 + $0x5f4] ss:$36 sps:$4 sm:$0xff]   ;;  %v5560_v51 = vld [vmem:[%s5994_s30 + $0x63c] ss:$36 sps:$4 sm:$0xff]  }
 0x162   : > { %4703 = vmatprep.subr.bf16.mxu1 %v5572_v55  ;;  %v5564_v54 = vld [vmem:[%s5994_s30 + $0x638] ss:$36 sps:$4 sm:$0xff]  }
 0x165   : > { %4704 = vmatpush3.bf16.msra.mxu1 %v5572_v55  ;;  %v5565_v55 = vld [vmem:[%s5994_s30 + $0x1c8] ss:$36 sps:$4 sm:$0xff]  }
 0x166   : > { %4705 = vmatprep.subr.bf16.mxu1 %v5591_v56 }
 0x167   : > { %3014 = vmatmul.mubr.bf16.gmra.mrb[44].mxu1 %v5492_v58  ;;  %v5568_v58 = vld [vmem:[%s5994_s30 + $0x214] ss:$36 sps:$4 sm:$0xff]  }
 0x168   : > { %3431 = vmatmul.mubr.bf16.gmra.mrb[108].mxu0 %v5493_v59  ;;  %3021 = vmatprep.mubr.bf16.mxu1 %v5495_v61  ;;  %v5570_v59 = vld [vmem:[%s5994_s30 + $0x680] ss:$36 sps:$4 sm:$0xff]   ;;  %v5571_v61 = vld [vmem:[%s5994_s30 + $0x210] ss:$36 sps:$4 sm:$0xff]  }
 0x169   : > { %3438 = vmatprep.mubr.bf16.mxu0 %v5497_v62  ;;  %4706 = vmatpush3.bf16.msra.mxu1 %v5591_v56  ;;  %v5566_v56 = vld [vmem:[%s5994_s30 + $0x684] ss:$36 sps:$4 sm:$0xff]   ;;  %v5573_v62 = vld [vmem:[%s5994_s30 + $0x6cc] ss:$36 sps:$4 sm:$0xff]  }
 0x16a   : > { %4707 = vmatprep.subr.bf16.mxu1 %v5610_v12 }
 0x16d   : > { %4708 = vmatpush3.bf16.msra.mxu1 %v5610_v12  ;;  %v5587_v12 = vld [vmem:[%s5994_s30 + $0x2ec] ss:$36 sps:$4 sm:$0xff]  }
 0x16f   : > { %3022 = vmatmul.mubr.bf16.gmra.mrb[48].mxu1 %v5499_v63  ;;  %v5575_v63 = vld [vmem:[%s5994_s30 + $0x25c] ss:$36 sps:$4 sm:$0xff]  }
 0x170   : > { %3439 = vmatmul.mubr.bf16.gmra.mrb[112].mxu0 %v5500_v0  ;;  %3029 = vmatprep.mubr.bf16.mxu1 %v5502_v3  ;;  %v5577_v0 = vld [vmem:[%s5994_s30 + $0x6c8] ss:$36 sps:$4 sm:$0xff]   ;;  %v5578_v3 = vld [vmem:[%s5994_s30 + $0x258] ss:$36 sps:$4 sm:$0xff]  }
 0x171   : > { %3446 = vmatprep.mubr.bf16.mxu0 %v5504_v4  ;;  %v5579_v4 = vld [vmem:[%s5994_s30 + $0x714] ss:$36 sps:$4 sm:$0xff]  }
 0x177   : > { %3030 = vmatmul.mubr.bf16.gmra.mrb[52].mxu1 %v5506_v7  ;;  %v5581_v7 = vld [vmem:[%s5994_s30 + $0x2a4] ss:$36 sps:$4 sm:$0xff]  }
 0x178   : > { %3447 = vmatmul.mubr.bf16.gmra.mrb[116].mxu0 %v5507_v8  ;;  %3037 = vmatprep.mubr.bf16.mxu1 %v5508_v9  ;;  %v5583_v8 = vld [vmem:[%s5994_s30 + $0x710] ss:$36 sps:$4 sm:$0xff]   ;;  %v5584_v9 = vld [vmem:[%s5994_s30 + $0x2a0] ss:$36 sps:$4 sm:$0xff]  }
 0x179   : > { %3454 = vmatprep.mubr.bf16.mxu0 %v5510_v10  ;;  %v5585_v10 = vld [vmem:[%s5994_s30 + $0x75c] ss:$36 sps:$4 sm:$0xff]  }
 0x17f   : > { %3038 = vmatmul.mubr.bf16.gmra.mrb[56].mxu1 %v5512_v13  ;;  %v5589_v13 = vld [vmem:[%s5994_s30 + $0x758] ss:$36 sps:$4 sm:$0xff]  }
 0x180   : > { %3455 = vmatmul.mubr.bf16.gmra.mrb[120].mxu0 %v5513_v15  ;;  %3045 = vmatprep.mubr.bf16.mxu1 %v5516_v16  ;;  %v5590_v15 = vld [vmem:[%s5994_s30 + $0x2e8] ss:$36 sps:$4 sm:$0xff]  }
 0x181   : > { %3462 = vmatprep.mubr.bf16.mxu0 %v5518_v17  ;;  %v5592_v16 = vld [vmem:[%s5994_s30 + $0x7a4] ss:$36 sps:$4 sm:$0xff]   ;;  %v5594_v17 = vld [vmem:[%s5994_s30 + $0x334] ss:$36 sps:$4 sm:$0xff]  }
 0x187   : > { %3046 = vmatmul.mubr.bf16.gmra.mrb[60].mxu1 %v5520_v18  ;;  %v5596_v18 = vld [vmem:[%s5994_s30 + $0x7a0] ss:$36 sps:$4 sm:$0xff]  }
 0x188   : > { %3463 = vmatmul.mubr.bf16.gmra.mrb[124].mxu0 %v5521_v20  ;;  %3053 = vmatprep.mubr.bf16.mxu1 %v5522_v21  ;;  %v5597_v20 = vld [vmem:[%s5994_s30 + $0x330] ss:$36 sps:$4 sm:$0xff]  }
 0x189   : > { %3503 = vmatprep.mubr.bf16.mxu0 %v5526_v23  ;;  %v5598_v21 = vld [vmem:[%s5994_s30 + $0x7ec] ss:$36 sps:$4 sm:$0xff]   ;;  %v5600_v23 = vld [vmem:[%s5994_s30 + $0x37c] ss:$36 sps:$4 sm:$0xff]  }
 0x18f   : > { %3054 = vmatmul.mubr.bf16.gmra.mrb[64].mxu1 %v5527_v24  ;;  %v5602_v24 = vld [vmem:[%s5994_s30 + $0x7e8] ss:$36 sps:$4 sm:$0xff]  }
 0x190   : > { %3504 = vmatmul.mubr.bf16.vlgmr.msra.gmra.mrb[0].mxu0 %v5524_v25  ;;  %3061 = vmatprep.mubr.bf16.mxu1 %v5528_v26  ;;  %v5603_v25 = vld [vmem:[%s5994_s30 + $0x378] ss:$36 sps:$4 sm:$0xff]  }
 0x191   : > { %3511 = vmatprep.mubr.bf16.mxu0 %v5530_v28  ;;  %v5604_v26 = vld [vmem:[%s5994_s30 + $0x834] ss:$36 sps:$4 sm:$0xff]   ;;  %v5606_v28 = vld [vmem:[%s5994_s30 + $0x3c4] ss:$36 sps:$4 sm:$0xff]  }
 0x197   : > { %3062 = vmatmul.mubr.bf16.gmra.mrb[68].mxu1 %v5532_v29  ;;  %v5608_v29 = vld [vmem:[%s5994_s30 + $0x830] ss:$36 sps:$4 sm:$0xff]  }
 0x198   : > { %3512 = vmatmul.mubr.bf16.gmra.mrb[4].mxu0 %v5533_v31  ;;  %3069 = vmatprep.mubr.bf16.mxu1 %v5535_v32  ;;  %v5609_v31 = vld [vmem:[%s5994_s30 + $0x3c0] ss:$36 sps:$4 sm:$0xff]  }
 0x199   : > { %3519 = vmatprep.mubr.bf16.mxu0 %v5537_v1  ;;  %v5611_v32 = vld [vmem:[%s5994_s30 + $0x87c] ss:$36 sps:$4 sm:$0xff]   ;;  %v5613_v1 = vld [vmem:[%s5994_s30 + $0x40c] ss:$36 sps:$4 sm:$0xff]  }
 0x19f   : > { %3070 = vmatmul.mubr.bf16.gmra.mrb[72].mxu1 %v5539_v33  ;;  %v5615_v33 = vld [vmem:[%s5994_s30 + $0x878] ss:$36 sps:$4 sm:$0xff]  }
 0x1a0   : > { %3520 = vmatmul.mubr.bf16.gmra.mrb[8].mxu0 %v5540_v34  ;;  %3077 = vmatprep.mubr.bf16.mxu1 %v5541_v35  ;;  %v5616_v34 = vld [vmem:[%s5994_s30 + $0x408] ss:$36 sps:$4 sm:$0xff]  }
 0x1a1   : > { %3527 = vmatprep.mubr.bf16.mxu0 %v5543_v37  ;;  %v5617_v35 = vld [vmem:[%s5994_s30 + $0x8c4] ss:$36 sps:$4 sm:$0xff]   ;;  %v5619_v37 = vld [vmem:[%s5994_s30 + $0x454] ss:$36 sps:$4 sm:$0xff]  }
 0x1a7   : > { %3078 = vmatmul.mubr.bf16.gmra.mrb[76].mxu1 %v5545_v38  ;;  %v5621_v38 = vld [vmem:[%s5994_s30 + $0x8c0] ss:$36 sps:$4 sm:$0xff]  }
 0x1a8   : > { %3528 = vmatmul.mubr.bf16.gmra.mrb[12].mxu0 %v5546_v40  ;;  %3085 = vmatprep.mubr.bf16.mxu1 %v5547_v41  ;;  %v5622_v40 = vld [vmem:[%s5994_s30 + $0x450] ss:$36 sps:$4 sm:$0xff]   ;;  %v5625_v41 = vld [vmem:[%s5994_s30 + $0x20] ss:$36 sps:$4 sm:$0xff]  }
 0x1a9   : > { %3535 = vmatprep.mubr.bf16.mxu0 %v5549_v42  ;;  %v5623_v42 = vld [vmem:[%s5994_s30 + $0x49c] ss:$36 sps:$4 sm:$0xff]  }
 0x1af   : > { %3086 = vmatmul.mubr.bf16.gmra.mrb[80].mxu1 %v5551_v6  ;;  %v5627_v6 = vld [vmem:[%s5994_s30 + $0x68] ss:$36 sps:$4 sm:$0xff]  }
 0x1b0   : > { %3536 = vmatmul.mubr.bf16.gmra.mrb[16].mxu0 %v5552_v43  ;;  %3093 = vmatprep.mubr.bf16.mxu1 %v5554_v45  ;;  %v5626_v43 = vld [vmem:[%s5994_s30 + $0x498] ss:$36 sps:$4 sm:$0xff]   ;;  %v5630_v45 = vld [vmem:[%s5994_s30 + $0xb0] ss:$36 sps:$4 sm:$0xff]  }
 0x1b1   : > { %3543 = vmatprep.mubr.bf16.mxu0 %v5556_v46  ;;  %v5628_v46 = vld [vmem:[%s5994_s30 + $0x4e4] ss:$36 sps:$4 sm:$0xff]  }
 0x1b7   : > { %3094 = vmatmul.mubr.bf16.gmra.mrb[84].mxu1 %v5558_v47  ;;  %v5632_v47 = vld [vmem:[%s5994_s30 + $0xf8] ss:$36 sps:$4 sm:$0xff]  }
 0x1b8   : > { %3544 = vmatmul.mubr.bf16.gmra.mrb[20].mxu0 %v5559_v50  ;;  %3101 = vmatprep.mubr.bf16.mxu1 %v5560_v51  ;;  %v5631_v50 = vld [vmem:[%s5994_s30 + $0x4e0] ss:$36 sps:$4 sm:$0xff]  }
 0x1b9   : > { %3551 = vmatprep.mubr.bf16.mxu0 %v5562_v53  ;;  %v5635_v51 = vld [vmem:[%s5994_s30 + $0x140] ss:$36 sps:$4 sm:$0xff]   ;;  %v5633_v53 = vld [vmem:[%s5994_s30 + $0x52c] ss:$36 sps:$4 sm:$0xff]  }
 0x1bf   : > { %3102 = vmatmul.mubr.bf16.gmra.mrb[88].mxu1 %v5564_v54  ;;  %v5637_v54 = vld [vmem:[%s5994_s30 + $0x188] ss:$36 sps:$4 sm:$0xff]  }
 0x1c0   : > { %3552 = vmatmul.mubr.bf16.gmra.mrb[24].mxu0 %v5565_v55  ;;  %3109 = vmatprep.mubr.bf16.mxu1 %v5566_v56  ;;  %v5636_v55 = vld [vmem:[%s5994_s30 + $0x528] ss:$36 sps:$4 sm:$0xff]   ;;  %v5640_v56 = vld [vmem:[%s5994_s30 + $0x1d0] ss:$36 sps:$4 sm:$0xff]  }
 0x1c1   : > { %3559 = vmatprep.mubr.bf16.mxu0 %v5568_v58  ;;  %v5638_v58 = vld [vmem:[%s5994_s30 + $0x574] ss:$36 sps:$4 sm:$0xff]  }
 0x1c7   : > { %3110 = vmatmul.mubr.bf16.gmra.mrb[92].mxu1 %v5570_v59 }
 0x1c8   : > { %3560 = vmatmul.mubr.bf16.gmra.mrb[28].mxu0 %v5571_v61  ;;  %3117 = vmatprep.mubr.bf16.mxu1 %v5573_v62  ;;  %v5642_v62 = vld [vmem:[%s5994_s30 + $0x218] ss:$36 sps:$4 sm:$0xff]  }
 0x1c9   : > { %3567 = vmatprep.mubr.bf16.mxu0 %v5575_v63 }
 0x1cf   : > { %3118 = vmatmul.mubr.bf16.gmra.mrb[96].mxu1 %v5577_v0  ;;  %v5641_v0 = vld [vmem:[%s5994_s30 + $0x570] ss:$36 sps:$4 sm:$0xff]  }
 0x1d0   : > { %3568 = vmatmul.mubr.bf16.gmra.mrb[32].mxu0 %v5578_v3  ;;  %3125 = vmatprep.mubr.bf16.mxu1 %v5579_v4  ;;  %v5645_v3 = vld [vmem:[%s5994_s30 + $0x260] ss:$36 sps:$4 sm:$0xff]  }
 0x1d1   : > { %3575 = vmatprep.mubr.bf16.mxu0 %v5581_v7  ;;  %v5643_v7 = vld [vmem:[%s5994_s30 + $0x5bc] ss:$36 sps:$4 sm:$0xff]  }
 0x1d7   : > { %3126 = vmatmul.mubr.bf16.gmra.mrb[100].mxu1 %v5583_v8 }
 0x1d8   : > { %3576 = vmatmul.mubr.bf16.gmra.mrb[36].mxu0 %v5584_v9  ;;  %3133 = vmatprep.mubr.bf16.mxu1 %v5585_v10  ;;  %v5647_v10 = vld [vmem:[%s5994_s30 + $0x2a8] ss:$36 sps:$4 sm:$0xff]  }
 0x1d9   : > { %3583 = vmatprep.mubr.bf16.mxu0 %v5587_v12 }
 0x1df   : > { %3134 = vmatmul.mubr.bf16.gmra.mrb[104].mxu1 %v5589_v13  ;;  %v5646_v13 = vld [vmem:[%s5994_s30 + $0x5b8] ss:$36 sps:$4 sm:$0xff]  }
 0x1e0   : > { %3584 = vmatmul.mubr.bf16.gmra.mrb[40].mxu0 %v5590_v15  ;;  %3141 = vmatprep.mubr.bf16.mxu1 %v5592_v16  ;;  %v5650_v15 = vld [vmem:[%s5994_s30 + $0x2f0] ss:$36 sps:$4 sm:$0xff]  }
 0x1e1   : > { %3591 = vmatprep.mubr.bf16.mxu0 %v5594_v17  ;;  %v5648_v17 = vld [vmem:[%s5994_s30 + $0x604] ss:$36 sps:$4 sm:$0xff]  }
 0x1e7   : > { %3142 = vmatmul.mubr.bf16.gmra.mrb[108].mxu1 %v5596_v18 }
 0x1e8   : > { %3592 = vmatmul.mubr.bf16.gmra.mrb[44].mxu0 %v5597_v20  ;;  %3149 = vmatprep.mubr.bf16.mxu1 %v5598_v21  ;;  %v5652_v21 = vld [vmem:[%s5994_s30 + $0x338] ss:$36 sps:$4 sm:$0xff]  }
 0x1e9   : > { %3599 = vmatprep.mubr.bf16.mxu0 %v5600_v23 }
 0x1ef   : > { %3150 = vmatmul.mubr.bf16.gmra.mrb[112].mxu1 %v5602_v24  ;;  %v5651_v24 = vld [vmem:[%s5994_s30 + $0x600] ss:$36 sps:$4 sm:$0xff]  }
 0x1f0   : > { %3600 = vmatmul.mubr.bf16.gmra.mrb[48].mxu0 %v5603_v25  ;;  %3157 = vmatprep.mubr.bf16.mxu1 %v5604_v26  ;;  %v5655_v25 = vld [vmem:[%s5994_s30 + $0x380] ss:$36 sps:$4 sm:$0xff]  }
 0x1f1   : > { %3607 = vmatprep.mubr.bf16.mxu0 %v5606_v28  ;;  %v5653_v28 = vld [vmem:[%s5994_s30 + $0x64c] ss:$36 sps:$4 sm:$0xff]  }
 0x1f7   : > { %3158 = vmatmul.mubr.bf16.gmra.mrb[116].mxu1 %v5608_v29 }
 0x1f8   : > { %3608 = vmatmul.mubr.bf16.gmra.mrb[52].mxu0 %v5609_v31  ;;  %3165 = vmatprep.mubr.bf16.mxu1 %v5611_v32  ;;  %v5657_v32 = vld [vmem:[%s5994_s30 + $0x3c8] ss:$36 sps:$4 sm:$0xff]  }
 0x1f9   : > { %3615 = vmatprep.mubr.bf16.mxu0 %v5613_v1 }
 0x1ff   : > { %3166 = vmatmul.mubr.bf16.gmra.mrb[120].mxu1 %v5615_v33  ;;  %v5656_v33 = vld [vmem:[%s5994_s30 + $0x648] ss:$36 sps:$4 sm:$0xff]  }
 0x200   : > { %3616 = vmatmul.mubr.bf16.gmra.mrb[56].mxu0 %v5616_v34  ;;  %3173 = vmatprep.mubr.bf16.mxu1 %v5617_v35  ;;  %v5660_v34 = vld [vmem:[%s5994_s30 + $0x410] ss:$36 sps:$4 sm:$0xff]  }
 0x201   : > { %3623 = vmatprep.mubr.bf16.mxu0 %v5619_v37  ;;  %v5658_v37 = vld [vmem:[%s5994_s30 + $0x694] ss:$36 sps:$4 sm:$0xff]  }
 0x207   : > { %3174 = vmatmul.mubr.bf16.gmra.mrb[124].mxu1 %v5621_v38 }
 0x208   : > { %3624 = vmatmul.mubr.bf16.gmra.mrb[60].mxu0 %v5622_v40  ;;  %4709 = vmatprep.mubr.bf16.mxu1 %v5625_v41  ;;  %v5662_v41 = vld [vmem:[%s5994_s30 + $0x458] ss:$36 sps:$4 sm:$0xff]  }
 0x209   : > { %3631 = vmatprep.mubr.bf16.mxu0 %v5623_v42 }
 0x20f   : > { %4710 = vmatmul.mubr.bf16.vlgmr.msra.gmra.mrb[128].mxu1 %v5627_v6  ;;  %v5661_v6 = vld [vmem:[%s5994_s30 + $0x690] ss:$36 sps:$4 sm:$0xff]  }
 0x210   : > { %3632 = vmatmul.mubr.bf16.gmra.mrb[64].mxu0 %v5626_v43  ;;  %4713 = vmatprep.mubr.bf16.mxu1 %v5630_v45  ;;  %v5665_v43 = vld [vmem:[%s5994_s30 + $0x4a0] ss:$36 sps:$4 sm:$0xff]  }
 0x211   : > { %3639 = vmatprep.mubr.bf16.mxu0 %v5628_v46  ;;  %v5663_v46 = vld [vmem:[%s5994_s30 + $0x6dc] ss:$36 sps:$4 sm:$0xff]  }
 0x217   : > { %4714 = vmatmul.mubr.bf16.gmra.mrb[132].mxu1 %v5632_v47 }
 0x218   : > { %3640 = vmatmul.mubr.bf16.gmra.mrb[68].mxu0 %v5631_v50  ;;  %4717 = vmatprep.mubr.bf16.mxu1 %v5635_v51  ;;  %v5667_v51 = vld [vmem:[%s5994_s30 + $0x4e8] ss:$36 sps:$4 sm:$0xff]  }
 0x219   : > { %3647 = vmatprep.mubr.bf16.mxu0 %v5633_v53 }
 0x21f   : > { %4718 = vmatmul.mubr.bf16.gmra.mrb[136].mxu1 %v5637_v54  ;;  %v5666_v54 = vld [vmem:[%s5994_s30 + $0x6d8] ss:$36 sps:$4 sm:$0xff]  }
 0x220   : > { %3648 = vmatmul.mubr.bf16.gmra.mrb[72].mxu0 %v5636_v55  ;;  %4721 = vmatprep.mubr.bf16.mxu1 %v5640_v56  ;;  %v5670_v55 = vld [vmem:[%s5994_s30 + $0x530] ss:$36 sps:$4 sm:$0xff]  }
 0x221   : > { %3655 = vmatprep.mubr.bf16.mxu0 %v5638_v58  ;;  %v5668_v58 = vld [vmem:[%s5994_s30 + $0x724] ss:$36 sps:$4 sm:$0xff]  }
 0x222   : > { %v6540_v59 = vpop.f32.mrb[32].mxu1 }
 0x223   : > { %v2993_v61 = vpop.f32.mrb[33].mxu1 }
 0x224   : > { %v6543_v63 = vpop.f32.mrb[34].mxu1 }
 0x225   : > { %v2996_v4 = vpop.f32.mrb[35].mxu1 }
 0x226   : > { %v5671_v4 = vld [vmem:[%s5994_s30 + $0x720] ss:$36 sps:$4 sm:$0xff]  }
 0x227   : > { %4722 = vmatmul.mubr.bf16.gmra.mrb[140].mxu1 %v5642_v62 }
 0x228   : > { %3656 = vmatmul.mubr.bf16.gmra.mrb[76].mxu0 %v5641_v0  ;;  %4725 = vmatprep.mubr.bf16.mxu1 %v5645_v3  ;;  %v5672_v0 = vld [vmem:[%s5994_s30 + $0x578] ss:$36 sps:$4 sm:$0xff]  }
 0x229   : > { %3663 = vmatprep.mubr.bf16.mxu0 %v5643_v7  ;;  %v5675_v7 = vld [vmem:[%s5994_s30 + $0x5c0] ss:$36 sps:$4 sm:$0xff]  }
 0x22a   : > { %v6548_v8 = vpop.f32.mrb[36].mxu1 }
 0x22b   : > { %v3001_v9 = vpop.f32.mrb[37].mxu1 }
 0x22c   : > { %v6551_v12 = vpop.f32.mrb[38].mxu1 }
 0x22d   : > { %v3004_v16 = vpop.f32.mrb[39].mxu1 }
 0x22e   : > { %v5677_v16 = vld [vmem:[%s5994_s30 + $0x608] ss:$36 sps:$4 sm:$0xff]  }
 0x22f   : > { %4726 = vmatmul.mubr.bf16.gmra.mrb[144].mxu1 %v5647_v10  ;;  %v5673_v10 = vld [vmem:[%s5994_s30 + $0x76c] ss:$36 sps:$4 sm:$0xff]  }
 0x230   : > { %3664 = vmatmul.mubr.bf16.gmra.mrb[80].mxu0 %v5646_v13  ;;  %4729 = vmatprep.mubr.bf16.mxu1 %v5650_v15 }
 0x231   : > { %3671 = vmatprep.mubr.bf16.mxu0 %v5648_v17 }
 0x232   : > { %v6556_v18 = vpop.f32.mrb[40].mxu1 }
 0x233   : > { %v3009_v20 = vpop.f32.mrb[41].mxu1 }
 0x234   : > { %v6559_v23 = vpop.f32.mrb[42].mxu1  ;;  %v5676_v20 = vld [vmem:[%s5994_s30 + $0x768] ss:$36 sps:$4 sm:$0xff]  }
 0x235   : > { %v3012_v26 = vpop.f32.mrb[43].mxu1 }
 0x236   : > { %v6607_v26 = vld [vmem:[%s7067_s2] ss:$0 sm:$0xff] }
 0x237   : > { %4730 = vmatmul.mubr.bf16.gmra.mrb[148].mxu1 %v5652_v21  ;;  %v5680_v21 = vld [vmem:[%s5994_s30 + $0x650] ss:$36 sps:$4 sm:$0xff]  }
 0x238   : > { %3672 = vmatmul.mubr.bf16.gmra.mrb[84].mxu0 %v5651_v24  ;;  %4733 = vmatprep.mubr.bf16.mxu1 %v5655_v25  ;;  %v5678_v25 = vld [vmem:[%s5994_s30 + $0x7b4] ss:$36 sps:$4 sm:$0xff]  }
 0x239   : > { %3679 = vmatprep.mubr.bf16.mxu0 %v5653_v28  ;;  %v2639_v28 = vadd.f32 %v6607_v26, %v6358_v49 }
 0x23a   : > { %v6564_v29 = vpop.f32.mrb[44].mxu1 }
 0x23b   : > { %v3017_v31 = vpop.f32.mrb[45].mxu1 }
 0x23c   : > { %v6567_v1 = vpop.f32.mrb[46].mxu1 }
 0x23d   : > { %v3020_v35 = vpop.f32.mrb[47].mxu1 }
 0x23e   : > { %v2642_v35 = vadd.f32 %v6607_v26, %v6361_v52  ;;  %v2647_v52 = vadd.f32 %v6607_v26, %v6366_v57 }
 0x23f   : > { %4734 = vmatmul.mubr.bf16.gmra.mrb[152].mxu1 %v5657_v32 }
 0x240   : > { %3680 = vmatmul.mubr.bf16.gmra.mrb[88].mxu0 %v5656_v33  ;;  %4737 = vmatprep.mubr.bf16.mxu1 %v5660_v34  ;;  %v5682_v34 = vld [vmem:[%s5994_s30 + $0x698] ss:$36 sps:$4 sm:$0xff]  }
 0x241   : > { %3687 = vmatprep.mubr.bf16.mxu0 %v5658_v37 }
 0x242   : > { %v6572_v38 = vpop.f32.mrb[48].mxu1 }
 0x243   : > { %v3025_v40 = vpop.f32.mrb[49].mxu1 }
 0x244   : > { %v6575_v42 = vpop.f32.mrb[50].mxu1 }
 0x245   : > { %v3028_v45 = vpop.f32.mrb[51].mxu1 }
 0x247   : > { %4738 = vmatmul.mubr.bf16.gmra.mrb[156].mxu1 %v5662_v41 }
 0x248   : > { %3688 = vmatmul.mubr.bf16.gmra.mrb[92].mxu0 %v5661_v6  ;;  %4741 = vmatprep.mubr.bf16.mxu1 %v5665_v43  ;;  %v5681_v6 = vld [vmem:[%s5994_s30 + $0x7b0] ss:$36 sps:$4 sm:$0xff]   ;;  %v5685_v43 = vld [vmem:[%s5994_s30 + $0x6e0] ss:$36 sps:$4 sm:$0xff]  }
 0x249   : > { %3695 = vmatprep.mubr.bf16.mxu0 %v5663_v46 }
 0x24a   : > { %v6580_v47 = vpop.f32.mrb[52].mxu1 }
 0x24b   : > { %v3033_v50 = vpop.f32.mrb[53].mxu1 }
 0x24c   : > { %v6583_v53 = vpop.f32.mrb[54].mxu1  ;;  %v5683_v50 = vld [vmem:[%s5994_s30 + $0x7fc] ss:$36 sps:$4 sm:$0xff]  }
 0x24d   : > { %v3036_v56 = vpop.f32.mrb[55].mxu1 }
 0x24f   : > { %4742 = vmatmul.mubr.bf16.gmra.mrb[160].mxu1 %v5667_v51 }
 0x250   : > { %3696 = vmatmul.mubr.bf16.gmra.mrb[96].mxu0 %v5666_v54  ;;  %4745 = vmatprep.mubr.bf16.mxu1 %v5670_v55 }
 0x251   : > { %3703 = vmatprep.mubr.bf16.mxu0 %v5668_v58  ;;  %v5687_v58 = vld [vmem:[%s5994_s30 + $0x728] ss:$36 sps:$4 sm:$0xff]  }
 0x252   : > { %v6588_v61 = vpop.f32.mrb[56].mxu1 }
 0x253   : > { %v3041_v62 = vpop.f32.mrb[57].mxu1 }
 0x254   : > { %v6591_v3 = vpop.f32.mrb[58].mxu1  ;;  %v2650_v62 = vadd.f32 %v6607_v26, %v6369_v60  ;;  %v2655_v60 = vadd.f32 %v6607_v26, %v6374_v2 }
 0x255   : > { %v3044_v9 = vpop.f32.mrb[59].mxu1 }
 0x256   : > { %v5686_v9 = vld [vmem:[%s5994_s30 + $0x7f8] ss:$36 sps:$4 sm:$0xff]  }
 0x257   : > { %4746 = vmatmul.mubr.bf16.gmra.mrb[164].mxu1 %v5672_v0 }
 0x258   : > { %3704 = vmatmul.mubr.bf16.gmra.mrb[100].mxu0 %v5671_v4  ;;  %4749 = vmatprep.mubr.bf16.mxu1 %v5675_v7 }
 0x259   : > { %3711 = vmatprep.mubr.bf16.mxu0 %v5673_v10  ;;  %v5690_v10 = vld [vmem:[%s5994_s30 + $0x770] ss:$36 sps:$4 sm:$0xff]  }
 0x25a   : > { %v6596_v13 = vpop.f32.mrb[60].mxu1 }
 0x25b   : > { %v3049_v15 = vpop.f32.mrb[61].mxu1 }
 0x25c   : > { %v6599_v17 = vpop.f32.mrb[62].mxu1 }
 0x25d   : > { %v3052_v24 = vpop.f32.mrb[63].mxu1 }
 0x25f   : > { %4750 = vmatmul.mubr.bf16.gmra.mrb[168].mxu1 %v5677_v16 }
 0x260   : > { %3712 = vmatmul.mubr.bf16.gmra.mrb[104].mxu0 %v5676_v20  ;;  %4753 = vmatprep.mubr.bf16.mxu1 %v5680_v21  ;;  %v5688_v20 = vld [vmem:[%s5994_s30 + $0x844] ss:$36 sps:$4 sm:$0xff]  }
 0x261   : > { %3719 = vmatprep.mubr.bf16.mxu0 %v5678_v25 }
 0x262   : > { %v6611_v31 = vpop.f32.mrb[64].mxu1 }
 0x263   : > { %v3505_v32 = vpop.f32.mrb[0].mxu0  ;;  %v3057_v33 = vpop.f32.mrb[65].mxu1 }
 0x264   : > { %v6616_v37 = vadd.f32 %v3505_v32, %v2639_v28  ;;  %v3507_v40 = vpop.f32.mrb[1].mxu0  ;;  %v6618_v41 = vpop.f32.mrb[66].mxu1  ;;  %v5692_v32 = vld [vmem:[%s5994_s30 + $0x7b8] ss:$36 sps:$4 sm:$0xff]   ;;  %v2658_v33 = vadd.f32 %v6607_v26, %v6377_v5  ;;  %v2663_v5 = vadd.f32 %v6607_v26, %v6382_v11 }
 0x265   : > { %v3508_v45 = vpop.f32.mrb[2].mxu0  ;;  %v3060_v46 = vpop.f32.mrb[67].mxu1 }
 0x266   : > { %v6623_v49 = vadd.f32 %v3508_v45, %v2642_v35  ;;  %v3510_v51 = vpop.f32.mrb[3].mxu0 }
 0x267   : > { %4754 = vmatmul.mubr.bf16.gmra.mrb[172].mxu1 %v5682_v34 }
 0x268   : > { %3720 = vmatmul.mubr.bf16.gmra.mrb[108].mxu0 %v5681_v6  ;;  %4757 = vmatprep.mubr.bf16.mxu1 %v5685_v43  ;;  %v5691_v6 = vld [vmem:[%s5994_s30 + $0x840] ss:$36 sps:$4 sm:$0xff]  }
 0x269   : > { %3727 = vmatprep.mubr.bf16.mxu0 %v5683_v50  ;;  %v5695_v43 = vld [vmem:[%s5994_s30 + $0x800] ss:$36 sps:$4 sm:$0xff]   ;;  %v5693_v50 = vld [vmem:[%s5994_s30 + $0x88c] ss:$36 sps:$4 sm:$0xff]  }
 0x26a   : > { %v6627_v54 = vpop.f32.mrb[68].mxu1 }
 0x26b   : > { %v3513_v55 = vpop.f32.mrb[4].mxu0  ;;  %v3065_v56 = vpop.f32.mrb[69].mxu1 }
 0x26c   : > { %v6632_v0 = vadd.f32 %v3513_v55, %v2647_v52  ;;  %v3515_v4 = vpop.f32.mrb[5].mxu0  ;;  %v6634_v7 = vpop.f32.mrb[70].mxu1 }
 0x26d   : > { %v3516_v15 = vpop.f32.mrb[6].mxu0  ;;  %v3068_v16 = vpop.f32.mrb[71].mxu1 }
 0x26e   : > { %v6639_v57 = vadd.f32 %v3516_v15, %v2650_v62  ;;  %v3518_v21 = vpop.f32.mrb[7].mxu0  ;;  %v2666_v62 = vadd.f32 %v6607_v26, %v6385_v14  ;;  %v5696_v15 = vld [vmem:[%s5994_s30 + $0x888] ss:$36 sps:$4 sm:$0xff]   ;;  %v5700_v16 = vld [vmem:[%s5994_s30 + $0x890] ss:$36 sps:$4 sm:$0xff]   ;;  %v2671_v14 = vadd.f32 %v6607_v26, %v6390_v19  ;;  %v2679_v19 = vadd.f32 %v6607_v26, %v6398_v27 }
 0x26f   : > { %4758 = vmatmul.mubr.bf16.gmra.mrb[176].mxu1 %v5687_v58  ;;  %v5697_v58 = vld [vmem:[%s5994_s30 + $0x848] ss:$36 sps:$4 sm:$0xff]   ;;  %v2687_v27 = vadd.f32 %v6607_v26, %v6413_v36  ;;  %v2695_v36 = vadd.f32 %v6607_v26, %v6424_v44  ;;  %v4837_v44 = vadd.f32 %v6607_v26, %v6540_v59  ;;  %v4841_v59 = vadd.f32 %v6607_v26, %v6548_v8 }
 0x270   : > { %3728 = vmatmul.mubr.bf16.gmra.mrb[112].mxu0 %v5686_v9  ;;  %4761 = vmatprep.mubr.bf16.mxu1 %v5690_v10  ;;  %v4845_v8 = vadd.f32 %v6607_v26, %v6556_v18  ;;  %v4849_v18 = vadd.f32 %v6607_v26, %v6564_v29  ;;  %v4853_v29 = vadd.f32 %v6607_v26, %v6572_v38 }
 0x271   : > { %3735 = vmatprep.mubr.bf16.mxu0 %v5688_v20  ;;  %v4857_v38 = vadd.f32 %v6607_v26, %v6580_v47  ;;  %v4861_v47 = vadd.f32 %v6607_v26, %v6588_v61  ;;  %v4865_v61 = vadd.f32 %v6607_v26, %v6596_v13  ;;  %v4869_v13 = vadd.f32 %v6607_v26, %v6611_v31 }
 0x272   : > { %v6643_v24 = vpop.f32.mrb[72].mxu1 }
 0x273   : > { %v3521_v25 = vpop.f32.mrb[8].mxu0  ;;  %v3073_v28 = vpop.f32.mrb[73].mxu1 }
 0x274   : > { %v6648_v34 = vadd.f32 %v3521_v25, %v2655_v60  ;;  %v3523_v35 = vpop.f32.mrb[9].mxu0  ;;  %v6650_v40 = vpop.f32.mrb[74].mxu1  ;;  %v5698_v60 = vld [vmem:[%s5994_s30 + $0x8d4] ss:$36 sps:$4 sm:$0xff]  }
 0x275   : > { %v3524_v45 = vpop.f32.mrb[10].mxu0  ;;  %v3076_v46 = vpop.f32.mrb[75].mxu1  ;;  %v5702_v35 = vld [vmem:[%s5994_s30 + $0x8d8] ss:$36 sps:$4 sm:$0xff]  }
 0x276   : > { %v6655_v2 = vadd.f32 %v3524_v45, %v2658_v33  ;;  %v3526_v51 = vpop.f32.mrb[11].mxu0 }
 0x277   : > { %4762 = vmatmul.mubr.bf16.gmra.mrb[180].mxu1 %v5692_v32 }
 0x278   : > { %3736 = vmatmul.mubr.bf16.gmra.mrb[116].mxu0 %v5691_v6  ;;  %4765 = vmatprep.mubr.bf16.mxu1 %v5695_v43  ;;  %v2674_v6 = vadd.f32 %v6607_v26, %v6393_v22 }
 0x279   : > { %3743 = vmatprep.mubr.bf16.mxu0 %v5693_v50  ;;  %v5701_v50 = vld [vmem:[%s5994_s30 + $0x8d0] ss:$36 sps:$4 sm:$0xff]   ;;  %s4289_s30 = sshll.u32 %s7102_s9, 3 }
 0x27a   : > { %v6659_v52 = vpop.f32.mrb[76].mxu1  ;;  %s6843_s8 = scalar_lea.vmem %s7068_s3, %s4289_s30 }
 0x27b   : > { %v3529_v55 = vpop.f32.mrb[12].mxu0  ;;  %v3081_v56 = vpop.f32.mrb[77].mxu1 }
 0x27c   : > { %v6664_v4 = vadd.f32 %v3529_v55, %v2663_v5  ;;  %v3531_v9 = vpop.f32.mrb[13].mxu0  ;;  %v6666_v10 = vpop.f32.mrb[78].mxu1 }
 0x27d   : > { %v3532_v20 = vpop.f32.mrb[14].mxu0  ;;  %v3084_v21 = vpop.f32.mrb[79].mxu1  ;;  %v2682_v9 = vadd.f32 %v6607_v26, %v6401_v30  ;;  %v2690_v30 = vadd.f32 %v6607_v26, %v6416_v39  ;;  %v2698_v39 = vadd.f32 %v6607_v26, %v6430_v48  ;;  %v4839_v48 = vadd.f32 %v6607_v26, %v6543_v63 }
 0x27e   : > { %v6671_v11 = vadd.f32 %v3532_v20, %v2666_v62  ;;  %v3534_v25 = vpop.f32.mrb[15].mxu0  ;;  %v4843_v63 = vadd.f32 %v6607_v26, %v6551_v12  ;;  %v4847_v12 = vadd.f32 %v6607_v26, %v6559_v23  ;;  %v4851_v23 = vadd.f32 %v6607_v26, %v6567_v1 }
 0x27f   : > { %4766 = vmatmul.mubr.bf16.gmra.mrb[184].mxu1 %v5697_v58  ;;  %v4855_v1 = vadd.f32 %v6607_v26, %v6575_v42  ;;  %v4859_v42 = vadd.f32 %v6607_v26, %v6583_v53  ;;  %v4863_v53 = vadd.f32 %v6607_v26, %v6591_v3  ;;  %v4867_v3 = vadd.f32 %v6607_v26, %v6599_v17 }
 0x280   : > { %3744 = vmatmul.mubr.bf16.gmra.mrb[120].mxu0 %v5696_v15  ;;  %4769 = vmatprep.mubr.bf16.mxu1 %v5700_v16  ;;  %v4871_v17 = vadd.f32 %v6607_v26, %v6618_v41  ;;  %v4873_v41 = vadd.f32 %v6607_v26, %v6627_v54 }
 0x281   : > { %3751 = vmatprep.mubr.bf16.mxu0 %v5698_v60 }
 0x282   : > { %v6675_v28 = vpop.f32.mrb[80].mxu1 }
 0x283   : > { %v3537_v32 = vpop.f32.mrb[16].mxu0  ;;  %v3089_v33 = vpop.f32.mrb[81].mxu1 }
 0x284   : > { %v6680_v43 = vadd.f32 %v3537_v32, %v2671_v14  ;;  %v3539_v45 = vpop.f32.mrb[17].mxu0  ;;  %v6682_v46 = vpop.f32.mrb[82].mxu1 }
 0x285   : > { %v3540_v51 = vpop.f32.mrb[18].mxu0  ;;  %v3092_v5 = vpop.f32.mrb[83].mxu1 }
 0x286   : > { %v6685_v55 = vadd.f32 %v3540_v51, %v2674_v6  ;;  %v3542_v56 = vpop.f32.mrb[19].mxu0 }
 0x287   : > { %4770 = vmatmul.mubr.bf16.gmra.mrb[188].mxu1 %v5702_v35 }
 0x288   : > { %3752 = vmatmul.mubr.bf16.gmra.mrb[124].mxu0 %v5701_v50 }
 0x28a   : > { %v6689_v58 = vpop.f32.mrb[84].mxu1 }
 0x28b   : > { %v3545_v62 = vpop.f32.mrb[20].mxu0  ;;  %v3097_v22 = vpop.f32.mrb[85].mxu1 }
 0x28c   : > { %v6693_v15 = vadd.f32 %v3545_v62, %v2679_v19  ;;  %v3547_v16 = vpop.f32.mrb[21].mxu0  ;;  %v6695_v20 = vpop.f32.mrb[86].mxu1 }
 0x28d   : > { %v3548_v21 = vpop.f32.mrb[22].mxu0  ;;  %v3100_v60 = vpop.f32.mrb[87].mxu1 }
 0x28e   : > { %v6697_v25 = vadd.f32 %v3548_v21, %v2682_v9  ;;  %v3550_v14 = vpop.f32.mrb[23].mxu0 }
 0x292   : > { %v6701_v32 = vpop.f32.mrb[88].mxu1 }
 0x293   : > { %v3553_v33 = vpop.f32.mrb[24].mxu0  ;;  %v3105_v35 = vpop.f32.mrb[89].mxu1 }
 0x294   : > { %v6705_v6 = vadd.f32 %v3553_v33, %v2687_v27  ;;  %v3555_v45 = vpop.f32.mrb[25].mxu0  ;;  %v6707_v50 = vpop.f32.mrb[90].mxu1 }
 0x295   : > { %v3556_v51 = vpop.f32.mrb[26].mxu0  ;;  %v3108_v5 = vpop.f32.mrb[91].mxu1 }
 0x296   : > { %v6709_v56 = vadd.f32 %v3556_v51, %v2690_v30  ;;  %v3558_v19 = vpop.f32.mrb[27].mxu0 }
 0x29a   : > { %v6713_v62 = vpop.f32.mrb[92].mxu1 }
 0x29b   : > { %v3561_v22 = vpop.f32.mrb[28].mxu0  ;;  %v3113_v9 = vpop.f32.mrb[93].mxu1 }
 0x29c   : > { %v6717_v16 = vadd.f32 %v3561_v22, %v2695_v36  ;;  %v3563_v21 = vpop.f32.mrb[29].mxu0  ;;  %v6719_v60 = vpop.f32.mrb[94].mxu1 }
 0x29d   : > { %v3564_v14 = vpop.f32.mrb[30].mxu0  ;;  %v3116_v27 = vpop.f32.mrb[95].mxu1 }
 0x29e   : > { %v6721_v33 = vadd.f32 %v3564_v14, %v2698_v39  ;;  %v3566_v35 = vpop.f32.mrb[31].mxu0 }
 0x2a2   : > { %v6725_v30 = vpop.f32.mrb[96].mxu1 }
 0x2a3   : > { %v3569_v45 = vpop.f32.mrb[32].mxu0  ;;  %v3121_v51 = vpop.f32.mrb[97].mxu1 }
 0x2a4   : > { %v6729_v5 = vadd.f32 %v4837_v44, %v3569_v45  ;;  %v3571_v19 = vpop.f32.mrb[33].mxu0  ;;  %v6731_v36 = vpop.f32.mrb[98].mxu1 }
 0x2a5   : > { %7069 = vst [vmem:[#allocation2_spill] sm:$0xff] %v6731_v36  ;;  %v3572_v22 = vpop.f32.mrb[34].mxu0  ;;  %v3124_v9 = vpop.f32.mrb[99].mxu1 }
 0x2a6   : > { %v6733_v39 = vadd.f32 %v4839_v48, %v3572_v22  ;;  %v3574_v21 = vpop.f32.mrb[35].mxu0 }
 0x2aa   : > { %v6737_v14 = vpop.f32.mrb[100].mxu1 }
 0x2ab   : > { %7070 = vst [vmem:[#allocation3_spill] sm:$0xff] %v6737_v14  ;;  %v3577_v27 = vpop.f32.mrb[36].mxu0  ;;  %v3129_v35 = vpop.f32.mrb[101].mxu1 }
 0x2ac   : > { %v6741_v44 = vadd.f32 %v4841_v59, %v3577_v27  ;;  %v3579_v45 = vpop.f32.mrb[37].mxu0  ;;  %v6743_v51 = vpop.f32.mrb[102].mxu1 }
 0x2ad   : > { %7071 = vst [vmem:[#allocation4_spill] sm:$0xff] %v6743_v51  ;;  %v3580_v19 = vpop.f32.mrb[38].mxu0  ;;  %v3132_v9 = vpop.f32.mrb[103].mxu1 }
 0x2ae   : > { %v6745_v48 = vadd.f32 %v4843_v63, %v3580_v19  ;;  %v3582_v22 = vpop.f32.mrb[39].mxu0 }
 0x2b2   : > { %v6749_v21 = vpop.f32.mrb[104].mxu1 }
 0x2b3   : > { %7072 = vst [vmem:[#allocation5_spill] sm:$0xff] %v6749_v21  ;;  %v3585_v14 = vpop.f32.mrb[40].mxu0  ;;  %v3137_v35 = vpop.f32.mrb[105].mxu1 }
 0x2b4   : > { %v6753_v59 = vadd.f32 %v4845_v8, %v3585_v14  ;;  %v3587_v27 = vpop.f32.mrb[41].mxu0  ;;  %v6755_v45 = vpop.f32.mrb[106].mxu1 }
 0x2b5   : > { %7073 = vst [vmem:[#allocation6_spill] sm:$0xff] %v6755_v45  ;;  %v3588_v51 = vpop.f32.mrb[42].mxu0  ;;  %v3140_v9 = vpop.f32.mrb[107].mxu1 }
 0x2b6   : > { %v6757_v63 = vadd.f32 %v4847_v12, %v3588_v51  ;;  %v3590_v19 = vpop.f32.mrb[43].mxu0 }
 0x2ba   : > { %v6761_v22 = vpop.f32.mrb[108].mxu1 }
 0x2bb   : > { %7074 = vst [vmem:[#allocation7_spill] sm:$0xff] %v6761_v22  ;;  %v3593_v21 = vpop.f32.mrb[44].mxu0  ;;  %v3145_v35 = vpop.f32.mrb[109].mxu1 }
 0x2bc   : > { %v6765_v14 = vadd.f32 %v4849_v18, %v3593_v21  ;;  %v3595_v8 = vpop.f32.mrb[45].mxu0  ;;  %v6767_v27 = vpop.f32.mrb[110].mxu1 }
 0x2bd   : > { %7075 = vst [vmem:[#allocation8_spill] sm:$0xff] %v6767_v27  ;;  %v3596_v45 = vpop.f32.mrb[46].mxu0  ;;  %v3148_v9 = vpop.f32.mrb[111].mxu1 }
 0x2be   : > { %v6769_v51 = vadd.f32 %v4851_v23, %v3596_v45  ;;  %v3598_v12 = vpop.f32.mrb[47].mxu0 }
 0x2c2   : > { %v6773_v19 = vpop.f32.mrb[112].mxu1 }
 0x2c3   : > { %7076 = vst [vmem:[#allocation9_spill] sm:$0xff] %v6773_v19  ;;  %v3601_v22 = vpop.f32.mrb[48].mxu0  ;;  %v3153_v35 = vpop.f32.mrb[113].mxu1 }
 0x2c4   : > { %v6777_v21 = vadd.f32 %v4853_v29, %v3601_v22  ;;  %v3603_v18 = vpop.f32.mrb[49].mxu0  ;;  %v6779_v8 = vpop.f32.mrb[114].mxu1 }
 0x2c5   : > { %7077 = vst [vmem:[#allocation10_spill] sm:$0xff] %v6779_v8  ;;  %v3604_v27 = vpop.f32.mrb[50].mxu0  ;;  %v3156_v9 = vpop.f32.mrb[115].mxu1 }
 0x2c6   : > { %v6781_v45 = vadd.f32 %v4855_v1, %v3604_v27  ;;  %v3606_v23 = vpop.f32.mrb[51].mxu0 }
 0x2ca   : > { %v6785_v12 = vpop.f32.mrb[116].mxu1 }
 0x2cb   : > { %7078 = vst [vmem:[#allocation11_spill] sm:$0xff] %v6785_v12  ;;  %v3609_v19 = vpop.f32.mrb[52].mxu0  ;;  %v3161_v35 = vpop.f32.mrb[117].mxu1 }
 0x2cc   : > { %v6789_v22 = vadd.f32 %v4857_v38, %v3609_v19  ;;  %v3611_v29 = vpop.f32.mrb[53].mxu0  ;;  %v6791_v18 = vpop.f32.mrb[118].mxu1 }
 0x2cd   : > { %7079 = vst [vmem:[#allocation12_spill] sm:$0xff] %v6791_v18  ;;  %v3612_v8 = vpop.f32.mrb[54].mxu0  ;;  %v3164_v9 = vpop.f32.mrb[119].mxu1 }
 0x2ce   : > { %v6793_v27 = vadd.f32 %v4859_v42, %v3612_v8  ;;  %v3614_v1 = vpop.f32.mrb[55].mxu0 }
 0x2d2   : > { %v6797_v23 = vpop.f32.mrb[120].mxu1 }
 0x2d3   : > { %7080 = vst [vmem:[#allocation13_spill] sm:$0xff] %v6797_v23  ;;  %v3617_v12 = vpop.f32.mrb[56].mxu0  ;;  %v3169_v35 = vpop.f32.mrb[121].mxu1 }
 0x2d4   : > { %v6801_v19 = vadd.f32 %v4861_v47, %v3617_v12  ;;  %v3619_v38 = vpop.f32.mrb[57].mxu0  ;;  %v6803_v29 = vpop.f32.mrb[122].mxu1 }
 0x2d5   : > { %7081 = vst [vmem:[#allocation14_spill] sm:$0xff] %v6803_v29  ;;  %v3620_v18 = vpop.f32.mrb[58].mxu0  ;;  %v3172_v9 = vpop.f32.mrb[123].mxu1 }
 0x2d6   : > { %v6805_v8 = vadd.f32 %v4863_v53, %v3620_v18  ;;  %v3622_v42 = vpop.f32.mrb[59].mxu0 }
 0x2da   : > { %v6809_v1 = vpop.f32.mrb[124].mxu1 }
 0x2db   : > { %7082 = vst [vmem:[#allocation15_spill] sm:$0xff] %v6809_v1  ;;  %v3625_v23 = vpop.f32.mrb[60].mxu0  ;;  %v3177_v35 = vpop.f32.mrb[125].mxu1 }
 0x2dc   : > { %v6813_v12 = vadd.f32 %v4865_v61, %v3625_v23  ;;  %v3627_v47 = vpop.f32.mrb[61].mxu0  ;;  %v6815_v38 = vpop.f32.mrb[126].mxu1 }
 0x2dd   : > { %v3628_v29 = vpop.f32.mrb[62].mxu0  ;;  %v3180_v9 = vpop.f32.mrb[127].mxu1 }
 0x2de   : > { %v6817_v18 = vadd.f32 %v4867_v3, %v3628_v29  ;;  %v3630_v53 = vpop.f32.mrb[63].mxu0 }
 0x2e2   : > { %v4711_v42 = vpop.f32.mrb[128].mxu1 }
 0x2e3   : > { %v3633_v1 = vpop.f32.mrb[64].mxu0  ;;  %v3803_v35 = vadd.f32 %v6632_v0, %v4711_v42  ;;  %v3794_v36 = vpop.f32.mrb[129].mxu1 }
 0x2e4   : > { %v6824_v23 = vadd.f32 %v4869_v13, %v3633_v1  ;;  %v3635_v61 = vpop.f32.mrb[65].mxu0  ;;  %v3795_v47 = vadd.f32 %v6616_v37, %v3794_v36  ;;  %v4712_v29 = vpop.f32.mrb[130].mxu1 }
 0x2e5   : > { %5703 = vtanh.f32 %v3803_v35  ;;  %v3636_v3 = vpop.f32.mrb[66].mxu0  ;;  %v3806_v9 = vadd.f32 %v6639_v57, %v4712_v29  ;;  %v3797_v31 = vpop.f32.mrb[131].mxu1  ;;  %v4875_v57 = vadd.f32 %v6607_v26, %v6634_v7 }
 0x2e6   : > { %5705 = vtanh.f32 %v3795_v47  ;;  %v6828_v53 = vadd.f32 %v4871_v17, %v3636_v3  ;;  %v3638_v0 = vpop.f32.mrb[67].mxu0  ;;  %v3798_v42 = vadd.f32 %v6623_v49, %v3797_v31 }
 0x2e7   : > { %5707 = vtanh.f32 %v3806_v9 }
 0x2e8   : > { %5709 = vtanh.f32 %v3798_v42  ;;  %v4877_v42 = vadd.f32 %v6607_v26, %v6643_v24 }
 0x2ea   : > { %v4715_v1 = vpop.f32.mrb[132].mxu1 }
 0x2eb   : > { %v3641_v37 = vpop.f32.mrb[68].mxu0  ;;  %v3819_v36 = vadd.f32 %v6664_v4, %v4715_v1  ;;  %v3810_v13 = vpop.f32.mrb[133].mxu1 }
 0x2ec   : > { %v6837_v35 = vadd.f32 %v4873_v41, %v3641_v37  ;;  %v3643_v17 = vpop.f32.mrb[69].mxu0  ;;  %v3811_v61 = vadd.f32 %v6648_v34, %v3810_v13  ;;  %v4716_v49 = vpop.f32.mrb[134].mxu1 }
 0x2ed   : > { %5711 = vtanh.f32 %v3819_v36  ;;  %v3644_v54 = vpop.f32.mrb[70].mxu0  ;;  %v3822_v4 = vadd.f32 %v6671_v11, %v4716_v49  ;;  %v3813_v47 = vpop.f32.mrb[135].mxu1 }
 0x2ee   : > { %5713 = vtanh.f32 %v3811_v61  ;;  %v6846_v7 = vadd.f32 %v4875_v57, %v3644_v54  ;;  %v3646_v29 = vpop.f32.mrb[71].mxu0  ;;  %v3814_v34 = vadd.f32 %v6655_v2, %v3813_v47  ;;  %v4879_v2 = vadd.f32 %v6607_v26, %v6650_v40 }
 0x2ef   : > { %v5704_v3 = vpop.eup %5703  ;;  %5715 = vtanh.f32 %v3822_v4 }
 0x2f0   : > { %v5706_v9 = vpop.eup %5705  ;;  %4115 = vst [vmem:[%s6843_s8 + $0x10] sm:$0xff] %v5704_v3  ;;  %5717 = vtanh.f32 %v3814_v34  ;;  %v4881_v34 = vadd.f32 %v6607_v26, %v6659_v52 }
 0x2f1   : > { %v5708_v31 = vpop.eup %5707  ;;  %4113 = vst [vmem:[%s6843_s8] sm:$0xff] %v5706_v9 }
 0x2f2   : > { %v5710_v0 = vpop.eup %5709  ;;  %4116 = vst [vmem:[%s6843_s8 + $0x18] sm:$0xff] %v5708_v31  ;;  %v4719_v11 = vpop.f32.mrb[136].mxu1 }
 0x2f3   : > { %4114 = vst [vmem:[%s6843_s8 + $0x8] sm:$0xff] %v5710_v0  ;;  %v3649_v41 = vpop.f32.mrb[72].mxu0  ;;  %v3835_v1 = vadd.f32 %v6693_v15, %v4719_v11  ;;  %v3826_v37 = vpop.f32.mrb[137].mxu1 }
 0x2f4   : > { %v6858_v36 = vadd.f32 %v4877_v42, %v3649_v41  ;;  %v3651_v13 = vpop.f32.mrb[73].mxu0  ;;  %v3827_v57 = vadd.f32 %v6680_v43, %v3826_v37  ;;  %v4720_v17 = vpop.f32.mrb[138].mxu1 }
 0x2f5   : > { %5719 = vtanh.f32 %v3835_v1  ;;  %v3652_v24 = vpop.f32.mrb[74].mxu0  ;;  %v3838_v61 = vadd.f32 %v6697_v25, %v4720_v17  ;;  %v3829_v49 = vpop.f32.mrb[139].mxu1 }
 0x2f6   : > { %5721 = vtanh.f32 %v3827_v57  ;;  %v6862_v15 = vadd.f32 %v4879_v2, %v3652_v24  ;;  %v3654_v54 = vpop.f32.mrb[75].mxu0  ;;  %v3830_v40 = vadd.f32 %v6685_v55, %v3829_v49  ;;  %v4883_v55 = vadd.f32 %v6607_v26, %v6666_v10 }
 0x2f7   : > { %v5712_v4 = vpop.eup %5711  ;;  %5723 = vtanh.f32 %v3838_v61  ;;  %v4885_v24 = vadd.f32 %v6607_v26, %v6675_v28 }
 0x2f8   : > { %v5714_v47 = vpop.eup %5713  ;;  %4119 = vst [vmem:[%s6843_s8 + $0x30] sm:$0xff] %v5712_v4  ;;  %5725 = vtanh.f32 %v3830_v40 }
 0x2f9   : > { %v5716_v43 = vpop.eup %5715  ;;  %4117 = vst [vmem:[%s6843_s8 + $0x20] sm:$0xff] %v5714_v47 }
 0x2fa   : > { %v5718_v29 = vpop.eup %5717  ;;  %4120 = vst [vmem:[%s6843_s8 + $0x38] sm:$0xff] %v5716_v43  ;;  %v4723_v25 = vpop.f32.mrb[140].mxu1 }
 0x2fb   : > { %4118 = vst [vmem:[%s6843_s8 + $0x28] sm:$0xff] %v5718_v29  ;;  %v3657_v3 = vpop.f32.mrb[76].mxu0  ;;  %v3851_v9 = vadd.f32 %v6717_v16, %v4723_v25  ;;  %v3842_v31 = vpop.f32.mrb[141].mxu1 }
 0x2fc   : > { %v6874_v0 = vadd.f32 %v4881_v34, %v3657_v3  ;;  %v3659_v42 = vpop.f32.mrb[77].mxu0  ;;  %v3843_v11 = vadd.f32 %v6705_v6, %v3842_v31  ;;  %v4724_v41 = vpop.f32.mrb[142].mxu1 }
 0x2fd   : > { %5727 = vtanh.f32 %v3851_v9  ;;  %v3660_v52 = vpop.f32.mrb[78].mxu0  ;;  %v3854_v1 = vadd.f32 %v6721_v33, %v4724_v41  ;;  %v3845_v37 = vpop.f32.mrb[143].mxu1 }
 0x2fe   : > { %5729 = vtanh.f32 %v3843_v11  ;;  %v6878_v16 = vadd.f32 %v4883_v55, %v3660_v52  ;;  %v3662_v2 = vpop.f32.mrb[79].mxu0  ;;  %v3846_v10 = vadd.f32 %v6709_v56, %v3845_v37  ;;  %v4887_v56 = vadd.f32 %v6607_v26, %v6682_v46 }
 0x2ff   : > { %v5720_v13 = vpop.eup %5719  ;;  %5731 = vtanh.f32 %v3854_v1  ;;  %v4889_v55 = vadd.f32 %v6607_v26, %v6689_v58 }
 0x300   : > { %v5722_v57 = vpop.eup %5721  ;;  %4123 = vst [vmem:[%s6843_s8 + $0x50] sm:$0xff] %v5720_v13  ;;  %5733 = vtanh.f32 %v3846_v10 }
 0x301   : > { %v5724_v6 = vpop.eup %5723  ;;  %4121 = vst [vmem:[%s6843_s8 + $0x40] sm:$0xff] %v5722_v57 }
 0x302   : > { %v5726_v17 = vpop.eup %5725  ;;  %4124 = vst [vmem:[%s6843_s8 + $0x58] sm:$0xff] %v5724_v6  ;;  %v4727_v33 = vpop.f32.mrb[144].mxu1 }
 0x303   : > { %4122 = vst [vmem:[%s6843_s8 + $0x48] sm:$0xff] %v5726_v17  ;;  %v3665_v61 = vpop.f32.mrb[80].mxu0  ;;  %v3867_v49 = vadd.f32 %v6741_v44, %v4727_v33  ;;  %v3858_v54 = vpop.f32.mrb[145].mxu1  ;;  %v4893_v33 = vadd.f32 %v6607_v26, %v6701_v32 }
 0x304   : > { %v6890_v40 = vadd.f32 %v4885_v24, %v3665_v61  ;;  %v3667_v4 = vpop.f32.mrb[81].mxu0  ;;  %v3859_v47 = vadd.f32 %v6729_v5, %v3858_v54  ;;  %v4728_v43 = vpop.f32.mrb[146].mxu1 }
 0x305   : > { %5735 = vtanh.f32 %v3867_v49  ;;  %v3668_v28 = vpop.f32.mrb[82].mxu0  ;;  %v3870_v29 = vadd.f32 %v6745_v48, %v4728_v43  ;;  %v3861_v34 = vpop.f32.mrb[147].mxu1 }
 0x306   : > { %5737 = vtanh.f32 %v3859_v47  ;;  %v6894_v44 = vadd.f32 %v4887_v56, %v3668_v28  ;;  %v3670_v25 = vpop.f32.mrb[83].mxu0  ;;  %v3862_v46 = vadd.f32 %v6733_v39, %v3861_v34  ;;  %v4891_v39 = vadd.f32 %v6607_v26, %v6695_v20 }
 0x307   : > { %v5728_v3 = vpop.eup %5727  ;;  %5739 = vtanh.f32 %v3870_v29 }
 0x308   : > { %v5730_v9 = vpop.eup %5729  ;;  %4127 = vst [vmem:[%s6843_s8 + $0x70] sm:$0xff] %v5728_v3  ;;  %5741 = vtanh.f32 %v3862_v46 }
 0x309   : > { %v5732_v5 = vpop.eup %5731  ;;  %4125 = vst [vmem:[%s6843_s8 + $0x60] sm:$0xff] %v5730_v9  ;;  %v4897_v9 = vadd.f32 %v6607_v26, %v6713_v62 }
 0x30a   : > { %v5734_v31 = vpop.eup %5733  ;;  %4128 = vst [vmem:[%s6843_s8 + $0x78] sm:$0xff] %v5732_v5  ;;  %v4731_v48 = vpop.f32.mrb[148].mxu1 }
 0x30b   : > { %4126 = vst [vmem:[%s6843_s8 + $0x68] sm:$0xff] %v5734_v31  ;;  %v3673_v42 = vpop.f32.mrb[84].mxu0  ;;  %v3883_v11 = vadd.f32 %v6765_v14, %v4731_v48  ;;  %v3874_v41 = vpop.f32.mrb[149].mxu1 }
 0x30c   : > { %v6906_v52 = vadd.f32 %v4889_v55, %v3673_v42  ;;  %v3675_v1 = vpop.f32.mrb[85].mxu0  ;;  %v3875_v37 = vadd.f32 %v6753_v59, %v3874_v41  ;;  %v4732_v2 = vpop.f32.mrb[150].mxu1 }
 0x30d   : > { %5743 = vtanh.f32 %v3883_v11  ;;  %v3676_v58 = vpop.f32.mrb[86].mxu0  ;;  %v3886_v10 = vadd.f32 %v6769_v51, %v4732_v2  ;;  %v3877_v13 = vpop.f32.mrb[151].mxu1 }
 0x30e   : > { %5745 = vtanh.f32 %v3875_v37  ;;  %v6910_v14 = vadd.f32 %v4891_v39, %v3676_v58  ;;  %v3678_v57 = vpop.f32.mrb[87].mxu0  ;;  %v3878_v20 = vadd.f32 %v6757_v63, %v3877_v13  ;;  %v4895_v63 = vadd.f32 %v6607_v26, %v6707_v50 }
 0x30f   : > { %v5736_v6 = vpop.eup %5735  ;;  %5747 = vtanh.f32 %v3886_v10  ;;  %v4901_v13 = vadd.f32 %v6607_v26, %v6725_v30 }
 0x310   : > { %v5738_v17 = vpop.eup %5737  ;;  %4131 = vst [vmem:[%s6843_s8 + $0x90] sm:$0xff] %v5736_v6  ;;  %5749 = vtanh.f32 %v3878_v20 }
 0x311   : > { %v5740_v59 = vpop.eup %5739  ;;  %4129 = vst [vmem:[%s6843_s8 + $0x80] sm:$0xff] %v5738_v17  ;;  %v7083_v17 = vld [vmem:[#allocation2_spill] sm:$0xff] }
 0x312   : > { %v5742_v24 = vpop.eup %5741  ;;  %4132 = vst [vmem:[%s6843_s8 + $0x98] sm:$0xff] %v5740_v59  ;;  %v4735_v51 = vpop.f32.mrb[152].mxu1 }
 0x313   : > { %4130 = vst [vmem:[%s6843_s8 + $0x88] sm:$0xff] %v5742_v24  ;;  %v3681_v61 = vpop.f32.mrb[88].mxu0  ;;  %v3899_v49 = vadd.f32 %v6789_v22, %v4735_v51  ;;  %v3890_v54 = vpop.f32.mrb[153].mxu1 }
 0x314   : > { %v6922_v56 = vadd.f32 %v4893_v33, %v3681_v61  ;;  %v3683_v4 = vpop.f32.mrb[89].mxu0  ;;  %v3891_v47 = vadd.f32 %v6777_v21, %v3890_v54  ;;  %v4736_v43 = vpop.f32.mrb[154].mxu1 }
 0x315   : > { %5751 = vtanh.f32 %v3899_v49  ;;  %v3684_v32 = vpop.f32.mrb[90].mxu0  ;;  %v3902_v28 = vadd.f32 %v6793_v27, %v4736_v43  ;;  %v3893_v29 = vpop.f32.mrb[155].mxu1 }
 0x316   : > { %5753 = vtanh.f32 %v3891_v47  ;;  %v6926_v22 = vadd.f32 %v4895_v63, %v3684_v32  ;;  %v3686_v34 = vpop.f32.mrb[91].mxu0  ;;  %v3894_v50 = vadd.f32 %v6781_v45, %v3893_v29  ;;  %v4899_v45 = vadd.f32 %v6607_v26, %v6719_v60  ;;  %v7084_v32 = vld [vmem:[#allocation3_spill] sm:$0xff] }
 0x317   : > { %v5744_v25 = vpop.eup %5743  ;;  %5755 = vtanh.f32 %v3902_v28  ;;  %v4905_v28 = vadd.f32 %v6607_v26, %v7084_v32 }
 0x318   : > { %v5746_v46 = vpop.eup %5745  ;;  %4135 = vst [vmem:[%s6843_s8 + $0xb0] sm:$0xff] %v5744_v25  ;;  %5757 = vtanh.f32 %v3894_v50  ;;  %v7085_v25 = vld [vmem:[#allocation4_spill] sm:$0xff] }
 0x319   : > { %v5748_v21 = vpop.eup %5747  ;;  %4133 = vst [vmem:[%s6843_s8 + $0xa0] sm:$0xff] %v5746_v46 }
 0x31a   : > { %v5750_v3 = vpop.eup %5749  ;;  %4136 = vst [vmem:[%s6843_s8 + $0xb8] sm:$0xff] %v5748_v21  ;;  %v4739_v27 = vpop.f32.mrb[156].mxu1 }
 0x31b   : > { %4134 = vst [vmem:[%s6843_s8 + $0xa8] sm:$0xff] %v5750_v3  ;;  %v3689_v5 = vpop.f32.mrb[92].mxu0  ;;  %v3915_v31 = vadd.f32 %v6813_v12, %v4739_v27  ;;  %v3906_v55 = vpop.f32.mrb[157].mxu1 }
 0x31c   : > { %v6938_v48 = vadd.f32 %v4897_v9, %v3689_v5  ;;  %v3691_v42 = vpop.f32.mrb[93].mxu0  ;;  %v3907_v11 = vadd.f32 %v6801_v19, %v3906_v55  ;;  %v4740_v41 = vpop.f32.mrb[158].mxu1 }
 0x31d   : > { %5759 = vtanh.f32 %v3915_v31  ;;  %v3692_v62 = vpop.f32.mrb[94].mxu0  ;;  %v3918_v39 = vadd.f32 %v6817_v18, %v4740_v41  ;;  %v3909_v1 = vpop.f32.mrb[159].mxu1 }
 0x31e   : > { %5761 = vtanh.f32 %v3907_v11  ;;  %v6942_v12 = vadd.f32 %v4899_v45, %v3692_v62  ;;  %v3694_v37 = vpop.f32.mrb[95].mxu0  ;;  %v3910_v60 = vadd.f32 %v6805_v8, %v3909_v1  ;;  %v4903_v8 = vadd.f32 %v6607_v26, %v7083_v17  ;;  %v7086_v62 = vld [vmem:[#allocation5_spill] sm:$0xff] }
 0x31f   : > { %v5752_v2 = vpop.eup %5751  ;;  %5763 = vtanh.f32 %v3918_v39  ;;  %v4909_v39 = vadd.f32 %v6607_v26, %v7086_v62 }
 0x320   : > { %v5754_v58 = vpop.eup %5753  ;;  %4139 = vst [vmem:[%s6843_s8 + $0xd0] sm:$0xff] %v5752_v2  ;;  %5765 = vtanh.f32 %v3910_v60  ;;  %v7087_v2 = vld [vmem:[#allocation6_spill] sm:$0xff] }
 0x321   : > { %v5756_v19 = vpop.eup %5755  ;;  %4137 = vst [vmem:[%s6843_s8 + $0xc0] sm:$0xff] %v5754_v58 }
 0x322   : > { %v5758_v10 = vpop.eup %5757  ;;  %4140 = vst [vmem:[%s6843_s8 + $0xd8] sm:$0xff] %v5756_v19  ;;  %v4743_v18 = vpop.f32.mrb[160].mxu1 }
 0x323   : > { %4138 = vst [vmem:[%s6843_s8 + $0xc8] sm:$0xff] %v5758_v10  ;;  %v3697_v57 = vpop.f32.mrb[96].mxu0  ;;  %v3931_v20 = vadd.f32 %v6837_v35, %v4743_v18  ;;  %v3922_v6 = vpop.f32.mrb[161].mxu1 }
 0x324   : > { %v6954_v59 = vadd.f32 %v4901_v13, %v3697_v57  ;;  %v3699_v24 = vpop.f32.mrb[97].mxu0  ;;  %v3923_v33 = vadd.f32 %v6824_v23, %v3922_v6  ;;  %v4744_v51 = vpop.f32.mrb[162].mxu1 }
 0x325   : > { %5767 = vtanh.f32 %v3931_v20  ;;  %v3700_v30 = vpop.f32.mrb[98].mxu0  ;;  %v3934_v61 = vadd.f32 %v6846_v7, %v4744_v51  ;;  %v3925_v49 = vpop.f32.mrb[163].mxu1  ;;  %v7088_v51 = vld [vmem:[#allocation7_spill] sm:$0xff] }
 0x326   : > { %5769 = vtanh.f32 %v3923_v33  ;;  %v6958_v35 = vadd.f32 %v4903_v8, %v3700_v30  ;;  %v3702_v54 = vpop.f32.mrb[99].mxu0  ;;  %v3926_v63 = vadd.f32 %v6828_v53, %v3925_v49  ;;  %v4907_v53 = vadd.f32 %v6607_v26, %v7085_v25 }
 0x327   : > { %v5760_v4 = vpop.eup %5759  ;;  %5771 = vtanh.f32 %v3934_v61 }
 0x328   : > { %v5762_v47 = vpop.eup %5761  ;;  %4143 = vst [vmem:[%s6843_s8 + $0xf0] sm:$0xff] %v5760_v4  ;;  %5773 = vtanh.f32 %v3926_v63  ;;  %v7089_v63 = vld [vmem:[#allocation8_spill] sm:$0xff] }
 0x329   : > { %v5764_v23 = vpop.eup %5763  ;;  %4141 = vst [vmem:[%s6843_s8 + $0xe0] sm:$0xff] %v5762_v47 }
 0x32a   : > { %v5766_v43 = vpop.eup %5765  ;;  %4144 = vst [vmem:[%s6843_s8 + $0xf8] sm:$0xff] %v5764_v23  ;;  %v4747_v7 = vpop.f32.mrb[164].mxu1 }
 0x32b   : > { %4142 = vst [vmem:[%s6843_s8 + $0xe8] sm:$0xff] %v5766_v43  ;;  %v3705_v29 = vpop.f32.mrb[100].mxu0  ;;  %v3947_v34 = vadd.f32 %v6874_v0, %v4747_v7  ;;  %v3938_v50 = vpop.f32.mrb[165].mxu1 }
 0x32c   : > { %v6970_v46 = vadd.f32 %v4905_v28, %v3705_v29  ;;  %v3707_v21 = vpop.f32.mrb[101].mxu0  ;;  %v3939_v3 = vadd.f32 %v6858_v36, %v3938_v50  ;;  %v4748_v9 = vpop.f32.mrb[166].mxu1 }
 0x32d   : > { %5775 = vtanh.f32 %v3947_v34  ;;  %v3708_v27 = vpop.f32.mrb[102].mxu0  ;;  %v3950_v5 = vadd.f32 %v6878_v16, %v4748_v9  ;;  %v3941_v31 = vpop.f32.mrb[167].mxu1  ;;  %v7090_v21 = vld [vmem:[#allocation9_spill] sm:$0xff] }
 0x32e   : > { %5777 = vtanh.f32 %v3939_v3  ;;  %v6974_v0 = vadd.f32 %v4907_v53, %v3708_v27  ;;  %v3710_v55 = vpop.f32.mrb[103].mxu0  ;;  %v3942_v45 = vadd.f32 %v6862_v15, %v3941_v31  ;;  %v6987_v15 = vld [vmem:[%s7067_s2] ss:$0 sm:$0xff] }
 0x32f   : > { %v5768_v42 = vpop.eup %5767  ;;  %5779 = vtanh.f32 %v3950_v5  ;;  %v4911_v58 = vadd.f32 %v6987_v15, %v7087_v2  ;;  %v4913_v30 = vadd.f32 %v6987_v15, %v7088_v51  ;;  %v4917_v3 = vadd.f32 %v6987_v15, %v7090_v21  ;;  %v7091_v31 = vld [vmem:[#allocation10_spill] sm:$0xff]  ;;  %v7092_v2 = vld [vmem:[#allocation11_spill] sm:$0xff] }
 0x330   : > { %v5770_v11 = vpop.eup %5769  ;;  %4147 = vst [vmem:[%s6843_s8 + $0x110] sm:$0xff] %v5768_v42  ;;  %5781 = vtanh.f32 %v3942_v45 }
 0x331   : > { %v5772_v36 = vpop.eup %5771  ;;  %4145 = vst [vmem:[%s6843_s8 + $0x100] sm:$0xff] %v5770_v11 }
 0x332   : > { %v5774_v41 = vpop.eup %5773  ;;  %4148 = vst [vmem:[%s6843_s8 + $0x118] sm:$0xff] %v5772_v36  ;;  %v4751_v16 = vpop.f32.mrb[168].mxu1 }
 0x333   : > { %4146 = vst [vmem:[%s6843_s8 + $0x108] sm:$0xff] %v5774_v41  ;;  %v3713_v1 = vpop.f32.mrb[104].mxu0  ;;  %v3963_v37 = vadd.f32 %v6906_v52, %v4751_v16  ;;  %v3954_v60 = vpop.f32.mrb[169].mxu1 }
 0x334   : > { %v6991_v19 = vadd.f32 %v4909_v39, %v3713_v1  ;;  %v3715_v10 = vpop.f32.mrb[105].mxu0  ;;  %v3955_v26 = vadd.f32 %v6890_v40, %v3954_v60  ;;  %v4752_v13 = vpop.f32.mrb[170].mxu1 }
 0x335   : > { %5783 = vtanh.f32 %v3963_v37  ;;  %v3716_v18 = vpop.f32.mrb[106].mxu0  ;;  %v3966_v52 = vadd.f32 %v6910_v14, %v4752_v13  ;;  %v3957_v57 = vpop.f32.mrb[171].mxu1 }
 0x336   : > { %5785 = vtanh.f32 %v3955_v26  ;;  %v6995_v20 = vadd.f32 %v4911_v58, %v3716_v18  ;;  %v3718_v6 = vpop.f32.mrb[107].mxu0  ;;  %v3958_v17 = vadd.f32 %v6894_v44, %v3957_v57  ;;  %v4915_v44 = vadd.f32 %v6987_v15, %v7089_v63  ;;  %v7093_v18 = vld [vmem:[#allocation12_spill] sm:$0xff] }
 0x337   : > { %v5776_v8 = vpop.eup %5775  ;;  %5787 = vtanh.f32 %v3966_v52  ;;  %v4921_v58 = vadd.f32 %v6987_v15, %v7092_v2 }
 0x338   : > { %v5778_v24 = vpop.eup %5777  ;;  %4151 = vst [vmem:[%s6843_s8 + $0x130] sm:$0xff] %v5776_v8  ;;  %5789 = vtanh.f32 %v3958_v17 }
 0x339   : > { %v5780_v40 = vpop.eup %5779  ;;  %4149 = vst [vmem:[%s6843_s8 + $0x120] sm:$0xff] %v5778_v24 }
 0x33a   : > { %v5782_v33 = vpop.eup %5781  ;;  %4152 = vst [vmem:[%s6843_s8 + $0x138] sm:$0xff] %v5780_v40  ;;  %v4755_v14 = vpop.f32.mrb[172].mxu1 }
 0x33b   : > { %4150 = vst [vmem:[%s6843_s8 + $0x128] sm:$0xff] %v5782_v33  ;;  %v3721_v61 = vpop.f32.mrb[108].mxu0  ;;  %v3979_v49 = vadd.f32 %v6938_v48, %v4755_v14  ;;  %v3970_v54 = vpop.f32.mrb[173].mxu1 }
 0x33c   : > { %v4914_v4 = vadd.f32 %v4913_v30, %v3721_v61  ;;  %v3723_v47 = vpop.f32.mrb[109].mxu0  ;;  %v3971_v23 = vadd.f32 %v6922_v56, %v3970_v54  ;;  %v4756_v43 = vpop.f32.mrb[174].mxu1  ;;  %v7094_v54 = vld [vmem:[#allocation13_spill] sm:$0xff] }
 0x33d   : > { %5791 = vtanh.f32 %v3979_v49  ;;  %v3724_v32 = vpop.f32.mrb[110].mxu0  ;;  %v3982_v28 = vadd.f32 %v6942_v12, %v4756_v43  ;;  %v3973_v7 = vpop.f32.mrb[175].mxu1  ;;  %v4925_v63 = vadd.f32 %v6987_v15, %v7094_v54  ;;  %v7095_v43 = vld [vmem:[#allocation14_spill] sm:$0xff] }
 0x33e   : > { %5793 = vtanh.f32 %v3971_v23  ;;  %v4916_v48 = vadd.f32 %v4915_v44, %v3724_v32  ;;  %v3726_v29 = vpop.f32.mrb[111].mxu0  ;;  %v3974_v34 = vadd.f32 %v6926_v22, %v3973_v7  ;;  %v4919_v22 = vadd.f32 %v6987_v15, %v7091_v31 }
 0x33f   : > { %v5784_v50 = vpop.eup %5783  ;;  %5795 = vtanh.f32 %v3982_v28 }
 0x340   : > { %v5786_v25 = vpop.eup %5785  ;;  %4155 = vst [vmem:[%s6843_s8 + $0x150] sm:$0xff] %v5784_v50  ;;  %5797 = vtanh.f32 %v3974_v34 }
 0x341   : > { %v5788_v56 = vpop.eup %5787  ;;  %4153 = vst [vmem:[%s6843_s8 + $0x140] sm:$0xff] %v5786_v25 }
 0x342   : > { %v5790_v53 = vpop.eup %5789  ;;  %4156 = vst [vmem:[%s6843_s8 + $0x158] sm:$0xff] %v5788_v56  ;;  %v4759_v12 = vpop.f32.mrb[176].mxu1 }
 0x343   : > { %4154 = vst [vmem:[%s6843_s8 + $0x148] sm:$0xff] %v5790_v53  ;;  %v3729_v9 = vpop.f32.mrb[112].mxu0  ;;  %v3995_v27 = vadd.f32 %v6970_v46, %v4759_v12  ;;  %v3986_v5 = vpop.f32.mrb[177].mxu1 }
 0x344   : > { %v4918_v55 = vadd.f32 %v4917_v3, %v3729_v9  ;;  %v3731_v45 = vpop.f32.mrb[113].mxu0  ;;  %v3987_v42 = vadd.f32 %v6954_v59, %v3986_v5  ;;  %v4760_v11 = vpop.f32.mrb[178].mxu1 }
 0x345   : > { %5799 = vtanh.f32 %v3995_v27  ;;  %v3732_v36 = vpop.f32.mrb[114].mxu0  ;;  %v3998_v41 = vadd.f32 %v6974_v0, %v4760_v11  ;;  %v3989_v62 = vpop.f32.mrb[179].mxu1  ;;  %v7096_v27 = vld [vmem:[#allocation15_spill] sm:$0xff]  ;;  %v4931_v45 = vadd.f32 %v6987_v15, %v6815_v38 }
 0x346   : > { %5801 = vtanh.f32 %v3987_v42  ;;  %v4920_v46 = vadd.f32 %v4919_v22, %v3732_v36  ;;  %v3734_v39 = vpop.f32.mrb[115].mxu0  ;;  %v3990_v16 = vadd.f32 %v6958_v35, %v3989_v62  ;;  %v4923_v35 = vadd.f32 %v6987_v15, %v7093_v18 }
 0x347   : > { %v5792_v1 = vpop.eup %5791  ;;  %5803 = vtanh.f32 %v3998_v41  ;;  %v4929_v5 = vadd.f32 %v6987_v15, %v7096_v27 }
 0x348   : > { %v5794_v37 = vpop.eup %5793  ;;  %4159 = vst [vmem:[%s6843_s8 + $0x170] sm:$0xff] %v5792_v1  ;;  %5805 = vtanh.f32 %v3990_v16 }
 0x349   : > { %v5796_v59 = vpop.eup %5795  ;;  %4157 = vst [vmem:[%s6843_s8 + $0x160] sm:$0xff] %v5794_v37 }
 0x34a   : > { %v5798_v60 = vpop.eup %5797  ;;  %4160 = vst [vmem:[%s6843_s8 + $0x178] sm:$0xff] %v5796_v59  ;;  %v4763_v0 = vpop.f32.mrb[180].mxu1 }
 0x34b   : > { %4158 = vst [vmem:[%s6843_s8 + $0x168] sm:$0xff] %v5798_v60  ;;  %v3737_v10 = vpop.f32.mrb[116].mxu0  ;;  %v4011_v26 = vadd.f32 %v4914_v4, %v4763_v0  ;;  %v4002_v13 = vpop.f32.mrb[181].mxu1 }
 0x34c   : > { %v4922_v52 = vadd.f32 %v4921_v58, %v3737_v10  ;;  %v3739_v57 = vpop.f32.mrb[117].mxu0  ;;  %v4003_v6 = vadd.f32 %v6991_v19, %v4002_v13  ;;  %v4764_v17 = vpop.f32.mrb[182].mxu1 }
 0x34d   : > { %5807 = vtanh.f32 %v4011_v26  ;;  %v3740_v8 = vpop.f32.mrb[118].mxu0  ;;  %v4014_v24 = vadd.f32 %v4916_v48, %v4764_v17  ;;  %v4005_v40 = vpop.f32.mrb[183].mxu1 }
 0x34e   : > { %5809 = vtanh.f32 %v4003_v6  ;;  %v4924_v33 = vadd.f32 %v4923_v35, %v3740_v8  ;;  %v3742_v51 = vpop.f32.mrb[119].mxu0  ;;  %v4006_v30 = vadd.f32 %v6995_v20, %v4005_v40  ;;  %v4927_v20 = vadd.f32 %v6987_v15, %v7095_v43 }
 0x34f   : > { %v5800_v14 = vpop.eup %5799  ;;  %5811 = vtanh.f32 %v4014_v24 }
 0x350   : > { %v5802_v61 = vpop.eup %5801  ;;  %4163 = vst [vmem:[%s6843_s8 + $0x190] sm:$0xff] %v5800_v14  ;;  %5813 = vtanh.f32 %v4006_v30 }
 0x351   : > { %v5804_v49 = vpop.eup %5803  ;;  %4161 = vst [vmem:[%s6843_s8 + $0x180] sm:$0xff] %v5802_v61 }
 0x352   : > { %v5806_v19 = vpop.eup %5805  ;;  %4164 = vst [vmem:[%s6843_s8 + $0x198] sm:$0xff] %v5804_v49  ;;  %v4767_v44 = vpop.f32.mrb[184].mxu1 }
 0x353   : > { %4162 = vst [vmem:[%s6843_s8 + $0x188] sm:$0xff] %v5806_v19  ;;  %v3745_v4 = vpop.f32.mrb[120].mxu0  ;;  %v4027_v47 = vadd.f32 %v4922_v52, %v4767_v44  ;;  %v4018_v23 = vpop.f32.mrb[185].mxu1 }
 0x354   : > { %v4926_v32 = vadd.f32 %v4925_v63, %v3745_v4  ;;  %v3747_v28 = vpop.f32.mrb[121].mxu0  ;;  %v4019_v7 = vadd.f32 %v4918_v55, %v4018_v23  ;;  %v4768_v48 = vpop.f32.mrb[186].mxu1 }
 0x355   : > { %5815 = vtanh.f32 %v4027_v47  ;;  %v3748_v29 = vpop.f32.mrb[122].mxu0  ;;  %v4030_v34 = vadd.f32 %v4924_v33, %v4768_v48  ;;  %v4021_v50 = vpop.f32.mrb[187].mxu1 }
 0x356   : > { %5817 = vtanh.f32 %v4019_v7  ;;  %v4928_v25 = vadd.f32 %v4927_v20, %v3748_v29  ;;  %v3750_v56 = vpop.f32.mrb[123].mxu0  ;;  %v4022_v53 = vadd.f32 %v4920_v46, %v4021_v50 }
 0x357   : > { %v5808_v21 = vpop.eup %5807  ;;  %5819 = vtanh.f32 %v4030_v34 }
 0x358   : > { %v5810_v3 = vpop.eup %5809  ;;  %4167 = vst [vmem:[%s6843_s8 + $0x1b0] sm:$0xff] %v5808_v21  ;;  %5821 = vtanh.f32 %v4022_v53 }
 0x359   : > { %v5812_v12 = vpop.eup %5811  ;;  %4165 = vst [vmem:[%s6843_s8 + $0x1a0] sm:$0xff] %v5810_v3 }
 0x35a   : > { %v5814_v9 = vpop.eup %5813  ;;  %4168 = vst [vmem:[%s6843_s8 + $0x1b8] sm:$0xff] %v5812_v12  ;;  %v4771_v31 = vpop.f32.mrb[188].mxu1 }
 0x35b   : > { %4166 = vst [vmem:[%s6843_s8 + $0x1a8] sm:$0xff] %v5814_v9  ;;  %v3753_v22 = vpop.f32.mrb[124].mxu0  ;;  %v4034_v55 = vpop.f32.mrb[189].mxu1 }
 0x35c   : > { %v4930_v42 = vadd.f32 %v4929_v5, %v3753_v22  ;;  %v3755_v11 = vpop.f32.mrb[125].mxu0  ;;  %v4035_v36 = vadd.f32 %v4926_v32, %v4034_v55  ;;  %v4772_v41 = vpop.f32.mrb[190].mxu1 }
 0x35d   : > { %v3756_v62 = vpop.f32.mrb[126].mxu0  ;;  %v4037_v46 = vpop.f32.mrb[191].mxu1 }
 0x35e   : > { %v4043_v39 = vadd.f32 %v4930_v42, %v4771_v31  ;;  %5823 = vtanh.f32 %v4035_v36  ;;  %v4932_v16 = vadd.f32 %v4931_v45, %v3756_v62  ;;  %v3758_v1 = vpop.f32.mrb[127].mxu0  ;;  %v4038_v37 = vadd.f32 %v4928_v25, %v4037_v46 }
 0x35f   : > { %v5816_v59 = vpop.eup %5815 }
 0x360   : > { %v5818_v60 = vpop.eup %5817  ;;  %4171 = vst [vmem:[%s6843_s8 + $0x1d0] sm:$0xff] %v5816_v59  ;;  %5825 = vtanh.f32 %v4043_v39  ;;  %v4046_v38 = vadd.f32 %v4932_v16, %v4772_v41 }
 0x361   : > { %v5820_v15 = vpop.eup %5819  ;;  %4169 = vst [vmem:[%s6843_s8 + $0x1c0] sm:$0xff] %v5818_v60  ;;  %5827 = vtanh.f32 %v4038_v37 }
 0x362   : > { %v5822_v2 = vpop.eup %5821  ;;  %4172 = vst [vmem:[%s6843_s8 + $0x1d8] sm:$0xff] %v5820_v15  ;;  %5829 = vtanh.f32 %v4046_v38 }
 0x363   : > { %4170 = vst [vmem:[%s6843_s8 + $0x1c8] sm:$0xff] %v5822_v2 }
 0x368   : > { %v5824_v58 = vpop.eup %5823 }
 0x369   : > { %4173 = vst [vmem:[%s6843_s8 + $0x1e0] sm:$0xff] %v5824_v58 }
 0x36a   : > { %v5826_v0 = vpop.eup %5825 }
 0x36b   : > { %v5828_v10 = vpop.eup %5827  ;;  %4175 = vst [vmem:[%s6843_s8 + $0x1f0] sm:$0xff] %v5826_v0 }
 0x36c   : > { %v5830_v26 = vpop.eup %5829  ;;  %4174 = vst [vmem:[%s6843_s8 + $0x1e8] sm:$0xff] %v5828_v10 }
 0x36d   : > { %4176 = vst [vmem:[%s6843_s8 + $0x1f8] sm:$0xff] %v5830_v26 }
 0x36e PF: > { %s13_s14 = sadd.s32 1, %s5854_s14   ;;  %s7097_s12 = smov %s5850_s13 }
 0x36f   : > { %p10_p5 = scmp.ge.s32.totalorder %s13_s14, 6   ;;  %s7098_s13 = smov %s7100_s15 }
 0x371   :  { %12 = sbr.rel (!%p10_p5) target bundleno = 2 (0x2), region = 68 }

</bundles_post_ra>
